<compile_context>
chip_gen: v7x
topology: tpu7x:2x2x1
jax: 0.10.0
libtpu: 0.0.40
codegen_flags: <defaults>
</compile_context>

<pallas_src>
import functools

import jax
import jax.numpy as jnp
from jax import lax
from jax.experimental import pallas as pl
from jax.experimental.pallas import tpu as pltpu


# ---------------------------------------------------------------------------
# Fused Pallas kernel: one grid step == one sample.
# ---------------------------------------------------------------------------
def _residual_block_kernel(x_ref, w1_ref, b1_ref, w2_ref, b2_ref, o_ref,
                           pad_ref, *, eps):
    H, W, C = x_ref.shape
    P = H * W

    def reflect_pad_write(a_bf16):
        # ReflectionPad2d(1): fill pad_ref (H+2, W+2, C) from a_bf16 (H, W, C).
        pad_ref[1:H + 1, 1:W + 1, :] = a_bf16
        pad_ref[0:1, 1:W + 1, :] = a_bf16[1:2]                 # top row  <- row 1
        pad_ref[H + 1:H + 2, 1:W + 1, :] = a_bf16[H - 2:H - 1]  # bottom   <- row H-2
        # Columns (incl. corners) reflect already-padded columns 2 / W-1.
        pad_ref[:, 0:1, :] = pad_ref[:, 2:3, :]
        pad_ref[:, W + 1:W + 2, :] = pad_ref[:, W - 1:W, :]

    def conv3x3(w_ref, b_ref):
        # Implicit GEMM: 9 shifted (P, C) x (C, C) bf16 matmuls, f32 accumulate.
        acc = None
        for t in range(9):
            di, dj = divmod(t, 3)
            tap = pad_ref[di:di + H, dj:dj + W, :].reshape(P, C)
            part = jnp.dot(tap, w_ref[t], preferred_element_type=jnp.float32)
            acc = part if acc is None else acc + part
        return acc + b_ref[...]                                 # (P, C) f32

    def instance_norm(y):
        # One-pass stats in f32: var = E[y^2] - mean^2 (biased), eps = 1e-5.
        inv_p = 1.0 / P
        mean = jnp.sum(y, axis=0, keepdims=True) * inv_p
        var = jnp.sum(y * y, axis=0, keepdims=True) * inv_p - mean * mean
        return (y - mean) * lax.rsqrt(var + eps)

    x = x_ref[...]                                              # (H, W, C) f32
    reflect_pad_write(x.astype(jnp.bfloat16))
    y = conv3x3(w1_ref, b1_ref)
    a = jnp.maximum(instance_norm(y), 0.0)                      # IN + ReLU, f32
    reflect_pad_write(a.reshape(H, W, C).astype(jnp.bfloat16))  # reuse scratch
    z = instance_norm(conv3x3(w2_ref, b2_ref))
    o_ref[...] = (x + z.reshape(H, W, C)).astype(o_ref.dtype)   # residual add


# ---------------------------------------------------------------------------
# Wrapper: NCHW interface, weight re-layout, pallas_call plumbing.
# ---------------------------------------------------------------------------
def _weight_to_taps(w):
    # PyTorch conv weight (Cout, Cin, 3, 3) -> (9, Cin, Cout); tap t = di*3+dj.
    cout, cin, kh, kw = w.shape
    return jnp.transpose(w, (2, 3, 1, 0)).reshape(kh * kw, cin, cout)


def residual_block_pallas(x_nchw, w1, b1, w2, b2, *, eps=1e-5):
    N, C, H, W = x_nchw.shape
    x = jnp.transpose(x_nchw, (0, 2, 3, 1))                     # NHWC
    w1t = _weight_to_taps(w1).astype(jnp.bfloat16)              # (9, C, C)
    w2t = _weight_to_taps(w2).astype(jnp.bfloat16)
    b1r = b1.reshape(1, C).astype(jnp.float32)
    b2r = b2.reshape(1, C).astype(jnp.float32)

    kernel = functools.partial(_residual_block_kernel, eps=eps)
    out = pl.pallas_call(
        kernel,
        out_shape=jax.ShapeDtypeStruct((N, H, W, C), jnp.float32),
        grid_spec=pltpu.PrefetchScalarGridSpec(
            num_scalar_prefetch=0,
            grid=(N,),
            in_specs=[
                pl.BlockSpec((pl.Squeezed(), H, W, C), lambda n: (n, 0, 0, 0)),
                pl.BlockSpec((9, C, C), lambda n: (0, 0, 0)),
                pl.BlockSpec((1, C), lambda n: (0, 0)),
                pl.BlockSpec((9, C, C), lambda n: (0, 0, 0)),
                pl.BlockSpec((1, C), lambda n: (0, 0)),
            ],
            out_specs=pl.BlockSpec((pl.Squeezed(), H, W, C),
                                   lambda n: (n, 0, 0, 0)),
            scratch_shapes=[
                pltpu.VMEM((H + 2, W + 2, C), jnp.bfloat16),    # shared pad buf
            ],
        ),
        compiler_params=pltpu.CompilerParams(
            dimension_semantics=("parallel",),
            vmem_limit_bytes=32 * 1024 * 1024,                  # v7x-safe
        ),
    )(x, w1t, b1r, w2t, b2r)
    return jnp.transpose(out, (0, 3, 1, 2))                     # back to NCHW


# ---------------------------------------------------------------------------
# Pure-JAX f32 reference (mirrors the PyTorch module exactly).
# ---------------------------------------------------------------------------
def reference_forward(x, w1, b1, w2, b2, eps=1e-5):
    def conv_refpad(x, w, b):
        xp = jnp.pad(x, ((0, 0), (0, 0), (1, 1), (1, 1)), mode="reflect")
        y = lax.conv_general_dilated(
            xp, w, (1, 1), "VALID",
            dimension_numbers=("NCHW", "OIHW", "NCHW"))
        return y + b[None, :, None, None]

    def inorm(y):
        mean = jnp.mean(y, axis=(2, 3), keepdims=True)
        var = jnp.mean(jnp.square(y - mean), axis=(2, 3), keepdims=True)
        return (y - mean) * lax.rsqrt(var + eps)

    h = jnp.maximum(inorm(conv_refpad(x, w1, b1)), 0.0)
    h = inorm(conv_refpad(h, w2, b2))
    return x + h


if __name__ == "__main__":
    key = jax.random.PRNGKey(0)
    kx, kw1, kb1, kw2, kb2 = jax.random.split(key, 5)

    # Small, MXU-friendly shapes consistent with the module: NCHW input,
    # in_channels == out_channels.
    N, C, H, W = 2, 128, 16, 16
    x = jax.random.normal(kx, (N, C, H, W), jnp.float32)
    w1 = 0.05 * jax.random.normal(kw1, (C, C, 3, 3), jnp.float32)
    b1 = 0.05 * jax.random.normal(kb1, (C,), jnp.float32)
    w2 = 0.05 * jax.random.normal(kw2, (C, C, 3, 3), jnp.float32)
    b2 = 0.05 * jax.random.normal(kb2, (C,), jnp.float32)

    out = jax.block_until_ready(
        jax.jit(residual_block_pallas)(x, w1, b1, w2, b2))
    ref = jax.block_until_ready(reference_forward(x, w1, b1, w2, b2))

    assert out.shape == ref.shape, (out.shape, ref.shape)
    max_err = float(jnp.max(jnp.abs(out - ref)))
    # bf16 MXU inputs with f32 accumulation -> small numerical delta vs f32 ref.
    assert jnp.allclose(out, ref, rtol=5e-2, atol=5e-2), f"max abs err {max_err}"

    print("KERNEL_OK")
</pallas_src>

<mosaic_0001>
module attributes {stable_mosaic.version = 11 : i64} {
  func.func @_residual_block_kernel(%arg0: i32, %arg1: memref<1x16x16x128xf32, #tpu.memory_space<vmem>>, %arg2: memref<9x128x128xbf16, #tpu.memory_space<vmem>>, %arg3: memref<1x128xf32, #tpu.memory_space<vmem>>, %arg4: memref<9x128x128xbf16, #tpu.memory_space<vmem>>, %arg5: memref<1x128xf32, #tpu.memory_space<vmem>>, %arg6: memref<1x16x16x128xf32, #tpu.memory_space<vmem>>, %arg7: memref<18x18x128xbf16, #tpu.memory_space<vmem>>) attributes {dimension_semantics = [#tpu.dimension_semantics<parallel>], iteration_bounds = array<i64: 2>, scalar_prefetch = 0 : i64, scratch_operands = 1 : i64, tpu.core_type = #tpu.core_type<tc>, window_params = [{transform_indices = @transform_0, window_bounds = array<i64: 1, 16, 16, 128>}, {pipeline_mode = #tpu.pipeline_mode<synchronous>, transform_indices = @transform_1, window_bounds = array<i64: 9, 128, 128>}, {pipeline_mode = #tpu.pipeline_mode<synchronous>, transform_indices = @transform_2, window_bounds = array<i64: 1, 128>}, {pipeline_mode = #tpu.pipeline_mode<synchronous>, transform_indices = @transform_3, window_bounds = array<i64: 9, 128, 128>}, {pipeline_mode = #tpu.pipeline_mode<synchronous>, transform_indices = @transform_4, window_bounds = array<i64: 1, 128>}, {transform_indices = @transform_5, window_bounds = array<i64: 1, 16, 16, 128>}]} {
    %c0 = arith.constant 0 : index
    %c0_0 = arith.constant 0 : index
    %c0_1 = arith.constant 0 : index
    %c0_2 = arith.constant 0 : index
    %0 = vector.load %arg1[%c0, %c0_0, %c0_1, %c0_2] : memref<1x16x16x128xf32, #tpu.memory_space<vmem>>, vector<1x16x16x128xf32>
    %1 = vector.shape_cast %0 : vector<1x16x16x128xf32> to vector<16x16x128xf32>
    %2 = arith.truncf %1 : vector<16x16x128xf32> to vector<16x16x128xbf16>
    %c1 = arith.constant 1 : index
    %c1_3 = arith.constant 1 : index
    %c0_4 = arith.constant 0 : index
    %3 = vector.load %arg7[%c1, %c1_3, %c0_4] : memref<18x18x128xbf16, #tpu.memory_space<vmem>>, vector<16x16x128xbf16>
    tpu.vector_store %arg7[%c1, %c1_3, %c0_4], %2 {strides = array<i32>} : memref<18x18x128xbf16, #tpu.memory_space<vmem>>, vector<16x16x128xbf16>,
    %4 = vector.extract_strided_slice %2 {offsets = [1, 0, 0], sizes = [1, 16, 128], strides = [1, 1, 1]} : vector<16x16x128xbf16> to vector<1x16x128xbf16>
    %c0_5 = arith.constant 0 : index
    %c1_6 = arith.constant 1 : index
    %c0_7 = arith.constant 0 : index
    %5 = vector.load %arg7[%c0_5, %c1_6, %c0_7] : memref<18x18x128xbf16, #tpu.memory_space<vmem>>, vector<1x16x128xbf16>
    tpu.vector_store %arg7[%c0_5, %c1_6, %c0_7], %4 {strides = array<i32>} : memref<18x18x128xbf16, #tpu.memory_space<vmem>>, vector<1x16x128xbf16>,
    %6 = vector.extract_strided_slice %2 {offsets = [14, 0, 0], sizes = [1, 16, 128], strides = [1, 1, 1]} : vector<16x16x128xbf16> to vector<1x16x128xbf16>
    %c17 = arith.constant 17 : index
    %c1_8 = arith.constant 1 : index
    %c0_9 = arith.constant 0 : index
    %7 = vector.load %arg7[%c17, %c1_8, %c0_9] : memref<18x18x128xbf16, #tpu.memory_space<vmem>>, vector<1x16x128xbf16>
    tpu.vector_store %arg7[%c17, %c1_8, %c0_9], %6 {strides = array<i32>} : memref<18x18x128xbf16, #tpu.memory_space<vmem>>, vector<1x16x128xbf16>,
    %c0_10 = arith.constant 0 : index
    %c2 = arith.constant 2 : index
    %c0_11 = arith.constant 0 : index
    %8 = vector.load %arg7[%c0_10, %c2, %c0_11] : memref<18x18x128xbf16, #tpu.memory_space<vmem>>, vector<18x1x128xbf16>
    %c0_12 = arith.constant 0 : index
    %c0_13 = arith.constant 0 : index
    %c0_14 = arith.constant 0 : index
    %9 = vector.load %arg7[%c0_12, %c0_13, %c0_14] : memref<18x18x128xbf16, #tpu.memory_space<vmem>>, vector<18x1x128xbf16>
    tpu.vector_store %arg7[%c0_12, %c0_13, %c0_14], %8 {strides = array<i32>} : memref<18x18x128xbf16, #tpu.memory_space<vmem>>, vector<18x1x128xbf16>,
    %c0_15 = arith.constant 0 : index
    %c15 = arith.constant 15 : index
    %c0_16 = arith.constant 0 : index
    %10 = vector.load %arg7[%c0_15, %c15, %c0_16] : memref<18x18x128xbf16, #tpu.memory_space<vmem>>, vector<18x1x128xbf16>
    %c0_17 = arith.constant 0 : index
    %c17_18 = arith.constant 17 : index
    %c0_19 = arith.constant 0 : index
    %11 = vector.load %arg7[%c0_17, %c17_18, %c0_19] : memref<18x18x128xbf16, #tpu.memory_space<vmem>>, vector<18x1x128xbf16>
    tpu.vector_store %arg7[%c0_17, %c17_18, %c0_19], %10 {strides = array<i32>} : memref<18x18x128xbf16, #tpu.memory_space<vmem>>, vector<18x1x128xbf16>,
    %c0_20 = arith.constant 0 : index
    %c0_21 = arith.constant 0 : index
    %c0_22 = arith.constant 0 : index
    %12 = vector.load %arg7[%c0_20, %c0_21, %c0_22] : memref<18x18x128xbf16, #tpu.memory_space<vmem>>, vector<16x16x128xbf16>
    %13 = vector.shape_cast %12 : vector<16x16x128xbf16> to vector<256x128xbf16>
    %c0_23 = arith.constant 0 : index
    %c0_24 = arith.constant 0 : index
    %c0_25 = arith.constant 0 : index
    %14 = vector.load %arg2[%c0_23, %c0_24, %c0_25] : memref<9x128x128xbf16, #tpu.memory_space<vmem>>, vector<1x128x128xbf16>
    %15 = vector.shape_cast %14 : vector<1x128x128xbf16> to vector<128x128xbf16>
    %cst = arith.constant dense<0.000000e+00> : vector<256x128xf32>
    %16 = tpu.matmul %13, %15, %cst {dimension_numbers = #tpu.dot_dimension_numbers<[1], [0], [0], [1], [0, 0, 1, 1], [], []>} : vector<256x128xbf16>, vector<128x128xbf16>, vector<256x128xf32> -> vector<256x128xf32>
    %c0_26 = arith.constant 0 : index
    %c1_27 = arith.constant 1 : index
    %c0_28 = arith.constant 0 : index
    %17 = vector.load %arg7[%c0_26, %c1_27, %c0_28] : memref<18x18x128xbf16, #tpu.memory_space<vmem>>, vector<16x16x128xbf16>
    %18 = vector.shape_cast %17 : vector<16x16x128xbf16> to vector<256x128xbf16>
    %c1_29 = arith.constant 1 : index
    %c0_30 = arith.constant 0 : index
    %c0_31 = arith.constant 0 : index
    %19 = vector.load %arg2[%c1_29, %c0_30, %c0_31] : memref<9x128x128xbf16, #tpu.memory_space<vmem>>, vector<1x128x128xbf16>
    %20 = vector.shape_cast %19 : vector<1x128x128xbf16> to vector<128x128xbf16>
    %cst_32 = arith.constant dense<0.000000e+00> : vector<256x128xf32>
    %21 = tpu.matmul %18, %20, %cst_32 {dimension_numbers = #tpu.dot_dimension_numbers<[1], [0], [0], [1], [0, 0, 1, 1], [], []>} : vector<256x128xbf16>, vector<128x128xbf16>, vector<256x128xf32> -> vector<256x128xf32>
    %22 = arith.addf %16, %21 : vector<256x128xf32>
    %c0_33 = arith.constant 0 : index
    %c2_34 = arith.constant 2 : index
    %c0_35 = arith.constant 0 : index
    %23 = vector.load %arg7[%c0_33, %c2_34, %c0_35] : memref<18x18x128xbf16, #tpu.memory_space<vmem>>, vector<16x16x128xbf16>
    %24 = vector.shape_cast %23 : vector<16x16x128xbf16> to vector<256x128xbf16>
    %c2_36 = arith.constant 2 : index
    %c0_37 = arith.constant 0 : index
    %c0_38 = arith.constant 0 : index
    %25 = vector.load %arg2[%c2_36, %c0_37, %c0_38] : memref<9x128x128xbf16, #tpu.memory_space<vmem>>, vector<1x128x128xbf16>
    %26 = vector.shape_cast %25 : vector<1x128x128xbf16> to vector<128x128xbf16>
    %cst_39 = arith.constant dense<0.000000e+00> : vector<256x128xf32>
    %27 = tpu.matmul %24, %26, %cst_39 {dimension_numbers = #tpu.dot_dimension_numbers<[1], [0], [0], [1], [0, 0, 1, 1], [], []>} : vector<256x128xbf16>, vector<128x128xbf16>, vector<256x128xf32> -> vector<256x128xf32>
    %28 = arith.addf %22, %27 : vector<256x128xf32>
    %c1_40 = arith.constant 1 : index
    %c0_41 = arith.constant 0 : index
    %c0_42 = arith.constant 0 : index
    %29 = vector.load %arg7[%c1_40, %c0_41, %c0_42] : memref<18x18x128xbf16, #tpu.memory_space<vmem>>, vector<16x16x128xbf16>
    %30 = vector.shape_cast %29 : vector<16x16x128xbf16> to vector<256x128xbf16>
    %c3 = arith.constant 3 : index
    %c0_43 = arith.constant 0 : index
    %c0_44 = arith.constant 0 : index
    %31 = vector.load %arg2[%c3, %c0_43, %c0_44] : memref<9x128x128xbf16, #tpu.memory_space<vmem>>, vector<1x128x128xbf16>
    %32 = vector.shape_cast %31 : vector<1x128x128xbf16> to vector<128x128xbf16>
    %cst_45 = arith.constant dense<0.000000e+00> : vector<256x128xf32>
    %33 = tpu.matmul %30, %32, %cst_45 {dimension_numbers = #tpu.dot_dimension_numbers<[1], [0], [0], [1], [0, 0, 1, 1], [], []>} : vector<256x128xbf16>, vector<128x128xbf16>, vector<256x128xf32> -> vector<256x128xf32>
    %34 = arith.addf %28, %33 : vector<256x128xf32>
    %c1_46 = arith.constant 1 : index
    %c1_47 = arith.constant 1 : index
    %c0_48 = arith.constant 0 : index
    %35 = vector.load %arg7[%c1_46, %c1_47, %c0_48] : memref<18x18x128xbf16, #tpu.memory_space<vmem>>, vector<16x16x128xbf16>
    %36 = vector.shape_cast %35 : vector<16x16x128xbf16> to vector<256x128xbf16>
    %c4 = arith.constant 4 : index
    %c0_49 = arith.constant 0 : index
    %c0_50 = arith.constant 0 : index
    %37 = vector.load %arg2[%c4, %c0_49, %c0_50] : memref<9x128x128xbf16, #tpu.memory_space<vmem>>, vector<1x128x128xbf16>
    %38 = vector.shape_cast %37 : vector<1x128x128xbf16> to vector<128x128xbf16>
    %cst_51 = arith.constant dense<0.000000e+00> : vector<256x128xf32>
    %39 = tpu.matmul %36, %38, %cst_51 {dimension_numbers = #tpu.dot_dimension_numbers<[1], [0], [0], [1], [0, 0, 1, 1], [], []>} : vector<256x128xbf16>, vector<128x128xbf16>, vector<256x128xf32> -> vector<256x128xf32>
    %40 = arith.addf %34, %39 : vector<256x128xf32>
    %c1_52 = arith.constant 1 : index
    %c2_53 = arith.constant 2 : index
    %c0_54 = arith.constant 0 : index
    %41 = vector.load %arg7[%c1_52, %c2_53, %c0_54] : memref<18x18x128xbf16, #tpu.memory_space<vmem>>, vector<16x16x128xbf16>
    %42 = vector.shape_cast %41 : vector<16x16x128xbf16> to vector<256x128xbf16>
    %c5 = arith.constant 5 : index
    %c0_55 = arith.constant 0 : index
    %c0_56 = arith.constant 0 : index
    %43 = vector.load %arg2[%c5, %c0_55, %c0_56] : memref<9x128x128xbf16, #tpu.memory_space<vmem>>, vector<1x128x128xbf16>
    %44 = vector.shape_cast %43 : vector<1x128x128xbf16> to vector<128x128xbf16>
    %cst_57 = arith.constant dense<0.000000e+00> : vector<256x128xf32>
    %45 = tpu.matmul %42, %44, %cst_57 {dimension_numbers = #tpu.dot_dimension_numbers<[1], [0], [0], [1], [0, 0, 1, 1], [], []>} : vector<256x128xbf16>, vector<128x128xbf16>, vector<256x128xf32> -> vector<256x128xf32>
    %46 = arith.addf %40, %45 : vector<256x128xf32>
    %c2_58 = arith.constant 2 : index
    %c0_59 = arith.constant 0 : index
    %c0_60 = arith.constant 0 : index
    %47 = vector.load %arg7[%c2_58, %c0_59, %c0_60] : memref<18x18x128xbf16, #tpu.memory_space<vmem>>, vector<16x16x128xbf16>
    %48 = vector.shape_cast %47 : vector<16x16x128xbf16> to vector<256x128xbf16>
    %c6 = arith.constant 6 : index
    %c0_61 = arith.constant 0 : index
    %c0_62 = arith.constant 0 : index
    %49 = vector.load %arg2[%c6, %c0_61, %c0_62] : memref<9x128x128xbf16, #tpu.memory_space<vmem>>, vector<1x128x128xbf16>
    %50 = vector.shape_cast %49 : vector<1x128x128xbf16> to vector<128x128xbf16>
    %cst_63 = arith.constant dense<0.000000e+00> : vector<256x128xf32>
    %51 = tpu.matmul %48, %50, %cst_63 {dimension_numbers = #tpu.dot_dimension_numbers<[1], [0], [0], [1], [0, 0, 1, 1], [], []>} : vector<256x128xbf16>, vector<128x128xbf16>, vector<256x128xf32> -> vector<256x128xf32>
    %52 = arith.addf %46, %51 : vector<256x128xf32>
    %c2_64 = arith.constant 2 : index
    %c1_65 = arith.constant 1 : index
    %c0_66 = arith.constant 0 : index
    %53 = vector.load %arg7[%c2_64, %c1_65, %c0_66] : memref<18x18x128xbf16, #tpu.memory_space<vmem>>, vector<16x16x128xbf16>
    %54 = vector.shape_cast %53 : vector<16x16x128xbf16> to vector<256x128xbf16>
    %c7 = arith.constant 7 : index
    %c0_67 = arith.constant 0 : index
    %c0_68 = arith.constant 0 : index
    %55 = vector.load %arg2[%c7, %c0_67, %c0_68] : memref<9x128x128xbf16, #tpu.memory_space<vmem>>, vector<1x128x128xbf16>
    %56 = vector.shape_cast %55 : vector<1x128x128xbf16> to vector<128x128xbf16>
    %cst_69 = arith.constant dense<0.000000e+00> : vector<256x128xf32>
    %57 = tpu.matmul %54, %56, %cst_69 {dimension_numbers = #tpu.dot_dimension_numbers<[1], [0], [0], [1], [0, 0, 1, 1], [], []>} : vector<256x128xbf16>, vector<128x128xbf16>, vector<256x128xf32> -> vector<256x128xf32>
    %58 = arith.addf %52, %57 : vector<256x128xf32>
    %c2_70 = arith.constant 2 : index
    %c2_71 = arith.constant 2 : index
    %c0_72 = arith.constant 0 : index
    %59 = vector.load %arg7[%c2_70, %c2_71, %c0_72] : memref<18x18x128xbf16, #tpu.memory_space<vmem>>, vector<16x16x128xbf16>
    %60 = vector.shape_cast %59 : vector<16x16x128xbf16> to vector<256x128xbf16>
    %c8 = arith.constant 8 : index
    %c0_73 = arith.constant 0 : index
    %c0_74 = arith.constant 0 : index
    %61 = vector.load %arg2[%c8, %c0_73, %c0_74] : memref<9x128x128xbf16, #tpu.memory_space<vmem>>, vector<1x128x128xbf16>
    %62 = vector.shape_cast %61 : vector<1x128x128xbf16> to vector<128x128xbf16>
    %cst_75 = arith.constant dense<0.000000e+00> : vector<256x128xf32>
    %63 = tpu.matmul %60, %62, %cst_75 {dimension_numbers = #tpu.dot_dimension_numbers<[1], [0], [0], [1], [0, 0, 1, 1], [], []>} : vector<256x128xbf16>, vector<128x128xbf16>, vector<256x128xf32> -> vector<256x128xf32>
    %64 = arith.addf %58, %63 : vector<256x128xf32>
    %c0_76 = arith.constant 0 : index
    %c0_77 = arith.constant 0 : index
    %65 = vector.load %arg3[%c0_76, %c0_77] : memref<1x128xf32, #tpu.memory_space<vmem>>, vector<1x128xf32>
    %66 = vector.broadcast %65 : vector<1x128xf32> to vector<256x128xf32>
    %67 = arith.addf %64, %66 : vector<256x128xf32>
    %cst_78 = arith.constant dense<0.000000e+00> : vector<128xf32>
    %68 = vector.multi_reduction <add>, %67, %cst_78 [0] : vector<256x128xf32> to vector<128xf32>
    %69 = vector.shape_cast %68 : vector<128xf32> to vector<1x128xf32>
    %cst_79 = arith.constant 3.906250e-03 : f32
    %70 = vector.broadcast %cst_79 : f32 to vector<1x128xf32>
    %71 = arith.mulf %69, %70 : vector<1x128xf32>
    %72 = arith.mulf %67, %67 : vector<256x128xf32>
    %cst_80 = arith.constant dense<0.000000e+00> : vector<128xf32>
    %73 = vector.multi_reduction <add>, %72, %cst_80 [0] : vector<256x128xf32> to vector<128xf32>
    %74 = vector.shape_cast %73 : vector<128xf32> to vector<1x128xf32>
    %cst_81 = arith.constant 3.906250e-03 : f32
    %75 = vector.broadcast %cst_81 : f32 to vector<1x128xf32>
    %76 = arith.mulf %74, %75 : vector<1x128xf32>
    %77 = arith.mulf %71, %71 : vector<1x128xf32>
    %78 = arith.subf %76, %77 : vector<1x128xf32>
    %79 = vector.broadcast %71 : vector<1x128xf32> to vector<256x128xf32>
    %80 = arith.subf %67, %79 : vector<256x128xf32>
    %cst_82 = arith.constant 9.99999974E-6 : f32
    %81 = vector.broadcast %cst_82 : f32 to vector<1x128xf32>
    %82 = arith.addf %78, %81 : vector<1x128xf32>
    %83 = math.rsqrt %82 : vector<1x128xf32>
    %84 = vector.broadcast %83 : vector<1x128xf32> to vector<256x128xf32>
    %85 = arith.mulf %80, %84 : vector<256x128xf32>
    %cst_83 = arith.constant 0.000000e+00 : f32
    %86 = vector.broadcast %cst_83 : f32 to vector<256x128xf32>
    %87 = arith.maximumf %85, %86 : vector<256x128xf32>
    %88 = vector.shape_cast %87 : vector<256x128xf32> to vector<16x16x128xf32>
    %89 = arith.truncf %88 : vector<16x16x128xf32> to vector<16x16x128xbf16>
    %c1_84 = arith.constant 1 : index
    %c1_85 = arith.constant 1 : index
    %c0_86 = arith.constant 0 : index
    %90 = vector.load %arg7[%c1_84, %c1_85, %c0_86] : memref<18x18x128xbf16, #tpu.memory_space<vmem>>, vector<16x16x128xbf16>
    tpu.vector_store %arg7[%c1_84, %c1_85, %c0_86], %89 {strides = array<i32>} : memref<18x18x128xbf16, #tpu.memory_space<vmem>>, vector<16x16x128xbf16>,
    %91 = vector.extract_strided_slice %89 {offsets = [1, 0, 0], sizes = [1, 16, 128], strides = [1, 1, 1]} : vector<16x16x128xbf16> to vector<1x16x128xbf16>
    %c0_87 = arith.constant 0 : index
    %c1_88 = arith.constant 1 : index
    %c0_89 = arith.constant 0 : index
    %92 = vector.load %arg7[%c0_87, %c1_88, %c0_89] : memref<18x18x128xbf16, #tpu.memory_space<vmem>>, vector<1x16x128xbf16>
    tpu.vector_store %arg7[%c0_87, %c1_88, %c0_89], %91 {strides = array<i32>} : memref<18x18x128xbf16, #tpu.memory_space<vmem>>, vector<1x16x128xbf16>,
    %93 = vector.extract_strided_slice %89 {offsets = [14, 0, 0], sizes = [1, 16, 128], strides = [1, 1, 1]} : vector<16x16x128xbf16> to vector<1x16x128xbf16>
    %c17_90 = arith.constant 17 : index
    %c1_91 = arith.constant 1 : index
    %c0_92 = arith.constant 0 : index
    %94 = vector.load %arg7[%c17_90, %c1_91, %c0_92] : memref<18x18x128xbf16, #tpu.memory_space<vmem>>, vector<1x16x128xbf16>
    tpu.vector_store %arg7[%c17_90, %c1_91, %c0_92], %93 {strides = array<i32>} : memref<18x18x128xbf16, #tpu.memory_space<vmem>>, vector<1x16x128xbf16>,
    %c0_93 = arith.constant 0 : index
    %c2_94 = arith.constant 2 : index
    %c0_95 = arith.constant 0 : index
    %95 = vector.load %arg7[%c0_93, %c2_94, %c0_95] : memref<18x18x128xbf16, #tpu.memory_space<vmem>>, vector<18x1x128xbf16>
    %c0_96 = arith.constant 0 : index
    %c0_97 = arith.constant 0 : index
    %c0_98 = arith.constant 0 : index
    %96 = vector.load %arg7[%c0_96, %c0_97, %c0_98] : memref<18x18x128xbf16, #tpu.memory_space<vmem>>, vector<18x1x128xbf16>
    tpu.vector_store %arg7[%c0_96, %c0_97, %c0_98], %95 {strides = array<i32>} : memref<18x18x128xbf16, #tpu.memory_space<vmem>>, vector<18x1x128xbf16>,
    %c0_99 = arith.constant 0 : index
    %c15_100 = arith.constant 15 : index
    %c0_101 = arith.constant 0 : index
    %97 = vector.load %arg7[%c0_99, %c15_100, %c0_101] : memref<18x18x128xbf16, #tpu.memory_space<vmem>>, vector<18x1x128xbf16>
    %c0_102 = arith.constant 0 : index
    %c17_103 = arith.constant 17 : index
    %c0_104 = arith.constant 0 : index
    %98 = vector.load %arg7[%c0_102, %c17_103, %c0_104] : memref<18x18x128xbf16, #tpu.memory_space<vmem>>, vector<18x1x128xbf16>
    tpu.vector_store %arg7[%c0_102, %c17_103, %c0_104], %97 {strides = array<i32>} : memref<18x18x128xbf16, #tpu.memory_space<vmem>>, vector<18x1x128xbf16>,
    %c0_105 = arith.constant 0 : index
    %c0_106 = arith.constant 0 : index
    %c0_107 = arith.constant 0 : index
    %99 = vector.load %arg7[%c0_105, %c0_106, %c0_107] : memref<18x18x128xbf16, #tpu.memory_space<vmem>>, vector<16x16x128xbf16>
    %100 = vector.shape_cast %99 : vector<16x16x128xbf16> to vector<256x128xbf16>
    %c0_108 = arith.constant 0 : index
    %c0_109 = arith.constant 0 : index
    %c0_110 = arith.constant 0 : index
    %101 = vector.load %arg4[%c0_108, %c0_109, %c0_110] : memref<9x128x128xbf16, #tpu.memory_space<vmem>>, vector<1x128x128xbf16>
    %102 = vector.shape_cast %101 : vector<1x128x128xbf16> to vector<128x128xbf16>
    %cst_111 = arith.constant dense<0.000000e+00> : vector<256x128xf32>
    %103 = tpu.matmul %100, %102, %cst_111 {dimension_numbers = #tpu.dot_dimension_numbers<[1], [0], [0], [1], [0, 0, 1, 1], [], []>} : vector<256x128xbf16>, vector<128x128xbf16>, vector<256x128xf32> -> vector<256x128xf32>
    %c0_112 = arith.constant 0 : index
    %c1_113 = arith.constant 1 : index
    %c0_114 = arith.constant 0 : index
    %104 = vector.load %arg7[%c0_112, %c1_113, %c0_114] : memref<18x18x128xbf16, #tpu.memory_space<vmem>>, vector<16x16x128xbf16>
    %105 = vector.shape_cast %104 : vector<16x16x128xbf16> to vector<256x128xbf16>
    %c1_115 = arith.constant 1 : index
    %c0_116 = arith.constant 0 : index
    %c0_117 = arith.constant 0 : index
    %106 = vector.load %arg4[%c1_115, %c0_116, %c0_117] : memref<9x128x128xbf16, #tpu.memory_space<vmem>>, vector<1x128x128xbf16>
    %107 = vector.shape_cast %106 : vector<1x128x128xbf16> to vector<128x128xbf16>
    %cst_118 = arith.constant dense<0.000000e+00> : vector<256x128xf32>
    %108 = tpu.matmul %105, %107, %cst_118 {dimension_numbers = #tpu.dot_dimension_numbers<[1], [0], [0], [1], [0, 0, 1, 1], [], []>} : vector<256x128xbf16>, vector<128x128xbf16>, vector<256x128xf32> -> vector<256x128xf32>
    %109 = arith.addf %103, %108 : vector<256x128xf32>
    %c0_119 = arith.constant 0 : index
    %c2_120 = arith.constant 2 : index
    %c0_121 = arith.constant 0 : index
    %110 = vector.load %arg7[%c0_119, %c2_120, %c0_121] : memref<18x18x128xbf16, #tpu.memory_space<vmem>>, vector<16x16x128xbf16>
    %111 = vector.shape_cast %110 : vector<16x16x128xbf16> to vector<256x128xbf16>
    %c2_122 = arith.constant 2 : index
    %c0_123 = arith.constant 0 : index
    %c0_124 = arith.constant 0 : index
    %112 = vector.load %arg4[%c2_122, %c0_123, %c0_124] : memref<9x128x128xbf16, #tpu.memory_space<vmem>>, vector<1x128x128xbf16>
    %113 = vector.shape_cast %112 : vector<1x128x128xbf16> to vector<128x128xbf16>
    %cst_125 = arith.constant dense<0.000000e+00> : vector<256x128xf32>
    %114 = tpu.matmul %111, %113, %cst_125 {dimension_numbers = #tpu.dot_dimension_numbers<[1], [0], [0], [1], [0, 0, 1, 1], [], []>} : vector<256x128xbf16>, vector<128x128xbf16>, vector<256x128xf32> -> vector<256x128xf32>
    %115 = arith.addf %109, %114 : vector<256x128xf32>
    %c1_126 = arith.constant 1 : index
    %c0_127 = arith.constant 0 : index
    %c0_128 = arith.constant 0 : index
    %116 = vector.load %arg7[%c1_126, %c0_127, %c0_128] : memref<18x18x128xbf16, #tpu.memory_space<vmem>>, vector<16x16x128xbf16>
    %117 = vector.shape_cast %116 : vector<16x16x128xbf16> to vector<256x128xbf16>
    %c3_129 = arith.constant 3 : index
    %c0_130 = arith.constant 0 : index
    %c0_131 = arith.constant 0 : index
    %118 = vector.load %arg4[%c3_129, %c0_130, %c0_131] : memref<9x128x128xbf16, #tpu.memory_space<vmem>>, vector<1x128x128xbf16>
    %119 = vector.shape_cast %118 : vector<1x128x128xbf16> to vector<128x128xbf16>
    %cst_132 = arith.constant dense<0.000000e+00> : vector<256x128xf32>
    %120 = tpu.matmul %117, %119, %cst_132 {dimension_numbers = #tpu.dot_dimension_numbers<[1], [0], [0], [1], [0, 0, 1, 1], [], []>} : vector<256x128xbf16>, vector<128x128xbf16>, vector<256x128xf32> -> vector<256x128xf32>
    %121 = arith.addf %115, %120 : vector<256x128xf32>
    %c1_133 = arith.constant 1 : index
    %c1_134 = arith.constant 1 : index
    %c0_135 = arith.constant 0 : index
    %122 = vector.load %arg7[%c1_133, %c1_134, %c0_135] : memref<18x18x128xbf16, #tpu.memory_space<vmem>>, vector<16x16x128xbf16>
    %123 = vector.shape_cast %122 : vector<16x16x128xbf16> to vector<256x128xbf16>
    %c4_136 = arith.constant 4 : index
    %c0_137 = arith.constant 0 : index
    %c0_138 = arith.constant 0 : index
    %124 = vector.load %arg4[%c4_136, %c0_137, %c0_138] : memref<9x128x128xbf16, #tpu.memory_space<vmem>>, vector<1x128x128xbf16>
    %125 = vector.shape_cast %124 : vector<1x128x128xbf16> to vector<128x128xbf16>
    %cst_139 = arith.constant dense<0.000000e+00> : vector<256x128xf32>
    %126 = tpu.matmul %123, %125, %cst_139 {dimension_numbers = #tpu.dot_dimension_numbers<[1], [0], [0], [1], [0, 0, 1, 1], [], []>} : vector<256x128xbf16>, vector<128x128xbf16>, vector<256x128xf32> -> vector<256x128xf32>
    %127 = arith.addf %121, %126 : vector<256x128xf32>
    %c1_140 = arith.constant 1 : index
    %c2_141 = arith.constant 2 : index
    %c0_142 = arith.constant 0 : index
    %128 = vector.load %arg7[%c1_140, %c2_141, %c0_142] : memref<18x18x128xbf16, #tpu.memory_space<vmem>>, vector<16x16x128xbf16>
    %129 = vector.shape_cast %128 : vector<16x16x128xbf16> to vector<256x128xbf16>
    %c5_143 = arith.constant 5 : index
    %c0_144 = arith.constant 0 : index
    %c0_145 = arith.constant 0 : index
    %130 = vector.load %arg4[%c5_143, %c0_144, %c0_145] : memref<9x128x128xbf16, #tpu.memory_space<vmem>>, vector<1x128x128xbf16>
    %131 = vector.shape_cast %130 : vector<1x128x128xbf16> to vector<128x128xbf16>
    %cst_146 = arith.constant dense<0.000000e+00> : vector<256x128xf32>
    %132 = tpu.matmul %129, %131, %cst_146 {dimension_numbers = #tpu.dot_dimension_numbers<[1], [0], [0], [1], [0, 0, 1, 1], [], []>} : vector<256x128xbf16>, vector<128x128xbf16>, vector<256x128xf32> -> vector<256x128xf32>
    %133 = arith.addf %127, %132 : vector<256x128xf32>
    %c2_147 = arith.constant 2 : index
    %c0_148 = arith.constant 0 : index
    %c0_149 = arith.constant 0 : index
    %134 = vector.load %arg7[%c2_147, %c0_148, %c0_149] : memref<18x18x128xbf16, #tpu.memory_space<vmem>>, vector<16x16x128xbf16>
    %135 = vector.shape_cast %134 : vector<16x16x128xbf16> to vector<256x128xbf16>
    %c6_150 = arith.constant 6 : index
    %c0_151 = arith.constant 0 : index
    %c0_152 = arith.constant 0 : index
    %136 = vector.load %arg4[%c6_150, %c0_151, %c0_152] : memref<9x128x128xbf16, #tpu.memory_space<vmem>>, vector<1x128x128xbf16>
    %137 = vector.shape_cast %136 : vector<1x128x128xbf16> to vector<128x128xbf16>
    %cst_153 = arith.constant dense<0.000000e+00> : vector<256x128xf32>
    %138 = tpu.matmul %135, %137, %cst_153 {dimension_numbers = #tpu.dot_dimension_numbers<[1], [0], [0], [1], [0, 0, 1, 1], [], []>} : vector<256x128xbf16>, vector<128x128xbf16>, vector<256x128xf32> -> vector<256x128xf32>
    %139 = arith.addf %133, %138 : vector<256x128xf32>
    %c2_154 = arith.constant 2 : index
    %c1_155 = arith.constant 1 : index
    %c0_156 = arith.constant 0 : index
    %140 = vector.load %arg7[%c2_154, %c1_155, %c0_156] : memref<18x18x128xbf16, #tpu.memory_space<vmem>>, vector<16x16x128xbf16>
    %141 = vector.shape_cast %140 : vector<16x16x128xbf16> to vector<256x128xbf16>
    %c7_157 = arith.constant 7 : index
    %c0_158 = arith.constant 0 : index
    %c0_159 = arith.constant 0 : index
    %142 = vector.load %arg4[%c7_157, %c0_158, %c0_159] : memref<9x128x128xbf16, #tpu.memory_space<vmem>>, vector<1x128x128xbf16>
    %143 = vector.shape_cast %142 : vector<1x128x128xbf16> to vector<128x128xbf16>
    %cst_160 = arith.constant dense<0.000000e+00> : vector<256x128xf32>
    %144 = tpu.matmul %141, %143, %cst_160 {dimension_numbers = #tpu.dot_dimension_numbers<[1], [0], [0], [1], [0, 0, 1, 1], [], []>} : vector<256x128xbf16>, vector<128x128xbf16>, vector<256x128xf32> -> vector<256x128xf32>
    %145 = arith.addf %139, %144 : vector<256x128xf32>
    %c2_161 = arith.constant 2 : index
    %c2_162 = arith.constant 2 : index
    %c0_163 = arith.constant 0 : index
    %146 = vector.load %arg7[%c2_161, %c2_162, %c0_163] : memref<18x18x128xbf16, #tpu.memory_space<vmem>>, vector<16x16x128xbf16>
    %147 = vector.shape_cast %146 : vector<16x16x128xbf16> to vector<256x128xbf16>
    %c8_164 = arith.constant 8 : index
    %c0_165 = arith.constant 0 : index
    %c0_166 = arith.constant 0 : index
    %148 = vector.load %arg4[%c8_164, %c0_165, %c0_166] : memref<9x128x128xbf16, #tpu.memory_space<vmem>>, vector<1x128x128xbf16>
    %149 = vector.shape_cast %148 : vector<1x128x128xbf16> to vector<128x128xbf16>
    %cst_167 = arith.constant dense<0.000000e+00> : vector<256x128xf32>
    %150 = tpu.matmul %147, %149, %cst_167 {dimension_numbers = #tpu.dot_dimension_numbers<[1], [0], [0], [1], [0, 0, 1, 1], [], []>} : vector<256x128xbf16>, vector<128x128xbf16>, vector<256x128xf32> -> vector<256x128xf32>
    %151 = arith.addf %145, %150 : vector<256x128xf32>
    %c0_168 = arith.constant 0 : index
    %c0_169 = arith.constant 0 : index
    %152 = vector.load %arg5[%c0_168, %c0_169] : memref<1x128xf32, #tpu.memory_space<vmem>>, vector<1x128xf32>
    %153 = vector.broadcast %152 : vector<1x128xf32> to vector<256x128xf32>
    %154 = arith.addf %151, %153 : vector<256x128xf32>
    %cst_170 = arith.constant dense<0.000000e+00> : vector<128xf32>
    %155 = vector.multi_reduction <add>, %154, %cst_170 [0] : vector<256x128xf32> to vector<128xf32>
    %156 = vector.shape_cast %155 : vector<128xf32> to vector<1x128xf32>
    %cst_171 = arith.constant 3.906250e-03 : f32
    %157 = vector.broadcast %cst_171 : f32 to vector<1x128xf32>
    %158 = arith.mulf %156, %157 : vector<1x128xf32>
    %159 = arith.mulf %154, %154 : vector<256x128xf32>
    %cst_172 = arith.constant dense<0.000000e+00> : vector<128xf32>
    %160 = vector.multi_reduction <add>, %159, %cst_172 [0] : vector<256x128xf32> to vector<128xf32>
    %161 = vector.shape_cast %160 : vector<128xf32> to vector<1x128xf32>
    %cst_173 = arith.constant 3.906250e-03 : f32
    %162 = vector.broadcast %cst_173 : f32 to vector<1x128xf32>
    %163 = arith.mulf %161, %162 : vector<1x128xf32>
    %164 = arith.mulf %158, %158 : vector<1x128xf32>
    %165 = arith.subf %163, %164 : vector<1x128xf32>
    %166 = vector.broadcast %158 : vector<1x128xf32> to vector<256x128xf32>
    %167 = arith.subf %154, %166 : vector<256x128xf32>
    %cst_174 = arith.constant 9.99999974E-6 : f32
    %168 = vector.broadcast %cst_174 : f32 to vector<1x128xf32>
    %169 = arith.addf %165, %168 : vector<1x128xf32>
    %170 = math.rsqrt %169 : vector<1x128xf32>
    %171 = vector.broadcast %170 : vector<1x128xf32> to vector<256x128xf32>
    %172 = arith.mulf %167, %171 : vector<256x128xf32>
    %173 = vector.shape_cast %172 : vector<256x128xf32> to vector<16x16x128xf32>
    %174 = arith.addf %1, %173 : vector<16x16x128xf32>
    %c0_175 = arith.constant 0 : index
    %c0_176 = arith.constant 0 : index
    %c0_177 = arith.constant 0 : index
    %c0_178 = arith.constant 0 : index
    %175 = vector.load %arg6[%c0_175, %c0_176, %c0_177, %c0_178] : memref<1x16x16x128xf32, #tpu.memory_space<vmem>>, vector<1x16x16x128xf32>
    %176 = vector.shape_cast %175 : vector<1x16x16x128xf32> to vector<16x16x128xf32>
    %177 = vector.shape_cast %174 : vector<16x16x128xf32> to vector<1x16x16x128xf32>
    tpu.vector_store %arg6[%c0_175, %c0_176, %c0_177, %c0_178], %177 {strides = array<i32>} : memref<1x16x16x128xf32, #tpu.memory_space<vmem>>, vector<1x16x16x128xf32>,
    return
  }
  func.func @transform_0(%arg0: i32) -> (i32, i32, i32, i32) {
    %c0_i32 = arith.constant 0 : i32
    %c0_i32_0 = arith.constant 0 : i32
    %c0_i32_1 = arith.constant 0 : i32
    %c0_i32_2 = arith.constant 0 : i32
    return %arg0, %c0_i32, %c0_i32_0, %c0_i32_1 : i32, i32, i32, i32
  }
  func.func @transform_1(%arg0: i32) -> (i32, i32, i32) {
    %c0_i32 = arith.constant 0 : i32
    %c0_i32_0 = arith.constant 0 : i32
    %c0_i32_1 = arith.constant 0 : i32
    %c0_i32_2 = arith.constant 0 : i32
    return %c0_i32, %c0_i32_0, %c0_i32_1 : i32, i32, i32
  }
  func.func @transform_2(%arg0: i32) -> (i32, i32) {
    %c0_i32 = arith.constant 0 : i32
    %c0_i32_0 = arith.constant 0 : i32
    %c0_i32_1 = arith.constant 0 : i32
    return %c0_i32, %c0_i32_0 : i32, i32
  }
  func.func @transform_3(%arg0: i32) -> (i32, i32, i32) {
    %c0_i32 = arith.constant 0 : i32
    %c0_i32_0 = arith.constant 0 : i32
    %c0_i32_1 = arith.constant 0 : i32
    %c0_i32_2 = arith.constant 0 : i32
    return %c0_i32, %c0_i32_0, %c0_i32_1 : i32, i32, i32
  }
  func.func @transform_4(%arg0: i32) -> (i32, i32) {
    %c0_i32 = arith.constant 0 : i32
    %c0_i32_0 = arith.constant 0 : i32
    %c0_i32_1 = arith.constant 0 : i32
    return %c0_i32, %c0_i32_0 : i32, i32
  }
  func.func @transform_5(%arg0: i32) -> (i32, i32, i32, i32) {
    %c0_i32 = arith.constant 0 : i32
    %c0_i32_0 = arith.constant 0 : i32
    %c0_i32_1 = arith.constant 0 : i32
    %c0_i32_2 = arith.constant 0 : i32
    return %arg0, %c0_i32, %c0_i32_0, %c0_i32_1 : i32, i32, i32, i32
  }
}

</mosaic_0001>

<bundles_post_ra>
// kernel: residual_block_pallas.1
= control target key start
LH: loop header
LB: loop body
LE: loop exit
PB: predicated region body
PF: predicated region fallthrough
CT: control target
= control target key end

     0   :  { %10 = vsyncpa [#allocation4], 0  ;;  %s19948_s0 = inlined_call_operand.vmem [shape: f32[2,16,16,128], index: 0, kind: input, shape index: {}]   ;;  %s19949_s1 = inlined_call_operand.vmem [shape: bf16[9,128,128], index: 1, kind: input, shape index: {}]   ;;  %s19950_s2 = inlined_call_operand.vmem [shape: f32[1,128], index: 2, kind: input, shape index: {}]   ;;  %s19951_s3 = inlined_call_operand.vmem [shape: bf16[9,128,128], index: 3, kind: input, shape index: {}]   ;;  %s19952_s4 = inlined_call_operand.vmem [shape: f32[1,128], index: 4, kind: input, shape index: {}]   ;;  %s19953_s5 = inlined_call_operand.hbm [shape: f32[2,16,16,128], index: 5, kind: output, shape index: {}]  }
   0x1   :  { %12 = vsyncpa [#allocation4 + $0x1], 0  ;;  %s15439_s18 = smov 0   ;;  %s15441_s19 = smov 0  }
   0x2   :  { %s15443_s20 = smov 0   ;;  %s15445_s21 = smov 0  }
   0x3 LB: > { %s15460_s22 = sadd.s32 4294967295, %s15404_s21   ;;  %s12137_s23 = sadd.s32 4294967294, %s15404_s21   ;;  %s15404_s21 = sphi %s15445_s21, %s20235_s21   ;;  %s15400_s20 = sphi %s15443_s20, %s20234_s20   ;;  %s15396_s19 = sphi %s15441_s19, %s20233_s19   ;;  %s15392_s18 = sphi %s15439_s18, %s20232_s18  }
   0x4   : > { %s15464_s24 = sadd.s32 1, %s15404_s21   ;;  %s135_s25 = sadd.s32 1, %s15400_s20 }
   0x5   : > { %s132_s26 = ssub.s32 %s15404_s21, %s15464_s24  ;;  %p145_p0 = scmp.ne.s32.totalorder %s15400_s20, %s15396_s19 }
   0x6   : > { %p133_p1 = scmp.eq.s32.totalorder %s132_s26, 0  ;;  %p146_p2 = scmp.eq.s32.totalorder %s15460_s22, 1 }
   0x7   : > { %p151_p3 = scmp.ne.s32.totalorder %s15396_s19, %s15392_s18  ;;  %p152_p4 = scmp.eq.s32.totalorder %s12137_s23, 1 }
   0x8   : > { %s15475_s27 = scalar_select %p133_p1, %s15400_s20, %s135_s25  }
   0x9   : > { %p15477_p5 = por %p146_p2, %p145_p0  ;;  %p15481_p6 = por %p152_p4, %p151_p3 }
   0xa   : > { %p12140_p7 = scmp.ge.s32.totalorder %s15404_s21, 1  ;;  %p190_p8 = scmp.lt.s32.totalorder %s15404_s21, 3 }
   0xc   : > { %p191_p9 = pnand %p12140_p7, %p190_p8 }
   0xe   : > { %194 = sbr.rel (%p191_p9) target bundleno = 1963 (0x7ab), region = 40 }
  0x15   : > { %v14986_v0 = vld [vmem:[%s19949_s1 + $0x40] sm:$0xff]   ;;  %p218_p10 = scmp.lt.s32.totalorder %s15460_s22, 1  ;;  %v14987_v1 = vld [vmem:[%s19949_s1 + $0x48] sm:$0xff]   ;;  %v14988_v2 = vld [vmem:[%s19949_s1 + $0x50] sm:$0xff]   ;;  %vm676_vm0 = vcmask 1043456   ;;  %vm683_vm4 = vcmask 1040384  }
  0x16   : > { %13569 = vmatprep.subr.bf16.mxu0 %v14986_v0  ;;  %v14989_v3 = vld [vmem:[%s19949_s1 + $0x58] sm:$0xff]   ;;  %vm352_vm1 = vsmask.f32 256  ;;  %vm353_vm2 = vsmask.f32 4368  ;;  %v14990_v8 = vld [vmem:[%s19949_s1 + $0x60] sm:$0xff]  }
  0x17   : > { %s219_s9 = scalar_select %p218_p10, %s15460_s22, 1  ;;  %13570 = vmatpush3.bf16.msra.mxu0 %v14986_v0  ;;  %vm677_vm3 = vsmask.f32 7938  ;;  %vm15512_vm5 = vmor %vm352_vm1, %vm353_vm2  ;;  %v20033_v13 = vmov 0  ;;  %v793_v14 = vld [vmem:[#allocation2] sm:$0xf] }
  0x18   : > { %13571 = vmatprep.subr.bf16.mxu0 %v14987_v1  ;;  %v20034_v13 = vsel %vm15512_vm5, 4294967295, %v20033_v13  ;;  %vm15519_vm6 = vmand %vm676_vm0, %vm677_vm3  ;;  %v20036_v18 = vmov 0  ;;  %v797_v19 = vld [vmem:[#allocation2 + $0x8] sm:$0x1]  ;;  %v20039_v22 = vmov 0  ;;  %v14992_v52 = vld [vmem:[%s19949_s1 + $0x70] sm:$0xff]  }
  0x19   : > { %s13071_s12 = sshll.u32 %s219_s9, 8  ;;  %20035 = vst [vmem:[#allocation6_spill] sm:$0xff] %v20034_v13  ;;  %v20037_v18 = vsel %vm15519_vm6, 4294967295, %v20036_v18  ;;  %vm15526_vm7 = vmand %vm683_vm4, %vm352_vm1  ;;  %v688_v24 = vld [vmem:[#allocation2 + $0x18] sm:$0xf]  ;;  %v14991_v30 = vld [vmem:[%s19949_s1 + $0x68] sm:$0xff]  }
  0x1a   : > { %s15501_s15 = scalar_lea.vmem %s19948_s0, %s13071_s12  ;;  %20038 = vst [vmem:[#allocation7_spill] sm:$0xff] %v20037_v18  ;;  %v20040_v22 = vsel %vm15526_vm7, 4294967295, %v20039_v22  ;;  %v692_v25 = vld [vmem:[#allocation2 + $0x20] sm:$0x1]  ;;  %v679_v43 = vld [vmem:[#allocation2 + $0xc] sm:$0xf]  ;;  %vm15567_vm8 = vmand %vm683_vm4, %vm677_vm3 }
  0x1b   : > { %13572 = vmatpush3.bf16.msra.mxu0 %v14987_v1  ;;  %v226_v4 = vld [vmem:[%s15501_s15 + $0x10] sm:$0xff]  ;;  %v227_v5 = vld [vmem:[%s15501_s15 + $0x18] sm:$0xff]  ;;  %v224_v15 = vld [vmem:[%s15501_s15] sm:$0xff]  ;;  %20041 = vst [vmem:[#allocation8_spill] sm:$0xff] %v20040_v22  ;;  %vm1161_vm9 = vsmask.f32 3328 }
  0x1c   : > { %13573 = vmatprep.subr.bf16.mxu0 %v14988_v2  ;;  %v13074_v6 = vpack.c.bf16 %v226_v4, %v226_v4  ;;  %v13075_v7 = vpack.c.bf16 %v227_v5, %v227_v5  ;;  %v225_v20 = vld [vmem:[%s15501_s15 + $0x8] sm:$0xff]  ;;  %v13072_v21 = vpack.c.bf16 %v224_v15, %v224_v15  ;;  %v228_v35 = vld [vmem:[%s15501_s15 + $0x20] sm:$0xff]  ;;  %v230_v46 = vld [vmem:[%s15501_s15 + $0x30] sm:$0xff]  ;;  %vm1162_vm10 = vsmask.f32 7440  ;;  %s215_s30 = sand.u32 1, %s15396_s19  }
  0x1d   : > { %v13073_v23 = vpack.c.bf16 %v225_v20, %v225_v20  ;;  %v229_v40 = vld [vmem:[%s15501_s15 + $0x28] sm:$0xff]  ;;  %v13076_v45 = vpack.c.bf16 %v228_v35, %v228_v35  ;;  %v231_v47 = vld [vmem:[%s15501_s15 + $0x38] sm:$0xff]  ;;  %v685_v48 = vld [vmem:[#allocation2 + $0x14] sm:$0x1]  ;;  %v13078_v50 = vpack.c.bf16 %v230_v46, %v230_v46  ;;  %vm2191_vm12 = vcmask 1042432   ;;  %s12141_s6 = sshll.u32 %s215_s30, 8 }
  0x1e   : > { %v373_v9 = vshrl.u32 %v13074_v6, 16  ;;  %v376_v10 = vshll.u32 %v13074_v6, 16  ;;  %v381_v11 = vshrl.u32 %v13075_v7, 16  ;;  %v384_v12 = vshll.u32 %v13075_v7, 16  ;;  %v232_v1 = vld [vmem:[%s15501_s15 + $0x40] sm:$0xff]  ;;  %vm15643_vm11 = vmor %vm1161_vm9, %vm1162_vm10  ;;  %s19791_s7 = scalar_lea.vmem [#allocation3], %s12141_s6 }
  0x1f   : > { %13574 = vmatpush3.bf16.msra.mxu0 %v14988_v2  ;;  %v356_v31 = vshrl.u32 %v13072_v21, 16  ;;  %v359_v32 = vshll.u32 %v13072_v21, 16  ;;  %v364_v33 = vshrl.u32 %v13073_v23, 16  ;;  %v367_v34 = vshll.u32 %v13073_v23, 16  ;;  %v233_v2 = vld [vmem:[%s15501_s15 + $0x48] sm:$0xff]  ;;  %v235_v23 = vld [vmem:[%s15501_s15 + $0x58] sm:$0xff] }
  0x20   : > { %13575 = vmatprep.subr.bf16.mxu0 %v14989_v3  ;;  %v375_v16 = vrot.slane %v373_v9, 7  ;;  %v383_v17 = vrot.slane %v381_v11, 7  ;;  %v13077_v49 = vpack.c.bf16 %v229_v40, %v229_v40  ;;  %v15547_v51 = vpack.c.bf16 %v231_v47, %v231_v47  ;;  %v695_v6 = vld [vmem:[#allocation2 + $0x24] sm:$0xf]  ;;  %s13136_s8 = sshll.u32 %s15460_s22, 12  ;;  %s12075_s9 = sshll.u32 %s19791_s7, 4  ;;  %s19883_s9 = int_to_ptr.vmem [resolvable:$true] %s12075_s9 }
  0x21   : > { %v358_v41 = vrot.slane %v356_v31, 7  ;;  %v366_v42 = vrot.slane %v364_v33, 7  ;;  %v390_v57 = vshrl.u32 %v13076_v45, 16  ;;  %v393_v58 = vshll.u32 %v13076_v45, 16  ;;  %s19879_s12 = scalar_lea.hbm %s19953_s5, %s13136_s8  ;;  %s19907_s22 = scalar_lea.sflag [#allocation4], %s215_s30 }
  0x22   : > { %v378_v26 = vor.u32 %v376_v10, %v375_v16  ;;  %v379_v27 = vrot.slane %v375_v16, 4  ;;  %v386_v28 = vor.u32 %v384_v12, %v383_v17  ;;  %v388_v29 = vrot.slane %v383_v17, 4  ;;  %v234_v12 = vld [vmem:[%s15501_s15 + $0x50] sm:$0xff]  ;;  %s15406_s13 = smov [#allocation3]  }
  0x23   : > { %13576 = vmatpush3.bf16.msra.mxu0 %v14989_v3  ;;  %v361_v53 = vor.u32 %v359_v32, %v358_v41  ;;  %v362_v54 = vrot.slane %v358_v41, 4  ;;  %v369_v55 = vor.u32 %v367_v34, %v366_v42  ;;  %v371_v56 = vrot.slane %v366_v42, 4  ;;  %v14993_v3 = vld [vmem:[%s19949_s1 + $0x78] sm:$0xff]   ;;  %s15346_s14 = sshll.u32 %s15406_s13, 4  ;;  %s15347_s14 = int_to_ptr.vmem [resolvable:$false] %s15346_s14 }
  0x24   : > { %13577 = vmatprep.subr.bf16.mxu0 %v14990_v8  ;;  %v387_v36 = vsel %vm15512_vm5, %v379_v27, %v386_v28  ;;  %v794_v37 = vsel %vm15519_vm6, %v378_v26, %v793_v14  ;;  %v798_v38 = vsel %vm15526_vm7, %v388_v29, %v797_v19  ;;  %v689_v39 = vsel %vm15519_vm6, %v378_v26, %v688_v24  ;;  %v702_v19 = vld [vmem:[#allocation2 + $0x30] sm:$0xf]  ;;  %v15584_v28 = vld [vmem:[%s19949_s1] sm:$0xff]   ;;  %s15348_s16 = scalar_lea.vmem %s15347_s14, 8192  ;;  %p15349_p0 = scmp.lt.s32.totalorder %s19883_s9, %s15347_s14 }
  0x25   : > { %691 = vst [vmem:[#allocation2 + $0x1c] sm:$0xf] %v387_v36  ;;  %795 = vst [vmem:[#allocation2] sm:$0xf] %v794_v37  ;;  %v693_v44 = vsel %vm15526_vm7, %v388_v29, %v692_v25  ;;  %v398_v59 = vshrl.u32 %v13077_v49, 16  ;;  %v401_v60 = vshll.u32 %v13077_v49, 16  ;;  %v370_v61 = vsel %vm15512_vm5, %v362_v54, %v369_v55 }
  0x26   : > { %796 = vst [vmem:[#allocation2 + $0x4] sm:$0xf] %v387_v36  ;;  %799 = vst [vmem:[#allocation2 + $0x8] sm:$0x1] %v798_v38  ;;  %v680_v62 = vsel %vm15519_vm6, %v361_v53, %v679_v43  ;;  %v686_v63 = vsel %vm15526_vm7, %v371_v56, %v685_v48  ;;  %v407_v0 = vshrl.u32 %v13078_v50, 16  ;;  %v392_v4 = vrot.slane %v390_v57, 7 }
  0x27   : > { %690 = vst [vmem:[#allocation2 + $0x18] sm:$0xf] %v689_v39  ;;  %13578 = vmatpush3.bf16.msra.mxu0 %v14990_v8  ;;  %694 = vst [vmem:[#allocation2 + $0x20] sm:$0x1] %v693_v44  ;;  %v15563_v5 = vrot.slane %v398_v59, 7  ;;  %v410_v7 = vshll.u32 %v13078_v50, 16  ;;  %v15576_v20 = vpack.c.bf16 %v232_v1, %v232_v1  ;;  %v15578_v21 = vpack.c.bf16 %v233_v2, %v233_v2 }
  0x28   : > { %13579 = vmatprep.subr.bf16.mxu0 %v14991_v30  ;;  %681 = vst [vmem:[#allocation2 + $0xc] sm:$0xf] %v680_v62  ;;  %682 = vst [vmem:[#allocation2 + $0x10] sm:$0xf] %v370_v61  ;;  %v20042_v8 = vmov 0  ;;  %v15571_v9 = vrot.slane %v407_v0, 7  ;;  %v395_v17 = vor.u32 %v393_v58, %v392_v4  ;;  %v15590_v36 = vpack.c.bf16 %v234_v12, %v234_v12 }
  0x29   : > { %687 = vst [vmem:[#allocation2 + $0x14] sm:$0x1] %v686_v63  ;;  %v20043_v8 = vsel %vm15567_vm8, 4294967295, %v20042_v8  ;;  %v415_v10 = vshrl.u32 %v15547_v51, 16  ;;  %v418_v11 = vshll.u32 %v15547_v51, 16  ;;  %v403_v29 = vor.u32 %v401_v60, %v15563_v5  ;;  %v237_v12 = vld [vmem:[%s15501_s15 + $0x68] sm:$0xff] }
  0x2a   : > { %20044 = vst [vmem:[#allocation9_spill] sm:$0xff] %v20043_v8  ;;  %v696_v35 = vsel %vm15519_vm6, %v395_v17, %v695_v6  ;;  %v396_v42 = vrot.slane %v392_v4, 4  ;;  %v699_v43 = vld [vmem:[#allocation2 + $0x2c] sm:$0x1]  ;;  %v405_v48 = vrot.slane %v15563_v5, 4  ;;  %v15605_v56 = vpack.c.bf16 %v235_v23, %v235_v23 }
  0x2b   : > { %13580 = vmatpush3.bf16.msra.mxu0 %v14991_v30  ;;  %v412_v30 = vor.u32 %v410_v7, %v15571_v9  ;;  %697 = vst [vmem:[#allocation2 + $0x24] sm:$0xf] %v696_v35  ;;  %v236_v7 = vld [vmem:[%s15501_s15 + $0x60] sm:$0xff]  ;;  %vm2192_vm13 = vcmask 1046532  }
  0x2c   : > { %13581 = vmatprep.subr.bf16.mxu0 %v14992_v52  ;;  %v808_v14 = vld [vmem:[#allocation2] sm:$0x2]  ;;  %v898_v15 = vld [vmem:[#allocation2] sm:$0x1]  ;;  %v954_v40 = vld [vmem:[#allocation2 + $0x1c] sm:$0x8]  ;;  %v404_v54 = vsel %vm15512_vm5, %v396_v42, %v403_v29  ;;  %v700_v6 = vsel %vm15526_vm7, %v405_v48, %v699_v43 }
  0x2d   : > { %v952_v16 = vld [vmem:[#allocation2 + $0x4] sm:$0x8]  ;;  %v12176_v24 = vrot.slane %v808_v14, 9  ;;  %v1043_v26 = vld [vmem:[#allocation2 + $0x8] sm:$0x1]  ;;  %v12196_v46 = vrot.slane %v954_v40, 11  ;;  %v703_v55 = vsel %vm15519_vm6, %v412_v30, %v702_v19  ;;  %vm16147_vm14 = vmor %vm2191_vm12, %vm2192_vm13 }
  0x2e   : > { %v12194_v25 = vrot.slane %v952_v16, 11  ;;  %v1098_v27 = vld [vmem:[#allocation2 + $0x4] sm:$0xf]  ;;  %v810_v33 = vld [vmem:[#allocation2 + $0x18] sm:$0x2] }
  0x2f   : > { %13582 = vmatpush3.bf16.msra.mxu0 %v14992_v52  ;;  %v1174_v31 = vshll.u32 %v1098_v27, 16  ;;  %v1178_v32 = vshrl.u32 %v1098_v27, 16  ;;  %v904_v34 = vld [vmem:[#allocation2 + $0x18] sm:$0x1]  ;;  %v899_v37 = vsel %vm15526_vm7, %v12176_v24, %v898_v15  ;;  %v12178_v39 = vrot.slane %v810_v33, 9 }
  0x30   : > { %13583 = vmatprep.subr.bf16.mxu0 %v14993_v3  ;;  %v1044_v38 = vsel %vm15567_vm8, %v12194_v25, %v1043_v26  ;;  %v1049_v41 = vld [vmem:[#allocation2 + $0x20] sm:$0x1]  ;;  %900 = vst [vmem:[#allocation2] sm:$0x1] %v899_v37  ;;  %v1102_v47 = vld [vmem:[#allocation2 + $0x1c] sm:$0xf]  ;;  %v15630_v26 = vpack.c.bf16 %v236_v7, %v236_v7  ;;  %v15632_v27 = vpack.c.bf16 %v237_v12, %v237_v12 }
  0x31   : > { %1045 = vst [vmem:[#allocation2 + $0x8] sm:$0x1] %v1044_v38  ;;  %v15596_v44 = vrot.slane %v1174_v31, 5  ;;  %v1180_v45 = vrot.slane %v1178_v32, 4  ;;  %v809_v49 = vld [vmem:[#allocation2 + $0xc] sm:$0x2]  ;;  %v905_v53 = vsel %vm15526_vm7, %v12178_v39, %v904_v34  ;;  %v1050_v62 = vsel %vm15567_vm8, %v12196_v46, %v1049_v41 }
  0x32   : > { %v901_v50 = vld [vmem:[#allocation2 + $0xc] sm:$0x1]  ;;  %v953_v52 = vld [vmem:[#allocation2 + $0x10] sm:$0x8]  ;;  %v12177_v58 = vrot.slane %v809_v49, 9  ;;  %v1222_v1 = vshll.u32 %v1102_v47, 16 }
  0x33   : > { %13584 = vmatpush3.bf16.msra.mxu0 %v14993_v3  ;;  %v1181_v57 = vor.u32 %v1180_v45, %v15596_v44  ;;  %v12195_v59 = vrot.slane %v953_v52, 11  ;;  %v1046_v60 = vld [vmem:[#allocation2 + $0x14] sm:$0x1]  ;;  %v1100_v61 = vld [vmem:[#allocation2 + $0x10] sm:$0xf]  ;;  %v1226_v2 = vshrl.u32 %v1102_v47, 16 }
  0x34   : > { %906 = vst [vmem:[#allocation2 + $0x18] sm:$0x1] %v905_v53  ;;  %698 = vst [vmem:[#allocation2 + $0x28] sm:$0xf] %v404_v54  ;;  %13617 = vmatprep.subr.bf16.mxu0 %v15584_v28  ;;  %v1198_v63 = vshll.u32 %v1100_v61, 16  ;;  %v1202_v0 = vshrl.u32 %v1100_v61, 16  ;;  %v902_v4 = vsel %vm15526_vm7, %v12177_v58, %v901_v50 }
  0x35   : > { %704 = vst [vmem:[#allocation2 + $0x30] sm:$0xf] %v703_v55  ;;  %1051 = vst [vmem:[#allocation2 + $0x20] sm:$0x1] %v1050_v62  ;;  %v15611_v3 = vrot.slane %v1181_v57, 4  ;;  %v1047_v5 = vsel %vm15567_vm8, %v12195_v59, %v1046_v60  ;;  %v15623_v16 = vrot.slane %v1222_v1, 5 }
  0x36   : > { %903 = vst [vmem:[#allocation2 + $0xc] sm:$0x1] %v902_v4  ;;  %1048 = vst [vmem:[#allocation2 + $0x14] sm:$0x1] %v1047_v5  ;;  %v15621_v14 = vrot.slane %v1198_v63, 5  ;;  %v1204_v15 = vrot.slane %v1202_v0, 4 }
  0x37   : > { %v1228_v17 = vrot.slane %v1226_v2, 4  ;;  %701 = vst [vmem:[#allocation2 + $0x2c] sm:$0x1] %v700_v6  ;;  %v811_v19 = vld [vmem:[#allocation2 + $0x24] sm:$0x2]  ;;  %v413_v24 = vrot.slane %v15571_v9, 4 }
  0x38   : > { %v907_v23 = vld [vmem:[#allocation2 + $0x24] sm:$0x1]  ;;  %v15628_v25 = vrot.slane %v415_v10, 7  ;;  %v1097_v29 = vld [vmem:[#allocation2] sm:$0xf]  ;;  %v1205_v31 = vor.u32 %v1204_v15, %v15621_v14  ;;  %v12179_v33 = vrot.slane %v811_v19, 9 }
  0x39   : > { %v1145_v30 = vld [vmem:[#allocation2 + $0x8] sm:$0x1]  ;;  %v1229_v32 = vor.u32 %v1228_v17, %v15623_v16  ;;  %v424_v34 = vshrl.u32 %v15576_v20, 16  ;;  %v1165_v35 = vshrl.u32 %v1097_v29, 16  ;;  %v1168_v37 = vshll.u32 %v1097_v29, 16  ;;  %v238_v38 = vld [vmem:[%s15501_s15 + $0x70] sm:$0xff] }
  0x3a   : > { %v1184_v9 = vshll.u32 %v1145_v30, 16  ;;  %v420_v10 = vor.u32 %v418_v11, %v15628_v25  ;;  %v20045_v39 = vmov 0  ;;  %v15647_v40 = vrot.slane %v1205_v31, 4 }
  0x3b   : > { %v20046_v39 = vsel %vm15643_vm11, 4294967295, %v20045_v39  ;;  %v1101_v41 = vld [vmem:[#allocation2 + $0x18] sm:$0xf]  ;;  %v1230_v42 = vrot.slane %v1229_v32, 4  ;;  %v908_v43 = vsel %vm15526_vm7, %v12179_v33, %v907_v23  ;;  %v955_v45 = vld [vmem:[#allocation2 + $0x28] sm:$0x8]  ;;  %v15651_v46 = vpack.c.bf16 %v238_v38, %v238_v38 }
  0x3c   : > { %20047 = vst [vmem:[#allocation10_spill] sm:$0xff] %v20046_v39  ;;  %v1167_v47 = vrot.slane %v1165_v35, 4  ;;  %v1170_v51 = vrot.slane %v1168_v37, 5  ;;  %v1186_v11 = vrot.slane %v1184_v9, 5  ;;  %v1147_v48 = vld [vmem:[#allocation2 + $0x20] sm:$0x1]  ;;  %v421_v55 = vsel %vm15512_vm5, %v413_v24, %v420_v10 }
  0x3d   : > { %v1213_v49 = vshrl.u32 %v1101_v41, 16  ;;  %909 = vst [vmem:[#allocation2 + $0x24] sm:$0x1] %v908_v43  ;;  %v1216_v50 = vshll.u32 %v1101_v41, 16  ;;  %v1232_v52 = vshll.u32 %v1147_v48, 16  ;;  %v12197_v53 = vrot.slane %v955_v45, 11 }
  0x3e   : > { %v1104_v54 = vld [vmem:[#allocation2 + $0x28] sm:$0xf]  ;;  %v1171_v57 = vor.u32 %v1170_v51, %v1167_v47  ;;  %v1187_v58 = vsel %vm15643_vm11, %v15611_v3, %v1186_v11  ;;  %v1099_v59 = vld [vmem:[#allocation2 + $0xc] sm:$0xf]  ;;  %v1146_v60 = vld [vmem:[#allocation2 + $0x14] sm:$0x1] }
  0x3f   : > { %v1215_v61 = vrot.slane %v1213_v49, 4  ;;  %v1246_v62 = vshll.u32 %v1104_v54, 16  ;;  %705 = vst [vmem:[#allocation2 + $0x34] sm:$0xf] %v421_v55  ;;  %v1189_v63 = vshrl.u32 %v1099_v59, 16  ;;  %v1192_v0 = vshll.u32 %v1099_v59, 16 }
  0x40   : > { %v1208_v1 = vshll.u32 %v1146_v60, 16  ;;  %v1218_v2 = vrot.slane %v1216_v50, 5  ;;  %v1052_v4 = vld [vmem:[#allocation2 + $0x2c] sm:$0x1]  ;;  %v1172_v5 = vrot.slane %v1171_v57, 4  ;;  %v1234_v6 = vrot.slane %v1232_v52, 5 }
  0x41   : > { %v1053_v7 = vsel %vm15567_vm8, %v12197_v53, %v1052_v4  ;;  %v15660_v12 = vrot.slane %v1246_v62, 5  ;;  %v1191_v15 = vrot.slane %v1189_v63, 4  ;;  %v1194_v3 = vrot.slane %v1192_v0, 5  ;;  %v706_v23 = vld [vmem:[#allocation2 + $0x38] sm:$0x1]  ;;  %v14995_v55 = vld [vmem:[%s19949_s1 + $0x8] sm:$0xff]  }
  0x42   : > { %v1210_v17 = vrot.slane %v1208_v1, 5  ;;  %v1219_v19 = vor.u32 %v1218_v2, %v1215_v61  ;;  %1054 = vst [vmem:[#allocation2 + $0x2c] sm:$0x1] %v1053_v7  ;;  %v239_v24 = vld [vmem:[%s15501_s15 + $0x78] sm:$0xff]  ;;  %v1177_v29 = vsel %vm15643_vm11, %v1172_v5, %v15596_v44  ;;  %v1235_v30 = vsel %vm15643_vm11, %v1230_v42, %v1234_v6  ;;  %v812_v33 = vld [vmem:[#allocation2 + $0x30] sm:$0x2] }
  0x43   : > { %v1250_v31 = vshrl.u32 %v1104_v54, 16  ;;  %v422_v32 = vrot.slane %v15628_v25, 4  ;;  %v910_v35 = vld [vmem:[#allocation2 + $0x30] sm:$0x1]  ;;  %v12228_v37 = vcombine.low %v1177_v29, %v1187_v58  ;;  %v1195_v9 = vor.u32 %v1194_v3, %v1191_v15  ;;  %v709_v0 = vld [vmem:[#allocation2 + $0x3c] sm:$0xf] }
  0x44   : > { %v1211_v10 = vsel %vm15643_vm11, %v15647_v40, %v1210_v17  ;;  %v1220_v38 = vrot.slane %v1219_v19, 4  ;;  %v1103_v41 = vld [vmem:[#allocation2 + $0x24] sm:$0xf]  ;;  %v12180_v51 = vrot.slane %v812_v33, 9  ;;  %v15677_v49 = vpack.c.bf16 %v239_v24, %v239_v24 }
  0x45   : > { %v1237_v43 = vshrl.u32 %v1103_v41, 16  ;;  %v1240_v45 = vshll.u32 %v1103_v41, 16  ;;  %v1252_v47 = vrot.slane %v1250_v31, 4  ;;  %v707_v44 = vsel %vm15526_vm7, %v422_v32, %v706_v23  ;;  %13585 = vmatprep.mubr.bf16.mxu0 %v12228_v37 }
  0x46   : > { %v1196_v42 = vrot.slane %v1195_v9, 4  ;;  %v1225_v25 = vsel %vm15643_vm11, %v1220_v38, %v15623_v16  ;;  %708 = vst [vmem:[#allocation2 + $0x38] sm:$0x1] %v707_v44  ;;  %v956_v11 = vld [vmem:[#allocation2 + $0x34] sm:$0x8]  ;;  %v911_v16 = vsel %vm15526_vm7, %v12180_v51, %v910_v35  ;;  %v427_v4 = vshll.u32 %v15576_v20, 16 }
  0x47   : > { %v1106_v48 = vld [vmem:[#allocation2 + $0x34] sm:$0xf]  ;;  %v12230_v40 = vcombine.low %v1225_v25, %v1235_v30  ;;  %v1239_v50 = vrot.slane %v1237_v43, 4  ;;  %v1242_v52 = vrot.slane %v1240_v45, 5  ;;  %v1253_v53 = vor.u32 %v1252_v47, %v15660_v12  ;;  %912 = vst [vmem:[#allocation2 + $0x30] sm:$0x1] %v911_v16 }
  0x48   : > { %v1201_v54 = vsel %vm15643_vm11, %v1196_v42, %v15621_v14  ;;  %v12198_v57 = vrot.slane %v956_v11, 11  ;;  %v1270_v58 = vshll.u32 %v1106_v48, 16  ;;  %v1274_v63 = vshrl.u32 %v1106_v48, 16  ;;  %v716_v38 = vld [vmem:[#allocation2 + $0x48] sm:$0xf]  ;;  %v14997_v11 = vld [vmem:[%s19949_s1 + $0x18] sm:$0xff]  }
  0x49   : > { %v12229_v59 = vcombine.low %v1201_v54, %v1211_v10  ;;  %v1148_v60 = vld [vmem:[#allocation2 + $0x2c] sm:$0x1]  ;;  %v1243_v61 = vor.u32 %v1242_v52, %v1239_v50  ;;  %v1254_v62 = vrot.slane %v1253_v53, 4  ;;  %v426_v14 = vrot.slane %v424_v34, 7 }
  0x4a   : > { %v1256_v1 = vshll.u32 %v1148_v60, 16  ;;  %v15688_v2 = vrot.slane %v1270_v58, 5  ;;  %v1276_v6 = vrot.slane %v1274_v63, 4  ;;  %v432_v7 = vshrl.u32 %v15578_v21, 16 }
  0x4b   : > { %13586 = vmatmul.mubr.bf16.vlgmr.msra.gmra.mrb[0].mxu0 %v12229_v59  ;;  %v1244_v5 = vrot.slane %v1243_v61, 4  ;;  %v435_v15 = vshll.u32 %v15578_v21, 16  ;;  %v429_v17 = vor.u32 %v427_v4, %v426_v14  ;;  %v430_v19 = vrot.slane %v426_v14, 4  ;;  %v14996_v21 = vld [vmem:[%s19949_s1 + $0x10] sm:$0xff]  }
  0x4c   : > { %13618 = vmatpush3.bf16.msra.mxu0 %v15584_v28  ;;  %13589 = vmatprep.mubr.bf16.mxu0 %v12230_v40  ;;  %v1258_v3 = vrot.slane %v1256_v1, 5  ;;  %v441_v23 = vshrl.u32 %v15590_v36, 16  ;;  %v1277_v24 = vor.u32 %v1276_v6, %v15688_v2  ;;  %v434_v29 = vrot.slane %v432_v7, 7  ;;  %v720_v40 = vld [vmem:[#allocation2 + $0x50] sm:$0x1] }
  0x4d   : > { %13619 = vmatprep.subr.bf16.mxu0 %v14995_v55  ;;  %v1249_v20 = vsel %vm15643_vm11, %v1244_v5, %v15660_v12  ;;  %v1055_v34 = vld [vmem:[#allocation2 + $0x38] sm:$0x1]  ;;  %v444_v28 = vshll.u32 %v15590_v36, 16  ;;  %v710_v32 = vsel %vm15519_vm6, %v429_v17, %v709_v0  ;;  %v713_v12 = vld [vmem:[#allocation2 + $0x44] sm:$0x1]  ;;  %v449_v45 = vshrl.u32 %v15605_v56, 16 }
  0x4e   : > { %v1259_v30 = vsel %vm15643_vm11, %v1254_v62, %v1258_v3  ;;  %v1056_v31 = vsel %vm15567_vm8, %v12198_v57, %v1055_v34  ;;  %v443_v33 = vrot.slane %v441_v23, 7  ;;  %v15711_v37 = vrot.slane %v1277_v24, 4  ;;  %711 = vst [vmem:[#allocation2 + $0x3c] sm:$0xf] %v710_v32  ;;  %v1105_v36 = vld [vmem:[#allocation2 + $0x30] sm:$0xf] }
  0x4f   : > { %v12231_v35 = vcombine.low %v1249_v20, %v1259_v30  ;;  %1057 = vst [vmem:[#allocation2 + $0x38] sm:$0x1] %v1056_v31  ;;  %v437_v9 = vor.u32 %v435_v15, %v434_v29  ;;  %v439_v10 = vrot.slane %v434_v29, 4  ;;  %v452_v47 = vshll.u32 %v15605_v56, 16  ;;  %v240_v57 = vld [vmem:[%s15501_s15 + $0x80] sm:$0xff] }
  0x50   : > { %13620 = vmatpush3.bf16.msra.mxu0 %v14995_v55  ;;  %v446_v41 = vor.u32 %v444_v28, %v443_v33  ;;  %v447_v43 = vrot.slane %v443_v33, 4  ;;  %v1261_v44 = vshrl.u32 %v1105_v36, 16  ;;  %v1264_v42 = vshll.u32 %v1105_v36, 16  ;;  %v723_v61 = vld [vmem:[#allocation2 + $0x54] sm:$0xf]  ;;  %v14999_v28 = vld [vmem:[%s19949_s1 + $0x28] sm:$0xff]  }
  0x51   : > { %13621 = vmatprep.subr.bf16.mxu0 %v14996_v21  ;;  %v438_v25 = vsel %vm15512_vm5, %v430_v19, %v437_v9  ;;  %v714_v51 = vsel %vm15526_vm7, %v439_v10, %v713_v12  ;;  %v451_v48 = vrot.slane %v449_v45, 7  ;;  %v458_v50 = vshrl.u32 %v15630_v26, 16  ;;  %v730_v9 = vld [vmem:[#allocation2 + $0x60] sm:$0xf]  ;;  %v241_v45 = vld [vmem:[%s15501_s15 + $0x88] sm:$0xff] }
  0x52   : > { %712 = vst [vmem:[#allocation2 + $0x40] sm:$0xf] %v438_v25  ;;  %715 = vst [vmem:[#allocation2 + $0x44] sm:$0x1] %v714_v51  ;;  %v717_v56 = vsel %vm15519_vm6, %v446_v41, %v716_v38  ;;  %v461_v52 = vshll.u32 %v15630_v26, 16  ;;  %v1263_v53 = vrot.slane %v1261_v44, 4  ;;  %v15739_v17 = vpack.c.bf16 %v240_v57, %v240_v57 }
  0x53   : > { %13590 = vmatmul.mubr.bf16.gmra.mrb[4].mxu0 %v12231_v35  ;;  %v1266_v54 = vrot.slane %v1264_v42, 5  ;;  %718 = vst [vmem:[#allocation2 + $0x48] sm:$0xf] %v717_v56  ;;  %v466_v55 = vshrl.u32 %v15632_v27, 16  ;;  %v469_v16 = vshll.u32 %v15632_v27, 16  ;;  %v454_v58 = vor.u32 %v452_v47, %v451_v48  ;;  %v14998_v27 = vld [vmem:[%s19949_s1 + $0x20] sm:$0xff]  }
  0x54   : > { %13622 = vmatpush3.bf16.msra.mxu0 %v14996_v21  ;;  %v456_v59 = vrot.slane %v451_v48, 4  ;;  %v460_v60 = vrot.slane %v458_v50, 7  ;;  %v475_v62 = vshrl.u32 %v15651_v46, 16  ;;  %v727_v26 = vld [vmem:[#allocation2 + $0x5c] sm:$0x1]  ;;  %v478_v1 = vshll.u32 %v15651_v46, 16 }
  0x55   : > { %v1267_v63 = vor.u32 %v1266_v54, %v1263_v53  ;;  %13623 = vmatprep.subr.bf16.mxu0 %v14997_v11  ;;  %v468_v0 = vrot.slane %v466_v55, 7  ;;  %v483_v14 = vshrl.u32 %v15677_v49, 16  ;;  %v813_v5 = vld [vmem:[#allocation2 + $0x3c] sm:$0x2]  ;;  %v913_v6 = vld [vmem:[#allocation2 + $0x3c] sm:$0x1]  ;;  %v455_v7 = vsel %vm15512_vm5, %v447_v43, %v454_v58 }
  0x56   : > { %v1149_v4 = vld [vmem:[#allocation2 + $0x38] sm:$0x1]  ;;  %v721_v15 = vsel %vm15526_vm7, %v456_v59, %v720_v40  ;;  %v463_v3 = vor.u32 %v461_v52, %v460_v60  ;;  %v12181_v23 = vrot.slane %v813_v5, 9  ;;  %719 = vst [vmem:[#allocation2 + $0x4c] sm:$0xf] %v455_v7  ;;  %v464_v20 = vrot.slane %v460_v60, 4 }
  0x57   : > { %v1268_v19 = vrot.slane %v1267_v63, 4  ;;  %v1280_v46 = vshll.u32 %v1149_v4, 16  ;;  %722 = vst [vmem:[#allocation2 + $0x50] sm:$0x1] %v721_v15  ;;  %v471_v34 = vor.u32 %v469_v16, %v468_v0  ;;  %v473_v24 = vrot.slane %v468_v0, 4  ;;  %v15000_v16 = vld [vmem:[%s19949_s1 + $0x30] sm:$0xff]  }
  0x58   : > { %v724_v21 = vsel %vm15519_vm6, %v463_v3, %v723_v61  ;;  %13624 = vmatpush3.bf16.msra.mxu0 %v14997_v11  ;;  %v477_v29 = vrot.slane %v475_v62, 7  ;;  %v914_v32 = vsel %vm15526_vm7, %v12181_v23, %v913_v6  ;;  %v485_v35 = vrot.slane %v483_v14, 7  ;;  %v242_v11 = vld [vmem:[%s15501_s15 + $0x90] sm:$0xff]  ;;  %v734_v52 = vld [vmem:[#allocation2 + $0x68] sm:$0x1]  ;;  %v243_v14 = vld [vmem:[%s15501_s15 + $0x98] sm:$0xff] }
  0x59   : > { %v1273_v30 = vsel %vm15643_vm11, %v1268_v19, %v15688_v2  ;;  %v1282_v31 = vrot.slane %v1280_v46, 5  ;;  %v957_v12 = vld [vmem:[#allocation2 + $0x40] sm:$0x8]  ;;  %v1058_v33 = vld [vmem:[#allocation2 + $0x44] sm:$0x1]  ;;  %13625 = vmatprep.subr.bf16.mxu0 %v14998_v27  ;;  %v472_v41 = vsel %vm15512_vm5, %v464_v20, %v471_v34  ;;  %v728_v2 = vsel %vm15526_vm7, %v473_v24, %v727_v26  ;;  %v15001_v34 = vld [vmem:[%s19949_s1 + $0x38] sm:$0xff]  }
  0x5a   : > { %725 = vst [vmem:[#allocation2 + $0x54] sm:$0xf] %v724_v21  ;;  %915 = vst [vmem:[#allocation2 + $0x3c] sm:$0x1] %v914_v32  ;;  %v12199_v10 = vrot.slane %v957_v12, 11  ;;  %v480_v43 = vor.u32 %v478_v1, %v477_v29  ;;  %v481_v40 = vrot.slane %v477_v29, 4  ;;  %v15772_v61 = vpack.c.bf16 %v241_v45, %v241_v45 }
  0x5b   : > { %v1108_v38 = vld [vmem:[#allocation2 + $0x40] sm:$0xf]  ;;  %v814_v36 = vld [vmem:[#allocation2 + $0x48] sm:$0x2]  ;;  %v1283_v47 = vsel %vm15643_vm11, %v15711_v37, %v1282_v31  ;;  %v916_v51 = vld [vmem:[#allocation2 + $0x48] sm:$0x1]  ;;  %v15774_v62 = vpack.c.bf16 %v242_v11, %v242_v11 }
  0x5c   : > { %v1294_v44 = vshll.u32 %v1108_v38, 16  ;;  %v1298_v42 = vshrl.u32 %v1108_v38, 16  ;;  %v12182_v25 = vrot.slane %v814_v36, 9  ;;  %726 = vst [vmem:[#allocation2 + $0x58] sm:$0xf] %v472_v41  ;;  %v12232_v48 = vcombine.low %v1273_v30, %v1283_v47  ;;  %13626 = vmatpush3.bf16.msra.mxu0 %v14998_v27 }
  0x5d   : > { %729 = vst [vmem:[#allocation2 + $0x5c] sm:$0x1] %v728_v2  ;;  %v1059_v56 = vsel %vm15567_vm8, %v12199_v10, %v1058_v33  ;;  %v486_v50 = vshll.u32 %v15677_v49, 16  ;;  %v490_v55 = vrot.slane %v485_v35, 4  ;;  %13627 = vmatprep.subr.bf16.mxu0 %v14999_v28  ;;  %v958_v57 = vld [vmem:[#allocation2 + $0x4c] sm:$0x8]  ;;  %v731_v60 = vsel %vm15519_vm6, %v480_v43, %v730_v9 }
  0x5e   : > { %1060 = vst [vmem:[#allocation2 + $0x44] sm:$0x1] %v1059_v56  ;;  %v15763_v53 = vrot.slane %v1294_v44, 5  ;;  %v1300_v37 = vrot.slane %v1298_v42, 4  ;;  %v917_v54 = vsel %vm15526_vm7, %v12182_v25, %v916_v51  ;;  %13593 = vmatprep.mubr.bf16.mxu0 %v12232_v48  ;;  %v1061_v49 = vld [vmem:[#allocation2 + $0x50] sm:$0x1] }
  0x5f   : > { %918 = vst [vmem:[#allocation2 + $0x48] sm:$0x1] %v917_v54  ;;  %v1110_v58 = vld [vmem:[#allocation2 + $0x4c] sm:$0xf]  ;;  %v488_v59 = vor.u32 %v486_v50, %v485_v35  ;;  %v12200_v0 = vrot.slane %v958_v57, 11  ;;  %v735_v6 = vsel %vm15526_vm7, %v490_v55, %v734_v52  ;;  %v492_v7 = vshrl.u32 %v15739_v17, 16 }
  0x60   : > { %v1301_v63 = vor.u32 %v1300_v37, %v15763_v53  ;;  %v1318_v26 = vshll.u32 %v1110_v58, 16  ;;  %v1322_v1 = vshrl.u32 %v1110_v58, 16  ;;  %732 = vst [vmem:[#allocation2 + $0x60] sm:$0xf] %v731_v60  ;;  %v495_v15 = vshll.u32 %v15739_v17, 16  ;;  %13628 = vmatpush3.bf16.msra.mxu0 %v14999_v28  ;;  %v15003_v42 = vld [vmem:[%s19949_s1 + $0x80] sm:$0xff]  }
  0x61   : > { %v815_v27 = vld [vmem:[#allocation2 + $0x54] sm:$0x2]  ;;  %v919_v4 = vld [vmem:[#allocation2 + $0x54] sm:$0x1]  ;;  %v489_v5 = vsel %vm15512_vm5, %v481_v40, %v488_v59  ;;  %v1107_v3 = vld [vmem:[#allocation2 + $0x3c] sm:$0xf]  ;;  %v1062_v46 = vsel %vm15567_vm8, %v12200_v0, %v1061_v49  ;;  %13629 = vmatprep.subr.bf16.mxu0 %v15000_v16  ;;  %v15797_v35 = vpack.c.bf16 %v243_v14, %v243_v14 }
  0x62   : > { %v15784_v19 = vrot.slane %v1301_v63, 4  ;;  %v15788_v23 = vrot.slane %v1318_v26, 5  ;;  %v1324_v20 = vrot.slane %v1322_v1, 4  ;;  %733 = vst [vmem:[#allocation2 + $0x64] sm:$0xf] %v489_v5  ;;  %v1285_v24 = vshrl.u32 %v1107_v3, 16 }
  0x63   : > { %736 = vst [vmem:[#allocation2 + $0x68] sm:$0x1] %v735_v6  ;;  %v1288_v21 = vshll.u32 %v1107_v3, 16  ;;  %1063 = vst [vmem:[#allocation2 + $0x50] sm:$0x1] %v1062_v46  ;;  %v12183_v17 = vrot.slane %v815_v27, 9 }
  0x64   : > { %v959_v29 = vld [vmem:[#allocation2 + $0x58] sm:$0x8]  ;;  %v15793_v28 = vrot.slane %v492_v7, 7  ;;  %v1325_v30 = vor.u32 %v1324_v20, %v15788_v23  ;;  %v1064_v32 = vld [vmem:[#allocation2 + $0x5c] sm:$0x1]  ;;  %v500_v33 = vshrl.u32 %v15772_v61, 16  ;;  %13630 = vmatpush3.bf16.msra.mxu0 %v15000_v16 }
  0x65   : > { %v12201_v31 = vrot.slane %v959_v29, 11  ;;  %v1112_v12 = vld [vmem:[#allocation2 + $0x58] sm:$0xf]  ;;  %v1150_v9 = vld [vmem:[#allocation2 + $0x44] sm:$0x1]  ;;  %v1287_v10 = vrot.slane %v1285_v24, 4  ;;  %v920_v36 = vsel %vm15526_vm7, %v12183_v17, %v919_v4  ;;  %13631 = vmatprep.subr.bf16.mxu0 %v15001_v34 }
  0x66   : > { %v1290_v38 = vrot.slane %v1288_v21, 5  ;;  %v1342_v41 = vshll.u32 %v1112_v12, 16  ;;  %v1304_v2 = vshll.u32 %v1150_v9, 16  ;;  %v1109_v43 = vld [vmem:[#allocation2 + $0x48] sm:$0xf]  ;;  %v1326_v45 = vrot.slane %v1325_v30, 4 }
  0x67   : > { %921 = vst [vmem:[#allocation2 + $0x54] sm:$0x1] %v920_v36  ;;  %v1065_v47 = vsel %vm15567_vm8, %v12201_v31, %v1064_v32  ;;  %v1346_v44 = vshrl.u32 %v1112_v12, 16  ;;  %v1309_v51 = vshrl.u32 %v1109_v43, 16  ;;  %v1312_v11 = vshll.u32 %v1109_v43, 16 }
  0x68   : > { %v1291_v25 = vor.u32 %v1290_v38, %v1287_v10  ;;  %1066 = vst [vmem:[#allocation2 + $0x5c] sm:$0x1] %v1065_v47  ;;  %v15806_v48 = vrot.slane %v1342_v41, 5  ;;  %v816_v56 = vld [vmem:[#allocation2 + $0x60] sm:$0x2]  ;;  %v1306_v40 = vrot.slane %v1304_v2, 5  ;;  %v497_v54 = vor.u32 %v495_v15, %v15793_v28  ;;  %13632 = vmatpush3.bf16.msra.mxu0 %v15001_v34 }
  0x69   : > { %v1348_v50 = vrot.slane %v1346_v44, 4  ;;  %v12184_v52 = vrot.slane %v816_v56, 9  ;;  %v922_v37 = vld [vmem:[#allocation2 + $0x60] sm:$0x1]  ;;  %v1311_v16 = vrot.slane %v1309_v51, 4  ;;  %v1314_v57 = vrot.slane %v1312_v11, 5  ;;  %13665 = vmatprep.subr.bf16.mxu0 %v15003_v42 }
  0x6a   : > { %v1292_v55 = vrot.slane %v1291_v25, 4  ;;  %v960_v49 = vld [vmem:[#allocation2 + $0x64] sm:$0x8]  ;;  %v498_v58 = vrot.slane %v15793_v28, 4  ;;  %v1307_v59 = vsel %vm15643_vm11, %v15784_v19, %v1306_v40  ;;  %v1151_v60 = vld [vmem:[#allocation2 + $0x50] sm:$0x1] }
  0x6b   : > { %v1349_v63 = vor.u32 %v1348_v50, %v15806_v48  ;;  %v923_v0 = vsel %vm15526_vm7, %v12184_v52, %v922_v37  ;;  %v12202_v26 = vrot.slane %v960_v49, 11  ;;  %v1067_v1 = vld [vmem:[#allocation2 + $0x68] sm:$0x1]  ;;  %v1315_v27 = vor.u32 %v1314_v57, %v1311_v16  ;;  %v1114_v5 = vld [vmem:[#allocation2 + $0x64] sm:$0xf] }
  0x6c   : > { %v1297_v14 = vsel %vm15643_vm11, %v1292_v55, %v15763_v53  ;;  %v1328_v4 = vshll.u32 %v1151_v60, 16  ;;  %924 = vst [vmem:[#allocation2 + $0x60] sm:$0x1] %v923_v0  ;;  %v502_v6 = vrot.slane %v500_v33, 7  ;;  %v1366_v19 = vshll.u32 %v1114_v5, 16 }
  0x6d   : > { %v12233_v7 = vcombine.low %v1297_v14, %v1307_v59  ;;  %v1350_v15 = vrot.slane %v1349_v63, 4  ;;  %v1068_v3 = vsel %vm15567_vm8, %v12202_v26, %v1067_v1  ;;  %v737_v46 = vld [vmem:[#allocation2 + $0x6c] sm:$0xf]  ;;  %v741_v20 = vld [vmem:[#allocation2 + $0x74] sm:$0x1]  ;;  %v1316_v34 = vrot.slane %v1315_v27, 4 }
  0x6e   : > { %v1330_v24 = vrot.slane %v1328_v4, 5  ;;  %v1111_v21 = vld [vmem:[#allocation2 + $0x54] sm:$0xf]  ;;  %1069 = vst [vmem:[#allocation2 + $0x68] sm:$0x1] %v1068_v3  ;;  %v1370_v17 = vshrl.u32 %v1114_v5, 16  ;;  %v738_v47 = vsel %vm15519_vm6, %v497_v54, %v737_v46 }
  0x6f   : > { %v503_v53 = vshll.u32 %v15772_v61, 16  ;;  %13594 = vmatmul.mubr.bf16.gmra.mrb[8].mxu0 %v12233_v7  ;;  %v1152_v29 = vld [vmem:[#allocation2 + $0x5c] sm:$0x1]  ;;  %v1333_v28 = vshrl.u32 %v1111_v21, 16  ;;  %v1336_v30 = vshll.u32 %v1111_v21, 16  ;;  %v15822_v31 = vrot.slane %v1366_v19, 5 }
  0x70   : > { %v507_v32 = vrot.slane %v502_v6, 4  ;;  %v1321_v12 = vsel %vm15643_vm11, %v1316_v34, %v15788_v23  ;;  %v1331_v33 = vsel %vm15643_vm11, %v1326_v45, %v1330_v24  ;;  %v1352_v9 = vshll.u32 %v1152_v29, 16  ;;  %v244_v23 = vld [vmem:[%s15501_s15 + $0xa0] sm:$0xff]  ;;  %739 = vst [vmem:[#allocation2 + $0x6c] sm:$0xf] %v738_v47  ;;  %v245_v54 = vld [vmem:[%s15501_s15 + $0xa8] sm:$0xff] }
  0x71   : > { %v1372_v10 = vrot.slane %v1370_v17, 4  ;;  %v12234_v38 = vcombine.low %v1321_v12, %v1331_v33  ;;  %v1335_v36 = vrot.slane %v1333_v28, 4  ;;  %v1338_v61 = vrot.slane %v1336_v30, 5  ;;  %v744_v37 = vld [vmem:[#allocation2 + $0x78] sm:$0xf]  ;;  %v246_v26 = vld [vmem:[%s15501_s15 + $0xb0] sm:$0xff] }
  0x72   : > { %v505_v41 = vor.u32 %v503_v53, %v502_v6  ;;  %v1354_v2 = vrot.slane %v1352_v9, 5  ;;  %v742_v44 = vsel %vm15526_vm7, %v507_v32, %v741_v20  ;;  %v509_v51 = vshrl.u32 %v15774_v62, 16  ;;  %v748_v63 = vld [vmem:[#allocation2 + $0x80] sm:$0x1]  ;;  %v247_v17 = vld [vmem:[%s15501_s15 + $0xb8] sm:$0xff] }
  0x73   : > { %v1373_v43 = vor.u32 %v1372_v10, %v15822_v31  ;;  %13597 = vmatprep.mubr.bf16.mxu0 %v12234_v38  ;;  %v1339_v42 = vor.u32 %v1338_v61, %v1335_v36  ;;  %v1113_v45 = vld [vmem:[#allocation2 + $0x60] sm:$0xf]  ;;  %743 = vst [vmem:[#allocation2 + $0x74] sm:$0x1] %v742_v44  ;;  %v512_v11 = vshll.u32 %v15774_v62, 16  ;;  %v517_v49 = vshrl.u32 %v15797_v35, 16 }
  0x74   : > { %v506_v25 = vsel %vm15512_vm5, %v498_v58, %v505_v41  ;;  %v1355_v56 = vsel %vm15643_vm11, %v1350_v15, %v1354_v2  ;;  %v1357_v40 = vshrl.u32 %v1113_v45, 16  ;;  %v1360_v50 = vshll.u32 %v1113_v45, 16  ;;  %v751_v9 = vld [vmem:[#allocation2 + $0x84] sm:$0xf] }
  0x75   : > { %v1374_v52 = vrot.slane %v1373_v43, 4  ;;  %740 = vst [vmem:[#allocation2 + $0x70] sm:$0xf] %v506_v25  ;;  %v1340_v55 = vrot.slane %v1339_v42, 4  ;;  %v1153_v16 = vld [vmem:[#allocation2 + $0x68] sm:$0x1]  ;;  %v13092_v0 = vpack.c.bf16 %v244_v23, %v244_v23  ;;  %v13093_v15 = vpack.c.bf16 %v245_v54, %v245_v54 }
  0x76   : > { %v511_v57 = vrot.slane %v509_v51, 7  ;;  %v520_v58 = vshll.u32 %v15797_v35, 16  ;;  %v1359_v59 = vrot.slane %v1357_v40, 4  ;;  %v1362_v60 = vrot.slane %v1360_v50, 5  ;;  %v248_v2 = vld [vmem:[%s15501_s15 + $0xc0] sm:$0xff] }
  0x77   : > { %v1376_v62 = vshll.u32 %v1153_v16, 16  ;;  %v1345_v1 = vsel %vm15643_vm11, %v1340_v55, %v15806_v48  ;;  %v519_v4 = vrot.slane %v517_v49, 7  ;;  %v526_v46 = vshrl.u32 %v13092_v0, 16  ;;  %v817_v48 = vld [vmem:[#allocation2 + $0x6c] sm:$0x2] }
  0x78   : > { %v514_v14 = vor.u32 %v512_v11, %v511_v57  ;;  %v515_v27 = vrot.slane %v511_v57, 4  ;;  %v12235_v5 = vcombine.low %v1345_v1, %v1355_v56  ;;  %v1363_v6 = vor.u32 %v1362_v60, %v1359_v59  ;;  %v925_v24 = vld [vmem:[#allocation2 + $0x6c] sm:$0x1]  ;;  %v758_v1 = vld [vmem:[#allocation2 + $0x90] sm:$0xf] }
  0x79   : > { %v1378_v7 = vrot.slane %v1376_v62, 5  ;;  %v522_v3 = vor.u32 %v520_v58, %v519_v4  ;;  %v524_v35 = vrot.slane %v519_v4, 4  ;;  %v529_v21 = vshll.u32 %v13092_v0, 16  ;;  %v755_v42 = vld [vmem:[#allocation2 + $0x8c] sm:$0x1] }
  0x7a   : > { %v745_v19 = vsel %vm15519_vm6, %v514_v14, %v744_v37  ;;  %13598 = vmatmul.mubr.bf16.gmra.mrb[12].mxu0 %v12235_v5  ;;  %v1364_v20 = vrot.slane %v1363_v6, 4  ;;  %v13094_v53 = vpack.c.bf16 %v246_v26, %v246_v26  ;;  %v12185_v29 = vrot.slane %v817_v48, 9  ;;  %v1070_v30 = vld [vmem:[#allocation2 + $0x74] sm:$0x1] }
  0x7b   : > { %v1379_v34 = vsel %vm15643_vm11, %v1374_v52, %v1378_v7  ;;  %746 = vst [vmem:[#allocation2 + $0x78] sm:$0xf] %v745_v19  ;;  %v523_v32 = vsel %vm15512_vm5, %v515_v27, %v522_v3  ;;  %v749_v12 = vsel %vm15526_vm7, %v524_v35, %v748_v63  ;;  %v528_v33 = vrot.slane %v526_v46, 7  ;;  %v762_v19 = vld [vmem:[#allocation2 + $0x98] sm:$0x1]  ;;  %v249_v46 = vld [vmem:[%s15501_s15 + $0xc8] sm:$0xff] }
  0x7c   : > { %v961_v28 = vld [vmem:[#allocation2 + $0x70] sm:$0x8]  ;;  %v1369_v10 = vsel %vm15643_vm11, %v1364_v20, %v15822_v31  ;;  %747 = vst [vmem:[#allocation2 + $0x7c] sm:$0xf] %v523_v32  ;;  %750 = vst [vmem:[#allocation2 + $0x80] sm:$0x1] %v749_v12  ;;  %v926_v47 = vsel %vm15526_vm7, %v12185_v29, %v925_v24  ;;  %v13095_v40 = vpack.c.bf16 %v247_v17, %v247_v17 }
  0x7d   : > { %v12203_v38 = vrot.slane %v961_v28, 11  ;;  %v15860_v36 = vld [vmem:[#allocation2 + $0x70] sm:$0xf]  ;;  %v534_v61 = vshrl.u32 %v13093_v15, 16  ;;  %v537_v41 = vshll.u32 %v13093_v15, 16  ;;  %v12236_v43 = vcombine.low %v1369_v10, %v1379_v34 }
  0x7e   : > { %v1390_v44 = vshll.u32 %v15860_v36, 16  ;;  %v1394_v23 = vshrl.u32 %v15860_v36, 16  ;;  %927 = vst [vmem:[#allocation2 + $0x6c] sm:$0x1] %v926_v47  ;;  %v531_v45 = vor.u32 %v529_v21, %v528_v33  ;;  %v532_v25 = vrot.slane %v528_v33, 4  ;;  %v251_v33 = vld [vmem:[%s15501_s15 + $0xd8] sm:$0xff] }
  0x7f   : > { %v1071_v31 = vsel %vm15567_vm8, %v12203_v38, %v1070_v30  ;;  %v536_v51 = vrot.slane %v534_v61, 7  ;;  %13601 = vmatprep.mubr.bf16.mxu0 %v12236_v43  ;;  %v543_v50 = vshrl.u32 %v13094_v53, 16  ;;  %v546_v55 = vshll.u32 %v13094_v53, 16  ;;  %v250_v53 = vld [vmem:[%s15501_s15 + $0xd0] sm:$0xff] }
  0x80   : > { %1072 = vst [vmem:[#allocation2 + $0x74] sm:$0x1] %v1071_v31  ;;  %v15869_v11 = vrot.slane %v1390_v44, 5  ;;  %v1396_v56 = vrot.slane %v1394_v23, 4  ;;  %v752_v54 = vsel %vm15519_vm6, %v531_v45, %v751_v9  ;;  %v551_v59 = vshrl.u32 %v13095_v40, 16  ;;  %v252_v9 = vld [vmem:[%s15501_s15 + $0xe0] sm:$0xff] }
  0x81   : > { %v539_v52 = vor.u32 %v537_v41, %v536_v51  ;;  %v541_v37 = vrot.slane %v536_v51, 4  ;;  %753 = vst [vmem:[#allocation2 + $0x84] sm:$0xf] %v752_v54  ;;  %v545_v58 = vrot.slane %v543_v50, 7  ;;  %v15874_v60 = vpack.c.bf16 %v248_v2, %v248_v2  ;;  %v253_v31 = vld [vmem:[%s15501_s15 + $0xe8] sm:$0xff] }
  0x82   : > { %v1397_v16 = vor.u32 %v1396_v56, %v15869_v11  ;;  %v818_v57 = vld [vmem:[#allocation2 + $0x78] sm:$0x2]  ;;  %v928_v49 = vld [vmem:[#allocation2 + $0x78] sm:$0x1]  ;;  %v554_v26 = vshll.u32 %v13095_v40, 16  ;;  %v553_v35 = vrot.slane %v551_v59, 7  ;;  %v15914_v54 = vpack.c.bf16 %v250_v53, %v250_v53 }
  0x83   : > { %v12186_v62 = vrot.slane %v818_v57, 9  ;;  %v540_v63 = vsel %vm15512_vm5, %v532_v25, %v539_v52  ;;  %v756_v0 = vsel %vm15526_vm7, %v541_v37, %v755_v42  ;;  %v962_v27 = vld [vmem:[#allocation2 + $0x7c] sm:$0x8]  ;;  %v1073_v4 = vld [vmem:[#allocation2 + $0x80] sm:$0x1]  ;;  %v548_v5 = vor.u32 %v546_v55, %v545_v58 }
  0x84   : > { %v15880_v14 = vrot.slane %v1397_v16, 4  ;;  %754 = vst [vmem:[#allocation2 + $0x88] sm:$0xf] %v540_v63  ;;  %757 = vst [vmem:[#allocation2 + $0x8c] sm:$0x1] %v756_v0  ;;  %v549_v6 = vrot.slane %v545_v58, 4  ;;  %v556_v12 = vor.u32 %v554_v26, %v553_v35  ;;  %v15906_v42 = vpack.c.bf16 %v249_v46, %v249_v46 }
  0x85   : > { %v929_v7 = vsel %vm15526_vm7, %v12186_v62, %v928_v49  ;;  %v12204_v15 = vrot.slane %v962_v27, 11  ;;  %v15884_v3 = vld [vmem:[#allocation2 + $0x7c] sm:$0xf]  ;;  %v560_v20 = vshrl.u32 %v15874_v60, 16  ;;  %v15888_v34 = vld [vmem:[#allocation2 + $0x6c] sm:$0xf]  ;;  %v759_v21 = vsel %vm15519_vm6, %v548_v5, %v758_v1 }
  0x86   : > { %930 = vst [vmem:[#allocation2 + $0x78] sm:$0x1] %v929_v7  ;;  %v1414_v48 = vshll.u32 %v15884_v3, 16  ;;  %v1418_v24 = vshrl.u32 %v15884_v3, 16  ;;  %v563_v17 = vshll.u32 %v15874_v60, 16  ;;  %v1381_v28 = vshrl.u32 %v15888_v34, 16 }
  0x87   : > { %v1154_v29 = vld [vmem:[#allocation2 + $0x74] sm:$0x1]  ;;  %v1384_v30 = vshll.u32 %v15888_v34, 16  ;;  %v1074_v32 = vsel %vm15567_vm8, %v12204_v15, %v1073_v4  ;;  %760 = vst [vmem:[#allocation2 + $0x90] sm:$0xf] %v759_v21  ;;  %v558_v41 = vrot.slane %v553_v35, 4  ;;  %v557_v23 = vsel %vm15512_vm5, %v549_v6, %v556_v12 }
  0x88   : > { %v1400_v10 = vshll.u32 %v1154_v29, 16  ;;  %1075 = vst [vmem:[#allocation2 + $0x80] sm:$0x1] %v1074_v32  ;;  %v15902_v38 = vrot.slane %v1414_v48, 5  ;;  %v1420_v61 = vrot.slane %v1418_v24, 4  ;;  %v1383_v2 = vrot.slane %v1381_v28, 4 }
  0x89   : > { %v1386_v43 = vrot.slane %v1384_v30, 5  ;;  %v819_v47 = vld [vmem:[#allocation2 + $0x84] sm:$0x2]  ;;  %v931_v44 = vld [vmem:[#allocation2 + $0x84] sm:$0x1]  ;;  %v763_v56 = vsel %vm15526_vm7, %v558_v41, %v762_v19  ;;  %v15916_v55 = vpack.c.bf16 %v251_v33, %v251_v33  ;;  %v15918_v16 = vpack.c.bf16 %v252_v9, %v252_v9 }
  0x8a   : > { %v1402_v45 = vrot.slane %v1400_v10, 5  ;;  %v1421_v25 = vor.u32 %v1420_v61, %v15902_v38  ;;  %v12187_v51 = vrot.slane %v819_v47, 9  ;;  %761 = vst [vmem:[#allocation2 + $0x94] sm:$0xf] %v557_v23  ;;  %764 = vst [vmem:[#allocation2 + $0x98] sm:$0x1] %v763_v56  ;;  %v15935_v7 = vpack.c.bf16 %v253_v31, %v253_v31 }
  0x8b   : > { %v1387_v40 = vor.u32 %v1386_v43, %v1383_v2  ;;  %v963_v50 = vld [vmem:[#allocation2 + $0x88] sm:$0x8]  ;;  %v1076_v52 = vld [vmem:[#allocation2 + $0x8c] sm:$0x1]  ;;  %v15929_v1 = vrot.slane %v560_v20, 7  ;;  %v568_v47 = vshrl.u32 %v15906_v42, 16 }
  0x8c   : > { %v15912_v37 = vld [vmem:[#allocation2 + $0x88] sm:$0xf]  ;;  %v1403_v57 = vsel %vm15643_vm11, %v15880_v14, %v1402_v45  ;;  %v1422_v49 = vrot.slane %v1421_v25, 4  ;;  %v932_v58 = vsel %vm15526_vm7, %v12187_v51, %v931_v44  ;;  %v12205_v59 = vrot.slane %v963_v50, 11  ;;  %v765_v23 = vld [vmem:[#allocation2 + $0x9c] sm:$0xf] }
  0x8d   : > { %v1388_v62 = vrot.slane %v1387_v40, 4  ;;  %v15925_v63 = vld [vmem:[#allocation2 + $0x78] sm:$0xf]  ;;  %933 = vst [vmem:[#allocation2 + $0x84] sm:$0x1] %v932_v58  ;;  %v1438_v0 = vshll.u32 %v15912_v37, 16 }
  0x8e   : > { %v1442_v26 = vshrl.u32 %v15912_v37, 16  ;;  %v1405_v27 = vshrl.u32 %v15925_v63, 16  ;;  %v1408_v4 = vshll.u32 %v15925_v63, 16  ;;  %v1077_v14 = vsel %vm15567_vm8, %v12205_v59, %v1076_v52  ;;  %v820_v5 = vld [vmem:[#allocation2 + $0x90] sm:$0x2] }
  0x8f   : > { %v934_v6 = vld [vmem:[#allocation2 + $0x90] sm:$0x1]  ;;  %v1393_v15 = vsel %vm15643_vm11, %v1388_v62, %v15869_v11  ;;  %v1155_v35 = vld [vmem:[#allocation2 + $0x80] sm:$0x1]  ;;  %1078 = vst [vmem:[#allocation2 + $0x8c] sm:$0x1] %v1077_v14  ;;  %v565_v11 = vor.u32 %v563_v17, %v15929_v1 }
  0x90   : > { %v15940_v19 = vrot.slane %v1438_v0, 5  ;;  %v1444_v46 = vrot.slane %v1442_v26, 4  ;;  %v12188_v20 = vrot.slane %v820_v5, 9  ;;  %v12237_v48 = vcombine.low %v1393_v15, %v1403_v57  ;;  %v6634_v39 = vld [vmem:[#allocation2 + $0x80] sm:$0x1] }
  0x91   : > { %v1407_v24 = vrot.slane %v1405_v27, 4  ;;  %v1410_v21 = vrot.slane %v1408_v4, 5  ;;  %v1424_v53 = vshll.u32 %v1155_v35, 16  ;;  %v964_v30 = vld [vmem:[#allocation2 + $0x94] sm:$0x8]  ;;  %v566_v12 = vrot.slane %v15929_v1, 4 }
  0x92   : > { %v1445_v29 = vor.u32 %v1444_v46, %v15940_v19  ;;  %v935_v28 = vsel %vm15526_vm7, %v12188_v20, %v934_v6  ;;  %v15945_v32 = vld [vmem:[#allocation2 + $0x94] sm:$0xf]  ;;  %13602 = vmatmul.mubr.bf16.gmra.mrb[16].mxu0 %v12237_v48  ;;  %v12206_v10 = vrot.slane %v964_v30, 11  ;;  %v1079_v61 = vld [vmem:[#allocation2 + $0x98] sm:$0x1]  ;;  %v571_v44 = vshll.u32 %v15906_v42, 16 }
  0x93   : > { %v1411_v33 = vor.u32 %v1410_v21, %v1407_v24  ;;  %v1426_v9 = vrot.slane %v1424_v53, 5  ;;  %936 = vst [vmem:[#allocation2 + $0x90] sm:$0x1] %v935_v28  ;;  %v1462_v41 = vshll.u32 %v15945_v32, 16  ;;  %v1466_v43 = vshrl.u32 %v15945_v32, 16 }
  0x94   : > { %v1446_v2 = vrot.slane %v1445_v29, 4  ;;  %v15957_v31 = vld [vmem:[#allocation2 + $0x84] sm:$0xf]  ;;  %v1080_v45 = vsel %vm15567_vm8, %v12206_v10, %v1079_v61  ;;  %v570_v50 = vrot.slane %v568_v47, 7  ;;  %v766_v57 = vsel %vm15519_vm6, %v565_v11, %v765_v23 }
  0x95   : > { %v1412_v60 = vrot.slane %v1411_v33, 4  ;;  %v1427_v17 = vsel %vm15643_vm11, %v1422_v49, %v1426_v9  ;;  %v15961_v25 = vrot.slane %v1462_v41, 5  ;;  %v1429_v51 = vshrl.u32 %v15957_v31, 16  ;;  %1081 = vst [vmem:[#allocation2 + $0x98] sm:$0x1] %v1080_v45 }
  0x96   : > { %v1432_v56 = vshll.u32 %v15957_v31, 16  ;;  %v1468_v40 = vrot.slane %v1466_v43, 4  ;;  %v1156_v52 = vld [vmem:[#allocation2 + $0x8c] sm:$0x1]  ;;  %v769_v49 = vld [vmem:[#allocation2 + $0xa4] sm:$0x1]  ;;  %v573_v4 = vor.u32 %v571_v44, %v570_v50 }
  0x97   : > { %v1417_v42 = vsel %vm15643_vm11, %v1412_v60, %v15902_v38  ;;  %v577_v58 = vshrl.u32 %v15914_v54, 16  ;;  %v580_v59 = vshll.u32 %v15914_v54, 16  ;;  %v1431_v0 = vrot.slane %v1429_v51, 4  ;;  %767 = vst [vmem:[#allocation2 + $0x9c] sm:$0xf] %v766_v57 }
  0x98   : > { %v12238_v62 = vcombine.low %v1417_v42, %v1427_v17  ;;  %v1434_v26 = vrot.slane %v1432_v56, 5  ;;  %v1448_v1 = vshll.u32 %v1156_v52, 16  ;;  %v1469_v27 = vor.u32 %v1468_v40, %v15961_v25  ;;  %v772_v38 = vld [vmem:[#allocation2 + $0xa8] sm:$0xf] }
  0x99   : > { %v575_v14 = vrot.slane %v570_v50, 4  ;;  %v579_v5 = vrot.slane %v577_v58, 7  ;;  %v585_v46 = vshrl.u32 %v15916_v55, 16  ;;  %v588_v54 = vshll.u32 %v15916_v55, 16 }
  0x9a   : > { %13605 = vmatprep.mubr.bf16.mxu0 %v12238_v62  ;;  %v1435_v6 = vor.u32 %v1434_v26, %v1431_v0  ;;  %v1450_v15 = vrot.slane %v1448_v1, 5  ;;  %v15973_v35 = vld [vmem:[#allocation2 + $0x90] sm:$0xf]  ;;  %v1470_v24 = vrot.slane %v1469_v27, 4  ;;  %v574_v21 = vsel %vm15512_vm5, %v566_v12, %v573_v4  ;;  %v783_v0 = vld [vmem:[#allocation2 + $0xbc] sm:$0x1] }
  0x9b   : > { %v1453_v20 = vshrl.u32 %v15973_v35, 16  ;;  %v1456_v48 = vshll.u32 %v15973_v35, 16  ;;  %768 = vst [vmem:[#allocation2 + $0xa0] sm:$0xf] %v574_v21  ;;  %v770_v28 = vsel %vm15526_vm7, %v575_v14, %v769_v49  ;;  %v582_v30 = vor.u32 %v580_v59, %v579_v5 }
  0x9c   : > { %v1436_v53 = vrot.slane %v1435_v6, 4  ;;  %v1451_v29 = vsel %vm15643_vm11, %v1446_v2, %v1450_v15  ;;  %v1157_v11 = vld [vmem:[#allocation2 + $0x98] sm:$0x1]  ;;  %771 = vst [vmem:[#allocation2 + $0xa4] sm:$0x1] %v770_v28  ;;  %v583_v9 = vrot.slane %v579_v5, 4 }
  0x9d   : > { %v1455_v33 = vrot.slane %v1453_v20, 4  ;;  %v1458_v55 = vrot.slane %v1456_v48, 5  ;;  %v587_v10 = vrot.slane %v585_v46, 7  ;;  %v1472_v12 = vshll.u32 %v1157_v11, 16  ;;  %v776_v2 = vld [vmem:[#allocation2 + $0xb0] sm:$0x1] }
  0x9e   : > { %v1441_v61 = vsel %vm15643_vm11, %v1436_v53, %v15940_v19  ;;  %v773_v41 = vsel %vm15519_vm6, %v582_v30, %v772_v38  ;;  %v594_v43 = vshrl.u32 %v15918_v16, 16  ;;  %v821_v23 = vld [vmem:[#allocation2 + $0x9c] sm:$0x2]  ;;  %v937_v60 = vld [vmem:[#allocation2 + $0x9c] sm:$0x1]  ;;  %v597_v50 = vshll.u32 %v15918_v16, 16 }
  0x9f   : > { %v12239_v47 = vcombine.low %v1441_v61, %v1451_v29  ;;  %v1459_v44 = vor.u32 %v1458_v55, %v1455_v33  ;;  %v590_v17 = vor.u32 %v588_v54, %v587_v10  ;;  %v592_v45 = vrot.slane %v587_v10, 4  ;;  %774 = vst [vmem:[#allocation2 + $0xa8] sm:$0xf] %v773_v41  ;;  %v779_v19 = vld [vmem:[#allocation2 + $0xb4] sm:$0xf] }
  0xa0   : > { %v1474_v51 = vrot.slane %v1472_v12, 5  ;;  %v12189_v56 = vrot.slane %v821_v23, 9  ;;  %v596_v40 = vrot.slane %v594_v43, 7  ;;  %v602_v49 = vshrl.u32 %v15935_v7, 16 }
  0xa1   : > { %13606 = vmatmul.mubr.bf16.gmra.mrb[20].mxu0 %v12239_v47  ;;  %v1460_v42 = vrot.slane %v1459_v44, 4  ;;  %v591_v52 = vsel %vm15512_vm5, %v583_v9, %v590_v17  ;;  %v777_v57 = vsel %vm15526_vm7, %v592_v45, %v776_v2  ;;  %v605_v14 = vshll.u32 %v15935_v7, 16 }
  0xa2   : > { %v1475_v58 = vsel %vm15643_vm11, %v1470_v24, %v1474_v51  ;;  %v938_v59 = vsel %vm15526_vm7, %v12189_v56, %v937_v60  ;;  %775 = vst [vmem:[#allocation2 + $0xac] sm:$0xf] %v591_v52  ;;  %778 = vst [vmem:[#allocation2 + $0xb0] sm:$0x1] %v777_v57  ;;  %v16001_v16 = vor.u32 %v597_v50, %v596_v40  ;;  %v600_v62 = vrot.slane %v596_v40, 4 }
  0xa3   : > { %v1465_v26 = vsel %vm15643_vm11, %v1460_v42, %v15961_v25  ;;  %939 = vst [vmem:[#allocation2 + $0x9c] sm:$0x1] %v938_v59  ;;  %v965_v1 = vld [vmem:[#allocation2 + $0xa0] sm:$0x8]  ;;  %v16008_v4 = vrot.slane %v602_v49, 7 }
  0xa4   : > { %v16006_v27 = vld [vmem:[#allocation2 + $0xa0] sm:$0xf]  ;;  %v12240_v5 = vcombine.low %v1465_v26, %v1475_v58  ;;  %v12207_v38 = vrot.slane %v965_v1, 11  ;;  %v1082_v6 = vld [vmem:[#allocation2 + $0xa4] sm:$0x1]  ;;  %v780_v25 = vsel %vm15519_vm6, %v16001_v16, %v779_v19 }
  0xa5   : > { %20048 = vst [vmem:[#allocation11_spill] sm:$0xff] %v16008_v4  ;;  %v1486_v15 = vshll.u32 %v16006_v27, 16  ;;  %v1490_v46 = vshrl.u32 %v16006_v27, 16  ;;  %v607_v54 = vor.u32 %v605_v14, %v16008_v4  ;;  %v19954_v20 = vrot.slane %v16008_v4, 4  ;;  %781 = vst [vmem:[#allocation2 + $0xb4] sm:$0xf] %v780_v25 }
  0xa6   : > { %13609 = vmatprep.mubr.bf16.mxu0 %v12240_v5  ;;  %v1083_v48 = vsel %vm15567_vm8, %v12207_v38, %v1082_v6  ;;  %v822_v24 = vld [vmem:[#allocation2 + $0xa8] sm:$0x2]  ;;  %v940_v21 = vld [vmem:[#allocation2 + $0xa8] sm:$0x1] }
  0xa7   : > { %v1488_v7 = vrot.slane %v1486_v15, 5  ;;  %1084 = vst [vmem:[#allocation2 + $0xa4] sm:$0x1] %v1083_v48  ;;  %v1492_v53 = vrot.slane %v1490_v46, 4  ;;  %v12190_v29 = vrot.slane %v822_v24, 9  ;;  %v608_v28 = vsel %vm15512_vm5, %v600_v62, %v607_v54 }
  0xa8   : > { %v784_v30 = vsel %vm15526_vm7, %v19954_v20, %v783_v0  ;;  %782 = vst [vmem:[#allocation2 + $0xb8] sm:$0xf] %v608_v28  ;;  %804 = vst [vmem:[#allocation2 + $0xd0] sm:$0xf] %v608_v28 }
  0xa9   : > { %785 = vst [vmem:[#allocation2 + $0xbc] sm:$0x1] %v784_v30  ;;  %v941_v11 = vsel %vm15526_vm7, %v12190_v29, %v940_v21  ;;  %v966_v33 = vld [vmem:[#allocation2 + $0xac] sm:$0x8]  ;;  %v1085_v55 = vld [vmem:[#allocation2 + $0xb0] sm:$0x1]  ;;  %v1493_v47 = vor.u32 %v1492_v53, %v1488_v7 }
  0xaa   : > { %v16028_v9 = vld [vmem:[#allocation2 + $0xac] sm:$0xf]  ;;  %v16030_v10 = vld [vmem:[#allocation2 + $0x9c] sm:$0xf]  ;;  %942 = vst [vmem:[#allocation2 + $0xa8] sm:$0x1] %v941_v11 }
  0xab   : > { %v12208_v61 = vrot.slane %v966_v33, 11  ;;  %v1510_v12 = vshll.u32 %v16028_v9, 16  ;;  %v1514_v41 = vshrl.u32 %v16028_v9, 16  ;;  %v1477_v2 = vshrl.u32 %v16030_v10, 16  ;;  %v16510_v4 = vld [vmem:[#allocation2 + $0xac] sm:$0xf] }
  0xac   : > { %v1480_v43 = vshll.u32 %v16030_v10, 16  ;;  %v823_v51 = vld [vmem:[#allocation2 + $0xb4] sm:$0x2]  ;;  %v943_v56 = vld [vmem:[#allocation2 + $0xb4] sm:$0x1]  ;;  %v1494_v42 = vrot.slane %v1493_v47, 4 }
  0xad   : > { %v1086_v44 = vsel %vm15567_vm8, %v12208_v61, %v1085_v55  ;;  %v1512_v23 = vrot.slane %v1510_v12, 5  ;;  %v1516_v60 = vrot.slane %v1514_v41, 4  ;;  %v1479_v17 = vrot.slane %v1477_v2, 4  ;;  %20056 = vst [vmem:[#allocation17_spill] sm:$0xff] %v16510_v4 }
  0xae   : > { %v1482_v45 = vrot.slane %v1480_v43, 5  ;;  %1087 = vst [vmem:[#allocation2 + $0xb0] sm:$0x1] %v1086_v44  ;;  %v16038_v40 = vld [vmem:[#allocation2 + $0xa4] sm:$0x1]  ;;  %v12191_v50 = vrot.slane %v823_v51, 9 }
  0xaf   : > { %v1496_v52 = vshll.u32 %v16038_v40, 16  ;;  %v967_v57 = vld [vmem:[#allocation2 + $0xb8] sm:$0x8]  ;;  %v1517_v58 = vor.u32 %v1516_v60, %v1512_v23 }
  0xb0   : > { %v1483_v19 = vor.u32 %v1482_v45, %v1479_v17  ;;  %v1088_v49 = vld [vmem:[#allocation2 + $0xbc] sm:$0x1]  ;;  %v944_v59 = vsel %vm15526_vm7, %v12191_v50, %v943_v56  ;;  %v12209_v62 = vrot.slane %v967_v57, 11  ;;  %v16043_v0 = vld [vmem:[#allocation2 + $0xb8] sm:$0xf] }
  0xb1   : > { %v1498_v1 = vrot.slane %v1496_v52, 5  ;;  %v16045_v14 = vld [vmem:[#allocation2 + $0xa8] sm:$0xf]  ;;  %945 = vst [vmem:[#allocation2 + $0xb4] sm:$0x1] %v944_v59  ;;  %v1534_v5 = vshll.u32 %v16043_v0, 16 }
  0xb2   : > { %v1484_v26 = vrot.slane %v1483_v19, 4  ;;  %v1538_v38 = vshrl.u32 %v16043_v0, 16  ;;  %v1501_v6 = vshrl.u32 %v16045_v14, 16  ;;  %v1504_v15 = vshll.u32 %v16045_v14, 16  ;;  %v16943_v18 = vld [vmem:[#allocation2 + $0xb8] sm:$0xf] }
  0xb3   : > { %v1089_v46 = vsel %vm15567_vm8, %v12209_v62, %v1088_v49  ;;  %v1499_v25 = vsel %vm15643_vm11, %v1494_v42, %v1498_v1  ;;  %v1536_v48 = vrot.slane %v1534_v5, 5  ;;  %v1518_v30 = vrot.slane %v1517_v58, 4  ;;  %v16075_v49 = vld [vmem:[#allocation2 + $0x4] sm:$0xf]  ;;  %v16078_v62 = vld [vmem:[#allocation2 + $0x10] sm:$0xf] }
  0xb4   : > { %v1489_v54 = vsel %vm15643_vm11, %v1484_v26, %v1488_v7  ;;  %1090 = vst [vmem:[#allocation2 + $0xbc] sm:$0x1] %v1089_v46  ;;  %v1540_v24 = vrot.slane %v1538_v38, 4  ;;  %v1503_v29 = vrot.slane %v1501_v6, 4  ;;  %v1506_v28 = vrot.slane %v1504_v15, 5  ;;  %v15006_v15 = vld [vmem:[%s19949_s1 + $0x88] sm:$0xff]  }
  0xb5   : > { %v12241_v21 = vcombine.low %v1489_v54, %v1499_v25  ;;  %v16057_v53 = vld [vmem:[#allocation2 + $0xb0] sm:$0x1]  ;;  %v15233_v26 = vld [vmem:[#allocation2 + $0xc] sm:$0xf]  ;;  %v16081_v5 = vld [vmem:[#allocation2 + $0x1c] sm:$0xf] }
  0xb6   : > { %v1520_v11 = vshll.u32 %v16057_v53, 16  ;;  %v1507_v33 = vor.u32 %v1506_v28, %v1503_v29  ;;  %v1541_v55 = vor.u32 %v1540_v24, %v1536_v48  ;;  %v12253_v1 = vcombine.low %v15233_v26, %v16078_v62  ;;  %v15235_v38 = vld [vmem:[#allocation2 + $0x18] sm:$0xf]  ;;  %v15236_v46 = vld [vmem:[%s19949_s1 + $0x80] sm:$0xff]   ;;  %v15009_v54 = vld [vmem:[%s19949_s1 + $0x90] sm:$0xff]  }
  0xb7   : > { %13610 = vmatmul.mubr.bf16.gmra.mrb[24].mxu0 %v12241_v21  ;;  %v12254_v6 = vcombine.low %v15235_v38, %v16081_v5  ;;  %v16093_v25 = vld [vmem:[#allocation2 + $0x28] sm:$0xf]  ;;  %v16096_v21 = vld [vmem:[#allocation2 + $0x34] sm:$0xf]  ;;  %v15240_v29 = vld [vmem:[#allocation2 + $0x30] sm:$0xf] }
  0xb8   : > { %v1522_v61 = vrot.slane %v1520_v11, 5  ;;  %v1508_v12 = vrot.slane %v1507_v33, 4  ;;  %v16060_v7 = vld [vmem:[#allocation2 + $0xb4] sm:$0xf]  ;;  %v1542_v60 = vrot.slane %v1541_v55, 4  ;;  %v12256_v28 = vcombine.low %v15240_v29, %v16096_v21  ;;  %v15015_v11 = vld [vmem:[%s19949_s1 + $0xa0] sm:$0xff]  }
  0xb9   : > { %v1525_v2 = vshrl.u32 %v16060_v7, 16  ;;  %v1528_v43 = vshll.u32 %v16060_v7, 16  ;;  %v16105_v33 = vld [vmem:[#allocation2 + $0x40] sm:$0xf]  ;;  %v15242_v55 = vld [vmem:[#allocation2 + $0x3c] sm:$0xf] }
  0xba   : > { %v1523_v41 = vsel %vm15643_vm11, %v1518_v30, %v1522_v61  ;;  %v1513_v47 = vsel %vm15643_vm11, %v1508_v12, %v1512_v23  ;;  %v15231_v23 = vld [vmem:[#allocation2] sm:$0xf]  ;;  %v15012_v30 = vld [vmem:[%s19949_s1 + $0x98] sm:$0xff]   ;;  %v12257_v61 = vcombine.low %v15242_v55, %v16105_v33  ;;  %v15018_v12 = vld [vmem:[%s19949_s1 + $0xa8] sm:$0xff]   ;;  %v12265_v55 = vcombine.low %v16030_v10, %v16006_v27 }
  0xbb   : > { %v16068_v44 = vld [vmem:[#allocation2 + $0xbc] sm:$0x1]  ;;  %v12242_v17 = vcombine.low %v1513_v47, %v1523_v41  ;;  %v1527_v45 = vrot.slane %v1525_v2, 4  ;;  %v1530_v51 = vrot.slane %v1528_v43, 5  ;;  %v12252_v58 = vcombine.low %v15231_v23, %v16075_v49  ;;  %v16111_v41 = vld [vmem:[#allocation2 + $0x4c] sm:$0xf] }
  0xbc   : > { %v1544_v56 = vshll.u32 %v16068_v44, 16  ;;  %v15244_v2 = vld [vmem:[#allocation2 + $0x48] sm:$0xf]  ;;  %v15021_v47 = vld [vmem:[%s19949_s1 + $0xb0] sm:$0xff]   ;;  %v12261_v23 = vcombine.low %v15888_v34, %v15860_v36  ;;  %v12263_v36 = vcombine.low %v15957_v31, %v15912_v37  ;;  %v2143_v34 = vld [vmem:[#allocation2] sm:$0xe] }
  0xbd   : > { %13613 = vmatprep.mubr.bf16.mxu0 %v12242_v17  ;;  %v1531_v50 = vor.u32 %v1530_v51, %v1527_v45  ;;  %v12258_v43 = vcombine.low %v15244_v2, %v16111_v41  ;;  %v15246_v17 = vld [vmem:[#allocation2 + $0x54] sm:$0xf]  ;;  %v15024_v51 = vld [vmem:[%s19949_s1 + $0xb8] sm:$0xff]   ;;  %v2203_v10 = vrot.slane %v16078_v62, 5 }
  0xbe   : > { %v1546_v19 = vrot.slane %v1544_v56, 5  ;;  %v16123_v56 = vld [vmem:[#allocation2 + $0x64] sm:$0xf]  ;;  %v16962_v22 = vld [vmem:[#allocation2 + $0xbc] sm:$0x1] }
  0xbf   : > { %v1532_v42 = vrot.slane %v1531_v50, 4  ;;  %v15248_v50 = vld [vmem:[#allocation2 + $0x60] sm:$0xf] }
  0xc0   : > { %v1547_v52 = vsel %vm15643_vm11, %v1542_v60, %v1546_v19  ;;  %v16117_v60 = vld [vmem:[#allocation2 + $0x58] sm:$0xf]  ;;  %v12260_v19 = vcombine.low %v15248_v50, %v16123_v56 }
  0xc1   : > { %v1537_v57 = vsel %vm15643_vm11, %v1532_v42, %v1536_v48  ;;  %v15238_v48 = vld [vmem:[#allocation2 + $0x24] sm:$0xf]  ;;  %v12259_v45 = vcombine.low %v15246_v17, %v16117_v60  ;;  %v2144_v17 = vld [vmem:[#allocation2 + $0xc] sm:$0xe] }
  0xc2   : > { %v12243_v59 = vcombine.low %v1537_v57, %v1547_v52  ;;  %v12255_v24 = vcombine.low %v15238_v48, %v16093_v25  ;;  %v16129_v42 = vld [vmem:[%s19949_s1 + $0xc0] sm:$0xff]   ;;  %v254_v52 = vld [vmem:[%s15501_s15 + $0xf0] sm:$0xff] }
  0xc3   : > { %v13102_v57 = vpack.c.bf16 %v254_v52, %v254_v52 }
  0xc4   : > { %13614 = vmatmul.mubr.bf16.gmra.mrb[28].mxu0 %v12243_v59 }
  0xc5   : > { %13633 = vmatprep.mubr.bf16.mxu0 %v12252_v58  ;;  %v12262_v58 = vcombine.low %v15925_v63, %v15884_v3  ;;  %v611_v59 = vshrl.u32 %v13102_v57, 16  ;;  %v12264_v3 = vcombine.low %v15973_v35, %v15945_v32  ;;  %v2196_v63 = vrot.slane %v16075_v49, 5 }
  0xc6   : > { %v20049_v32 = vmov 0 }
  0xc7   : > { %v613_v26 = vrot.slane %v611_v59, 7  ;;  %v2198_v29 = vrot.slane %v2196_v63, 4  ;;  %v20050_v32 = vsel %vm16147_vm14, 4294967295, %v20049_v32  ;;  %v2205_v59 = vrot.slane %v2203_v10, 4 }
  0xc8   : > { %20051 = vst [vmem:[#allocation12_spill] sm:$0xff] %v20050_v32 }
  0xc9   : > { %v617_v35 = vrot.slane %v613_v26, 4 }
  0xcc   : > { %13634 = vmatmul.mubr.bf16.vlgmr.msra.gmra.mrb[0].mxu0 %v12253_v1  ;;  %v614_v1 = vshll.u32 %v13102_v57, 16 }
  0xcd   : > { %13666 = vmatpush3.bf16.msra.mxu0 %v15236_v46  ;;  %13637 = vmatprep.mubr.bf16.mxu0 %v12254_v6  ;;  %v786_v6 = vld [vmem:[#allocation2 + $0xc0] sm:$0xf]  ;;  %v255_v46 = vld [vmem:[%s15501_s15 + $0xf8] sm:$0xff] }
  0xce   : > { %13667 = vmatprep.subr.bf16.mxu0 %v15006_v15  ;;  %v616_v38 = vor.u32 %v614_v1, %v613_v26  ;;  %v15250_v26 = vld [vmem:[#allocation2 + $0x14] sm:$0x1] }
  0xd1   : > { %13668 = vmatpush3.bf16.msra.mxu0 %v15006_v15  ;;  %v787_v15 = vsel %vm15519_vm6, %v616_v38, %v786_v6  ;;  %v15251_v6 = vld [vmem:[#allocation2 + $0x20] sm:$0x1] }
  0xd2   : > { %13669 = vmatprep.subr.bf16.mxu0 %v15009_v54  ;;  %788 = vst [vmem:[#allocation2 + $0xc0] sm:$0xf] %v787_v15  ;;  %v2213_v15 = vrot.slane %v15251_v6, 5  ;;  %v2252_v6 = vrot.slane %v16123_v56, 5  ;;  %v15031_v56 = vld [vmem:[%s19949_s1 + $0xe8] sm:$0xff]  }
  0xd4   : > { %13638 = vmatmul.mubr.bf16.gmra.mrb[4].mxu0 %v12255_v24  ;;  %v12276_v24 = vrot.slane %v2143_v34, 9 }
  0xd5   : > { %13641 = vmatprep.mubr.bf16.mxu0 %v12256_v28  ;;  %13670 = vmatpush3.bf16.msra.mxu0 %v15009_v54  ;;  %v13103_v54 = vpack.c.bf16 %v255_v46, %v255_v46  ;;  %v15249_v28 = vld [vmem:[#allocation2 + $0x8] sm:$0x1] }
  0xd6   : > { %13671 = vmatprep.subr.bf16.mxu0 %v15012_v30 }
  0xd7   : > { %v619_v48 = vshrl.u32 %v13103_v54, 16  ;;  %v622_v37 = vshll.u32 %v13103_v54, 16  ;;  %v2147_v54 = vld [vmem:[#allocation2 + $0x30] sm:$0xe] }
  0xd9   : > { %13672 = vmatpush3.bf16.msra.mxu0 %v15012_v30  ;;  %v2199_v30 = vrot.slane %v15249_v28, 5  ;;  %v824_v31 = vld [vmem:[#allocation2 + $0xc0] sm:$0x2]  ;;  %v946_v2 = vld [vmem:[#allocation2 + $0xc0] sm:$0x1] }
  0xda   : > { %13673 = vmatprep.subr.bf16.mxu0 %v15015_v11 }
  0xdb   : > { %v2200_v52 = vsel %vm16147_vm14, %v2198_v29, %v2199_v30  ;;  %v15027_v30 = vld [vmem:[%s19949_s1 + $0xc8] sm:$0xff]  }
  0xdc   : > { %13642 = vmatmul.mubr.bf16.gmra.mrb[8].mxu0 %v12257_v61  ;;  %v12192_v61 = vrot.slane %v824_v31, 9 }
  0xdd   : > { %13645 = vmatprep.mubr.bf16.mxu0 %v12258_v43  ;;  %13674 = vmatpush3.bf16.msra.mxu0 %v15015_v11  ;;  %v621_v11 = vrot.slane %v619_v48, 7  ;;  %v2224_v48 = vrot.slane %v16096_v21, 5 }
  0xde   : > { %13675 = vmatprep.subr.bf16.mxu0 %v15018_v12 }
  0xdf   : > { %v624_v49 = vor.u32 %v622_v37, %v621_v11  ;;  %v626_v50 = vrot.slane %v621_v11, 4  ;;  %v15252_v37 = vld [vmem:[#allocation2 + $0x2c] sm:$0x1] }
  0xe0   : > { %v2220_v31 = vrot.slane %v15252_v37, 5  ;;  %v15258_v37 = vld [vmem:[#allocation2 + $0x70] sm:$0xf] }
  0xe1   : > { %13676 = vmatpush3.bf16.msra.mxu0 %v15018_v12  ;;  %v12266_v12 = vcombine.low %v16045_v14, %v16028_v9  ;;  %v625_v43 = vsel %vm15512_vm5, %v617_v35, %v624_v49  ;;  %v2197_v14 = vsel %vm16147_vm14, %v12276_v24, %v2196_v63  ;;  %v15253_v35 = vld [vmem:[#allocation2 + $0x38] sm:$0x1] }
  0xe2   : > { %13677 = vmatprep.subr.bf16.mxu0 %v15021_v47  ;;  %789 = vst [vmem:[#allocation2 + $0xc4] sm:$0xf] %v625_v43  ;;  %v12308_v62 = vcombine.low %v2197_v14, %v2200_v52  ;;  %v2227_v49 = vrot.slane %v15253_v35, 5  ;;  %v2153_v35 = vld [vmem:[#allocation2 + $0x78] sm:$0xe] }
  0xe4   : > { %13646 = vmatmul.mubr.bf16.gmra.mrb[12].mxu0 %v12259_v45  ;;  %v2145_v45 = vld [vmem:[#allocation2 + $0x18] sm:$0xe] }
  0xe5   : > { %13649 = vmatprep.mubr.bf16.mxu0 %v12260_v19  ;;  %13678 = vmatpush3.bf16.msra.mxu0 %v15021_v47  ;;  %v947_v47 = vsel %vm15526_vm7, %v12192_v61, %v946_v2  ;;  %v790_v19 = vld [vmem:[#allocation2 + $0xc8] sm:$0x1]  ;;  %v12278_v1 = vrot.slane %v2145_v45, 9  ;;  %v2148_v61 = vld [vmem:[#allocation2 + $0x3c] sm:$0xe]  ;;  %v2231_v2 = vrot.slane %v16105_v33, 5 }
  0xe6   : > { %13679 = vmatprep.subr.bf16.mxu0 %v15024_v51  ;;  %948 = vst [vmem:[#allocation2 + $0xc0] sm:$0x1] %v947_v47  ;;  %v791_v57 = vsel %vm15526_vm7, %v626_v50, %v790_v19  ;;  %v15254_v33 = vld [vmem:[#allocation2 + $0x44] sm:$0x1] }
  0xe7   : > { %792 = vst [vmem:[#allocation2 + $0xc8] sm:$0x1] %v791_v57  ;;  %v2233_v19 = vrot.slane %v2231_v2, 4  ;;  %v2234_v14 = vrot.slane %v15254_v33, 5  ;;  %v15029_v57 = vld [vmem:[%s19949_s1 + $0xd8] sm:$0xff]  }
  0xe9   : > { %13680 = vmatpush3.bf16.msra.mxu0 %v15024_v51  ;;  %v2210_v51 = vrot.slane %v16081_v5, 5  ;;  %v2206_v5 = vrot.slane %v15250_v26, 5  ;;  %v2245_v26 = vrot.slane %v16117_v60, 5  ;;  %v15256_v60 = vld [vmem:[#allocation2 + $0x5c] sm:$0x1] }
  0xea   : > { %13713 = vmatprep.subr.bf16.mxu0 %v16129_v42 }
  0xeb   : > { %v2212_v38 = vrot.slane %v2210_v51, 4  ;;  %v2211_v63 = vsel %vm16147_vm14, %v12278_v1, %v2210_v51  ;;  %v12281_v51 = vrot.slane %v2148_v61, 9 }
  0xec   : > { %13650 = vmatmul.mubr.bf16.gmra.mrb[16].mxu0 %v12261_v23  ;;  %v12267_v23 = vcombine.low %v16060_v7, %v16043_v0  ;;  %v2217_v7 = vrot.slane %v16093_v25, 5  ;;  %v12280_v25 = vrot.slane %v2147_v54, 9 }
  0xed   : > { %13653 = vmatprep.mubr.bf16.mxu0 %v12262_v58  ;;  %v12277_v58 = vrot.slane %v2144_v17, 9  ;;  %v2214_v46 = vsel %vm16147_vm14, %v2212_v38, %v2213_v15  ;;  %v2149_v17 = vld [vmem:[#allocation2 + $0x48] sm:$0xe]  ;;  %v2150_v38 = vld [vmem:[#allocation2 + $0x54] sm:$0xe]  ;;  %v15030_v15 = vld [vmem:[%s19949_s1 + $0xe0] sm:$0xff]  }
  0xee   : > { %v12310_v28 = vcombine.low %v2211_v63, %v2214_v46  ;;  %v2219_v11 = vrot.slane %v2217_v7, 4  ;;  %v2225_v43 = vsel %vm16147_vm14, %v12280_v25, %v2224_v48  ;;  %v12282_v52 = vrot.slane %v2149_v17, 9 }
  0xef   : > { %v2204_v34 = vsel %vm16147_vm14, %v12277_v58, %v2203_v10  ;;  %v2238_v10 = vrot.slane %v16111_v41, 5  ;;  %v15255_v58 = vld [vmem:[#allocation2 + $0x50] sm:$0x1]  ;;  %v2232_v41 = vsel %vm16147_vm14, %v12281_v51, %v2231_v2  ;;  %v2247_v63 = vrot.slane %v2245_v26, 4 }
  0xf0   : > { %v2248_v46 = vrot.slane %v15256_v60, 5 }
  0xf4   : > { %13654 = vmatmul.mubr.bf16.gmra.mrb[20].mxu0 %v12263_v36  ;;  %v2146_v36 = vld [vmem:[#allocation2 + $0x24] sm:$0xe] }
  0xf5   : > { %13657 = vmatprep.mubr.bf16.mxu0 %v12264_v3  ;;  %v2207_v3 = vsel %vm16147_vm14, %v2205_v59, %v2206_v5  ;;  %v12279_v29 = vrot.slane %v2146_v36, 9  ;;  %v2235_v59 = vsel %vm16147_vm14, %v2233_v19, %v2234_v14  ;;  %v2239_v5 = vsel %vm16147_vm14, %v12282_v52, %v2238_v10  ;;  %v2151_v36 = vld [vmem:[#allocation2 + $0x60] sm:$0xe]  ;;  %v2154_v52 = vld [vmem:[#allocation2 + $0x84] sm:$0xe] }
  0xf6   : > { %v12309_v24 = vcombine.low %v2204_v34, %v2207_v3  ;;  %v12313_v34 = vcombine.low %v2232_v41, %v2235_v59  ;;  %v12284_v54 = vrot.slane %v2151_v36, 9  ;;  %v15263_v41 = vld [vmem:[#allocation2 + $0x94] sm:$0xf]  ;;  %v15264_v36 = vld [vmem:[#allocation2 + $0x8c] sm:$0x1] }
  0xf7   : > { %v2218_v21 = vsel %vm16147_vm14, %v12279_v29, %v2217_v7  ;;  %v12283_v7 = vrot.slane %v2150_v38, 9  ;;  %v2280_v59 = vrot.slane %v15263_v41, 5  ;;  %v15044_v41 = vld [vmem:[%s19949_s1 + $0x118] sm:$0xff]  }
  0xf8   : > { %v2253_v25 = vsel %vm16147_vm14, %v12284_v54, %v2252_v6 }
  0xfc   : > { %13658 = vmatmul.mubr.bf16.gmra.mrb[24].mxu0 %v12265_v55  ;;  %v2226_v55 = vrot.slane %v2224_v48, 4  ;;  %v2254_v48 = vrot.slane %v2252_v6, 4  ;;  %v12287_v6 = vrot.slane %v2154_v52, 9  ;;  %v15037_v52 = vld [vmem:[#allocation2 + $0x24] sm:$0xff]  }
  0xfd   : > { %13661 = vmatprep.mubr.bf16.mxu0 %v12266_v12  ;;  %v2221_v12 = vsel %vm16147_vm14, %v2219_v11, %v2220_v31  ;;  %v2152_v11 = vld [vmem:[#allocation2 + $0x6c] sm:$0xe]  ;;  %v2259_v31 = vrot.slane %v15258_v37, 5 }
  0xfe   : > { %v2228_v47 = vsel %vm16147_vm14, %v2226_v55, %v2227_v49  ;;  %v12311_v45 = vcombine.low %v2218_v21, %v2221_v12  ;;  %v15259_v49 = vld [vmem:[#allocation2 + $0x7c] sm:$0xf]  ;;  %v15032_v21 = vld [vmem:[%s19949_s1 + $0xf0] sm:$0xff]   ;;  %v12285_v2 = vrot.slane %v2152_v11, 9 }
  0xff   : > { %v12312_v50 = vcombine.low %v2225_v43, %v2228_v47  ;;  %v2266_v61 = vrot.slane %v15259_v49, 5  ;;  %v2261_v47 = vrot.slane %v2259_v31, 4 }
 0x100   : > { %v2260_v33 = vsel %vm16147_vm14, %v12285_v2, %v2259_v31  ;;  %v2158_v2 = vld [vmem:[#allocation2 + $0xb4] sm:$0xe] }
 0x101   : > { %v2268_v51 = vrot.slane %v2266_v61, 4 }
 0x104   : > { %13662 = vmatmul.mubr.bf16.gmra.mrb[28].mxu0 %v12267_v23  ;;  %v2240_v23 = vrot.slane %v2238_v10, 4  ;;  %v12286_v10 = vrot.slane %v2153_v35, 9 }
 0x105   : > { %13681 = vmatprep.mubr.bf16.mxu0 %v12308_v62  ;;  %v2241_v62 = vrot.slane %v15255_v58, 5 }
 0x106   : > { %v2267_v58 = vsel %vm16147_vm14, %v12286_v10, %v2266_v61  ;;  %v2297_v61 = vrot.slane %v16057_v53, 5  ;;  %v12291_v53 = vrot.slane %v2158_v2, 9  ;;  %v968_v10 = vld [vmem:[#allocation2 + $0xc4] sm:$0x8] }
 0x107   : > { %v2242_v1 = vsel %vm16147_vm14, %v2240_v23, %v2241_v62 }
 0x108   : > { %v12314_v3 = vcombine.low %v2239_v5, %v2242_v1  ;;  %v2155_v5 = vld [vmem:[#allocation2 + $0x90] sm:$0xe] }
 0x10c   : > { %13682 = vmatmul.mubr.bf16.vlgmr.msra.gmra.mrb[0].mxu0 %v12309_v24  ;;  %v15257_v24 = vld [vmem:[#allocation2 + $0x68] sm:$0x1] }
 0x10d   : > { %13714 = vmatpush3.bf16.msra.mxu0 %v16129_v42  ;;  %13685 = vmatprep.mubr.bf16.mxu0 %v12310_v28  ;;  %v15028_v42 = vld [vmem:[%s19949_s1 + $0xd0] sm:$0xff]   ;;  %v2255_v29 = vrot.slane %v15257_v24, 5  ;;  %v2246_v28 = vsel %vm16147_vm14, %v12283_v7, %v2245_v26  ;;  %v15035_v26 = vld [vmem:[%s19949_s1 + $0x100] sm:$0xff]   ;;  %v2282_v7 = vrot.slane %v2280_v59, 4  ;;  %v2287_v24 = vrot.slane %v16006_v27, 5 }
 0x10e   : > { %13715 = vmatprep.subr.bf16.mxu0 %v15027_v30 }
 0x10f   : > { %v2256_v55 = vsel %vm16147_vm14, %v2254_v48, %v2255_v29  ;;  %v2156_v48 = vld [vmem:[#allocation2 + $0x9c] sm:$0xe] }
 0x110   : > { %v12316_v43 = vcombine.low %v2253_v25, %v2256_v55  ;;  %v12289_v31 = vrot.slane %v2156_v48, 9  ;;  %v2289_v25 = vrot.slane %v2287_v24, 4  ;;  %v2290_v55 = vrot.slane %v16038_v40, 5 }
 0x111   : > { %13716 = vmatpush3.bf16.msra.mxu0 %v15027_v30  ;;  %v2249_v30 = vsel %vm16147_vm14, %v2247_v63, %v2248_v46  ;;  %v15265_v63 = vld [vmem:[#allocation2 + $0x98] sm:$0x1] }
 0x112   : > { %13717 = vmatprep.subr.bf16.mxu0 %v15028_v42  ;;  %v12315_v12 = vcombine.low %v2246_v28, %v2249_v30  ;;  %v2283_v60 = vrot.slane %v15265_v63, 5  ;;  %v2294_v28 = vrot.slane %v16028_v9, 5  ;;  %v2157_v30 = vld [vmem:[#allocation2 + $0xa8] sm:$0xe]  ;;  %v2288_v27 = vsel %vm16147_vm14, %v12289_v31, %v2287_v24  ;;  %v15048_v63 = vld [vmem:[#allocation2 + $0x78] sm:$0xff]  }
 0x113   : > { %v12290_v35 = vrot.slane %v2157_v30, 9  ;;  %v2301_v9 = vrot.slane %v16043_v0, 5 }
 0x114   : > { %13686 = vmatmul.mubr.bf16.gmra.mrb[4].mxu0 %v12311_v45  ;;  %v15033_v45 = vld [vmem:[%s19949_s1 + $0xf8] sm:$0xff]   ;;  %v2296_v49 = vrot.slane %v2294_v28, 4 }
 0x115   : > { %13689 = vmatprep.mubr.bf16.mxu0 %v12312_v50  ;;  %13718 = vmatpush3.bf16.msra.mxu0 %v15028_v42  ;;  %v15260_v42 = vld [vmem:[#allocation2 + $0x74] sm:$0x1]  ;;  %v15261_v50 = vld [vmem:[#allocation2 + $0x80] sm:$0x1] }
 0x116   : > { %13719 = vmatprep.subr.bf16.mxu0 %v15029_v57  ;;  %v2262_v17 = vrot.slane %v15260_v42, 5  ;;  %v2269_v19 = vrot.slane %v15261_v50, 5  ;;  %v2298_v40 = vsel %vm16147_vm14, %v2296_v49, %v2297_v61  ;;  %v2303_v42 = vrot.slane %v2301_v9, 4  ;;  %v16303_v49 = vld [vmem:[#allocation2 + $0x14] sm:$0x1] }
 0x117   : > { %v12210_v50 = vrot.slane %v968_v10, 11  ;;  %v3082_v10 = vshll.u32 %v16303_v49, 16 }
 0x118   : > { %v2263_v14 = vsel %vm16147_vm14, %v2261_v47, %v2262_v17  ;;  %v2270_v62 = vsel %vm16147_vm14, %v2268_v51, %v2269_v19  ;;  %v2304_v17 = vrot.slane %v16068_v44, 5  ;;  %v1091_v51 = vld [vmem:[#allocation2 + $0xc8] sm:$0x1]  ;;  %v15036_v44 = vld [vmem:[#allocation2 + $0x18] sm:$0xff]  }
 0x119   : > { %13720 = vmatpush3.bf16.msra.mxu0 %v15029_v57  ;;  %v15262_v57 = vld [vmem:[#allocation2 + $0x88] sm:$0xf]  ;;  %v12317_v1 = vcombine.low %v2260_v33, %v2263_v14  ;;  %v12318_v38 = vcombine.low %v2267_v58, %v2270_v62  ;;  %v15034_v33 = vld [vmem:[#allocation2 + $0xc] sm:$0xff]   ;;  %v1092_v14 = vsel %vm15567_vm8, %v12210_v50, %v1091_v51  ;;  %v15040_v62 = vld [vmem:[#allocation2 + $0x3c] sm:$0xff]  }
 0x11a   : > { %13721 = vmatprep.subr.bf16.mxu0 %v15030_v15  ;;  %v2273_v23 = vrot.slane %v15262_v57, 5  ;;  %v2305_v0 = vsel %vm16147_vm14, %v2303_v42, %v2304_v17  ;;  %1093 = vst [vmem:[#allocation2 + $0xc8] sm:$0x1] %v1092_v14  ;;  %v15038_v57 = vld [vmem:[%s19949_s1 + $0x108] sm:$0xff]   ;;  %v15041_v58 = vld [vmem:[%s19949_s1 + $0x110] sm:$0xff]  }
 0x11b   : > { %v16313_v51 = vld [vmem:[#allocation2 + $0x20] sm:$0x1] }
 0x11c   : > { %13690 = vmatmul.mubr.bf16.gmra.mrb[8].mxu0 %v12313_v34  ;;  %v2276_v34 = vrot.slane %v15264_v36, 5  ;;  %v2274_v46 = vsel %vm16147_vm14, %v12287_v6, %v2273_v23  ;;  %v15053_v6 = vld [vmem:[%s19949_s1 + $0x130] sm:$0xff]   ;;  %v15056_v36 = vld [vmem:[%s19949_s1 + $0x138] sm:$0xff]  }
 0x11d   : > { %13693 = vmatprep.mubr.bf16.mxu0 %v12314_v3  ;;  %13722 = vmatpush3.bf16.msra.mxu0 %v15030_v15  ;;  %v2275_v15 = vrot.slane %v2273_v23, 4  ;;  %v12288_v3 = vrot.slane %v2155_v5, 9  ;;  %v15039_v23 = vld [vmem:[#allocation2 + $0x30] sm:$0xff]  }
 0x11e   : > { %13723 = vmatprep.subr.bf16.mxu0 %v15031_v56  ;;  %v15043_v5 = vld [vmem:[#allocation2 + $0x54] sm:$0xff]  }
 0x11f   : > { %v2277_v54 = vsel %vm16147_vm14, %v2275_v15, %v2276_v34  ;;  %v2281_v29 = vsel %vm16147_vm14, %v12288_v3, %v2280_v59  ;;  %v15042_v59 = vld [vmem:[#allocation2 + $0x48] sm:$0xff]   ;;  %v16287_v3 = vld [vmem:[#allocation2 + $0x10] sm:$0xf] }
 0x120   : > { %v12319_v11 = vcombine.low %v2274_v46, %v2277_v54  ;;  %v15046_v15 = vld [vmem:[#allocation2 + $0x6c] sm:$0xff]   ;;  %v16292_v46 = vld [vmem:[%s19949_s1 + $0x140] sm:$0xff]   ;;  %v3072_v48 = vshll.u32 %v16287_v3, 16  ;;  %v3076_v24 = vshrl.u32 %v16287_v3, 16 }
 0x121   : > { %13724 = vmatpush3.bf16.msra.mxu0 %v15031_v56  ;;  %v2284_v56 = vsel %vm16147_vm14, %v2282_v7, %v2283_v60  ;;  %v3014_v34 = vld [vmem:[#allocation2 + $0xc] sm:$0xf]  ;;  %v15049_v54 = vld [vmem:[#allocation2 + $0x84] sm:$0xff]  }
 0x122   : > { %13725 = vmatprep.subr.bf16.mxu0 %v15032_v21  ;;  %v12320_v37 = vcombine.low %v2281_v29, %v2284_v56  ;;  %v3063_v7 = vshrl.u32 %v3014_v34, 16  ;;  %v3066_v60 = vshll.u32 %v3014_v34, 16  ;;  %v3017_v29 = vld [vmem:[#allocation2 + $0x18] sm:$0xf]  ;;  %v16297_v56 = vld [vmem:[#allocation2 + $0x1c] sm:$0xf] }
 0x123   : > { %v3090_v31 = vshll.u32 %v3017_v29, 16  ;;  %v3096_v61 = vshll.u32 %v16297_v56, 16  ;;  %v16326_v34 = vld [vmem:[#allocation2 + $0x40] sm:$0xf] }
 0x124   : > { %13694 = vmatmul.mubr.bf16.gmra.mrb[12].mxu0 %v12315_v12  ;;  %v2295_v12 = vsel %vm16147_vm14, %v12290_v35, %v2294_v28  ;;  %v3020_v28 = vld [vmem:[#allocation2 + $0x24] sm:$0xf]  ;;  %v3065_v30 = vrot.slane %v3063_v7, 4  ;;  %v3078_v35 = vrot.slane %v3076_v24, 4  ;;  %v15054_v7 = vld [vmem:[#allocation2 + $0xa8] sm:$0xff]  }
 0x125   : > { %13697 = vmatprep.mubr.bf16.mxu0 %v12316_v43  ;;  %13726 = vmatpush3.bf16.msra.mxu0 %v15032_v21  ;;  %v2291_v21 = vsel %vm16147_vm14, %v2289_v25, %v2290_v55  ;;  %v12322_v47 = vcombine.low %v2295_v12, %v2298_v40  ;;  %v16299_v25 = vld [vmem:[#allocation2 + $0x28] sm:$0xf]  ;;  %v16301_v55 = vrot.slane %v3072_v48, 5  ;;  %v15051_v12 = vld [vmem:[#allocation2 + $0x90] sm:$0xff]   ;;  %v16315_v50 = vrot.slane %v3096_v61, 5 }
 0x126   : > { %13727 = vmatprep.subr.bf16.mxu0 %v15033_v45  ;;  %v12321_v43 = vcombine.low %v2288_v27, %v2291_v21  ;;  %v3100_v27 = vshrl.u32 %v16297_v56, 16  ;;  %v3111_v21 = vshrl.u32 %v3020_v28, 16  ;;  %v3120_v40 = vshll.u32 %v16299_v25, 16 }
 0x127   : > { %v3124_v2 = vshrl.u32 %v16299_v25, 16  ;;  %v3079_v17 = vor.u32 %v3078_v35, %v16301_v55  ;;  %v3168_v35 = vshll.u32 %v16326_v34, 16  ;;  %v3172_v61 = vshrl.u32 %v16326_v34, 16 }
 0x129   : > { %13728 = vmatpush3.bf16.msra.mxu0 %v15033_v45  ;;  %v2302_v45 = vsel %vm16147_vm14, %v12291_v53, %v2301_v9  ;;  %v3114_v9 = vshll.u32 %v3020_v28, 16  ;;  %v3023_v53 = vld [vmem:[#allocation2 + $0x30] sm:$0xf] }
 0x12a   : > { %13761 = vmatprep.subr.bf16.mxu0 %v15035_v26  ;;  %v12323_v19 = vcombine.low %v2302_v45, %v2305_v0  ;;  %v3092_v45 = vrot.slane %v3090_v31, 5  ;;  %v16311_v0 = vld [vmem:[#allocation2 + $0x34] sm:$0xf] }
 0x12b   : > { %v3116_v14 = vrot.slane %v3114_v9, 5 }
 0x12c   : > { %13698 = vmatmul.mubr.bf16.gmra.mrb[16].mxu0 %v12317_v1  ;;  %v15050_v1 = vld [vmem:[%s19949_s1 + $0x128] sm:$0xff]  }
 0x12d   : > { %13701 = vmatprep.mubr.bf16.mxu0 %v12318_v38  ;;  %v15045_v38 = vld [vmem:[#allocation2 + $0x60] sm:$0xff]  }
 0x134   : > { %13702 = vmatmul.mubr.bf16.gmra.mrb[20].mxu0 %v12319_v11  ;;  %v3068_v11 = vrot.slane %v3066_v60, 5 }
 0x135   : > { %13705 = vmatprep.mubr.bf16.mxu0 %v12320_v37  ;;  %v3087_v37 = vshrl.u32 %v3017_v29, 16  ;;  %v16329_v29 = vld [vmem:[#allocation2 + $0x38] sm:$0x1] }
 0x136   : > { %v3069_v42 = vor.u32 %v3068_v11, %v3065_v30 }
 0x13c   : > { %13706 = vmatmul.mubr.bf16.gmra.mrb[24].mxu0 %v12321_v43  ;;  %v15052_v43 = vld [vmem:[#allocation2 + $0x9c] sm:$0xff]  }
 0x13d   : > { %13709 = vmatprep.mubr.bf16.mxu0 %v12322_v47  ;;  %v3089_v47 = vrot.slane %v3087_v37, 4 }
 0x144   : > { %13710 = vmatmul.mubr.bf16.gmra.mrb[28].mxu0 %v12323_v19  ;;  %v3102_v19 = vrot.slane %v3100_v27, 4 }
 0x145   : > { %13729 = vmatprep.mubr.bf16.mxu0 %v15034_v33  ;;  %v3113_v33 = vrot.slane %v3111_v21, 4 }
 0x147   : > { %v3117_v60 = vor.u32 %v3116_v14, %v3113_v33  ;;  %v16346_v33 = vrot.slane %v3168_v35, 5  ;;  %v3174_v14 = vrot.slane %v3172_v61, 4 }
 0x14c   : > { %13730 = vmatmul.mubr.bf16.vlgmr.msra.gmra.mrb[0].mxu0 %v15036_v44  ;;  %v16317_v44 = vld [vmem:[#allocation2 + $0x2c] sm:$0x1] }
 0x14d   : > { %13762 = vmatpush3.bf16.msra.mxu0 %v15035_v26  ;;  %13733 = vmatprep.mubr.bf16.mxu0 %v15037_v52  ;;  %v15047_v26 = vld [vmem:[%s19949_s1 + $0x120] sm:$0xff]   ;;  %v16319_v52 = vrot.slane %v3120_v40, 5  ;;  %v3029_v40 = vld [vmem:[#allocation2 + $0x48] sm:$0xf] }
 0x14e   : > { %13763 = vmatprep.subr.bf16.mxu0 %v15038_v57 }
 0x151   : > { %13764 = vmatpush3.bf16.msra.mxu0 %v15038_v57  ;;  %v3126_v57 = vrot.slane %v3124_v2, 4  ;;  %v3118_v2 = vrot.slane %v3117_v60, 4 }
 0x152   : > { %13765 = vmatprep.subr.bf16.mxu0 %v15041_v58 }
 0x154   : > { %13734 = vmatmul.mubr.bf16.gmra.mrb[4].mxu0 %v15039_v23  ;;  %v3135_v23 = vshrl.u32 %v3023_v53, 16 }
 0x155   : > { %13737 = vmatprep.mubr.bf16.mxu0 %v15040_v62  ;;  %13766 = vmatpush3.bf16.msra.mxu0 %v15041_v58  ;;  %v3138_v58 = vshll.u32 %v3023_v53, 16  ;;  %v3144_v62 = vshll.u32 %v16311_v0, 16  ;;  %v3154_v53 = vshll.u32 %v16329_v29, 16 }
 0x156   : > { %13767 = vmatprep.subr.bf16.mxu0 %v15044_v41  ;;  %v3137_v48 = vrot.slane %v3135_v23, 4  ;;  %v3186_v23 = vshll.u32 %v3029_v40, 16 }
 0x157   : > { %v3140_v24 = vrot.slane %v3138_v58, 5  ;;  %v16331_v28 = vrot.slane %v3144_v62, 5  ;;  %v15057_v58 = vld [vmem:[#allocation2 + $0xc0] sm:$0xff]  }
 0x159   : > { %13768 = vmatpush3.bf16.msra.mxu0 %v15044_v41  ;;  %v3148_v41 = vshrl.u32 %v16311_v0, 16 }
 0x15a   : > { %13769 = vmatprep.subr.bf16.mxu0 %v15047_v26 }
 0x15b   : > { %v3150_v30 = vrot.slane %v3148_v41, 4 }
 0x15c   : > { %13738 = vmatmul.mubr.bf16.gmra.mrb[8].mxu0 %v15042_v59  ;;  %v3084_v59 = vrot.slane %v3082_v10, 5 }
 0x15d   : > { %13741 = vmatprep.mubr.bf16.mxu0 %v15043_v5  ;;  %13770 = vmatpush3.bf16.msra.mxu0 %v15047_v26  ;;  %v3093_v26 = vor.u32 %v3092_v45, %v3089_v47  ;;  %v3106_v5 = vshll.u32 %v16313_v51, 16 }
 0x15e   : > { %13771 = vmatprep.subr.bf16.mxu0 %v15050_v1 }
 0x15f   : > { %v3108_v31 = vrot.slane %v3106_v5, 5  ;;  %v3094_v9 = vrot.slane %v3093_v26, 4  ;;  %v3123_v26 = vsel %vm15643_vm11, %v3118_v2, %v16319_v52  ;;  %v16380_v2 = vld [vmem:[#allocation2 + $0x5c] sm:$0x1] }
 0x161   : > { %13772 = vmatpush3.bf16.msra.mxu0 %v15050_v1  ;;  %v3026_v1 = vld [vmem:[#allocation2 + $0x3c] sm:$0xf]  ;;  %v3099_v41 = vsel %vm15643_vm11, %v3094_v9, %v16315_v50 }
 0x162   : > { %13773 = vmatprep.subr.bf16.mxu0 %v15053_v6  ;;  %v3159_v11 = vshrl.u32 %v3026_v1, 16  ;;  %v3162_v37 = vshll.u32 %v3026_v1, 16 }
 0x164   : > { %13742 = vmatmul.mubr.bf16.gmra.mrb[12].mxu0 %v15045_v38  ;;  %v3070_v38 = vrot.slane %v3069_v42, 4  ;;  %v3141_v42 = vor.u32 %v3140_v24, %v3137_v48  ;;  %v3161_v10 = vrot.slane %v3159_v11, 4  ;;  %v3164_v45 = vrot.slane %v3162_v37, 5  ;;  %v16370_v24 = vld [vmem:[#allocation2 + $0x50] sm:$0x1] }
 0x165   : > { %13745 = vmatprep.mubr.bf16.mxu0 %v15046_v15  ;;  %13774 = vmatpush3.bf16.msra.mxu0 %v15053_v6  ;;  %v3080_v6 = vrot.slane %v3079_v17, 4  ;;  %v3103_v15 = vor.u32 %v3102_v19, %v16315_v50  ;;  %v3151_v17 = vor.u32 %v3150_v30, %v16331_v28  ;;  %v16342_v19 = vld [vmem:[#allocation2 + $0x4c] sm:$0xf]  ;;  %v16364_v50 = vrot.slane %v3154_v53, 5 }
 0x166   : > { %13775 = vmatprep.subr.bf16.mxu0 %v15056_v36  ;;  %v3075_v27 = vsel %vm15643_vm11, %v3070_v38, %v16301_v55  ;;  %v16344_v55 = vld [vmem:[#allocation2 + $0x44] sm:$0x1]  ;;  %v3192_v1 = vshll.u32 %v16342_v19, 16  ;;  %v3196_v38 = vshrl.u32 %v16342_v19, 16  ;;  %v3188_v48 = vrot.slane %v3186_v23, 5 }
 0x167   : > { %v3085_v21 = vsel %vm15643_vm11, %v3080_v6, %v3084_v59  ;;  %v3032_v6 = vld [vmem:[#allocation2 + $0x54] sm:$0xf]  ;;  %v16367_v60 = vrot.slane %v3151_v17, 4  ;;  %v3202_v17 = vshll.u32 %v16370_v24, 16 }
 0x168   : > { %v12388_v62 = vcombine.low %v3075_v27, %v3085_v21  ;;  %v3207_v30 = vshrl.u32 %v3032_v6, 16  ;;  %v3210_v11 = vshll.u32 %v3032_v6, 16  ;;  %v16374_v61 = vrot.slane %v3192_v1, 5 }
 0x169   : > { %13776 = vmatpush3.bf16.msra.mxu0 %v15056_v36  ;;  %v3130_v36 = vshll.u32 %v16317_v44, 16  ;;  %v3198_v27 = vrot.slane %v3196_v38, 4 }
 0x16a   : > { %13809 = vmatprep.subr.bf16.mxu0 %v16292_v46 }
 0x16b   : > { %v3132_v47 = vrot.slane %v3130_v36, 5  ;;  %v16362_v36 = vrot.slane %v3141_v42, 4 }
 0x16c   : > { %13746 = vmatmul.mubr.bf16.gmra.mrb[16].mxu0 %v15048_v63  ;;  %v15055_v63 = vld [vmem:[#allocation2 + $0xb4] sm:$0xff]  }
 0x16d   : > { %13749 = vmatprep.mubr.bf16.mxu0 %v15049_v54  ;;  %v3127_v54 = vor.u32 %v3126_v57, %v16319_v52  ;;  %v3183_v57 = vshrl.u32 %v3029_v40, 16  ;;  %v3175_v52 = vor.u32 %v3174_v14, %v16346_v33  ;;  %v3147_v9 = vsel %vm15643_vm11, %v16362_v36, %v16331_v28  ;;  %v15059_v36 = vld [vmem:[%s19949_s1 + $0x148] sm:$0xff]  }
 0x16e   : > { %v3209_v14 = vrot.slane %v3207_v30, 4 }
 0x16f   : > { %v3176_v53 = vrot.slane %v3175_v52, 4 }
 0x174   : > { %13750 = vmatmul.mubr.bf16.gmra.mrb[20].mxu0 %v15051_v12  ;;  %v3104_v12 = vrot.slane %v3103_v15, 4  ;;  %v16360_v15 = vld [vmem:[#allocation2 + $0x58] sm:$0xf] }
 0x175   : > { %13753 = vmatprep.mubr.bf16.mxu0 %v15052_v43  ;;  %v3128_v43 = vrot.slane %v3127_v54, 4  ;;  %v3185_v54 = vrot.slane %v3183_v57, 4  ;;  %v3216_v37 = vshll.u32 %v16360_v15, 16  ;;  %v3212_v57 = vrot.slane %v3210_v11, 5  ;;  %v3041_v11 = vld [vmem:[#allocation2 + $0x78] sm:$0xf] }
 0x176   : > { %v3109_v59 = vsel %vm15643_vm11, %v3104_v12, %v3108_v31  ;;  %v3220_v31 = vshrl.u32 %v16360_v15, 16 }
 0x177   : > { %v3133_v5 = vsel %vm15643_vm11, %v3128_v43, %v3132_v47  ;;  %v12389_v35 = vcombine.low %v3099_v41, %v3109_v59  ;;  %v3035_v43 = vld [vmem:[#allocation2 + $0x60] sm:$0xf]  ;;  %v3157_v47 = vsel %vm15643_vm11, %v16367_v60, %v16364_v50  ;;  %v3189_v42 = vor.u32 %v3188_v48, %v3185_v54 }
 0x178   : > { %v12390_v21 = vcombine.low %v3123_v26, %v3133_v5  ;;  %v16389_v28 = vrot.slane %v3216_v37, 5  ;;  %v3222_v23 = vrot.slane %v3220_v31, 4  ;;  %v3226_v41 = vshll.u32 %v16380_v2, 16 }
 0x179   : > { %v3231_v59 = vshrl.u32 %v3035_v43, 16  ;;  %v3234_v26 = vshll.u32 %v3035_v43, 16  ;;  %v16409_v54 = vrot.slane %v3202_v17, 5  ;;  %v3213_v48 = vor.u32 %v3212_v57, %v3209_v14  ;;  %v16424_v17 = vld [vmem:[#allocation2 + $0x68] sm:$0x1] }
 0x17a   : > { %v3223_v30 = vor.u32 %v3222_v23, %v16389_v28  ;;  %v16414_v31 = vrot.slane %v3226_v41, 5  ;;  %v3279_v57 = vshrl.u32 %v3041_v11, 16  ;;  %v3282_v23 = vshll.u32 %v3041_v11, 16  ;;  %v16455_v11 = vld [vmem:[#allocation2 + $0x80] sm:$0x1] }
 0x17c   : > { %13754 = vmatmul.mubr.bf16.gmra.mrb[24].mxu0 %v15054_v7  ;;  %v3165_v7 = vor.u32 %v3164_v45, %v3161_v10  ;;  %v16387_v10 = vld [vmem:[#allocation2 + $0x64] sm:$0xf]  ;;  %v3038_v45 = vld [vmem:[#allocation2 + $0x6c] sm:$0xf] }
 0x17d   : > { %13757 = vmatprep.mubr.bf16.mxu0 %v15055_v63  ;;  %v3178_v63 = vshll.u32 %v16344_v55, 16  ;;  %v3240_v5 = vshll.u32 %v16387_v10, 16  ;;  %v3244_v1 = vshrl.u32 %v16387_v10, 16  ;;  %v3255_v38 = vshrl.u32 %v3038_v45, 16 }
 0x17e   : > { %v3166_v12 = vrot.slane %v3165_v7, 4  ;;  %v3258_v6 = vshll.u32 %v3038_v45, 16  ;;  %v16403_v7 = vrot.slane %v3189_v42, 4 }
 0x17f   : > { %v3180_v40 = vrot.slane %v3178_v63, 5  ;;  %v16422_v43 = vrot.slane %v3240_v5, 5  ;;  %v3257_v42 = vrot.slane %v3255_v38, 4 }
 0x180   : > { %v3171_v50 = vsel %vm15643_vm11, %v3166_v12, %v16346_v33  ;;  %v3233_v33 = vrot.slane %v3231_v59, 4  ;;  %v16416_v12 = vld [vmem:[#allocation2 + $0x7c] sm:$0xf] }
 0x181   : > { %v3181_v52 = vsel %vm15643_vm11, %v3176_v53, %v3180_v40  ;;  %v15060_v40 = vld [vmem:[%s19949_s1 + $0x150] sm:$0xff]   ;;  %v3246_v53 = vrot.slane %v3244_v1, 4  ;;  %v3288_v41 = vshll.u32 %v16416_v12, 16  ;;  %v3292_v59 = vshrl.u32 %v16416_v12, 16 }
 0x182   : > { %v12392_v5 = vcombine.low %v3171_v50, %v3181_v52  ;;  %v3195_v1 = vsel %vm15643_vm11, %v16403_v7, %v16374_v61  ;;  %v3281_v7 = vrot.slane %v3279_v57, 4 }
 0x184   : > { %13758 = vmatmul.mubr.bf16.gmra.mrb[28].mxu0 %v15057_v58  ;;  %v16391_v58 = vld [vmem:[#allocation2 + $0x70] sm:$0xf] }
 0x185   : > { %13777 = vmatprep.mubr.bf16.mxu0 %v12388_v62  ;;  %v3199_v62 = vor.u32 %v3198_v27, %v16374_v61  ;;  %v3264_v63 = vshll.u32 %v16391_v58, 16  ;;  %v3268_v60 = vshrl.u32 %v16391_v58, 16  ;;  %v3236_v27 = vrot.slane %v3234_v26, 5  ;;  %v15061_v61 = vld [vmem:[%s19949_s1 + $0x158] sm:$0xff]  }
 0x186   : > { %v12391_v26 = vcombine.low %v3147_v9, %v3157_v47  ;;  %v16442_v9 = vld [vmem:[#allocation2 + $0x88] sm:$0xf] }
 0x187   : > { %v16412_v37 = vrot.slane %v3199_v62, 4  ;;  %v16426_v45 = vrot.slane %v3264_v63, 5  ;;  %v3270_v14 = vrot.slane %v3268_v60, 4  ;;  %v3214_v62 = vrot.slane %v3213_v48, 4 }
 0x188   : > { %v3247_v63 = vor.u32 %v3246_v53, %v16422_v43  ;;  %v3250_v60 = vshll.u32 %v16424_v17, 16 }
 0x189   : > { %v3205_v38 = vsel %vm15643_vm11, %v16412_v37, %v16409_v54  ;;  %v3271_v47 = vor.u32 %v3270_v14, %v16426_v45  ;;  %v3219_v52 = vsel %vm15643_vm11, %v3214_v62, %v16389_v28  ;;  %v16457_v37 = vrot.slane %v3288_v41, 5 }
 0x18a   : > { %v3248_v28 = vrot.slane %v3247_v63, 4  ;;  %v3252_v57 = vrot.slane %v3250_v60, 5 }
 0x18c   : > { %13778 = vmatmul.mubr.bf16.vlgmr.msra.gmra.mrb[0].mxu0 %v12389_v35  ;;  %v3260_v35 = vrot.slane %v3258_v6, 5  ;;  %v3237_v6 = vor.u32 %v3236_v27, %v3233_v33  ;;  %v3294_v33 = vrot.slane %v3292_v59, 4  ;;  %v3298_v59 = vshll.u32 %v16455_v11, 16 }
 0x18d   : > { %13810 = vmatpush3.bf16.msra.mxu0 %v16292_v46  ;;  %13781 = vmatprep.mubr.bf16.mxu0 %v12390_v21  ;;  %v3224_v46 = vrot.slane %v3223_v30, 4  ;;  %v16428_v21 = vld [vmem:[#allocation2 + $0x74] sm:$0x1]  ;;  %v3044_v30 = vld [vmem:[#allocation2 + $0x84] sm:$0xf] }
 0x18e   : > { %13811 = vmatprep.subr.bf16.mxu0 %v15059_v36  ;;  %v3261_v48 = vor.u32 %v3260_v35, %v3257_v42  ;;  %v3274_v50 = vshll.u32 %v16428_v21, 16  ;;  %v3303_v27 = vshrl.u32 %v3044_v30, 16  ;;  %v3306_v53 = vshll.u32 %v3044_v30, 16 }
 0x18f   : > { %v3229_v54 = vsel %vm15643_vm11, %v3224_v46, %v16414_v31  ;;  %v3312_v42 = vshll.u32 %v16442_v9, 16  ;;  %v3316_v35 = vshrl.u32 %v16442_v9, 16  ;;  %v3238_v14 = vrot.slane %v3237_v6, 4  ;;  %v15062_v46 = vld [vmem:[%s19949_s1 + $0x160] sm:$0xff]   ;;  %v16468_v6 = vld [vmem:[#allocation2 + $0x8c] sm:$0x1] }
 0x190   : > { %v3272_v31 = vrot.slane %v3271_v47, 4  ;;  %v3276_v62 = vrot.slane %v3274_v50, 5  ;;  %v12393_v30 = vcombine.low %v3195_v1, %v3205_v38  ;;  %v12394_v20 = vcombine.low %v3219_v52, %v3229_v54  ;;  %v16477_v52 = vld [vmem:[#allocation2 + $0xa0] sm:$0xf] }
 0x191   : > { %13812 = vmatpush3.bf16.msra.mxu0 %v15059_v36  ;;  %v3284_v36 = vrot.slane %v3282_v23, 5  ;;  %v3262_v23 = vrot.slane %v3261_v48, 4  ;;  %v3305_v63 = vrot.slane %v3303_v27, 4  ;;  %v3308_v60 = vrot.slane %v3306_v53, 5  ;;  %20053 = vst [vmem:[#allocation14_spill] sm:$0xff] %v16477_v52 }
 0x192   : > { %13813 = vmatprep.subr.bf16.mxu0 %v15060_v40  ;;  %v16470_v48 = vrot.slane %v3312_v42, 5  ;;  %v3318_v47 = vrot.slane %v3316_v35, 4  ;;  %v3243_v50 = vsel %vm15643_vm11, %v3238_v14, %v16422_v43  ;;  %v3300_v53 = vrot.slane %v3298_v59, 5  ;;  %v15063_v43 = vld [vmem:[%s19949_s1 + $0x168] sm:$0xff]  }
 0x193   : > { %v3285_v41 = vor.u32 %v3284_v36, %v3281_v7  ;;  %v3253_v7 = vsel %vm15643_vm11, %v3248_v28, %v3252_v57  ;;  %v3050_v36 = vld [vmem:[#allocation2 + $0x9c] sm:$0xf]  ;;  %v3267_v54 = vsel %vm15643_vm11, %v3262_v23, %v16426_v45  ;;  %v3322_v42 = vshll.u32 %v16468_v6, 16 }
 0x194   : > { %13782 = vmatmul.mubr.bf16.gmra.mrb[4].mxu0 %v12391_v26  ;;  %v3047_v26 = vld [vmem:[#allocation2 + $0x90] sm:$0xf]  ;;  %v3351_v28 = vshrl.u32 %v3050_v36, 16  ;;  %v3354_v45 = vshll.u32 %v3050_v36, 16  ;;  %v3360_v57 = vshll.u32 %v16477_v52, 16  ;;  %v3364_v23 = vshrl.u32 %v16477_v52, 16 }
 0x195   : > { %13785 = vmatprep.mubr.bf16.mxu0 %v12392_v5  ;;  %13814 = vmatpush3.bf16.msra.mxu0 %v15060_v40  ;;  %v3295_v5 = vor.u32 %v3294_v33, %v16457_v37  ;;  %v16466_v40 = vld [vmem:[#allocation2 + $0x94] sm:$0xf]  ;;  %v3327_v1 = vshrl.u32 %v3047_v26, 16  ;;  %v3330_v38 = vshll.u32 %v3047_v26, 16  ;;  %v3277_v33 = vsel %vm15643_vm11, %v3272_v31, %v3276_v62 }
 0x196   : > { %13815 = vmatprep.subr.bf16.mxu0 %v15061_v61  ;;  %20052 = vst [vmem:[#allocation13_spill] sm:$0xff] %v16466_v40  ;;  %v3286_v27 = vrot.slane %v3285_v41, 4  ;;  %v3336_v35 = vshll.u32 %v16466_v40, 16  ;;  %v3340_v14 = vshrl.u32 %v16466_v40, 16  ;;  %v3309_v31 = vor.u32 %v3308_v60, %v3305_v63  ;;  %v15064_v36 = vld [vmem:[%s19949_s1 + $0x170] sm:$0xff]  }
 0x197   : > { %v3319_v62 = vor.u32 %v3318_v47, %v16470_v48  ;;  %v3329_v41 = vrot.slane %v3327_v1, 4  ;;  %v3332_v59 = vrot.slane %v3330_v38, 5  ;;  %v12395_v26 = vcombine.low %v3243_v50, %v3253_v7  ;;  %v16505_v47 = vld [vmem:[#allocation2 + $0xa4] sm:$0x1]  ;;  %v3053_v38 = vld [vmem:[#allocation2 + $0xa8] sm:$0xf] }
 0x198   : > { %v3291_v13 = vsel %vm15643_vm11, %v3286_v27, %v16457_v37  ;;  %v16503_v63 = vrot.slane %v3336_v35, 5  ;;  %v3342_v60 = vrot.slane %v3340_v14, 4  ;;  %20055 = vst [vmem:[#allocation16_spill] sm:$0xff] %v16505_v47  ;;  %v3353_v50 = vrot.slane %v3351_v28, 4  ;;  %v16536_v40 = vld [vmem:[#allocation2 + $0xc4] sm:$0xf] }
 0x199   : > { %13816 = vmatpush3.bf16.msra.mxu0 %v15061_v61  ;;  %v3296_v61 = vrot.slane %v3295_v5, 4  ;;  %v12396_v5 = vcombine.low %v3267_v54, %v3277_v33  ;;  %v3356_v7 = vrot.slane %v3354_v45, 5  ;;  %v16507_v1 = vrot.slane %v3360_v57, 5  ;;  %v3056_v45 = vld [vmem:[#allocation2 + $0xb4] sm:$0xf] }
 0x19a   : > { %13817 = vmatprep.subr.bf16.mxu0 %v15062_v46  ;;  %v3366_v37 = vrot.slane %v3364_v23, 4  ;;  %v3310_v54 = vrot.slane %v3309_v31, 4  ;;  %v3320_v33 = vrot.slane %v3319_v62, 4  ;;  %v3333_v27 = vor.u32 %v3332_v59, %v3329_v41  ;;  %v16517_v57 = vld [vmem:[#allocation2 + $0xb8] sm:$0xf] }
 0x19b   : > { %v3343_v35 = vor.u32 %v3342_v60, %v16503_v63  ;;  %v3375_v14 = vshrl.u32 %v3053_v38, 16  ;;  %v3378_v28 = vshll.u32 %v3053_v38, 16  ;;  %20057 = vst [vmem:[#allocation18_spill] sm:$0xff] %v16517_v57  ;;  %v3357_v23 = vor.u32 %v3356_v7, %v3353_v50 }
 0x19c   : > { %13786 = vmatmul.mubr.bf16.gmra.mrb[8].mxu0 %v12393_v30  ;;  %v16496_v30 = vld [vmem:[#allocation2 + $0x98] sm:$0x1]  ;;  %v3384_v31 = vshll.u32 %v16510_v4, 16  ;;  %v3388_v62 = vshrl.u32 %v16510_v4, 16  ;;  %v3334_v59 = vrot.slane %v3333_v27, 4  ;;  %v3399_v60 = vshrl.u32 %v3056_v45, 16 }
 0x19d   : > { %13789 = vmatprep.mubr.bf16.mxu0 %v12394_v20  ;;  %13818 = vmatpush3.bf16.msra.mxu0 %v15062_v46  ;;  %20054 = vst [vmem:[#allocation15_spill] sm:$0xff] %v16496_v30  ;;  %v3301_v20 = vsel %vm15643_vm11, %v3296_v61, %v3300_v53  ;;  %v3324_v46 = vrot.slane %v3322_v42, 5  ;;  %v3346_v8 = vshll.u32 %v16496_v30, 16  ;;  %v3370_v53 = vshll.u32 %v16505_v47, 16  ;;  %v15065_v61 = vld [vmem:[%s19949_s1 + $0x178] sm:$0xff]  }
 0x19e   : > { %13819 = vmatprep.subr.bf16.mxu0 %v15063_v43  ;;  %v12397_v42 = vcombine.low %v3291_v13, %v3301_v20  ;;  %v3315_v13 = vsel %vm15643_vm11, %v3310_v54, %v16470_v48  ;;  %v3408_v50 = vshll.u32 %v16517_v57, 16  ;;  %v3412_v7 = vshrl.u32 %v16517_v57, 16  ;;  %v3059_v4 = vld [vmem:[#allocation2 + $0xc0] sm:$0xf] }
 0x19f   : > { %v3325_v41 = vsel %vm15643_vm11, %v3320_v33, %v3324_v46  ;;  %v3348_v20 = vrot.slane %v3346_v8, 5  ;;  %v3372_v48 = vrot.slane %v3370_v53, 5  ;;  %v3377_v38 = vrot.slane %v3375_v14, 4 }
 0x1a0   : > { %v3380_v54 = vrot.slane %v3378_v28, 5  ;;  %v3358_v46 = vrot.slane %v3357_v23, 4  ;;  %v3386_v8 = vrot.slane %v3384_v31, 5  ;;  %v12398_v27 = vcombine.low %v3315_v13, %v3325_v41  ;;  %v16544_v28 = vld [vmem:[#allocation2 + $0xbc] sm:$0x1] }
 0x1a1   : > { %13820 = vmatpush3.bf16.msra.mxu0 %v15063_v43  ;;  %v3367_v43 = vor.u32 %v3366_v37, %v16507_v1  ;;  %v3344_v37 = vrot.slane %v3343_v35, 4  ;;  %v3401_v57 = vrot.slane %v3399_v60, 4  ;;  %v3410_v30 = vrot.slane %v3408_v50, 5  ;;  %v801_v60 = vld [vmem:[#allocation2 + $0xcc] sm:$0xf] }
 0x1a2   : > { %13821 = vmatprep.subr.bf16.mxu0 %v15064_v36  ;;  %v3414_v52 = vrot.slane %v3412_v7, 4  ;;  %v3339_v53 = vsel %vm15643_vm11, %v3334_v59, %v16503_v63  ;;  %v3381_v14 = vor.u32 %v3380_v54, %v3377_v38  ;;  %v3426_v63 = vshll.u32 %v3059_v4, 16 }
 0x1a3   : > { %v3368_v33 = vrot.slane %v3367_v43, 4  ;;  %v3349_v35 = vsel %vm15643_vm11, %v3344_v37, %v3348_v20  ;;  %v3432_v13 = vshll.u32 %v16536_v40, 16  ;;  %v3436_v41 = vshrl.u32 %v16536_v40, 16 }
 0x1a4   : > { %13790 = vmatmul.mubr.bf16.gmra.mrb[12].mxu0 %v12395_v26  ;;  %v3402_v26 = vshll.u32 %v3056_v45, 16  ;;  %v16534_v45 = vld [vmem:[#allocation2 + $0xb0] sm:$0x1]  ;;  %v3415_v20 = vor.u32 %v3414_v52, %v3410_v30  ;;  %v3382_v7 = vrot.slane %v3381_v14, 4  ;;  %v3428_v38 = vrot.slane %v3426_v63, 5 }
 0x1a5   : > { %13793 = vmatprep.mubr.bf16.mxu0 %v12396_v5  ;;  %13822 = vmatpush3.bf16.msra.mxu0 %v15064_v36  ;;  %v16532_v5 = vld [vmem:[%s19949_s1 + $0x180] sm:$0xff]   ;;  %v3390_v36 = vrot.slane %v3388_v62, 4  ;;  %v3373_v23 = vsel %vm15643_vm11, %v3368_v33, %v3372_v48  ;;  %v3394_v31 = vshll.u32 %v16534_v45, 16  ;;  %v3423_v62 = vshrl.u32 %v3059_v4, 16 }
 0x1a6   : > { %13823 = vmatprep.subr.bf16.mxu0 %v15065_v61  ;;  %v3404_v47 = vrot.slane %v3402_v26, 5  ;;  %v12399_v26 = vcombine.low %v3339_v53, %v3349_v35  ;;  %v3434_v54 = vrot.slane %v3432_v13, 5 }
 0x1a7   : > { %v3391_v43 = vor.u32 %v3390_v36, %v3386_v8  ;;  %v3396_v48 = vrot.slane %v3394_v31, 5  ;;  %v3425_v4 = vrot.slane %v3423_v62, 4  ;;  %v3387_v36 = vsel %vm15643_vm11, %v3382_v7, %v3386_v8 }
 0x1a8   : > { %v3405_v59 = vor.u32 %v3404_v47, %v3401_v57  ;;  %v3416_v47 = vrot.slane %v3415_v20, 4  ;;  %v16558_v57 = vld [vmem:[#allocation2 + $0xc8] sm:$0x1] }
 0x1a9   : > { %13824 = vmatpush3.bf16.msra.mxu0 %v15065_v61  ;;  %v3363_v61 = vsel %vm15643_vm11, %v3358_v46, %v16507_v1  ;;  %v802_v1 = vsel %vm15519_vm6, %v16001_v16, %v801_v60  ;;  %v3392_v37 = vrot.slane %v3391_v43, 4  ;;  %v3438_v46 = vrot.slane %v3436_v41, 4  ;;  %v3768_v43 = vld [vmem:[#allocation2 + $0xc] sm:$0xe] }
 0x1aa   : > { %13857 = vmatprep.subr.bf16.mxu0 %v16532_v5  ;;  %v12400_v50 = vcombine.low %v3363_v61, %v3373_v23  ;;  %803 = vst [vmem:[#allocation2 + $0xcc] sm:$0xf] %v802_v1  ;;  %v3406_v33 = vrot.slane %v3405_v59, 4  ;;  %v3442_v35 = vshll.u32 %v16558_v57, 16  ;;  %v3834_v23 = vrot.slane %v16287_v3, 5 }
 0x1ab   : > { %v3397_v16 = vsel %vm15643_vm11, %v3392_v37, %v3396_v48  ;;  %v3439_v53 = vor.u32 %v3438_v46, %v3434_v54  ;;  %v3769_v37 = vld [vmem:[#allocation2 + $0x18] sm:$0xe]  ;;  %v3848_v48 = vrot.slane %v16299_v25, 5  ;;  %v3855_v25 = vrot.slane %v16311_v0, 5  ;;  %v15067_v0 = vld [vmem:[%s19949_s1 + $0x188] sm:$0xff]  }
 0x1ac   : > { %13794 = vmatmul.mubr.bf16.gmra.mrb[16].mxu0 %v12397_v42  ;;  %v3418_v42 = vshll.u32 %v16544_v28, 16  ;;  %v3411_v14 = vsel %vm15643_vm11, %v3406_v33, %v3410_v30  ;;  %v12401_v62 = vcombine.low %v3387_v36, %v3397_v16  ;;  %v3444_v59 = vrot.slane %v3442_v35, 5  ;;  %v3771_v35 = vld [vmem:[#allocation2 + $0x30] sm:$0xe] }
 0x1ad   : > { %13797 = vmatprep.mubr.bf16.mxu0 %v12398_v27  ;;  %v3429_v27 = vor.u32 %v3428_v38, %v3425_v4  ;;  %v3440_v41 = vrot.slane %v3439_v53, 4  ;;  %v3836_v60 = vrot.slane %v3834_v23, 4  ;;  %v3770_v4 = vld [vmem:[#allocation2 + $0x24] sm:$0xe]  ;;  %v12413_v33 = vrot.slane %v3769_v37, 9  ;;  %v15069_v37 = vld [vmem:[%s19949_s1 + $0x198] sm:$0xff]  }
 0x1ae   : > { %v3420_v52 = vrot.slane %v3418_v42, 5  ;;  %v12412_v42 = vrot.slane %v3768_v43, 9  ;;  %v3850_v36 = vrot.slane %v3848_v48, 4  ;;  %v12415_v43 = vrot.slane %v3771_v35, 9 }
 0x1af   : > { %v3430_v13 = vrot.slane %v3429_v27, 4  ;;  %v3445_v1 = vsel %vm15643_vm11, %v3440_v41, %v3444_v59 }
 0x1b0   : > { %v3421_v61 = vsel %vm15643_vm11, %v3416_v47, %v3420_v52  ;;  %v3835_v7 = vsel %vm16147_vm14, %v12412_v42, %v3834_v23  ;;  %v12414_v52 = vrot.slane %v3770_v4, 9  ;;  %v3876_v42 = vrot.slane %v16360_v15, 5 }
 0x1b1   : > { %v825_v31 = vld [vmem:[#allocation2 + $0xcc] sm:$0x2]  ;;  %v12402_v63 = vcombine.low %v3411_v14, %v3421_v61  ;;  %v949_v20 = vld [vmem:[#allocation2 + $0xcc] sm:$0x1]  ;;  %v3435_v3 = vsel %vm15643_vm11, %v3430_v13, %v3434_v54  ;;  %v3844_v54 = vrot.slane %v16313_v51, 5  ;;  %v3862_v14 = vrot.slane %v16326_v34, 5 }
 0x1b2   : > { %v12193_v8 = vrot.slane %v825_v31, 9  ;;  %v12403_v38 = vcombine.low %v3435_v3, %v3445_v1  ;;  %v3849_v53 = vsel %vm16147_vm14, %v12414_v52, %v3848_v48  ;;  %v3857_v31 = vrot.slane %v3855_v25, 4 }
 0x1b3   : > { %v3865_v13 = vrot.slane %v16344_v55, 5  ;;  %v3856_v34 = vsel %vm16147_vm14, %v12415_v43, %v3855_v25  ;;  %v15068_v55 = vld [vmem:[%s19949_s1 + $0x190] sm:$0xff]   ;;  %v3872_v1 = vrot.slane %v16370_v24, 5  ;;  %v3883_v24 = vrot.slane %v16387_v10, 5 }
 0x1b4   : > { %13798 = vmatmul.mubr.bf16.gmra.mrb[20].mxu0 %v12399_v26  ;;  %v3837_v26 = vrot.slane %v16303_v49, 5  ;;  %v950_v30 = vsel %vm15526_vm7, %v12193_v8, %v949_v20  ;;  %v3886_v10 = vrot.slane %v16424_v17, 5  ;;  %v3893_v25 = vrot.slane %v16428_v21, 5 }
 0x1b5   : > { %13801 = vmatprep.mubr.bf16.mxu0 %v12400_v50  ;;  %951 = vst [vmem:[#allocation2 + $0xcc] sm:$0x1] %v950_v30  ;;  %v3841_v50 = vrot.slane %v16297_v56, 5  ;;  %v3851_v56 = vrot.slane %v16317_v44, 5  ;;  %v3772_v44 = vld [vmem:[#allocation2 + $0x3c] sm:$0xe] }
 0x1b6   : > { %v3838_v49 = vsel %vm16147_vm14, %v3836_v60, %v3837_v26  ;;  %v12416_v8 = vrot.slane %v3772_v44, 9  ;;  %v3774_v60 = vld [vmem:[#allocation2 + $0x54] sm:$0xe]  ;;  %v3897_v17 = vrot.slane %v16416_v12, 5  ;;  %v3904_v44 = vrot.slane %v16442_v9, 5  ;;  %v15073_v9 = vld [vmem:[%s19949_s1 + $0x1b8] sm:$0xff]  }
 0x1b7   : > { %v12444_v46 = vcombine.low %v3835_v7, %v3838_v49  ;;  %v3843_v47 = vrot.slane %v3841_v50, 4  ;;  %v3842_v16 = vsel %vm16147_vm14, %v12413_v33, %v3841_v50  ;;  %v3852_v51 = vsel %vm16147_vm14, %v3850_v36, %v3851_v56  ;;  %v15070_v33 = vld [vmem:[%s19949_s1 + $0x1a0] sm:$0xff]  }
 0x1b8   : > { %v12446_v23 = vcombine.low %v3849_v53, %v3852_v51  ;;  %v3863_v59 = vsel %vm16147_vm14, %v12416_v8, %v3862_v14  ;;  %v12418_v50 = vrot.slane %v3774_v60, 9  ;;  %v3878_v7 = vrot.slane %v3876_v42, 4  ;;  %v3780_v60 = vld [vmem:[#allocation2 + $0x9c] sm:$0xe] }
 0x1b9   : > { %v3845_v27 = vsel %vm16147_vm14, %v3843_v47, %v3844_v54  ;;  %v3879_v49 = vrot.slane %v16380_v2, 5  ;;  %v3776_v47 = vld [vmem:[#allocation2 + $0x6c] sm:$0xe]  ;;  %v3885_v56 = vrot.slane %v3883_v24, 4  ;;  %v3899_v12 = vrot.slane %v3897_v17, 4 }
 0x1ba   : > { %v12445_v61 = vcombine.low %v3842_v16, %v3845_v27  ;;  %v3877_v4 = vsel %vm16147_vm14, %v12418_v50, %v3876_v42  ;;  %v12420_v16 = vrot.slane %v3776_v47, 9  ;;  %v15075_v42 = vld [vmem:[%s19949_s1 + $0x1c0] sm:$0xff]   ;;  %v20063_v47 = vld [vmem:[#allocation18_spill] sm:$0xff] }
 0x1bb   : > { %v3880_v2 = vsel %vm16147_vm14, %v3878_v7, %v3879_v49  ;;  %v3887_v51 = vsel %vm16147_vm14, %v3885_v56, %v3886_v10  ;;  %v12424_v7 = vrot.slane %v3780_v60, 9  ;;  %v15084_v60 = vld [vmem:[%s19949_s1 + $0x1d8] sm:$0xff]  }
 0x1bc   : > { %13802 = vmatmul.mubr.bf16.gmra.mrb[24].mxu0 %v12401_v62  ;;  %v3858_v62 = vrot.slane %v16329_v29, 5  ;;  %v3869_v29 = vrot.slane %v16342_v19, 5  ;;  %v12450_v52 = vcombine.low %v3877_v4, %v3880_v2  ;;  %v20062_v4 = vld [vmem:[#allocation17_spill] sm:$0xff] }
 0x1bd   : > { %13805 = vmatprep.mubr.bf16.mxu0 %v12402_v63  ;;  %v3864_v63 = vrot.slane %v3862_v14, 4  ;;  %v3777_v14 = vld [vmem:[#allocation2 + $0x78] sm:$0xe]  ;;  %v3925_v2 = vrot.slane %v20062_v4, 5 }
 0x1be   : > { %v3859_v41 = vsel %vm16147_vm14, %v3857_v31, %v3858_v62  ;;  %v3871_v19 = vrot.slane %v3869_v29, 4  ;;  %v12421_v62 = vrot.slane %v3777_v14, 9  ;;  %v3783_v14 = vld [vmem:[#allocation2 + $0xc0] sm:$0xe] }
 0x1bf   : > { %v3866_v20 = vsel %vm16147_vm14, %v3864_v63, %v3865_v13  ;;  %v12447_v26 = vcombine.low %v3856_v34, %v3859_v41  ;;  %v3906_v63 = vrot.slane %v3904_v44, 4  ;;  %v3907_v13 = vrot.slane %v16468_v6, 5 }
 0x1c0   : > { %v12448_v30 = vcombine.low %v3863_v59, %v3866_v20  ;;  %v3873_v48 = vsel %vm16147_vm14, %v3871_v19, %v3872_v1  ;;  %v3898_v34 = vsel %vm16147_vm14, %v12421_v62, %v3897_v17  ;;  %v3779_v20 = vld [vmem:[#allocation2 + $0x90] sm:$0xe]  ;;  %v20060_v1 = vld [vmem:[#allocation15_spill] sm:$0xff] }
 0x1c1   : > { %v3908_v6 = vsel %vm16147_vm14, %v3906_v63, %v3907_v13  ;;  %v3914_v50 = vrot.slane %v20060_v1, 5  ;;  %v15074_v13 = vld [vmem:[#allocation2 + $0x18] sm:$0xff]   ;;  %v15085_v1 = vld [vmem:[#allocation2 + $0x6c] sm:$0xff]  }
 0x1c4   : > { %13806 = vmatmul.mubr.bf16.gmra.mrb[28].mxu0 %v12403_v38  ;;  %v3775_v38 = vld [vmem:[#allocation2 + $0x60] sm:$0xe] }
 0x1c5   : > { %13825 = vmatprep.mubr.bf16.mxu0 %v12444_v46  ;;  %v3890_v46 = vrot.slane %v16391_v58, 5  ;;  %v12419_v36 = vrot.slane %v3775_v38, 9  ;;  %v15071_v58 = vld [vmem:[%s19949_s1 + $0x1a8] sm:$0xff]  }
 0x1c7   : > { %v3892_v27 = vrot.slane %v3890_v46, 4  ;;  %v3884_v53 = vsel %vm16147_vm14, %v12419_v36, %v3883_v24  ;;  %v3891_v35 = vsel %vm16147_vm14, %v12420_v16, %v3890_v46  ;;  %v3927_v16 = vrot.slane %v3925_v2, 4 }
 0x1c8   : > { %v12451_v43 = vcombine.low %v3884_v53, %v3887_v51  ;;  %v3935_v53 = vrot.slane %v16544_v28, 5  ;;  %v12427_v28 = vrot.slane %v3783_v14, 9 }
 0x1c9   : > { %v3894_v21 = vsel %vm16147_vm14, %v3892_v27, %v3893_v25  ;;  %v3928_v27 = vrot.slane %v16534_v45, 5 }
 0x1ca   : > { %v12452_v31 = vcombine.low %v3891_v35, %v3894_v21  ;;  %v3939_v35 = vrot.slane %v16536_v40, 5 }
 0x1cb   : > { %v3929_v17 = vsel %vm16147_vm14, %v3927_v16, %v3928_v27  ;;  %v4659_v27 = vld [vmem:[#allocation2 + $0x30] sm:$0xf] }
 0x1cc   : > { %13826 = vmatmul.mubr.bf16.vlgmr.msra.gmra.mrb[0].mxu0 %v12445_v61  ;;  %v15072_v61 = vld [vmem:[%s19949_s1 + $0x1b0] sm:$0xff]   ;;  %v3940_v62 = vsel %vm16147_vm14, %v12427_v28, %v3939_v35  ;;  %v4750_v14 = vshrl.u32 %v4659_v27, 16 }
 0x1cd   : > { %13858 = vmatpush3.bf16.msra.mxu0 %v16532_v5  ;;  %13829 = vmatprep.mubr.bf16.mxu0 %v12446_v23  ;;  %v3773_v5 = vld [vmem:[#allocation2 + $0x48] sm:$0xe]  ;;  %v3778_v23 = vld [vmem:[#allocation2 + $0x84] sm:$0xe] }
 0x1ce   : > { %13859 = vmatprep.subr.bf16.mxu0 %v15067_v0  ;;  %v12417_v3 = vrot.slane %v3773_v5, 9  ;;  %v12422_v8 = vrot.slane %v3778_v23, 9  ;;  %v3941_v23 = vrot.slane %v3939_v35, 4 }
 0x1d0   : > { %v3870_v15 = vsel %vm16147_vm14, %v12417_v3, %v3869_v29  ;;  %v20058_v29 = vld [vmem:[#allocation13_spill] sm:$0xff]  ;;  %v3905_v59 = vsel %vm16147_vm14, %v12422_v8, %v3904_v44  ;;  %v12423_v3 = vrot.slane %v3779_v20, 9 }
 0x1d1   : > { %13860 = vmatpush3.bf16.msra.mxu0 %v15067_v0  ;;  %v12449_v54 = vcombine.low %v3870_v15, %v3873_v48  ;;  %v3900_v0 = vrot.slane %v16455_v11, 5  ;;  %v3911_v11 = vrot.slane %v20058_v29, 5  ;;  %v15081_v20 = vld [vmem:[%s19949_s1 + $0x1d0] sm:$0xff]  }
 0x1d2   : > { %13861 = vmatprep.subr.bf16.mxu0 %v15068_v55 }
 0x1d3   : > { %v3901_v41 = vsel %vm16147_vm14, %v3899_v12, %v3900_v0  ;;  %v3913_v19 = vrot.slane %v3911_v11, 4  ;;  %v3912_v48 = vsel %vm16147_vm14, %v12423_v3, %v3911_v11  ;;  %v20064_v12 = vld [vmem:[#allocation11_spill] sm:$0xff]  ;;  %v15090_v3 = vld [vmem:[%s19949_s1 + $0x1e8] sm:$0xff]  }
 0x1d4   : > { %13830 = vmatmul.mubr.bf16.gmra.mrb[4].mxu0 %v12447_v26  ;;  %v12453_v26 = vcombine.low %v3898_v34, %v3901_v41  ;;  %v20065_v0 = vrot.slane %v20064_v12, 4  ;;  %v15076_v41 = vld [vmem:[#allocation2 + $0x24] sm:$0xff]  }
 0x1d5   : > { %13833 = vmatprep.mubr.bf16.mxu0 %v12448_v30  ;;  %13862 = vmatpush3.bf16.msra.mxu0 %v15068_v55  ;;  %v20059_v55 = vld [vmem:[#allocation14_spill] sm:$0xff]  ;;  %v12454_v30 = vcombine.low %v3905_v59, %v3908_v6  ;;  %v3915_v24 = vsel %vm16147_vm14, %v3913_v19, %v3914_v50  ;;  %v15077_v59 = vld [vmem:[#allocation2 + $0x30] sm:$0xff]   ;;  %v15078_v6 = vld [vmem:[%s19949_s1 + $0x1c8] sm:$0xff]  }
 0x1d6   : > { %13863 = vmatprep.subr.bf16.mxu0 %v15069_v37  ;;  %v3918_v5 = vrot.slane %v20059_v55, 5  ;;  %v12455_v36 = vcombine.low %v3912_v48, %v3915_v24  ;;  %v15079_v55 = vld [vmem:[#allocation2 + $0x3c] sm:$0xff]   ;;  %v15093_v19 = vld [vmem:[%s19949_s1 + $0x1f0] sm:$0xff]   ;;  %v15088_v48 = vld [vmem:[#allocation2 + $0x84] sm:$0xff]   ;;  %20068 = vst [vmem:[#allocation14_spill] sm:$0xff] %v16943_v18 }
 0x1d7   : > { %v15086_v50 = vld [vmem:[#allocation2 + $0x78] sm:$0xff]   ;;  %v15089_v24 = vld [vmem:[#allocation2 + $0x90] sm:$0xff]  }
 0x1d8   : > { %v3920_v49 = vrot.slane %v3918_v5, 4  ;;  %v3919_v38 = vsel %vm16147_vm14, %v12424_v7, %v3918_v5  ;;  %v15080_v5 = vld [vmem:[#allocation2 + $0x48] sm:$0xff]   ;;  %v15096_v7 = vld [vmem:[%s19949_s1 + $0x1f8] sm:$0xff]  }
 0x1d9   : > { %13864 = vmatpush3.bf16.msra.mxu0 %v15069_v37  ;;  %v20061_v37 = vld [vmem:[#allocation16_spill] sm:$0xff] }
 0x1da   : > { %13865 = vmatprep.subr.bf16.mxu0 %v15070_v33  ;;  %v3921_v15 = vrot.slane %v20061_v37, 5  ;;  %v16726_v37 = vld [vmem:[%s19949_s1 + $0x200] sm:$0xff]  }
 0x1dc   : > { %13834 = vmatmul.mubr.bf16.gmra.mrb[8].mxu0 %v12449_v54  ;;  %v3922_v46 = vsel %vm16147_vm14, %v3920_v49, %v3921_v15  ;;  %v3932_v54 = vrot.slane %v20063_v47, 5  ;;  %v4653_v49 = vld [vmem:[#allocation2 + $0x18] sm:$0xf]  ;;  %v16728_v15 = vld [vmem:[#allocation2 + $0x1c] sm:$0xf] }
 0x1dd   : > { %13837 = vmatprep.mubr.bf16.mxu0 %v12450_v52  ;;  %13866 = vmatpush3.bf16.msra.mxu0 %v15070_v33  ;;  %v3781_v33 = vld [vmem:[#allocation2 + $0xa8] sm:$0xe]  ;;  %v3782_v52 = vld [vmem:[#allocation2 + $0xb4] sm:$0xe]  ;;  %v12456_v56 = vcombine.low %v3919_v38, %v3922_v46  ;;  %v4702_v4 = vshrl.u32 %v4653_v49, 16  ;;  %v4711_v46 = vshll.u32 %v16728_v15, 16 }
 0x1de   : > { %13867 = vmatprep.subr.bf16.mxu0 %v15071_v58  ;;  %v12425_v10 = vrot.slane %v3781_v33, 9  ;;  %v12426_v25 = vrot.slane %v3782_v52, 9  ;;  %v4656_v38 = vld [vmem:[#allocation2 + $0x24] sm:$0xf]  ;;  %v4715_v33 = vshrl.u32 %v16728_v15, 16 }
 0x1df   : > { %v4726_v47 = vshrl.u32 %v4656_v38, 16 }
 0x1e0   : > { %v3926_v51 = vsel %vm16147_vm14, %v12425_v10, %v3925_v2  ;;  %v3933_v21 = vsel %vm16147_vm14, %v12426_v25, %v3932_v54  ;;  %v4705_v2 = vshll.u32 %v4653_v49, 16  ;;  %v16735_v10 = vrot.slane %v4711_v46, 5  ;;  %v16737_v25 = vld [vmem:[#allocation2 + $0x34] sm:$0xf]  ;;  %v16764_v49 = vld [vmem:[#allocation2 + $0x4c] sm:$0xf] }
 0x1e1   : > { %13868 = vmatpush3.bf16.msra.mxu0 %v15071_v58  ;;  %v3934_v58 = vrot.slane %v3932_v54, 4  ;;  %v12457_v44 = vcombine.low %v3926_v51, %v3929_v17  ;;  %v4704_v54 = vrot.slane %v4702_v4, 4  ;;  %v4717_v16 = vrot.slane %v4715_v33, 4  ;;  %v15092_v51 = vld [vmem:[#allocation2 + $0xa8] sm:$0xff]   ;;  %v15095_v4 = vld [vmem:[#allocation2 + $0xc0] sm:$0xff]  }
 0x1e2   : > { %13869 = vmatprep.subr.bf16.mxu0 %v15072_v61  ;;  %v4707_v52 = vrot.slane %v4705_v2, 5  ;;  %v4728_v17 = vrot.slane %v4726_v47, 4  ;;  %v4763_v28 = vshrl.u32 %v16737_v25, 16 }
 0x1e3   : > { %v3936_v45 = vsel %vm16147_vm14, %v3934_v58, %v3935_v53  ;;  %v15091_v58 = vld [vmem:[#allocation2 + $0x9c] sm:$0xff]  }
 0x1e4   : > { %13838 = vmatmul.mubr.bf16.gmra.mrb[12].mxu0 %v12451_v43  ;;  %v3942_v43 = vrot.slane %v16558_v57, 5  ;;  %v16739_v53 = vld [vmem:[#allocation2 + $0x20] sm:$0x1] }
 0x1e5   : > { %13841 = vmatprep.mubr.bf16.mxu0 %v12452_v31  ;;  %13870 = vmatpush3.bf16.msra.mxu0 %v15072_v61  ;;  %v12458_v61 = vcombine.low %v3933_v21, %v3936_v45  ;;  %v805_v31 = vld [vmem:[#allocation2 + $0xd4] sm:$0x1]  ;;  %v4662_v45 = vld [vmem:[#allocation2 + $0x3c] sm:$0xf] }
 0x1e6   : > { %13871 = vmatprep.subr.bf16.mxu0 %v15073_v9  ;;  %v3943_v40 = vsel %vm16147_vm14, %v3941_v23, %v3942_v43  ;;  %v806_v8 = vsel %vm15526_vm7, %v20065_v0, %v805_v31  ;;  %v16745_v23 = vld [vmem:[#allocation2 + $0x40] sm:$0xf]  ;;  %v4708_v43 = vor.u32 %v4707_v52, %v4704_v54  ;;  %v4718_v31 = vor.u32 %v4717_v16, %v16735_v10 }
 0x1e7   : > { %v12459_v63 = vcombine.low %v3940_v62, %v3943_v40  ;;  %807 = vst [vmem:[#allocation2 + $0xd4] sm:$0x1] %v806_v8  ;;  %v4721_v62 = vshll.u32 %v16739_v53, 16  ;;  %v4774_v12 = vshrl.u32 %v4662_v45, 16  ;;  %v4777_v0 = vshll.u32 %v4662_v45, 16 }
 0x1e8   : > { %v16749_v8 = vld [vmem:[#allocation2 + $0x2c] sm:$0x1] }
 0x1e9   : > { %13872 = vmatpush3.bf16.msra.mxu0 %v15073_v9  ;;  %v969_v9 = vld [vmem:[#allocation2 + $0xd0] sm:$0x8] }
 0x1ea   : > { %13905 = vmatprep.subr.bf16.mxu0 %v15075_v42  ;;  %v12211_v57 = vrot.slane %v969_v9, 11  ;;  %v4783_v9 = vshll.u32 %v16745_v23, 16 }
 0x1ec   : > { %13842 = vmatmul.mubr.bf16.gmra.mrb[16].mxu0 %v12453_v26  ;;  %v15082_v26 = vld [vmem:[#allocation2 + $0x54] sm:$0xff]  }
 0x1ed   : > { %13845 = vmatprep.mubr.bf16.mxu0 %v12454_v30  ;;  %v15083_v30 = vld [vmem:[#allocation2 + $0x60] sm:$0xff]  }
 0x1ee   : > { %v1094_v34 = vld [vmem:[#allocation2 + $0xd4] sm:$0x1] }
 0x1ef   : > { %v1095_v11 = vsel %vm15567_vm8, %v12211_v57, %v1094_v34  ;;  %v4787_v57 = vshrl.u32 %v16745_v23, 16  ;;  %v4752_v34 = vrot.slane %v4750_v14, 4 }
 0x1f0   : > { %1096 = vst [vmem:[#allocation2 + $0xd4] sm:$0x1] %v1095_v11 }
 0x1f4   : > { %13846 = vmatmul.mubr.bf16.gmra.mrb[20].mxu0 %v12455_v36  ;;  %v16733_v36 = vld [vmem:[#allocation2 + $0x28] sm:$0xf] }
 0x1f5   : > { %13849 = vmatprep.mubr.bf16.mxu0 %v12456_v56  ;;  %v4729_v56 = vshll.u32 %v4656_v38, 16  ;;  %v4735_v35 = vshll.u32 %v16733_v36, 16  ;;  %v4739_v21 = vshrl.u32 %v16733_v36, 16 }
 0x1f7   : > { %v4731_v40 = vrot.slane %v4729_v56, 5 }
 0x1fc   : > { %13850 = vmatmul.mubr.bf16.gmra.mrb[24].mxu0 %v12457_v44  ;;  %v4753_v44 = vshll.u32 %v4659_v27, 16  ;;  %v4807_v27 = vshll.u32 %v16764_v49, 16 }
 0x1fd   : > { %13853 = vmatprep.mubr.bf16.mxu0 %v12458_v61  ;;  %v4759_v61 = vshll.u32 %v16737_v25, 16 }
 0x1ff   : > { %v16755_v11 = vrot.slane %v4759_v61, 5 }
 0x204   : > { %13854 = vmatmul.mubr.bf16.gmra.mrb[28].mxu0 %v12459_v63  ;;  %v16751_v63 = vrot.slane %v4735_v35, 5 }
 0x205   : > { %13873 = vmatprep.mubr.bf16.mxu0 %v15074_v13  ;;  %v4741_v13 = vrot.slane %v4739_v21, 4 }
 0x207   : > { %v4742_v2 = vor.u32 %v4741_v13, %v16751_v63 }
 0x20c   : > { %13874 = vmatmul.mubr.bf16.vlgmr.msra.gmra.mrb[0].mxu0 %v15076_v41  ;;  %v4755_v41 = vrot.slane %v4753_v44, 5 }
 0x20d   : > { %13906 = vmatpush3.bf16.msra.mxu0 %v15075_v42  ;;  %13877 = vmatprep.mubr.bf16.mxu0 %v15077_v59  ;;  %v15087_v42 = vld [vmem:[%s19949_s1 + $0x1e0] sm:$0xff]   ;;  %v4765_v59 = vrot.slane %v4763_v28, 4  ;;  %v16780_v28 = vld [vmem:[#allocation2 + $0x58] sm:$0xf] }
 0x20e   : > { %13907 = vmatprep.subr.bf16.mxu0 %v15078_v6  ;;  %v4756_v38 = vor.u32 %v4755_v41, %v4752_v34  ;;  %v15097_v41 = vld [vmem:[#allocation2 + $0xcc] sm:$0xff]  }
 0x20f   : > { %v4766_v46 = vor.u32 %v4765_v59, %v16755_v11 }
 0x210   : > { %v4757_v14 = vrot.slane %v4756_v38, 4 }
 0x211   : > { %13908 = vmatpush3.bf16.msra.mxu0 %v15078_v6  ;;  %v4665_v6 = vld [vmem:[#allocation2 + $0x48] sm:$0xf]  ;;  %v4767_v44 = vrot.slane %v4766_v46, 4  ;;  %v16808_v46 = vld [vmem:[#allocation2 + $0x5c] sm:$0x1] }
 0x212   : > { %13909 = vmatprep.subr.bf16.mxu0 %v15081_v20 }
 0x214   : > { %13878 = vmatmul.mubr.bf16.gmra.mrb[4].mxu0 %v15079_v55  ;;  %v4719_v55 = vrot.slane %v4718_v31, 4 }
 0x215   : > { %13881 = vmatprep.mubr.bf16.mxu0 %v15080_v5  ;;  %13910 = vmatpush3.bf16.msra.mxu0 %v15081_v20  ;;  %v4709_v20 = vrot.slane %v4708_v43, 4  ;;  %v4723_v5 = vrot.slane %v4721_v62, 5 }
 0x216   : > { %13911 = vmatprep.subr.bf16.mxu0 %v15084_v60 }
 0x217   : > { %v4714_v47 = vsel %vm15643_vm11, %v4709_v20, %v16735_v10  ;;  %v4724_v54 = vsel %vm15643_vm11, %v4719_v55, %v4723_v5  ;;  %v4743_v10 = vrot.slane %v4742_v2, 4  ;;  %v4831_v55 = vshll.u32 %v16780_v28, 16 }
 0x218   : > { %v12524_v43 = vcombine.low %v4714_v47, %v4724_v54  ;;  %v4835_v5 = vshrl.u32 %v16780_v28, 16 }
 0x219   : > { %13912 = vmatpush3.bf16.msra.mxu0 %v15084_v60  ;;  %v4732_v60 = vor.u32 %v4731_v40, %v4728_v17  ;;  %v16812_v54 = vrot.slane %v4831_v55, 5 }
 0x21a   : > { %13913 = vmatprep.subr.bf16.mxu0 %v15087_v42 }
 0x21b   : > { %v16774_v52 = vrot.slane %v4732_v60, 4 }
 0x21c   : > { %13882 = vmatmul.mubr.bf16.gmra.mrb[8].mxu0 %v15082_v26  ;;  %v15094_v26 = vld [vmem:[#allocation2 + $0xb4] sm:$0xff]  }
 0x21d   : > { %13885 = vmatprep.mubr.bf16.mxu0 %v15083_v30  ;;  %13914 = vmatpush3.bf16.msra.mxu0 %v15087_v42  ;;  %v16757_v42 = vld [vmem:[#allocation2 + $0x38] sm:$0x1]  ;;  %v4745_v30 = vshll.u32 %v16749_v8, 16  ;;  %v4738_v31 = vsel %vm15643_vm11, %v16774_v52, %v16751_v63  ;;  %v4837_v52 = vrot.slane %v4835_v5, 4 }
 0x21e   : > { %13915 = vmatprep.subr.bf16.mxu0 %v15090_v3  ;;  %v4769_v33 = vshll.u32 %v16757_v42, 16 }
 0x21f   : > { %v4747_v17 = vrot.slane %v4745_v30, 5 }
 0x220   : > { %v4771_v61 = vrot.slane %v4769_v33, 5  ;;  %v4674_v33 = vld [vmem:[#allocation2 + $0x6c] sm:$0xf] }
 0x221   : > { %13916 = vmatpush3.bf16.msra.mxu0 %v15090_v3  ;;  %v16760_v3 = vld [vmem:[#allocation2 + $0x44] sm:$0x1] }
 0x222   : > { %13917 = vmatprep.subr.bf16.mxu0 %v15093_v19  ;;  %v4793_v16 = vshll.u32 %v16760_v3, 16 }
 0x224   : > { %13886 = vmatmul.mubr.bf16.gmra.mrb[12].mxu0 %v15085_v1  ;;  %v4779_v1 = vrot.slane %v4777_v0, 5  ;;  %v16786_v0 = vld [vmem:[#allocation2 + $0x64] sm:$0xf] }
 0x225   : > { %13889 = vmatprep.mubr.bf16.mxu0 %v15086_v50  ;;  %13918 = vmatpush3.bf16.msra.mxu0 %v15093_v19  ;;  %v4776_v19 = vrot.slane %v4774_v12, 4  ;;  %v16762_v50 = vrot.slane %v4783_v9, 5  ;;  %v4671_v12 = vld [vmem:[#allocation2 + $0x60] sm:$0xf]  ;;  %v4795_v9 = vrot.slane %v4793_v16, 5  ;;  %v4859_v30 = vshrl.u32 %v16786_v0, 16 }
 0x226   : > { %13919 = vmatprep.subr.bf16.mxu0 %v15096_v7  ;;  %v4846_v63 = vshrl.u32 %v4671_v12, 16  ;;  %v4849_v60 = vshll.u32 %v4671_v12, 16  ;;  %v4838_v12 = vor.u32 %v4837_v52, %v16812_v54  ;;  %v15100_v52 = vld [vmem:[%s19949_s1 + $0x210] sm:$0xff]  }
 0x227   : > { %v4780_v56 = vor.u32 %v4779_v1, %v4776_v19  ;;  %v4748_v19 = vsel %vm15643_vm11, %v4743_v10, %v4747_v17  ;;  %v4762_v1 = vsel %vm15643_vm11, %v4757_v14, %v16755_v11  ;;  %v4841_v17 = vshll.u32 %v16808_v46, 16 }
 0x228   : > { %v4848_v16 = vrot.slane %v4846_v63, 4 }
 0x229   : > { %13920 = vmatpush3.bf16.msra.mxu0 %v15096_v7  ;;  %v4789_v7 = vrot.slane %v4787_v57, 4  ;;  %v4781_v13 = vrot.slane %v4780_v56, 4  ;;  %v16788_v57 = vrot.slane %v4807_v27, 5  ;;  %v16814_v56 = vld [vmem:[#allocation2 + $0x70] sm:$0xf]  ;;  %v16833_v5 = vrot.slane %v4841_v17, 5 }
 0x22a   : > { %13953 = vmatprep.subr.bf16.mxu0 %v16726_v37 }
 0x22b   : > { %v4790_v35 = vor.u32 %v4789_v7, %v16762_v50 }
 0x22c   : > { %13890 = vmatmul.mubr.bf16.gmra.mrb[16].mxu0 %v15088_v48  ;;  %v4798_v48 = vshrl.u32 %v4665_v6, 16 }
 0x22d   : > { %13893 = vmatprep.mubr.bf16.mxu0 %v15089_v24  ;;  %v4801_v24 = vshll.u32 %v4665_v6, 16  ;;  %v4791_v59 = vrot.slane %v4790_v35, 4  ;;  %v16790_v6 = vld [vmem:[#allocation2 + $0x50] sm:$0x1]  ;;  %v16819_v35 = vld [vmem:[#allocation2 + $0x68] sm:$0x1] }
 0x22e   : > { %v4800_v21 = vrot.slane %v4798_v48, 4  ;;  %v4817_v38 = vshll.u32 %v16790_v6, 16 }
 0x22f   : > { %v4803_v45 = vrot.slane %v4801_v24, 5  ;;  %v4772_v24 = vsel %vm15643_vm11, %v4767_v44, %v4771_v61  ;;  %v4796_v11 = vsel %vm15643_vm11, %v4791_v59, %v4795_v9  ;;  %v4879_v44 = vshll.u32 %v16814_v56, 16  ;;  %v16826_v59 = vld [vmem:[#allocation2 + $0x7c] sm:$0xf] }
 0x230   : > { %v4819_v14 = vrot.slane %v4817_v38, 5  ;;  %v4883_v61 = vshrl.u32 %v16814_v56, 16  ;;  %v4907_v38 = vshrl.u32 %v16826_v59, 16 }
 0x231   : > { %v4804_v20 = vor.u32 %v4803_v45, %v4800_v21  ;;  %v4870_v21 = vshrl.u32 %v4674_v33, 16  ;;  %v4873_v45 = vshll.u32 %v4674_v33, 16 }
 0x233   : > { %v4805_v47 = vrot.slane %v4804_v20, 4  ;;  %v15099_v20 = vld [vmem:[%s19949_s1 + $0x208] sm:$0xff]   ;;  %v4875_v63 = vrot.slane %v4873_v45, 5 }
 0x234   : > { %13894 = vmatmul.mubr.bf16.gmra.mrb[20].mxu0 %v15091_v58  ;;  %v4811_v58 = vshrl.u32 %v16764_v49, 16 }
 0x235   : > { %13897 = vmatprep.mubr.bf16.mxu0 %v15092_v51  ;;  %v4668_v51 = vld [vmem:[#allocation2 + $0x54] sm:$0xf] }
 0x236   : > { %v4822_v62 = vshrl.u32 %v4668_v51, 16  ;;  %v4825_v40 = vshll.u32 %v4668_v51, 16  ;;  %v4813_v34 = vrot.slane %v4811_v58, 4  ;;  %v4861_v58 = vrot.slane %v4859_v30, 4 }
 0x237   : > { %v16840_v30 = vrot.slane %v4879_v44, 5 }
 0x238   : > { %v4824_v7 = vrot.slane %v4822_v62, 4  ;;  %v4827_v48 = vrot.slane %v4825_v40, 5  ;;  %v4814_v2 = vor.u32 %v4813_v34, %v16788_v57  ;;  %v12525_v62 = vcombine.low %v4738_v31, %v4748_v19 }
 0x239   : > { %v4865_v34 = vshll.u32 %v16819_v35, 16  ;;  %v4872_v31 = vrot.slane %v4870_v21, 4  ;;  %v4885_v19 = vrot.slane %v4883_v61, 4 }
 0x23a   : > { %v4828_v51 = vor.u32 %v4827_v48, %v4824_v7  ;;  %v4815_v10 = vrot.slane %v4814_v2, 4  ;;  %v16842_v7 = vld [vmem:[#allocation2 + $0x88] sm:$0xf]  ;;  %v16844_v48 = vld [vmem:[#allocation2 + $0x74] sm:$0x1]  ;;  %v4903_v2 = vshll.u32 %v16826_v59, 16 }
 0x23b   : > { %v4876_v21 = vor.u32 %v4875_v63, %v4872_v31  ;;  %v4889_v45 = vshll.u32 %v16844_v48, 16  ;;  %v16877_v63 = vld [vmem:[#allocation2 + $0x94] sm:$0xf] }
 0x23c   : > { %13898 = vmatmul.mubr.bf16.gmra.mrb[24].mxu0 %v15094_v26  ;;  %v4855_v26 = vshll.u32 %v16786_v0, 16  ;;  %v16831_v55 = vrot.slane %v4828_v51, 4  ;;  %v4931_v51 = vshrl.u32 %v16842_v7, 16  ;;  %v16858_v61 = vrot.slane %v4903_v2, 5 }
 0x23d   : > { %13901 = vmatprep.mubr.bf16.mxu0 %v15095_v4  ;;  %v4786_v4 = vsel %vm15643_vm11, %v4781_v13, %v16762_v50  ;;  %v4851_v50 = vrot.slane %v4849_v60, 5  ;;  %v4810_v60 = vsel %vm15643_vm11, %v4805_v47, %v16788_v57  ;;  %v4839_v57 = vrot.slane %v4838_v12, 4 }
 0x23e   : > { %v16816_v27 = vrot.slane %v4855_v26, 5  ;;  %v12527_v40 = vcombine.low %v4786_v4, %v4796_v11  ;;  %v4820_v26 = vsel %vm15643_vm11, %v4815_v10, %v4819_v14  ;;  %v4867_v47 = vrot.slane %v4865_v34, 5  ;;  %v16856_v10 = vld [vmem:[#allocation2 + $0x80] sm:$0x1]  ;;  %v15101_v34 = vld [vmem:[%s19949_s1 + $0x218] sm:$0xff]  }
 0x23f   : > { %v4852_v13 = vor.u32 %v4851_v50, %v4848_v16  ;;  %v12528_v17 = vcombine.low %v4810_v60, %v4820_v26  ;;  %v4844_v12 = vsel %vm15643_vm11, %v4839_v57, %v16833_v5  ;;  %v16879_v5 = vrot.slane %v4876_v21, 4  ;;  %v16904_v21 = vld [vmem:[#allocation2 + $0x98] sm:$0x1] }
 0x240   : > { %v4862_v9 = vor.u32 %v4861_v58, %v16816_v27  ;;  %v4927_v58 = vshll.u32 %v16842_v7, 16  ;;  %v4913_v26 = vshll.u32 %v16856_v10, 16  ;;  %v4955_v57 = vshrl.u32 %v16877_v63, 16 }
 0x241   : > { %v4853_v33 = vrot.slane %v4852_v13, 4 }
 0x242   : > { %v4863_v11 = vrot.slane %v4862_v9, 4 }
 0x243   : > { %v4858_v13 = vsel %vm15643_vm11, %v4853_v33, %v16816_v27  ;;  %v16883_v27 = vrot.slane %v4889_v45, 5 }
 0x244   : > { %13902 = vmatmul.mubr.bf16.gmra.mrb[28].mxu0 %v15097_v41  ;;  %v4677_v41 = vld [vmem:[#allocation2 + $0x78] sm:$0xf]  ;;  %v4868_v9 = vsel %vm15643_vm11, %v4863_v11, %v4867_v47  ;;  %v15102_v11 = vld [vmem:[%s19949_s1 + $0x220] sm:$0xff]  }
 0x245   : > { %13921 = vmatprep.mubr.bf16.mxu0 %v12524_v43  ;;  %v12526_v43 = vcombine.low %v4762_v1, %v4772_v24  ;;  %v4680_v1 = vld [vmem:[#allocation2 + $0x84] sm:$0xf]  ;;  %v4894_v24 = vshrl.u32 %v4677_v41, 16  ;;  %v4897_v4 = vshll.u32 %v4677_v41, 16  ;;  %v4683_v41 = vld [vmem:[#allocation2 + $0x90] sm:$0xf] }
 0x246   : > { %v4918_v16 = vshrl.u32 %v4680_v1, 16  ;;  %v4921_v50 = vshll.u32 %v4680_v1, 16  ;;  %v4945_v2 = vshll.u32 %v4683_v41, 16 }
 0x247   : > { %v4896_v14 = vrot.slane %v4894_v24, 4  ;;  %v4899_v44 = vrot.slane %v4897_v4, 5  ;;  %v4942_v4 = vshrl.u32 %v4683_v41, 16  ;;  %v16910_v41 = vld [vmem:[#allocation2 + $0xac] sm:$0xf] }
 0x248   : > { %v4923_v31 = vrot.slane %v4921_v50, 5  ;;  %v4686_v50 = vld [vmem:[#allocation2 + $0x9c] sm:$0xf] }
 0x249   : > { %v4900_v1 = vor.u32 %v4899_v44, %v4896_v14  ;;  %v4944_v44 = vrot.slane %v4942_v4, 4 }
 0x24b   : > { %v4901_v45 = vrot.slane %v4900_v1, 4 }
 0x24c   : > { %13922 = vmatmul.mubr.bf16.vlgmr.msra.gmra.mrb[0].mxu0 %v12525_v62  ;;  %v4909_v62 = vrot.slane %v4907_v38, 4  ;;  %v4951_v38 = vshll.u32 %v16877_v63, 16 }
 0x24d   : > { %13954 = vmatpush3.bf16.msra.mxu0 %v16726_v37  ;;  %13925 = vmatprep.mubr.bf16.mxu0 %v12526_v43  ;;  %v4886_v37 = vor.u32 %v4885_v19, %v16840_v30  ;;  %v4834_v43 = vsel %vm15643_vm11, %v16831_v55, %v16812_v54  ;;  %v16875_v54 = vrot.slane %v4927_v58, 5  ;;  %v4933_v55 = vrot.slane %v4931_v51, 4  ;;  %v16886_v19 = vld [vmem:[#allocation2 + $0x8c] sm:$0x1] }
 0x24e   : > { %13955 = vmatprep.subr.bf16.mxu0 %v15099_v20  ;;  %v4910_v24 = vor.u32 %v4909_v62, %v16858_v61  ;;  %v12529_v33 = vcombine.low %v4834_v43, %v4844_v12  ;;  %v12530_v58 = vcombine.low %v4858_v13, %v4868_v9  ;;  %v4947_v62 = vrot.slane %v4945_v2, 5  ;;  %v4689_v43 = vld [vmem:[#allocation2 + $0xa8] sm:$0xf] }
 0x24f   : > { %v16881_v60 = vrot.slane %v4886_v37, 4  ;;  %v16906_v37 = vld [vmem:[#allocation2 + $0xa0] sm:$0xf]  ;;  %v16908_v12 = vrot.slane %v4951_v38, 5  ;;  %v4957_v13 = vrot.slane %v4955_v57, 4  ;;  %v4969_v9 = vshll.u32 %v4686_v50, 16 }
 0x250   : > { %v4911_v14 = vrot.slane %v4910_v24, 4  ;;  %v4993_v1 = vshll.u32 %v4689_v43, 16  ;;  %v4906_v24 = vsel %vm15643_vm11, %v4901_v45, %v16858_v61  ;;  %v4999_v2 = vshll.u32 %v16910_v41, 16 }
 0x251   : > { %13956 = vmatpush3.bf16.msra.mxu0 %v15099_v20  ;;  %v4920_v20 = vrot.slane %v4918_v16, 4  ;;  %v4937_v16 = vshll.u32 %v16886_v19, 16  ;;  %v4892_v51 = vsel %vm15643_vm11, %v16881_v60, %v16883_v27  ;;  %v15103_v60 = vld [vmem:[%s19949_s1 + $0x228] sm:$0xff]   ;;  %v4975_v27 = vshll.u32 %v16906_v37, 16 }
 0x252   : > { %13957 = vmatprep.subr.bf16.mxu0 %v15100_v52  ;;  %v5003_v38 = vshrl.u32 %v16910_v41, 16  ;;  %v4948_v57 = vor.u32 %v4947_v62, %v4944_v44  ;;  %v4995_v44 = vrot.slane %v4993_v1, 5 }
 0x253   : > { %v4924_v47 = vor.u32 %v4923_v31, %v4920_v20 }
 0x254   : > { %13926 = vmatmul.mubr.bf16.gmra.mrb[4].mxu0 %v12527_v40  ;;  %v4934_v40 = vor.u32 %v4933_v55, %v16875_v54  ;;  %v4939_v55 = vrot.slane %v4937_v16, 5  ;;  %v4971_v16 = vrot.slane %v4969_v9, 5  ;;  %v4692_v9 = vld [vmem:[#allocation2 + $0xb4] sm:$0xf] }
 0x255   : > { %13929 = vmatprep.mubr.bf16.mxu0 %v12528_v17  ;;  %13958 = vmatpush3.bf16.msra.mxu0 %v15100_v52  ;;  %v4882_v52 = vsel %vm15643_vm11, %v16879_v5, %v16840_v30  ;;  %v4915_v17 = vrot.slane %v4913_v26, 5  ;;  %v4966_v30 = vshrl.u32 %v4686_v50, 16  ;;  %v4925_v20 = vrot.slane %v4924_v47, 4 }
 0x256   : > { %13959 = vmatprep.subr.bf16.mxu0 %v15101_v34  ;;  %v4935_v31 = vrot.slane %v4934_v40, 4  ;;  %v4961_v5 = vshll.u32 %v16904_v21, 16  ;;  %v4990_v26 = vshrl.u32 %v4689_v43, 16  ;;  %v4958_v47 = vor.u32 %v4957_v13, %v16908_v12  ;;  %v16938_v13 = vld [vmem:[#allocation2 + $0xb0] sm:$0x1] }
 0x257   : > { %v4916_v4 = vsel %vm15643_vm11, %v4911_v14, %v4915_v17  ;;  %v4968_v40 = vrot.slane %v4966_v30, 4  ;;  %v16931_v17 = vld [vmem:[#allocation2 + $0xa4] sm:$0x1]  ;;  %v12531_v62 = vcombine.low %v4882_v52, %v4892_v51  ;;  %20067 = vst [vmem:[#allocation13_spill] sm:$0xff] %v16938_v13  ;;  %v5005_v30 = vrot.slane %v5003_v38, 4  ;;  %v15105_v52 = vld [vmem:[%s19949_s1 + $0x238] sm:$0xff]  }
 0x258   : > { %v4940_v61 = vsel %vm15643_vm11, %v4935_v31, %v4939_v55  ;;  %v4963_v50 = vrot.slane %v4961_v5, 5  ;;  %v4992_v14 = vrot.slane %v4990_v26, 4  ;;  %v12532_v43 = vcombine.low %v4906_v24, %v4916_v4  ;;  %v4695_v24 = vld [vmem:[#allocation2 + $0xc0] sm:$0xf]  ;;  %v16950_v4 = vld [vmem:[#allocation2 + $0xc4] sm:$0xf] }
 0x259   : > { %13960 = vmatpush3.bf16.msra.mxu0 %v15101_v34  ;;  %v4979_v34 = vshrl.u32 %v16906_v37, 16  ;;  %v4959_v31 = vrot.slane %v4958_v47, 4  ;;  %v4972_v55 = vor.u32 %v4971_v16, %v4968_v40  ;;  %v4985_v5 = vshll.u32 %v16931_v17, 16 }
 0x25a   : > { %13961 = vmatprep.subr.bf16.mxu0 %v15102_v11  ;;  %v5009_v26 = vshll.u32 %v16938_v13, 16  ;;  %v5014_v1 = vshrl.u32 %v4692_v9, 16  ;;  %v5023_v38 = vshll.u32 %v16943_v18, 16  ;;  %v16964_v13 = vld [vmem:[#allocation2 + $0xd0] sm:$0xf] }
 0x25b   : > { %v4981_v45 = vrot.slane %v4979_v34, 4  ;;  %v4996_v34 = vor.u32 %v4995_v44, %v4992_v14  ;;  %v4964_v40 = vsel %vm15643_vm11, %v4959_v31, %v4963_v50  ;;  %v4973_v16 = vrot.slane %v4972_v55, 4  ;;  %v4698_v55 = vld [vmem:[#allocation2 + $0xcc] sm:$0xf] }
 0x25c   : > { %13930 = vmatmul.mubr.bf16.gmra.mrb[8].mxu0 %v12529_v33  ;;  %v4930_v33 = vsel %vm15643_vm11, %v4925_v20, %v16875_v54  ;;  %v16940_v54 = vrot.slane %v4999_v2, 5  ;;  %v4949_v20 = vrot.slane %v4948_v57, 4  ;;  %v5017_v2 = vshll.u32 %v4692_v9, 16 }
 0x25d   : > { %13933 = vmatprep.mubr.bf16.mxu0 %v12530_v58  ;;  %13962 = vmatpush3.bf16.msra.mxu0 %v15102_v11  ;;  %v15104_v11 = vld [vmem:[%s19949_s1 + $0x230] sm:$0xff]   ;;  %v16936_v58 = vrot.slane %v4975_v27, 5  ;;  %v12533_v27 = vcombine.low %v4930_v33, %v4940_v61  ;;  %v5027_v57 = vshrl.u32 %v16943_v18, 16  ;;  %v4987_v33 = vrot.slane %v4985_v5, 5 }
 0x25e   : > { %13963 = vmatprep.subr.bf16.mxu0 %v15103_v60  ;;  %v4954_v47 = vsel %vm15643_vm11, %v4949_v20, %v16908_v12  ;;  %v5038_v61 = vshrl.u32 %v4695_v24, 16  ;;  %v5047_v14 = vshll.u32 %v16950_v4, 16  ;;  %v5051_v44 = vshrl.u32 %v16950_v4, 16 }
 0x25f   : > { %v4982_v51 = vor.u32 %v4981_v45, %v16936_v58  ;;  %v5041_v45 = vshll.u32 %v4695_v24, 16  ;;  %v5016_v9 = vrot.slane %v5014_v1, 4  ;;  %v5019_v12 = vrot.slane %v5017_v2, 5  ;;  %v16972_v1 = vld [vmem:[#allocation2 + $0xc8] sm:$0x1] }
 0x260   : > { %v5025_v20 = vrot.slane %v5023_v38, 5  ;;  %v5029_v50 = vrot.slane %v5027_v57, 4  ;;  %v12534_v31 = vcombine.low %v4954_v47, %v4964_v40  ;;  %v5049_v24 = vrot.slane %v5047_v14, 5 }
 0x261   : > { %13964 = vmatpush3.bf16.msra.mxu0 %v15103_v60  ;;  %v5006_v60 = vor.u32 %v5005_v30, %v16940_v54  ;;  %v4997_v30 = vrot.slane %v4996_v34, 4  ;;  %v5043_v5 = vrot.slane %v5041_v45, 5  ;;  %v5053_v18 = vrot.slane %v5051_v44, 4 }
 0x262   : > { %13965 = vmatprep.subr.bf16.mxu0 %v15104_v11  ;;  %v5020_v2 = vor.u32 %v5019_v12, %v5016_v9  ;;  %v5030_v38 = vor.u32 %v5029_v50, %v5025_v20  ;;  %v5062_v57 = vshrl.u32 %v4698_v55, 16  ;;  %v5071_v47 = vshll.u32 %v16964_v13, 16 }
 0x263   : > { %v5007_v29 = vrot.slane %v5006_v60, 4  ;;  %v5075_v40 = vshrl.u32 %v16964_v13, 16 }
 0x264   : > { %13934 = vmatmul.mubr.bf16.gmra.mrb[12].mxu0 %v12531_v62  ;;  %v4983_v62 = vrot.slane %v4982_v51, 4  ;;  %v4978_v51 = vsel %vm15643_vm11, %v4973_v16, %v16936_v58  ;;  %v5065_v58 = vshll.u32 %v4698_v55, 16  ;;  %v5021_v14 = vrot.slane %v5020_v2, 4 }
 0x265   : > { %13937 = vmatprep.mubr.bf16.mxu0 %v12532_v43  ;;  %13966 = vmatpush3.bf16.msra.mxu0 %v15104_v11  ;;  %v5011_v43 = vrot.slane %v5009_v26, 5  ;;  %v5040_v11 = vrot.slane %v5038_v61, 4  ;;  %v5033_v26 = vshll.u32 %v16962_v22, 16 }
 0x266   : > { %13967 = vmatprep.subr.bf16.mxu0 %v15105_v52  ;;  %v4988_v34 = vsel %vm15643_vm11, %v4983_v62, %v4987_v33  ;;  %v5054_v33 = vor.u32 %v5053_v18, %v5049_v24  ;;  %v5064_v62 = vrot.slane %v5062_v57, 4  ;;  %v5026_v18 = vsel %vm15643_vm11, %v5021_v14, %v5025_v20 }
 0x267   : > { %v5012_v60 = vsel %vm15643_vm11, %v5007_v29, %v5011_v43  ;;  %v5044_v16 = vor.u32 %v5043_v5, %v5040_v11  ;;  %v12535_v61 = vcombine.low %v4978_v51, %v4988_v34  ;;  %v5035_v44 = vrot.slane %v5033_v26, 5 }
 0x268   : > { %v5067_v29 = vrot.slane %v5065_v58, 5  ;;  %v5077_v43 = vrot.slane %v5075_v40, 4  ;;  %v5055_v12 = vrot.slane %v5054_v33, 4  ;;  %v5487_v14 = vrot.slane %v16737_v25, 5 }
 0x269   : > { %13968 = vmatpush3.bf16.msra.mxu0 %v15105_v52  ;;  %v5002_v52 = vsel %vm15643_vm11, %v4997_v30, %v16940_v54  ;;  %v5031_v54 = vrot.slane %v5030_v38, 4  ;;  %v5073_v30 = vrot.slane %v5071_v47, 5  ;;  %v5045_v9 = vrot.slane %v5044_v16, 4 }
 0x26a   : > { %v12536_v45 = vcombine.low %v5002_v52, %v5012_v60  ;;  %v5068_v11 = vor.u32 %v5067_v29, %v5064_v62  ;;  %v5473_v52 = vrot.slane %v16728_v15, 5  ;;  %v5407_v60 = vld [vmem:[#allocation2 + $0x18] sm:$0xe]  ;;  %v5476_v16 = vrot.slane %v16739_v53, 5  ;;  %v5409_v53 = vld [vmem:[#allocation2 + $0x30] sm:$0xe] }
 0x26b   : > { %v5036_v55 = vsel %vm15643_vm11, %v5031_v54, %v5035_v44  ;;  %v5078_v5 = vor.u32 %v5077_v43, %v5073_v30  ;;  %v5050_v34 = vsel %vm15643_vm11, %v5045_v9, %v5049_v24  ;;  %v12548_v47 = vrot.slane %v5407_v60, 9 }
 0x26c   : > { %13938 = vmatmul.mubr.bf16.gmra.mrb[16].mxu0 %v12533_v27  ;;  %v5057_v27 = vshll.u32 %v16972_v1, 16  ;;  %v12537_v2 = vcombine.low %v5026_v18, %v5036_v55  ;;  %v5069_v20 = vrot.slane %v5068_v11, 4  ;;  %v5475_v40 = vrot.slane %v5473_v52, 4  ;;  %v5410_v55 = vld [vmem:[#allocation2 + $0x3c] sm:$0xe] }
 0x26d   : > { %13941 = vmatprep.mubr.bf16.mxu0 %v12534_v31  ;;  %v16982_v31 = vld [vmem:[#allocation2 + $0xd4] sm:$0x1]  ;;  %v5079_v57 = vrot.slane %v5078_v5, 4  ;;  %v5480_v15 = vrot.slane %v16733_v36, 5  ;;  %v12550_v43 = vrot.slane %v5409_v53, 9  ;;  %v5489_v9 = vrot.slane %v5487_v14, 4 }
 0x26e   : > { %v5059_v50 = vrot.slane %v5057_v27, 5  ;;  %v5081_v51 = vshll.u32 %v16982_v31, 16  ;;  %v5074_v24 = vsel %vm15643_vm11, %v5069_v20, %v5073_v30  ;;  %v5474_v27 = vsel %vm16147_vm14, %v12548_v47, %v5473_v52 }
 0x26f   : > { %v5482_v29 = vrot.slane %v5480_v15, 4  ;;  %v5483_v30 = vrot.slane %v16749_v8, 5  ;;  %v5490_v36 = vrot.slane %v16757_v42, 5  ;;  %v5494_v25 = vrot.slane %v16745_v23, 5  ;;  %v5411_v42 = vld [vmem:[#allocation2 + $0x48] sm:$0xe] }
 0x270   : > { %v5060_v26 = vsel %vm15643_vm11, %v5055_v12, %v5059_v50  ;;  %v5083_v58 = vrot.slane %v5081_v51, 5  ;;  %v5488_v18 = vsel %vm16147_vm14, %v12550_v43, %v5487_v14  ;;  %v5501_v11 = vrot.slane %v16764_v49, 5 }
 0x271   : > { %v12538_v38 = vcombine.low %v5050_v34, %v5060_v26  ;;  %v5484_v50 = vsel %vm16147_vm14, %v5482_v29, %v5483_v30  ;;  %v5491_v8 = vsel %vm16147_vm14, %v5489_v9, %v5490_v36  ;;  %v12551_v34 = vrot.slane %v5410_v55, 9 }
 0x272   : > { %v5084_v33 = vsel %vm15643_vm11, %v5079_v57, %v5083_v58  ;;  %v12582_v51 = vcombine.low %v5488_v18, %v5491_v8  ;;  %v5496_v26 = vrot.slane %v5494_v25, 4  ;;  %v5497_v52 = vrot.slane %v16760_v3, 5  ;;  %v5412_v58 = vld [vmem:[#allocation2 + $0x54] sm:$0xe]  ;;  %v5416_v8 = vld [vmem:[#allocation2 + $0x84] sm:$0xe] }
 0x273   : > { %v12539_v54 = vcombine.low %v5074_v24, %v5084_v33  ;;  %v12552_v60 = vrot.slane %v5411_v42, 9  ;;  %v5504_v23 = vrot.slane %v16790_v6, 5  ;;  %v5508_v49 = vrot.slane %v16780_v28, 5  ;;  %v5413_v6 = vld [vmem:[#allocation2 + $0x60] sm:$0xe] }
 0x274   : > { %13942 = vmatmul.mubr.bf16.gmra.mrb[20].mxu0 %v12535_v61  ;;  %v5477_v61 = vsel %vm16147_vm14, %v5475_v40, %v5476_v16  ;;  %v5498_v20 = vsel %vm16147_vm14, %v5496_v26, %v5497_v52  ;;  %v5515_v47 = vrot.slane %v16786_v0, 5  ;;  %v12553_v24 = vrot.slane %v5412_v58, 9 }
 0x275   : > { %13945 = vmatprep.mubr.bf16.mxu0 %v12536_v45  ;;  %v5408_v45 = vld [vmem:[#allocation2 + $0x24] sm:$0xe]  ;;  %v12580_v44 = vcombine.low %v5474_v27, %v5477_v61  ;;  %v5502_v57 = vsel %vm16147_vm14, %v12552_v60, %v5501_v11  ;;  %v5510_v33 = vrot.slane %v5508_v49, 4  ;;  %v12554_v27 = vrot.slane %v5413_v6, 9 }
 0x276   : > { %v12549_v62 = vrot.slane %v5408_v45, 9  ;;  %v5517_v61 = vrot.slane %v5515_v47, 4  ;;  %v5518_v28 = vrot.slane %v16819_v35, 5  ;;  %v5509_v45 = vsel %vm16147_vm14, %v12553_v24, %v5508_v49  ;;  %v5415_v35 = vld [vmem:[#allocation2 + $0x78] sm:$0xe] }
 0x277   : > { %v5522_v0 = vrot.slane %v16814_v56, 5  ;;  %v5516_v53 = vsel %vm16147_vm14, %v12554_v27, %v5515_v47  ;;  %v5525_v9 = vrot.slane %v16844_v48, 5  ;;  %v12556_v36 = vrot.slane %v5415_v35, 9 }
 0x278   : > { %v5481_v12 = vsel %vm16147_vm14, %v12549_v62, %v5480_v15  ;;  %v5511_v15 = vrot.slane %v16808_v46, 5  ;;  %v5519_v46 = vsel %vm16147_vm14, %v5517_v61, %v5518_v28  ;;  %v5532_v56 = vrot.slane %v16856_v10, 5  ;;  %v5417_v10 = vld [vmem:[#allocation2 + $0x90] sm:$0xe]  ;;  %v5420_v61 = vld [vmem:[#allocation2 + $0xb4] sm:$0xe] }
 0x279   : > { %v12581_v5 = vcombine.low %v5481_v12, %v5484_v50  ;;  %v12586_v29 = vcombine.low %v5516_v53, %v5519_v46  ;;  %v5524_v43 = vrot.slane %v5522_v0, 4  ;;  %v5543_v55 = vrot.slane %v16877_v63, 5 }
 0x27a   : > { %v5512_v14 = vsel %vm16147_vm14, %v5510_v33, %v5511_v15  ;;  %v12558_v26 = vrot.slane %v5417_v10, 9  ;;  %v5550_v63 = vrot.slane %v16906_v37, 5  ;;  %v5553_v47 = vrot.slane %v16931_v17, 5 }
 0x27b   : > { %v12585_v62 = vcombine.low %v5509_v45, %v5512_v14  ;;  %v5545_v52 = vrot.slane %v5543_v55, 4  ;;  %v5571_v28 = vrot.slane %v16950_v4, 5  ;;  %v5421_v45 = vld [vmem:[#allocation2 + $0xc0] sm:$0xe]  ;;  %v12561_v53 = vrot.slane %v5420_v61, 9 }
 0x27c   : > { %13946 = vmatmul.mubr.bf16.gmra.mrb[24].mxu0 %v12537_v2  ;;  %v5503_v2 = vrot.slane %v5501_v11, 4  ;;  %v5552_v58 = vrot.slane %v5550_v63, 4  ;;  %v5578_v4 = vrot.slane %v16964_v13, 5 }
 0x27d   : > { %13949 = vmatprep.mubr.bf16.mxu0 %v12538_v38  ;;  %v5495_v38 = vsel %vm16147_vm14, %v12551_v34, %v5494_v25  ;;  %v5526_v25 = vsel %vm16147_vm14, %v5524_v43, %v5525_v9  ;;  %v5539_v34 = vrot.slane %v16886_v19, 5  ;;  %v5573_v35 = vrot.slane %v5571_v28, 4  ;;  %v5422_v9 = vld [vmem:[#allocation2 + $0xcc] sm:$0xe] }
 0x27e   : > { %v5505_v3 = vsel %vm16147_vm14, %v5503_v2, %v5504_v23  ;;  %v12583_v40 = vcombine.low %v5495_v38, %v5498_v20  ;;  %v5544_v23 = vsel %vm16147_vm14, %v12558_v26, %v5543_v55  ;;  %v5418_v38 = vld [vmem:[#allocation2 + $0x9c] sm:$0xe]  ;;  %v5557_v20 = vrot.slane %v16910_v41, 5 }
 0x27f   : > { %v12584_v16 = vcombine.low %v5502_v57, %v5505_v3  ;;  %v12559_v3 = vrot.slane %v5418_v38, 9  ;;  %v5554_v33 = vsel %vm16147_vm14, %v5552_v58, %v5553_v47  ;;  %v20070_v41 = vld [vmem:[#allocation14_spill] sm:$0xff] }
 0x280   : > { %v5564_v15 = vrot.slane %v20070_v41, 5 }
 0x281   : > { %v5551_v24 = vsel %vm16147_vm14, %v12559_v3, %v5550_v63 }
 0x282   : > { %v12591_v14 = vcombine.low %v5551_v24, %v5554_v33  ;;  %v5566_v46 = vrot.slane %v5564_v15, 4 }
 0x284   : > { %13950 = vmatmul.mubr.bf16.gmra.mrb[28].mxu0 %v12539_v54  ;;  %v5414_v54 = vld [vmem:[#allocation2 + $0x6c] sm:$0xe] }
 0x285   : > { %13969 = vmatprep.mubr.bf16.mxu0 %v12580_v44  ;;  %v5529_v44 = vrot.slane %v16826_v59, 5  ;;  %v12555_v30 = vrot.slane %v5414_v54, 9  ;;  %v5536_v59 = vrot.slane %v16842_v7, 5  ;;  %v5546_v7 = vrot.slane %v16904_v21, 5  ;;  %v5419_v21 = vld [vmem:[#allocation2 + $0xa8] sm:$0xe] }
 0x286   : > { %v12560_v6 = vrot.slane %v5419_v21, 9  ;;  %v5567_v54 = vrot.slane %v16962_v22, 5 }
 0x287   : > { %v5531_v12 = vrot.slane %v5529_v44, 4  ;;  %v5523_v50 = vsel %vm16147_vm14, %v12555_v30, %v5522_v0  ;;  %v5530_v18 = vsel %vm16147_vm14, %v12556_v36, %v5529_v44  ;;  %v5547_v19 = vsel %vm16147_vm14, %v5545_v52, %v5546_v7 }
 0x288   : > { %v12587_v11 = vcombine.low %v5523_v50, %v5526_v25  ;;  %v12590_v57 = vcombine.low %v5544_v23, %v5547_v19  ;;  %v5558_v27 = vsel %vm16147_vm14, %v12560_v6, %v5557_v20  ;;  %v12562_v44 = vrot.slane %v5421_v45, 9 }
 0x289   : > { %v5533_v48 = vsel %vm16147_vm14, %v5531_v12, %v5532_v56  ;;  %v5568_v30 = vsel %vm16147_vm14, %v5566_v46, %v5567_v54  ;;  %v5580_v56 = vrot.slane %v5578_v4, 4  ;;  %v5581_v50 = vrot.slane %v16982_v31, 5 }
 0x28a   : > { %v12588_v42 = vcombine.low %v5530_v18, %v5533_v48  ;;  %v5572_v43 = vsel %vm16147_vm14, %v12562_v44, %v5571_v28  ;;  %v17096_v18 = vld [vmem:[%s19950_s2] ss:$0 sm:$0xff] }
 0x28b   : > { %v5582_v13 = vsel %vm16147_vm14, %v5580_v56, %v5581_v50 }
 0x28c   : > { %13970 = vmatmul.mubr.bf16.vlgmr.msra.gmra.mrb[0].mxu0 %v12581_v5  ;;  %v12557_v5 = vrot.slane %v5416_v8, 9 }
 0x28d   : > { %13973 = vmatprep.mubr.bf16.mxu0 %v12582_v51  ;;  %v5538_v51 = vrot.slane %v5536_v59, 4 }
 0x28e   : > { %v5537_v60 = vsel %vm16147_vm14, %v12557_v5, %v5536_v59 }
 0x28f   : > { %v5540_v2 = vsel %vm16147_vm14, %v5538_v51, %v5539_v34 }
 0x290   : > { %v12589_v49 = vcombine.low %v5537_v60, %v5540_v2 }
 0x294   : > { %13974 = vmatmul.mubr.bf16.gmra.mrb[4].mxu0 %v12583_v40  ;;  %v5559_v40 = vrot.slane %v5557_v20, 4 }
 0x295   : > { %13977 = vmatprep.mubr.bf16.mxu0 %v12584_v16  ;;  %v20069_v16 = vld [vmem:[#allocation13_spill] sm:$0xff] }
 0x296   : > { %v5560_v37 = vrot.slane %v20069_v16, 5 }
 0x298   : > { %v5561_v17 = vsel %vm16147_vm14, %v5559_v40, %v5560_v37 }
 0x299   : > { %v12592_v0 = vcombine.low %v5558_v27, %v5561_v17 }
 0x29c   : > { %13978 = vmatmul.mubr.bf16.gmra.mrb[8].mxu0 %v12585_v62  ;;  %v5574_v62 = vrot.slane %v16972_v1, 5  ;;  %v12563_v1 = vrot.slane %v5422_v9, 9 }
 0x29d   : > { %13981 = vmatprep.mubr.bf16.mxu0 %v12586_v29  ;;  %v5565_v29 = vsel %vm16147_vm14, %v12561_v53, %v5564_v15 }
 0x29e   : > { %v5575_v22 = vsel %vm16147_vm14, %v5573_v35, %v5574_v62  ;;  %v12593_v36 = vcombine.low %v5565_v29, %v5568_v30  ;;  %v5579_v25 = vsel %vm16147_vm14, %v12563_v1, %v5578_v4 }
 0x29f   : > { %v12594_v12 = vcombine.low %v5572_v43, %v5575_v22  ;;  %v12595_v59 = vcombine.low %v5579_v25, %v5582_v13 }
 0x2a4   : > { %13982 = vmatmul.mubr.bf16.gmra.mrb[12].mxu0 %v12587_v11 }
 0x2a5   : > { %13985 = vmatprep.mubr.bf16.mxu0 %v12588_v42 }
 0x2ac   : > { %13986 = vmatmul.mubr.bf16.gmra.mrb[16].mxu0 %v12589_v49 }
 0x2ad   : > { %13989 = vmatprep.mubr.bf16.mxu0 %v12590_v57 }
 0x2b4   : > { %13990 = vmatmul.mubr.bf16.gmra.mrb[20].mxu0 %v12591_v14 }
 0x2b5   : > { %13993 = vmatprep.mubr.bf16.mxu0 %v12592_v0 }
 0x2bc   : > { %13994 = vmatmul.mubr.bf16.gmra.mrb[24].mxu0 %v12593_v36 }
 0x2bd   : > { %13997 = vmatprep.mubr.bf16.mxu0 %v12594_v12 }
 0x2c4   : > { %13998 = vmatmul.mubr.bf16.gmra.mrb[28].mxu0 %v12595_v59 }
 0x35f   : > { %v13971_v48 = vpop.f32.mrb[0].mxu0 }
 0x360   : > { %v5746_v8 = vpop.f32.mrb[1].mxu0  ;;  %v17102_v11 = vadd.f32 %v13971_v48, %v17096_v18 }
 0x361   : > { %v17099_v55 = vadd.f32 %v17096_v18, %v5746_v8  ;;  %v13972_v31 = vpop.f32.mrb[2].mxu0 }
 0x362   : > { %v5749_v10 = vpop.f32.mrb[3].mxu0  ;;  %v17110_v51 = vadd.f32 %v13972_v31, %v17096_v18  ;;  %v5984_v52 = vmul.f32 %v17102_v11, %v17102_v11 }
 0x363   : > { %v17105_v42 = vadd.f32 %v17096_v18, %v5749_v10  ;;  %v5982_v5 = vmul.f32 %v17099_v55, %v17099_v55 }
 0x364   : > { %v5985_v23 = vmul.f32 %v17110_v51, %v17110_v51 }
 0x365   : > { %v5944_v34 = vadd.f32 %v17105_v42, %v17099_v55  ;;  %v5983_v26 = vmul.f32 %v17105_v42, %v17105_v42 }
 0x367   : > { %v5945_v7 = vadd.f32 %v5944_v34, %v17102_v11  ;;  %v6014_v60 = vadd.f32 %v5983_v26, %v5982_v5  ;;  %v13975_v2 = vpop.f32.mrb[4].mxu0 }
 0x368   : > { %v5762_v63 = vpop.f32.mrb[5].mxu0  ;;  %v17126_v49 = vadd.f32 %v13975_v2, %v17096_v18 }
 0x369   : > { %v6015_v19 = vadd.f32 %v6014_v60, %v5984_v52  ;;  %v17122_v38 = vadd.f32 %v17096_v18, %v5762_v63  ;;  %v5946_v20 = vadd.f32 %v5945_v7, %v17110_v51  ;;  %v13976_v21 = vpop.f32.mrb[6].mxu0 }
 0x36a   : > { %v5765_v57 = vpop.f32.mrb[7].mxu0  ;;  %v17135_v16 = vadd.f32 %v13976_v21, %v17096_v18  ;;  %v5988_v33 = vmul.f32 %v17126_v49, %v17126_v49 }
 0x36b   : > { %v5947_v3 = vadd.f32 %v5946_v20, %v17122_v38  ;;  %v5986_v58 = vmul.f32 %v17122_v38, %v17122_v38  ;;  %v6016_v47 = vadd.f32 %v6015_v19, %v5985_v23  ;;  %v17132_v6 = vadd.f32 %v17096_v18, %v5765_v57 }
 0x36c   : > { %v5989_v61 = vmul.f32 %v17135_v16, %v17135_v16 }
 0x36d   : > { %v6017_v40 = vadd.f32 %v6016_v47, %v5986_v58  ;;  %v5948_v37 = vadd.f32 %v5947_v3, %v17132_v6  ;;  %v5987_v24 = vmul.f32 %v17132_v6, %v17132_v6 }
 0x36f   : > { %v5949_v41 = vadd.f32 %v5948_v37, %v17126_v49  ;;  %v6018_v15 = vadd.f32 %v6017_v40, %v5987_v24  ;;  %v13979_v27 = vpop.f32.mrb[8].mxu0 }
 0x370   : > { %v5778_v17 = vpop.f32.mrb[9].mxu0  ;;  %v17150_v53 = vadd.f32 %v13979_v27, %v17096_v18 }
 0x371   : > { %v6019_v28 = vadd.f32 %v6018_v15, %v5988_v33  ;;  %v17146_v45 = vadd.f32 %v17096_v18, %v5778_v17  ;;  %v5950_v14 = vadd.f32 %v5949_v41, %v17135_v16  ;;  %v13980_v0 = vpop.f32.mrb[10].mxu0 }
 0x372   : > { %v5781_v46 = vpop.f32.mrb[11].mxu0  ;;  %v17159_v30 = vadd.f32 %v13980_v0, %v17096_v18  ;;  %v5992_v22 = vmul.f32 %v17150_v53, %v17150_v53 }
 0x373   : > { %v5951_v54 = vadd.f32 %v5950_v14, %v17146_v45  ;;  %v5990_v44 = vmul.f32 %v17146_v45, %v17146_v45  ;;  %v6020_v35 = vadd.f32 %v6019_v28, %v5989_v61  ;;  %v17156_v62 = vadd.f32 %v17096_v18, %v5781_v46 }
 0x374   : > { %v5993_v56 = vmul.f32 %v17159_v30, %v17159_v30 }
 0x375   : > { %v6021_v29 = vadd.f32 %v6020_v35, %v5990_v44  ;;  %v5952_v4 = vadd.f32 %v5951_v54, %v17156_v62  ;;  %v5991_v43 = vmul.f32 %v17156_v62, %v17156_v62 }
 0x377   : > { %v5953_v9 = vadd.f32 %v5952_v4, %v17150_v53  ;;  %v6022_v36 = vadd.f32 %v6021_v29, %v5991_v43  ;;  %v13983_v12 = vpop.f32.mrb[12].mxu0 }
 0x378   : > { %v5794_v1 = vpop.f32.mrb[13].mxu0  ;;  %v17174_v48 = vadd.f32 %v13983_v12, %v17096_v18 }
 0x379   : > { %v6023_v50 = vadd.f32 %v6022_v36, %v5992_v22  ;;  %v17170_v25 = vadd.f32 %v17096_v18, %v5794_v1  ;;  %v5954_v13 = vadd.f32 %v5953_v9, %v17159_v30  ;;  %v13984_v59 = vpop.f32.mrb[14].mxu0 }
 0x37a   : > { %v5797_v8 = vpop.f32.mrb[15].mxu0  ;;  %v17183_v52 = vadd.f32 %v13984_v59, %v17096_v18  ;;  %v5996_v2 = vmul.f32 %v17174_v48, %v17174_v48 }
 0x37b   : > { %v5955_v31 = vadd.f32 %v5954_v13, %v17170_v25  ;;  %v5994_v10 = vmul.f32 %v17170_v25, %v17170_v25  ;;  %v6024_v5 = vadd.f32 %v6023_v50, %v5993_v56  ;;  %v17180_v34 = vadd.f32 %v17096_v18, %v5797_v8 }
 0x37c   : > { %v5997_v21 = vmul.f32 %v17183_v52, %v17183_v52 }
 0x37d   : > { %v6025_v26 = vadd.f32 %v6024_v5, %v5994_v10  ;;  %v5956_v7 = vadd.f32 %v5955_v31, %v17180_v34  ;;  %v5995_v60 = vmul.f32 %v17180_v34, %v17180_v34 }
 0x37f   : > { %v5957_v63 = vadd.f32 %v5956_v7, %v17174_v48  ;;  %v6026_v23 = vadd.f32 %v6025_v26, %v5995_v60  ;;  %v13987_v19 = vpop.f32.mrb[16].mxu0  ;;  %v15106_v60 = vld [vmem:[%s19951_s3 + $0x40] sm:$0xff]  }
 0x380   : > { %v5810_v20 = vpop.f32.mrb[17].mxu0  ;;  %v17198_v40 = vadd.f32 %v13987_v19, %v17096_v18  ;;  %14001 = vmatprep.subr.bf16.mxu1 %v15106_v60 }
 0x381   : > { %v6027_v57 = vadd.f32 %v6026_v23, %v5996_v2  ;;  %v17194_v3 = vadd.f32 %v17096_v18, %v5810_v20  ;;  %v5958_v58 = vadd.f32 %v5957_v63, %v17183_v52  ;;  %v13988_v47 = vpop.f32.mrb[18].mxu0  ;;  %14002 = vmatpush3.bf16.msra.mxu1 %v15106_v60 }
 0x382   : > { %v5813_v37 = vpop.f32.mrb[19].mxu0  ;;  %v17207_v17 = vadd.f32 %v13988_v47, %v17096_v18  ;;  %v6000_v14 = vmul.f32 %v17198_v40, %v17198_v40 }
 0x383   : > { %v5959_v24 = vadd.f32 %v5958_v58, %v17194_v3  ;;  %v5998_v33 = vmul.f32 %v17194_v3, %v17194_v3  ;;  %v6028_v41 = vadd.f32 %v6027_v57, %v5997_v21  ;;  %v17204_v15 = vadd.f32 %v17096_v18, %v5813_v37 }
 0x384   : > { %v6001_v35 = vmul.f32 %v17207_v17, %v17207_v17 }
 0x385   : > { %v6029_v27 = vadd.f32 %v6028_v41, %v5998_v33  ;;  %v5960_v61 = vadd.f32 %v5959_v24, %v17204_v15  ;;  %v5999_v28 = vmul.f32 %v17204_v15, %v17204_v15  ;;  %v15107_v41 = vld [vmem:[%s19951_s3 + $0x48] sm:$0xff]  }
 0x386   : > { %14003 = vmatprep.subr.bf16.mxu1 %v15107_v41 }
 0x387   : > { %v5961_v0 = vadd.f32 %v5960_v61, %v17198_v40  ;;  %v6030_v46 = vadd.f32 %v6029_v27, %v5999_v28  ;;  %v13991_v54 = vpop.f32.mrb[20].mxu0  ;;  %14004 = vmatpush3.bf16.msra.mxu1 %v15107_v41 }
 0x388   : > { %v5826_v44 = vpop.f32.mrb[21].mxu0  ;;  %v17222_v9 = vadd.f32 %v13991_v54, %v17096_v18 }
 0x389   : > { %v6031_v29 = vadd.f32 %v6030_v46, %v6000_v14  ;;  %v17218_v4 = vadd.f32 %v17096_v18, %v5826_v44  ;;  %v5962_v43 = vadd.f32 %v5961_v0, %v17207_v17  ;;  %v13992_v22 = vpop.f32.mrb[22].mxu0 }
 0x38a   : > { %v5829_v36 = vpop.f32.mrb[23].mxu0  ;;  %v17231_v59 = vadd.f32 %v13992_v22, %v17096_v18  ;;  %v6004_v10 = vmul.f32 %v17222_v9, %v17222_v9 }
 0x38b   : > { %v5963_v12 = vadd.f32 %v5962_v43, %v17218_v4  ;;  %v6002_v1 = vmul.f32 %v17218_v4, %v17218_v4  ;;  %v6032_v56 = vadd.f32 %v6031_v29, %v6001_v35  ;;  %v17228_v50 = vadd.f32 %v17096_v18, %v5829_v36  ;;  %v15108_v35 = vld [vmem:[%s19951_s3 + $0x50] sm:$0xff]  }
 0x38c   : > { %v6005_v63 = vmul.f32 %v17231_v59, %v17231_v59  ;;  %14005 = vmatprep.subr.bf16.mxu1 %v15108_v35 }
 0x38d   : > { %v6033_v13 = vadd.f32 %v6032_v56, %v6002_v1  ;;  %v5964_v8 = vadd.f32 %v5963_v12, %v17228_v50  ;;  %v6003_v31 = vmul.f32 %v17228_v50, %v17228_v50  ;;  %14006 = vmatpush3.bf16.msra.mxu1 %v15108_v35 }
 0x38f   : > { %v5965_v5 = vadd.f32 %v5964_v8, %v17222_v9  ;;  %v6034_v26 = vadd.f32 %v6033_v13, %v6003_v31  ;;  %v13995_v7 = vpop.f32.mrb[24].mxu0 }
 0x390   : > { %v5842_v2 = vpop.f32.mrb[25].mxu0  ;;  %v17249_v57 = vadd.f32 %v13995_v7, %v17096_v18  ;;  %v15110_v7 = vld [vmem:[%s19951_s3 + $0x60] sm:$0xff]  }
 0x391   : > { %v6035_v23 = vadd.f32 %v6034_v26, %v6004_v10  ;;  %v17245_v19 = vadd.f32 %v17096_v18, %v5842_v2  ;;  %v5966_v20 = vadd.f32 %v5965_v5, %v17231_v59  ;;  %v13996_v21 = vpop.f32.mrb[26].mxu0  ;;  %v15109_v26 = vld [vmem:[%s19951_s3 + $0x58] sm:$0xff]  }
 0x392   : > { %v5845_v58 = vpop.f32.mrb[27].mxu0  ;;  %v17261_v61 = vadd.f32 %v13996_v21, %v17096_v18  ;;  %v6008_v0 = vmul.f32 %v17249_v57, %v17249_v57  ;;  %14007 = vmatprep.subr.bf16.mxu1 %v15109_v26 }
 0x393   : > { %v5967_v47 = vadd.f32 %v5966_v20, %v17245_v19  ;;  %v6006_v37 = vmul.f32 %v17245_v19, %v17245_v19  ;;  %v6036_v24 = vadd.f32 %v6035_v23, %v6005_v63  ;;  %v17255_v33 = vadd.f32 %v17096_v18, %v5845_v58  ;;  %14008 = vmatpush3.bf16.msra.mxu1 %v15109_v26 }
 0x394   : > { %v6009_v43 = vmul.f32 %v17261_v61, %v17261_v61  ;;  %14009 = vmatprep.subr.bf16.mxu1 %v15110_v7 }
 0x395   : > { %v6037_v27 = vadd.f32 %v6036_v24, %v6006_v37  ;;  %v5968_v28 = vadd.f32 %v5967_v47, %v17255_v33  ;;  %v6007_v14 = vmul.f32 %v17255_v33, %v17255_v33  ;;  %v15111_v47 = vld [vmem:[%s19951_s3 + $0x68] sm:$0xff]  }
 0x397   : > { %v5969_v46 = vadd.f32 %v5968_v28, %v17249_v57  ;;  %v6038_v54 = vadd.f32 %v6037_v27, %v6007_v14  ;;  %v13999_v44 = vpop.f32.mrb[28].mxu0  ;;  %14010 = vmatpush3.bf16.msra.mxu1 %v15110_v7  ;;  %v15112_v28 = vld [vmem:[%s19951_s3 + $0x70] sm:$0xff]  }
 0x398   : > { %v5858_v29 = vpop.f32.mrb[29].mxu0  ;;  %v17279_v56 = vadd.f32 %v13999_v44, %v17096_v18  ;;  %14011 = vmatprep.subr.bf16.mxu1 %v15111_v47  ;;  %v15113_v44 = vld [vmem:[%s19951_s3 + $0x78] sm:$0xff]  }
 0x399   : > { %v6039_v22 = vadd.f32 %v6038_v54, %v6008_v0  ;;  %v17275_v36 = vadd.f32 %v17096_v18, %v5858_v29  ;;  %v5970_v12 = vadd.f32 %v5969_v46, %v17261_v61  ;;  %v14000_v1 = vpop.f32.mrb[30].mxu0 }
 0x39a   : > { %v5861_v13 = vpop.f32.mrb[31].mxu0  ;;  %v17294_v2 = vadd.f32 %v14000_v1, %v17096_v18  ;;  %v6012_v20 = vmul.f32 %v17279_v56, %v17279_v56 }
 0x39b   : > { %v5971_v8 = vadd.f32 %v5970_v12, %v17275_v36  ;;  %v6010_v31 = vmul.f32 %v17275_v36, %v17275_v36  ;;  %v6040_v10 = vadd.f32 %v6039_v22, %v6009_v43  ;;  %v17285_v5 = vadd.f32 %v17096_v18, %v5861_v13  ;;  %14012 = vmatpush3.bf16.msra.mxu1 %v15111_v47  ;;  %v15114_v13 = vld [vmem:[%s19951_s3] sm:$0xff]  }
 0x39c   : > { %v6013_v18 = vmul.f32 %v17294_v2, %v17294_v2  ;;  %14013 = vmatprep.subr.bf16.mxu1 %v15112_v28 }
 0x39d   : > { %v6041_v60 = vadd.f32 %v6040_v10, %v6010_v31  ;;  %v5972_v63 = vadd.f32 %v5971_v8, %v17285_v5  ;;  %v6011_v23 = vmul.f32 %v17285_v5, %v17285_v5 }
 0x39f   : > { %v5973_v21 = vadd.f32 %v5972_v63, %v17279_v56  ;;  %v6042_v58 = vadd.f32 %v6041_v60, %v6011_v23  ;;  %14014 = vmatpush3.bf16.msra.mxu1 %v15112_v28 }
 0x3a0   : > { %14015 = vmatprep.subr.bf16.mxu1 %v15113_v44 }
 0x3a1   : > { %v5974_v37 = vadd.f32 %v5973_v21, %v17294_v2  ;;  %v6043_v24 = vadd.f32 %v6042_v58, %v6012_v20 }
 0x3a3   : > { %v5975_v41 = vrot.slane %v5974_v37, 4  ;;  %v6044_v27 = vadd.f32 %v6043_v24, %v6013_v18  ;;  %14016 = vmatpush3.bf16.msra.mxu1 %v15113_v44 }
 0x3a4   : > { %14049 = vmatprep.subr.bf16.mxu1 %v15114_v13 }
 0x3a5   : > { %v5976_v14 = vadd.f32 %v5975_v41, %v5974_v37  ;;  %v6045_v0 = vrot.slane %v6044_v27, 4 }
 0x3a7   : > { %v5977_v46 = vrot.slane %v5976_v14, 2  ;;  %v6046_v54 = vadd.f32 %v6045_v0, %v6044_v27 }
 0x3a9   : > { %v5978_v35 = vadd.f32 %v5977_v46, %v5976_v14  ;;  %v6047_v29 = vrot.slane %v6046_v54, 2 }
 0x3ab   : > { %v5979_v43 = vrot.slane %v5978_v35, 1  ;;  %v6048_v22 = vadd.f32 %v6047_v29, %v6046_v54 }
 0x3ad   : > { %v5980_v12 = vadd.f32 %v5979_v43, %v5978_v35  ;;  %v6049_v1 = vrot.slane %v6048_v22, 1 }
 0x3af   : > { %v17317_v8 = vmul.f32 0.00390625, %v5980_v12  ;;  %v6050_v31 = vadd.f32 %v6049_v1, %v6048_v22 }
 0x3b1   : > { %v6051_v10 = vmul.f32 0.00390625, %v6050_v31  ;;  %v6052_v26 = vmul.f32 %v17317_v8, %v17317_v8  ;;  %v6082_v7 = vsub.f32 %v17275_v36, %v17317_v8  ;;  %v6083_v60 = vsub.f32 %v17285_v5, %v17317_v8 }
 0x3b2   : > { %v6063_v23 = vsub.f32 %v17156_v62, %v17317_v8  ;;  %v6066_v21 = vsub.f32 %v17170_v25, %v17317_v8  ;;  %v6067_v58 = vsub.f32 %v17180_v34, %v17317_v8  ;;  %v6068_v47 = vsub.f32 %v17174_v48, %v17317_v8 }
 0x3b3   : > { %v6053_v63 = vsub.f32 %v6051_v10, %v6052_v26  ;;  %v6069_v36 = vsub.f32 %v17183_v52, %v17317_v8  ;;  %v6070_v5 = vsub.f32 %v17194_v3, %v17317_v8  ;;  %v6071_v18 = vsub.f32 %v17204_v15, %v17317_v8 }
 0x3b4   : > { %v6072_v62 = vsub.f32 %v17198_v40, %v17317_v8  ;;  %v6073_v25 = vsub.f32 %v17207_v17, %v17317_v8  ;;  %v6074_v34 = vsub.f32 %v17218_v4, %v17317_v8  ;;  %v6075_v48 = vsub.f32 %v17228_v50, %v17317_v8 }
 0x3b5   : > { %v6086_v20 = vadd.f32 1e-05, %v6053_v63  ;;  %v6076_v52 = vsub.f32 %v17222_v9, %v17317_v8  ;;  %v6077_v3 = vsub.f32 %v17231_v59, %v17317_v8  ;;  %v6078_v15 = vsub.f32 %v17245_v19, %v17317_v8 }
 0x3b6   : > { %v6079_v40 = vsub.f32 %v17255_v33, %v17317_v8  ;;  %v6080_v17 = vsub.f32 %v17249_v57, %v17317_v8  ;;  %v6081_v4 = vsub.f32 %v17261_v61, %v17317_v8  ;;  %v6084_v50 = vsub.f32 %v17279_v56, %v17317_v8 }
 0x3b7   : > { %15226 = vrsqrt.f32 %v6086_v20  ;;  %v6085_v9 = vsub.f32 %v17294_v2, %v17317_v8  ;;  %v6054_v59 = vsub.f32 %v17099_v55, %v17317_v8  ;;  %v6055_v19 = vsub.f32 %v17105_v42, %v17317_v8 }
 0x3b8   : > { %v6056_v33 = vsub.f32 %v17102_v11, %v17317_v8  ;;  %v6057_v57 = vsub.f32 %v17110_v51, %v17317_v8  ;;  %v6058_v61 = vsub.f32 %v17122_v38, %v17317_v8  ;;  %v6059_v56 = vsub.f32 %v17132_v6, %v17317_v8 }
 0x3b9   : > { %v6060_v2 = vsub.f32 %v17126_v49, %v17317_v8  ;;  %v6061_v55 = vsub.f32 %v17135_v16, %v17317_v8  ;;  %v6062_v42 = vsub.f32 %v17146_v45, %v17317_v8  ;;  %v6064_v11 = vsub.f32 %v17150_v53, %v17317_v8 }
 0x3ba   : > { %v6065_v51 = vsub.f32 %v17159_v30, %v17317_v8 }
 0x3c1   : > { %v15227_v37 = vpop.eup %15226 }
 0x3c2   : > { %v6116_v38 = vmul.f32 %v15227_v37, %v6082_v7  ;;  %v6117_v24 = vmul.f32 %v15227_v37, %v6083_v60  ;;  %v17385_v41 = vmul.f32 %v15227_v37, %v6054_v59  ;;  %v17387_v6 = vmul.f32 %v15227_v37, %v6055_v19 }
 0x3c3   : > { %v17389_v49 = vmul.f32 %v15227_v37, %v6056_v33  ;;  %v17391_v27 = vmul.f32 %v15227_v37, %v6057_v57  ;;  %v17393_v16 = vmul.f32 %v15227_v37, %v6058_v61  ;;  %v17395_v28 = vmul.f32 %v15227_v37, %v6059_v56  ;;  %v15144_v56 = vld [vmem:[%s19951_s3 + $0xb8] sm:$0xff]  }
 0x3c4   : > { %v6148_v45 = vmax.f32 %v6116_v38, 0.0  ;;  %v6149_v14 = vmax.f32 %v6117_v24, 0.0  ;;  %v17397_v53 = vmul.f32 %v15227_v37, %v6060_v2  ;;  %v17399_v0 = vmul.f32 %v15227_v37, %v6061_v55 }
 0x3c5   : > { %v17401_v30 = vmul.f32 %v15227_v37, %v6062_v42  ;;  %v17403_v46 = vmul.f32 %v15227_v37, %v6063_v23  ;;  %v17405_v54 = vmul.f32 %v15227_v37, %v6064_v11  ;;  %v17407_v44 = vmul.f32 %v15227_v37, %v6065_v51 }
 0x3c6   : > { %v17409_v35 = vpack.c.bf16 %v6148_v45, %v6148_v45  ;;  %v13133_v29 = vpack.c.bf16 %v6149_v14, %v6149_v14  ;;  %v17411_v43 = vmul.f32 %v15227_v37, %v6066_v21  ;;  %v17413_v22 = vmul.f32 %v15227_v37, %v6067_v58 }
 0x3c7   : > { %v17415_v12 = vmul.f32 %v15227_v37, %v6068_v47  ;;  %v17417_v1 = vmul.f32 %v15227_v37, %v6069_v36  ;;  %v17419_v13 = vmul.f32 %v15227_v37, %v6070_v5  ;;  %v17421_v8 = vmul.f32 %v15227_v37, %v6071_v18  ;;  %v6669_v5 = vld [vmem:[#allocation2 + $0xbc] sm:$0x1]  ;;  %v6690_v18 = vld [vmem:[#allocation2 + $0xd4] sm:$0x1] }
 0x3c8   : > { %v6487_v31 = vshrl.u32 %v17409_v35, 16  ;;  %v6495_v10 = vshrl.u32 %v13133_v29, 16  ;;  %v6498_v26 = vshll.u32 %v13133_v29, 16  ;;  %v6490_v7 = vshll.u32 %v17409_v35, 16 }
 0x3c9   : > { %v17425_v60 = vmul.f32 %v15227_v37, %v6072_v62  ;;  %v17427_v63 = vmul.f32 %v15227_v37, %v6073_v25  ;;  %v17429_v23 = vmul.f32 %v15227_v37, %v6074_v34  ;;  %v17431_v20 = vmul.f32 %v15227_v37, %v6075_v48 }
 0x3ca   : > { %v17433_v21 = vrot.slane %v6487_v31, 7  ;;  %v6497_v58 = vrot.slane %v6495_v10, 7  ;;  %v17435_v47 = vmul.f32 %v15227_v37, %v6076_v52  ;;  %v17437_v36 = vmul.f32 %v15227_v37, %v6077_v3 }
 0x3cb   : > { %v17439_v59 = vmul.f32 %v15227_v37, %v6078_v15  ;;  %v17441_v19 = vmul.f32 %v15227_v37, %v6079_v40  ;;  %v17443_v62 = vmul.f32 %v15227_v37, %v6080_v17  ;;  %v17445_v25 = vmul.f32 %v15227_v37, %v6081_v4  ;;  %v17784_v40 = vld [vmem:[#allocation2] sm:$0xf] }
 0x3cc   : > { %v6493_v34 = vrot.slane %v17433_v21, 4  ;;  %v6500_v48 = vor.u32 %v6498_v26, %v6497_v58  ;;  %v6502_v33 = vrot.slane %v6497_v58, 4  ;;  %v17448_v57 = vmul.f32 %v15227_v37, %v6084_v50 }
 0x3cd   : > { %v17450_v52 = vmul.f32 %v15227_v37, %v6085_v9  ;;  %v6120_v3 = vmax.f32 %v17385_v41, 0.0  ;;  %v6121_v61 = vmax.f32 %v17387_v6, 0.0  ;;  %v6122_v15 = vmax.f32 %v17389_v49, 0.0 }
 0x3ce   : > { %v6501_v17 = vsel %vm15512_vm5, %v6493_v34, %v6500_v48  ;;  %v6670_v4 = vsel %vm15526_vm7, %v6502_v33, %v6669_v5  ;;  %v6691_v2 = vsel %vm15526_vm7, %v6502_v33, %v6690_v18  ;;  %v6123_v50 = vmax.f32 %v17391_v27, 0.0 }
 0x3cf   : > { %6668 = vst [vmem:[#allocation2 + $0xb8] sm:$0xf] %v6501_v17  ;;  %6671 = vst [vmem:[#allocation2 + $0xbc] sm:$0x1] %v6670_v4  ;;  %v6124_v9 = vmax.f32 %v17393_v16, 0.0  ;;  %v6125_v37 = vmax.f32 %v17395_v28, 0.0  ;;  %v13106_v10 = vpack.c.bf16 %v6122_v15, %v6122_v15 }
 0x3d0   : > { %6689 = vst [vmem:[#allocation2 + $0xd0] sm:$0xf] %v6501_v17  ;;  %6692 = vst [vmem:[#allocation2 + $0xd4] sm:$0x1] %v6691_v2  ;;  %v6126_v55 = vmax.f32 %v17397_v53, 0.0  ;;  %v6127_v42 = vmax.f32 %v17399_v0, 0.0  ;;  %v13107_v26 = vpack.c.bf16 %v6123_v50, %v6123_v50 }
 0x3d1   : > { %v6128_v11 = vmax.f32 %v17401_v30, 0.0  ;;  %v6129_v51 = vmax.f32 %v17403_v46, 0.0  ;;  %v6130_v38 = vmax.f32 %v17405_v54, 0.0  ;;  %v6131_v24 = vmax.f32 %v17407_v44, 0.0 }
 0x3d2   : > { %v6132_v41 = vmax.f32 %v17411_v43, 0.0  ;;  %v6133_v6 = vmax.f32 %v17413_v22, 0.0  ;;  %v6134_v49 = vmax.f32 %v17415_v12, 0.0  ;;  %v6135_v27 = vmax.f32 %v17417_v1, 0.0 }
 0x3d3   : > { %v6136_v16 = vmax.f32 %v17419_v13, 0.0  ;;  %v6137_v28 = vmax.f32 %v17421_v8, 0.0  ;;  %v6138_v45 = vmax.f32 %v17425_v60, 0.0  ;;  %v6139_v14 = vmax.f32 %v17427_v63, 0.0 }
 0x3d4   : > { %v6140_v53 = vmax.f32 %v17429_v23, 0.0  ;;  %v6141_v0 = vmax.f32 %v17431_v20, 0.0  ;;  %v6142_v30 = vmax.f32 %v17435_v47, 0.0  ;;  %v6143_v46 = vmax.f32 %v17437_v36, 0.0 }
 0x3d5   : > { %v6144_v54 = vmax.f32 %v17439_v59, 0.0  ;;  %v6145_v44 = vmax.f32 %v17441_v19, 0.0  ;;  %v6146_v29 = vmax.f32 %v17443_v62, 0.0  ;;  %v6147_v43 = vmax.f32 %v17445_v25, 0.0  ;;  %v17739_v25 = vld [vmem:[#allocation2 + $0x84] sm:$0xf] }
 0x3d6   : > { %v6150_v22 = vmax.f32 %v17448_v57, 0.0  ;;  %v6151_v12 = vmax.f32 %v17450_v52, 0.0  ;;  %v13104_v1 = vpack.c.bf16 %v6120_v3, %v6120_v3  ;;  %v13105_v13 = vpack.c.bf16 %v6121_v61, %v6121_v61  ;;  %v6852_v8 = vld [vmem:[#allocation2 + $0xb8] sm:$0x8]  ;;  %v6972_v58 = vld [vmem:[#allocation2 + $0xbc] sm:$0x1] }
 0x3d7   : > { %v6854_v31 = vld [vmem:[#allocation2 + $0xd0] sm:$0x8]  ;;  %v17488_v60 = vpack.c.bf16 %v6124_v9, %v6124_v9  ;;  %v17490_v63 = vpack.c.bf16 %v6125_v37, %v6125_v37  ;;  %v12670_v23 = vrot.slane %v6852_v8, 11  ;;  %v17492_v47 = vpack.c.bf16 %v6126_v55, %v6126_v55  ;;  %v6978_v5 = vld [vmem:[#allocation2 + $0xd4] sm:$0x1] }
 0x3d8   : > { %v12672_v20 = vrot.slane %v6854_v31, 11  ;;  %v17494_v36 = vpack.c.bf16 %v6127_v42, %v6127_v42  ;;  %v17496_v18 = vpack.c.bf16 %v6128_v11, %v6128_v11  ;;  %v17498_v59 = vpack.c.bf16 %v6129_v51, %v6129_v51 }
 0x3d9   : > { %v17500_v19 = vpack.c.bf16 %v6130_v38, %v6130_v38  ;;  %v17502_v62 = vpack.c.bf16 %v6131_v24, %v6131_v24  ;;  %v6973_v34 = vsel %vm15567_vm8, %v12670_v23, %v6972_v58  ;;  %v17508_v33 = vpack.c.bf16 %v6132_v41, %v6132_v41 }
 0x3da   : > { %v6979_v48 = vsel %vm15567_vm8, %v12672_v20, %v6978_v5  ;;  %v17510_v57 = vpack.c.bf16 %v6133_v6, %v6133_v6  ;;  %6974 = vst [vmem:[#allocation2 + $0xbc] sm:$0x1] %v6973_v34  ;;  %v17512_v52 = vpack.c.bf16 %v6134_v49, %v6134_v49  ;;  %v17514_v3 = vpack.c.bf16 %v6135_v27, %v6135_v27 }
 0x3db   : > { %6980 = vst [vmem:[#allocation2 + $0xd4] sm:$0x1] %v6979_v48  ;;  %v17516_v61 = vpack.c.bf16 %v6136_v16, %v6136_v16  ;;  %v17518_v15 = vpack.c.bf16 %v6137_v28, %v6137_v28  ;;  %v17520_v17 = vpack.c.bf16 %v6138_v45, %v6138_v45  ;;  %v17522_v4 = vpack.c.bf16 %v6139_v14, %v6139_v14 }
 0x3dc   : > { %v17524_v2 = vpack.c.bf16 %v6140_v53, %v6140_v53  ;;  %v17526_v50 = vpack.c.bf16 %v6141_v0, %v6141_v0  ;;  %v17528_v9 = vpack.c.bf16 %v6142_v30, %v6142_v30  ;;  %v17530_v37 = vpack.c.bf16 %v6143_v46, %v6143_v46 }
 0x3dd   : > { %v17532_v55 = vpack.c.bf16 %v6144_v54, %v6144_v54  ;;  %v17534_v42 = vpack.c.bf16 %v6145_v44, %v6145_v44  ;;  %v17536_v11 = vpack.c.bf16 %v6146_v29, %v6146_v29  ;;  %v17538_v51 = vpack.c.bf16 %v6147_v43, %v6147_v43 }
 0x3de   : > { %v17540_v38 = vpack.c.bf16 %v6150_v22, %v6150_v22  ;;  %v17542_v24 = vpack.c.bf16 %v6151_v12, %v6151_v12  ;;  %v6249_v41 = vshrl.u32 %v13104_v1, 16  ;;  %v6252_v6 = vshll.u32 %v13104_v1, 16 }
 0x3df   : > { %v6257_v49 = vshrl.u32 %v13105_v13, 16  ;;  %v6260_v27 = vshll.u32 %v13105_v13, 16  ;;  %v6266_v16 = vshrl.u32 %v13106_v10, 16  ;;  %v6269_v28 = vshll.u32 %v13106_v10, 16  ;;  %v15266_v13 = vld [vmem:[#allocation2 + $0xc] sm:$0xf] }
 0x3e0   : > { %v6274_v45 = vshrl.u32 %v13107_v26, 16  ;;  %v6277_v14 = vshll.u32 %v13107_v26, 16  ;;  %v6251_v53 = vrot.slane %v6249_v41, 7  ;;  %v6283_v30 = vshrl.u32 %v17488_v60, 16 }
 0x3e1   : > { %v17544_v0 = vrot.slane %v6257_v49, 7  ;;  %v6286_v46 = vshll.u32 %v17488_v60, 16  ;;  %v6268_v54 = vrot.slane %v6266_v16, 7  ;;  %v6291_v29 = vshrl.u32 %v17490_v63, 16 }
 0x3e2   : > { %v17548_v44 = vrot.slane %v6274_v45, 7  ;;  %v6294_v43 = vshll.u32 %v17490_v63, 16  ;;  %v17552_v22 = vor.u32 %v6252_v6, %v6251_v53  ;;  %v6255_v12 = vrot.slane %v6251_v53, 4 }
 0x3e3   : > { %v6262_v1 = vor.u32 %v6260_v27, %v17544_v0  ;;  %v17556_v8 = vor.u32 %v6269_v28, %v6268_v54  ;;  %v6272_v31 = vrot.slane %v6268_v54, 4  ;;  %v6285_v23 = vrot.slane %v6283_v30, 7 }
 0x3e4   : > { %v6279_v10 = vor.u32 %v6277_v14, %v17548_v44  ;;  %v17562_v20 = vrot.slane %v6291_v29, 7  ;;  %v6300_v63 = vshrl.u32 %v17492_v47, 16  ;;  %v6303_v5 = vshll.u32 %v17492_v47, 16 }
 0x3e5   : > { %20074 = vst [vmem:[#allocation15_spill] sm:$0xff] %v17556_v8  ;;  %v6263_v60 = vsel %vm15512_vm5, %v6255_v12, %v6262_v1  ;;  %v6308_v34 = vshrl.u32 %v17494_v36, 16  ;;  %v6311_v48 = vshll.u32 %v17494_v36, 16  ;;  %v17570_v41 = vor.u32 %v6286_v46, %v6285_v23 }
 0x3e6   : > { %v6280_v58 = vsel %vm15512_vm5, %v6272_v31, %v6279_v10  ;;  %6570 = vst [vmem:[#allocation2 + $0x10] sm:$0xf] %v6263_v60  ;;  %v6289_v6 = vrot.slane %v6285_v23, 4  ;;  %v6296_v49 = vor.u32 %v6294_v43, %v17562_v20  ;;  %v6302_v16 = vrot.slane %v6300_v63, 7 }
 0x3e7   : > { %6577 = vst [vmem:[#allocation2 + $0x1c] sm:$0xf] %v6280_v58  ;;  %6682 = vst [vmem:[#allocation2 + $0x4] sm:$0xf] %v6280_v58  ;;  %v17574_v28 = vrot.slane %v6308_v34, 7  ;;  %v6317_v45 = vshrl.u32 %v17496_v18, 16  ;;  %v6568_v34 = vsel %vm15519_vm6, %v17552_v22, %v15266_v13 }
 0x3e8   : > { %v6320_v47 = vshll.u32 %v17496_v18, 16  ;;  %v6297_v36 = vsel %vm15512_vm5, %v6289_v6, %v6296_v49  ;;  %v6325_v14 = vshrl.u32 %v17498_v59, 16  ;;  %v6328_v53 = vshll.u32 %v17498_v59, 16  ;;  %6569 = vst [vmem:[#allocation2 + $0xc] sm:$0xf] %v6568_v34 }
 0x3e9   : > { %v6334_v30 = vshrl.u32 %v17500_v19, 16  ;;  %v17583_v46 = vor.u32 %v6303_v5, %v6302_v16  ;;  %v6306_v54 = vrot.slane %v6302_v16, 4  ;;  %v6313_v29 = vor.u32 %v6311_v48, %v17574_v28  ;;  %6584 = vst [vmem:[#allocation2 + $0x28] sm:$0xf] %v6297_v36  ;;  %v17745_v13 = vld [vmem:[#allocation2 + $0x90] sm:$0xf] }
 0x3ea   : > { %v6319_v12 = vrot.slane %v6317_v45, 7  ;;  %v17587_v1 = vrot.slane %v6325_v14, 7  ;;  %v6337_v31 = vshll.u32 %v17500_v19, 16  ;;  %v6342_v59 = vshrl.u32 %v17502_v62, 16  ;;  %v17715_v14 = vld [vmem:[#allocation2 + $0x54] sm:$0xf] }
 0x3eb   : > { %v6336_v18 = vrot.slane %v6334_v30, 7  ;;  %v6314_v10 = vsel %vm15512_vm5, %v6306_v54, %v6313_v29  ;;  %v6345_v60 = vshll.u32 %v17502_v62, 16  ;;  %v6351_v23 = vshrl.u32 %v17508_v33, 16 }
 0x3ec   : > { %v17595_v63 = vor.u32 %v6320_v47, %v6319_v12  ;;  %v6323_v58 = vrot.slane %v6319_v12, 4  ;;  %v6330_v5 = vor.u32 %v6328_v53, %v17587_v1  ;;  %6591 = vst [vmem:[#allocation2 + $0x34] sm:$0xf] %v6314_v10  ;;  %v17601_v6 = vrot.slane %v6342_v59, 7 }
 0x3ed   : > { %v17599_v48 = vor.u32 %v6337_v31, %v6336_v18  ;;  %v6340_v19 = vrot.slane %v6336_v18, 4  ;;  %v6353_v49 = vrot.slane %v6351_v23, 7  ;;  %v6354_v62 = vshll.u32 %v17508_v33, 16 }
 0x3ee   : > { %v6331_v16 = vsel %vm15512_vm5, %v6323_v58, %v6330_v5  ;;  %v6359_v45 = vshrl.u32 %v17510_v57, 16  ;;  %v6362_v47 = vshll.u32 %v17510_v57, 16  ;;  %v6347_v36 = vor.u32 %v6345_v60, %v17601_v6  ;;  %v6585_v60 = vld [vmem:[#allocation2 + $0x2c] sm:$0x1] }
 0x3ef   : > { %v6357_v53 = vrot.slane %v6353_v49, 4  ;;  %v6368_v30 = vshrl.u32 %v17512_v52, 16  ;;  %6598 = vst [vmem:[#allocation2 + $0x40] sm:$0xf] %v6331_v16  ;;  %v17611_v54 = vor.u32 %v6354_v62, %v6353_v49  ;;  %v6371_v12 = vshll.u32 %v17512_v52, 16 }
 0x3f0   : > { %v17613_v29 = vrot.slane %v6359_v45, 7  ;;  %v6376_v33 = vshrl.u32 %v17514_v3, 16  ;;  %v6348_v18 = vsel %vm15512_vm5, %v6340_v19, %v6347_v36  ;;  %v6379_v31 = vshll.u32 %v17514_v3, 16  ;;  %v6581_v62 = vld [vmem:[#allocation2 + $0x24] sm:$0xf] }
 0x3f1   : > { %v6370_v57 = vrot.slane %v6368_v30, 7  ;;  %v6385_v10 = vshrl.u32 %v17516_v61, 16  ;;  %v6388_v58 = vshll.u32 %v17516_v61, 16  ;;  %6605 = vst [vmem:[#allocation2 + $0x4c] sm:$0xf] %v6348_v18  ;;  %v6393_v19 = vshrl.u32 %v17518_v15, 16 }
 0x3f2   : > { %v6364_v59 = vor.u32 %v6362_v47, %v17613_v29  ;;  %v17623_v23 = vrot.slane %v6376_v33, 7  ;;  %v6396_v45 = vshll.u32 %v17518_v15, 16  ;;  %v6402_v30 = vshrl.u32 %v17520_v17, 16  ;;  %v17696_v15 = vld [vmem:[#allocation2 + $0x30] sm:$0xf] }
 0x3f3   : > { %v17626_v52 = vor.u32 %v6371_v12, %v6370_v57  ;;  %v6374_v5 = vrot.slane %v6370_v57, 4  ;;  %v6387_v49 = vrot.slane %v6385_v10, 7  ;;  %v17636_v61 = vrot.slane %v6393_v19, 7 }
 0x3f4   : > { %v6365_v3 = vsel %vm15512_vm5, %v6357_v53, %v6364_v59  ;;  %v6381_v16 = vor.u32 %v6379_v31, %v17623_v23  ;;  %v6405_v33 = vshll.u32 %v17520_v17, 16  ;;  %v6410_v53 = vshrl.u32 %v17522_v4, 16 }
 0x3f5   : > { %v17634_v47 = vor.u32 %v6388_v58, %v6387_v49  ;;  %v6391_v36 = vrot.slane %v6387_v49, 4  ;;  %6612 = vst [vmem:[#allocation2 + $0x58] sm:$0xf] %v6365_v3  ;;  %v6413_v18 = vshll.u32 %v17522_v4, 16  ;;  %v6398_v57 = vor.u32 %v6396_v45, %v17636_v61 }
 0x3f6   : > { %v6382_v12 = vsel %vm15512_vm5, %v6374_v5, %v6381_v16  ;;  %v6404_v31 = vrot.slane %v6402_v30, 7  ;;  %v6419_v10 = vshrl.u32 %v17524_v2, 16  ;;  %v17647_v59 = vrot.slane %v6410_v53, 7 }
 0x3f7   : > { %6619 = vst [vmem:[#allocation2 + $0x64] sm:$0xf] %v6382_v12  ;;  %v6422_v58 = vshll.u32 %v17524_v2, 16  ;;  %v6427_v5 = vshrl.u32 %v17526_v50, 16  ;;  %v6430_v17 = vshll.u32 %v17526_v50, 16  ;;  %v6399_v49 = vsel %vm15512_vm5, %v6391_v36, %v6398_v57 }
 0x3f8   : > { %v17654_v4 = vor.u32 %v6405_v33, %v6404_v31  ;;  %v6408_v19 = vrot.slane %v6404_v31, 4  ;;  %v6421_v3 = vrot.slane %v6419_v10, 7  ;;  %v6415_v16 = vor.u32 %v6413_v18, %v17647_v59  ;;  %6626 = vst [vmem:[#allocation2 + $0x70] sm:$0xf] %v6399_v49 }
 0x3f9   : > { %v17658_v30 = vrot.slane %v6427_v5, 7  ;;  %v6436_v12 = vshrl.u32 %v17528_v9, 16  ;;  %v6439_v50 = vshll.u32 %v17528_v9, 16  ;;  %v6444_v36 = vshrl.u32 %v17530_v37, 16 }
 0x3fa   : > { %v17661_v2 = vor.u32 %v6422_v58, %v6421_v3  ;;  %v6425_v53 = vrot.slane %v6421_v3, 4  ;;  %v6416_v33 = vsel %vm15512_vm5, %v6408_v19, %v6415_v16  ;;  %v6447_v5 = vshll.u32 %v17530_v37, 16 }
 0x3fb   : > { %v6432_v57 = vor.u32 %v6430_v17, %v17658_v30  ;;  %v6438_v31 = vrot.slane %v6436_v12, 7  ;;  %v17669_v10 = vrot.slane %v6444_v36, 7  ;;  %v6453_v58 = vshrl.u32 %v17532_v55, 16  ;;  %6633 = vst [vmem:[#allocation2 + $0x7c] sm:$0xf] %v6416_v33 }
 0x3fc   : > { %v6456_v49 = vshll.u32 %v17532_v55, 16  ;;  %v6461_v17 = vshrl.u32 %v17534_v42, 16  ;;  %v6464_v37 = vshll.u32 %v17534_v42, 16  ;;  %v6470_v55 = vshrl.u32 %v17536_v11, 16 }
 0x3fd   : > { %v6433_v9 = vsel %vm15512_vm5, %v6425_v53, %v6432_v57  ;;  %v17676_v3 = vor.u32 %v6439_v50, %v6438_v31  ;;  %v6442_v19 = vrot.slane %v6438_v31, 4  ;;  %v6449_v16 = vor.u32 %v6447_v5, %v17669_v10  ;;  %v6574_v50 = vld [vmem:[#allocation2 + $0x18] sm:$0xf]  ;;  %v6571_v57 = vld [vmem:[#allocation2 + $0x14] sm:$0x1] }
 0x3fe   : > { %v6455_v36 = vrot.slane %v6453_v58, 7  ;;  %6640 = vst [vmem:[#allocation2 + $0x88] sm:$0xf] %v6433_v9  ;;  %v17682_v18 = vrot.slane %v6461_v17, 7  ;;  %v6473_v33 = vshll.u32 %v17536_v11, 16  ;;  %v6478_v53 = vshrl.u32 %v17538_v51, 16 }
 0x3ff   : > { %v6450_v31 = vsel %vm15512_vm5, %v6442_v19, %v6449_v16  ;;  %v6481_v58 = vshll.u32 %v17538_v51, 16  ;;  %v6472_v17 = vrot.slane %v6470_v55, 7  ;;  %v6578_v11 = vld [vmem:[#allocation2 + $0x20] sm:$0x1]  ;;  %v6504_v51 = vshrl.u32 %v17540_v38, 16 }
 0x400   : > { %v17689_v5 = vor.u32 %v6456_v49, %v6455_v36  ;;  %v6459_v12 = vrot.slane %v6455_v36, 4  ;;  %v6466_v42 = vor.u32 %v6464_v37, %v17682_v18  ;;  %v17694_v45 = vrot.slane %v6478_v53, 7  ;;  %6647 = vst [vmem:[#allocation2 + $0x94] sm:$0xf] %v6450_v31  ;;  %v6592_v36 = vld [vmem:[#allocation2 + $0x38] sm:$0x1] }
 0x401   : > { %v17701_v49 = vor.u32 %v6490_v7, %v17433_v21  ;;  %v6507_v19 = vshll.u32 %v17540_v38, 16  ;;  %v6512_v16 = vshrl.u32 %v17542_v24, 16  ;;  %v17706_v37 = vld [vmem:[#allocation2 + $0x3c] sm:$0xf]  ;;  %v6599_v55 = vld [vmem:[#allocation2 + $0x44] sm:$0x1]  ;;  %v17710_v31 = vor.u32 %v6473_v33, %v6472_v17 }
 0x402   : > { %v6467_v53 = vsel %vm15512_vm5, %v6459_v12, %v6466_v42  ;;  %v6476_v9 = vrot.slane %v6472_v17, 4  ;;  %v6483_v35 = vor.u32 %v6481_v58, %v17694_v45  ;;  %v17713_v7 = vld [vmem:[#allocation2 + $0x48] sm:$0xf]  ;;  %v6606_v21 = vld [vmem:[#allocation2 + $0x50] sm:$0x1]  ;;  %v6506_v43 = vrot.slane %v6504_v51, 7 }
 0x403   : > { %20075 = vst [vmem:[#allocation16_spill] sm:$0xff] %v17701_v49  ;;  %v6613_v38 = vld [vmem:[#allocation2 + $0x5c] sm:$0x1]  ;;  %v17718_v27 = vrot.slane %v6512_v16, 7  ;;  %v6515_v26 = vshll.u32 %v17542_v24, 16  ;;  %v20077_v51 = vrot.slane %v17544_v0, 4  ;;  %v6575_v16 = vsel %vm15519_vm6, %v17556_v8, %v6574_v50 }
 0x404   : > { %6654 = vst [vmem:[#allocation2 + $0xa0] sm:$0xf] %v6467_v53  ;;  %v17721_v12 = vld [vmem:[#allocation2 + $0x60] sm:$0xf]  ;;  %v6620_v33 = vld [vmem:[#allocation2 + $0x68] sm:$0x1]  ;;  %v6484_v17 = vsel %vm15512_vm5, %v6476_v9, %v6483_v35  ;;  %v17741_v35 = vor.u32 %v6507_v19, %v6506_v43 }
 0x405   : > { %v17723_v42 = vld [vmem:[#allocation2 + $0x6c] sm:$0xf]  ;;  %v6627_v58 = vld [vmem:[#allocation2 + $0x74] sm:$0x1]  ;;  %v6572_v24 = vsel %vm15526_vm7, %v20077_v51, %v6571_v57  ;;  %v17737_v53 = vld [vmem:[#allocation2 + $0x78] sm:$0xf]  ;;  %v6517_v22 = vor.u32 %v6515_v26, %v17718_v27  ;;  %v6582_v26 = vsel %vm15519_vm6, %v17570_v41, %v6581_v62 }
 0x406   : > { %v6641_v9 = vld [vmem:[#allocation2 + $0x8c] sm:$0x1]  ;;  %v6510_v49 = vrot.slane %v6506_v43, 4  ;;  %6573 = vst [vmem:[#allocation2 + $0x14] sm:$0x1] %v6572_v24  ;;  %v20078_v8 = vrot.slane %v17548_v44, 4 }
 0x407   : > { %6661 = vst [vmem:[#allocation2 + $0xac] sm:$0xf] %v6484_v17  ;;  %6576 = vst [vmem:[#allocation2 + $0x18] sm:$0xf] %v6575_v16  ;;  %v6648_v50 = vld [vmem:[#allocation2 + $0x98] sm:$0x1]  ;;  %v6589_v17 = vsel %vm15519_vm6, %v17583_v46, %v17696_v15  ;;  %v6596_v46 = vsel %vm15519_vm6, %v17595_v63, %v17706_v37  ;;  %v6603_v63 = vsel %vm15519_vm6, %v17599_v48, %v17713_v7 }
 0x408   : > { %v17747_v57 = vld [vmem:[#allocation2 + $0x9c] sm:$0xf]  ;;  %v6655_v51 = vld [vmem:[#allocation2 + $0xa4] sm:$0x1]  ;;  %v6579_v19 = vsel %vm15526_vm7, %v20078_v8, %v6578_v11  ;;  %v20079_v43 = vrot.slane %v17562_v20, 4  ;;  %v6518_v41 = vsel %vm15512_vm5, %v6510_v49, %v6517_v22  ;;  %v20080_v20 = vrot.slane %v17574_v28, 4 }
 0x409   : > { %v17764_v24 = vld [vmem:[#allocation2 + $0xa8] sm:$0xf]  ;;  %v6662_v16 = vld [vmem:[#allocation2 + $0xb0] sm:$0x1]  ;;  %v17766_v0 = vld [vmem:[#allocation2 + $0xc0] sm:$0xf]  ;;  %v6610_v37 = vsel %vm15519_vm6, %v17611_v54, %v17715_v14  ;;  %v6617_v48 = vsel %vm15519_vm6, %v17626_v52, %v17721_v12  ;;  %v6624_v14 = vsel %vm15519_vm6, %v17634_v47, %v17723_v42  ;;  %v6631_v47 = vsel %vm15519_vm6, %v17654_v4, %v17737_v53 }
 0x40a   : > { %v6586_v34 = vsel %vm15526_vm7, %v20079_v43, %v6585_v60  ;;  %v17768_v8 = vld [vmem:[#allocation2 + $0xb4] sm:$0xf]  ;;  %6580 = vst [vmem:[#allocation2 + $0x20] sm:$0x1] %v6579_v19  ;;  %v6593_v60 = vsel %vm15526_vm7, %v20080_v20, %v6592_v36  ;;  %v20081_v62 = vrot.slane %v17587_v1, 4  ;;  %v20082_v1 = vrot.slane %v17601_v6, 4 }
 0x40b   : > { %6587 = vst [vmem:[#allocation2 + $0x2c] sm:$0x1] %v6586_v34  ;;  %6583 = vst [vmem:[#allocation2 + $0x24] sm:$0xf] %v6582_v26  ;;  %v6683_v11 = vld [vmem:[#allocation2 + $0x8] sm:$0x1] }
 0x40c   : > { %v6600_v15 = vsel %vm15526_vm7, %v20081_v62, %v6599_v55  ;;  %6590 = vst [vmem:[#allocation2 + $0x30] sm:$0xf] %v6589_v17  ;;  %v17786_v49 = vld [vmem:[#allocation2 + $0xcc] sm:$0xf]  ;;  %v6676_v28 = vld [vmem:[#allocation2 + $0xc8] sm:$0x1]  ;;  %v6607_v36 = vsel %vm15526_vm7, %v20082_v1, %v6606_v21 }
 0x40d   : > { %6594 = vst [vmem:[#allocation2 + $0x38] sm:$0x1] %v6593_v60  ;;  %6601 = vst [vmem:[#allocation2 + $0x44] sm:$0x1] %v6600_v15  ;;  %v20083_v55 = vrot.slane %v17613_v29, 4  ;;  %v20084_v6 = vrot.slane %v17623_v23, 4 }
 0x40e   : > { %6675 = vst [vmem:[#allocation2 + $0xc4] sm:$0xf] %v6518_v41  ;;  %6597 = vst [vmem:[#allocation2 + $0x3c] sm:$0xf] %v6596_v46  ;;  %v20085_v54 = vrot.slane %v17636_v61, 4  ;;  %v20086_v61 = vrot.slane %v17647_v59, 4 }
 0x40f   : > { %v6614_v22 = vsel %vm15526_vm7, %v20083_v55, %v6613_v38  ;;  %6608 = vst [vmem:[#allocation2 + $0x50] sm:$0x1] %v6607_v36  ;;  %v6621_v7 = vsel %vm15526_vm7, %v20084_v6, %v6620_v33  ;;  %v17820_v21 = vld [vmem:[#allocation2 + $0x4] sm:$0x8]  ;;  %v17822_v38 = vld [vmem:[#allocation2 + $0x10] sm:$0x8]  ;;  %v6638_v33 = vsel %vm15519_vm6, %v17661_v2, %v17739_v25 }
 0x410   : > { %6615 = vst [vmem:[#allocation2 + $0x5c] sm:$0x1] %v6614_v22  ;;  %v6628_v29 = vsel %vm15526_vm7, %v20085_v54, %v6627_v58  ;;  %v17824_v52 = vld [vmem:[#allocation2 + $0x1c] sm:$0x8]  ;;  %v17826_v23 = vld [vmem:[#allocation2 + $0x28] sm:$0x8]  ;;  %v6635_v12 = vsel %vm15526_vm7, %v20086_v61, %v6634_v39  ;;  %v6645_v39 = vsel %vm15519_vm6, %v17676_v3, %v17745_v13 }
 0x411   : > { %6604 = vst [vmem:[#allocation2 + $0x48] sm:$0xf] %v6603_v63  ;;  %6611 = vst [vmem:[#allocation2 + $0x54] sm:$0xf] %v6610_v37  ;;  %v20087_v42 = vrot.slane %v17658_v30, 4  ;;  %v20088_v25 = vrot.slane %v17669_v10, 4  ;;  %v6652_v30 = vsel %vm15519_vm6, %v17689_v5, %v17747_v57  ;;  %v6659_v10 = vsel %vm15519_vm6, %v17710_v31, %v17764_v24 }
 0x412   : > { %6622 = vst [vmem:[#allocation2 + $0x68] sm:$0x1] %v6621_v7  ;;  %6629 = vst [vmem:[#allocation2 + $0x74] sm:$0x1] %v6628_v29  ;;  %v17844_v19 = vld [vmem:[#allocation2 + $0x34] sm:$0x8] }
 0x413   : > { %v6642_v58 = vsel %vm15526_vm7, %v20087_v42, %v6641_v9  ;;  %v17846_v26 = vld [vmem:[#allocation2 + $0x40] sm:$0x8]  ;;  %v17848_v4 = vld [vmem:[#allocation2 + $0x4c] sm:$0x8]  ;;  %6618 = vst [vmem:[#allocation2 + $0x60] sm:$0xf] %v6617_v48  ;;  %v6649_v59 = vsel %vm15526_vm7, %v20088_v25, %v6648_v50  ;;  %v6673_v50 = vsel %vm15519_vm6, %v17741_v35, %v17766_v0 }
 0x414   : > { %6625 = vst [vmem:[#allocation2 + $0x6c] sm:$0xf] %v6624_v14  ;;  %6636 = vst [vmem:[#allocation2 + $0x80] sm:$0x1] %v6635_v12  ;;  %v20089_v2 = vrot.slane %v17682_v18, 4  ;;  %v20090_v3 = vrot.slane %v17694_v45, 4 }
 0x415   : > { %6643 = vst [vmem:[#allocation2 + $0x8c] sm:$0x1] %v6642_v58  ;;  %v17866_v9 = vld [vmem:[#allocation2 + $0x58] sm:$0x8]  ;;  %6632 = vst [vmem:[#allocation2 + $0x78] sm:$0xf] %v6631_v47 }
 0x416   : > { %v6656_v53 = vsel %vm15526_vm7, %v20089_v2, %v6655_v51  ;;  %6639 = vst [vmem:[#allocation2 + $0x84] sm:$0xf] %v6638_v33  ;;  %6650 = vst [vmem:[#allocation2 + $0x98] sm:$0x1] %v6649_v59  ;;  %v6663_v5 = vsel %vm15526_vm7, %v20090_v3, %v6662_v16  ;;  %v20091_v18 = vld [vmem:[#allocation16_spill] sm:$0xff]  ;;  %v20092_v45 = vrot.slane %v17718_v27, 4 }
 0x417   : > { %6657 = vst [vmem:[#allocation2 + $0xa4] sm:$0x1] %v6656_v53  ;;  %v6666_v13 = vsel %vm15519_vm6, %v20091_v18, %v17768_v8  ;;  %v17884_v57 = vld [vmem:[#allocation2 + $0x64] sm:$0x8]  ;;  %v17886_v51 = vld [vmem:[#allocation2 + $0x70] sm:$0x8]  ;;  %v6687_v24 = vsel %vm15519_vm6, %v20091_v18, %v17786_v49 }
 0x418   : > { %v17888_v31 = vld [vmem:[#allocation2 + $0x7c] sm:$0x8]  ;;  %6646 = vst [vmem:[#allocation2 + $0x90] sm:$0xf] %v6645_v39  ;;  %6653 = vst [vmem:[#allocation2 + $0x9c] sm:$0xf] %v6652_v30  ;;  %v6677_v43 = vsel %vm15526_vm7, %v20092_v45, %v6676_v28 }
 0x419   : > { %6664 = vst [vmem:[#allocation2 + $0xb0] sm:$0x1] %v6663_v5  ;;  %v20093_v34 = vld [vmem:[#allocation15_spill] sm:$0xff]  ;;  %v20094_v35 = vrot.slane %v17548_v44, 4  ;;  %v17906_v16 = vld [vmem:[#allocation2 + $0x88] sm:$0x8] }
 0x41a   : > { %v6680_v17 = vsel %vm15519_vm6, %v20093_v34, %v17784_v40  ;;  %v17908_v27 = vld [vmem:[#allocation2 + $0x94] sm:$0x8]  ;;  %v17910_v8 = vld [vmem:[#allocation2 + $0xa0] sm:$0x8]  ;;  %6660 = vst [vmem:[#allocation2 + $0xa8] sm:$0xf] %v6659_v10 }
 0x41b   : > { %v6684_v0 = vsel %vm15526_vm7, %v20094_v35, %v6683_v11  ;;  %6667 = vst [vmem:[#allocation2 + $0xb4] sm:$0xf] %v6666_v13  ;;  %6674 = vst [vmem:[#allocation2 + $0xc0] sm:$0xf] %v6673_v50  ;;  %v17912_v44 = vld [vmem:[#allocation2 + $0xac] sm:$0x8] }
 0x41c   : > { %6678 = vst [vmem:[#allocation2 + $0xc8] sm:$0x1] %v6677_v43  ;;  %6681 = vst [vmem:[#allocation2] sm:$0xf] %v6680_v17  ;;  %v12655_v41 = vrot.slane %v17820_v21, 11  ;;  %v12656_v32 = vrot.slane %v17822_v38, 11 }
 0x41d   : > { %6685 = vst [vmem:[#allocation2 + $0x8] sm:$0x1] %v6684_v0  ;;  %6688 = vst [vmem:[#allocation2 + $0xcc] sm:$0xf] %v6687_v24  ;;  %v12657_v20 = vrot.slane %v17824_v52, 11  ;;  %v12658_v60 = vrot.slane %v17826_v23, 11 }
 0x41e   : > { %v17918_v46 = vld [vmem:[#allocation2 + $0xc4] sm:$0x8]  ;;  %v12659_v62 = vrot.slane %v17844_v19, 11  ;;  %v12660_v15 = vrot.slane %v17846_v26, 11  ;;  %v12661_v40 = vrot.slane %v17848_v4, 11  ;;  %v12662_v11 = vrot.slane %v17866_v9, 11 }
 0x41f   : > { %v6930_v49 = vld [vmem:[#allocation2 + $0x14] sm:$0x1]  ;;  %v6933_v28 = vld [vmem:[#allocation2 + $0x20] sm:$0x1]  ;;  %v12663_v63 = vrot.slane %v17884_v57, 11  ;;  %v12664_v1 = vrot.slane %v17886_v51, 11 }
 0x420   : > { %v12665_v36 = vrot.slane %v17888_v31, 11  ;;  %v12666_v37 = vrot.slane %v17906_v16, 11  ;;  %v6936_v55 = vld [vmem:[#allocation2 + $0x2c] sm:$0x1]  ;;  %v12667_v22 = vrot.slane %v17908_v27, 11  ;;  %v12668_v48 = vrot.slane %v17910_v8, 11 }
 0x421   : > { %v12669_v6 = vrot.slane %v17912_v44, 11  ;;  %v12671_v7 = vrot.slane %v17918_v46, 11  ;;  %v6939_v14 = vld [vmem:[#allocation2 + $0x38] sm:$0x1]  ;;  %v6931_v29 = vsel %vm15567_vm8, %v12656_v32, %v6930_v49  ;;  %v6934_v38 = vsel %vm15567_vm8, %v12657_v20, %v6933_v28  ;;  %v6942_v47 = vld [vmem:[#allocation2 + $0x44] sm:$0x1] }
 0x422   : > { %v6937_v52 = vsel %vm15567_vm8, %v12658_v60, %v6936_v55  ;;  %v6940_v23 = vsel %vm15567_vm8, %v12659_v62, %v6939_v14  ;;  %v6945_v61 = vld [vmem:[#allocation2 + $0x50] sm:$0x1]  ;;  %v6948_v12 = vld [vmem:[#allocation2 + $0x5c] sm:$0x1]  ;;  %v17940_v33 = vld [vmem:[#allocation2 + $0x4] sm:$0xf]  ;;  %v6943_v42 = vsel %vm15567_vm8, %v12660_v15, %v6942_v47 }
 0x423   : > { %6932 = vst [vmem:[#allocation2 + $0x14] sm:$0x1] %v6931_v29  ;;  %6935 = vst [vmem:[#allocation2 + $0x20] sm:$0x1] %v6934_v38  ;;  %v6946_v58 = vsel %vm15567_vm8, %v12661_v40, %v6945_v61  ;;  %v6949_v19 = vsel %vm15567_vm8, %v12662_v11, %v6948_v12  ;;  %v6951_v26 = vld [vmem:[#allocation2 + $0x68] sm:$0x1] }
 0x424   : > { %6938 = vst [vmem:[#allocation2 + $0x2c] sm:$0x1] %v6937_v52  ;;  %6941 = vst [vmem:[#allocation2 + $0x38] sm:$0x1] %v6940_v23  ;;  %v6954_v4 = vld [vmem:[#allocation2 + $0x74] sm:$0x1]  ;;  %v6952_v25 = vsel %vm15567_vm8, %v12663_v63, %v6951_v26 }
 0x425   : > { %v6957_v39 = vld [vmem:[#allocation2 + $0x80] sm:$0x1]  ;;  %6944 = vst [vmem:[#allocation2 + $0x44] sm:$0x1] %v6943_v42  ;;  %6947 = vst [vmem:[#allocation2 + $0x50] sm:$0x1] %v6946_v58  ;;  %v6955_v59 = vsel %vm15567_vm8, %v12664_v1, %v6954_v4 }
 0x426   : > { %6950 = vst [vmem:[#allocation2 + $0x5c] sm:$0x1] %v6949_v19  ;;  %v6958_v30 = vsel %vm15567_vm8, %v12665_v36, %v6957_v39  ;;  %v6960_v2 = vld [vmem:[#allocation2 + $0x8c] sm:$0x1]  ;;  %v6963_v53 = vld [vmem:[#allocation2 + $0x98] sm:$0x1] }
 0x427   : > { %v6966_v9 = vld [vmem:[#allocation2 + $0xa4] sm:$0x1]  ;;  %v6694_v10 = vld [vmem:[#allocation2 + $0xc] sm:$0x2]  ;;  %v17954_v3 = vld [vmem:[#allocation2 + $0x10] sm:$0xf]  ;;  %v6961_v50 = vsel %vm15567_vm8, %v12666_v37, %v6960_v2  ;;  %v6964_v57 = vsel %vm15567_vm8, %v12667_v22, %v6963_v53 }
 0x428   : > { %v6693_v5 = vld [vmem:[#allocation2] sm:$0x2]  ;;  %v6710_v18 = vld [vmem:[#allocation2 + $0xcc] sm:$0x2]  ;;  %v6783_v13 = vld [vmem:[#allocation2] sm:$0x1]  ;;  %v6967_v51 = vsel %vm15567_vm8, %v12668_v48, %v6966_v9 }
 0x429   : > { %6953 = vst [vmem:[#allocation2 + $0x68] sm:$0x1] %v6952_v25  ;;  %6956 = vst [vmem:[#allocation2 + $0x74] sm:$0x1] %v6955_v59  ;;  %v6695_v31 = vld [vmem:[#allocation2 + $0x18] sm:$0x2] }
 0x42a   : > { %6959 = vst [vmem:[#allocation2 + $0x80] sm:$0x1] %v6958_v30  ;;  %v12637_v45 = vrot.slane %v6693_v5, 9  ;;  %v12654_v43 = vrot.slane %v6710_v18, 9  ;;  %v6834_v34 = vld [vmem:[#allocation2 + $0xcc] sm:$0x1] }
 0x42b   : > { %v6927_v17 = vld [vmem:[#allocation2 + $0x8] sm:$0x1]  ;;  %6962 = vst [vmem:[#allocation2 + $0x8c] sm:$0x1] %v6961_v50  ;;  %6965 = vst [vmem:[#allocation2 + $0x98] sm:$0x1] %v6964_v57 }
 0x42c   : > { %6968 = vst [vmem:[#allocation2 + $0xa4] sm:$0x1] %v6967_v51  ;;  %v6928_v35 = vsel %vm15567_vm8, %v12655_v41, %v6927_v17  ;;  %v6969_v0 = vld [vmem:[#allocation2 + $0xb0] sm:$0x1]  ;;  %v6975_v24 = vld [vmem:[#allocation2 + $0xc8] sm:$0x1]  ;;  %v6784_v8 = vsel %vm15526_vm7, %v12637_v45, %v6783_v13  ;;  %v6835_v44 = vsel %vm15526_vm7, %v12654_v43, %v6834_v34 }
 0x42d   : > { %v7055_v16 = vshll.u32 %v17940_v33, 16  ;;  %v7059_v27 = vshrl.u32 %v17940_v33, 16  ;;  %6929 = vst [vmem:[#allocation2 + $0x8] sm:$0x1] %v6928_v35  ;;  %v6970_v32 = vsel %vm15567_vm8, %v12669_v6, %v6969_v0  ;;  %v6976_v21 = vsel %vm15567_vm8, %v12671_v7, %v6975_v24  ;;  %v17976_v41 = vld [vmem:[#allocation2 + $0x1c] sm:$0xf] }
 0x42e   : > { %6785 = vst [vmem:[#allocation2] sm:$0x1] %v6784_v8  ;;  %6836 = vst [vmem:[#allocation2 + $0xcc] sm:$0x1] %v6835_v44  ;;  %v12638_v46 = vrot.slane %v6694_v10, 9  ;;  %v7079_v15 = vshll.u32 %v17954_v3, 16 }
 0x42f   : > { %6971 = vst [vmem:[#allocation2 + $0xb0] sm:$0x1] %v6970_v32  ;;  %6977 = vst [vmem:[#allocation2 + $0xc8] sm:$0x1] %v6976_v21  ;;  %v17978_v20 = vrot.slane %v7055_v16, 5  ;;  %v7061_v60 = vrot.slane %v7059_v27, 4 }
 0x430   : > { %v6786_v62 = vld [vmem:[#allocation2 + $0xc] sm:$0x1]  ;;  %v17981_v40 = vld [vmem:[#allocation2 + $0x28] sm:$0xf]  ;;  %v7030_v11 = vld [vmem:[#allocation2 + $0x14] sm:$0x1] }
 0x431   : > { %v7083_v49 = vshrl.u32 %v17954_v3, 16  ;;  %v12639_v28 = vrot.slane %v6695_v31, 9  ;;  %v7031_v63 = vld [vmem:[#allocation2 + $0x20] sm:$0x1]  ;;  %v6787_v1 = vsel %vm15526_vm7, %v12638_v46, %v6786_v62  ;;  %v17986_v36 = vrot.slane %v7079_v15, 5 }
 0x432   : > { %v7089_v37 = vshll.u32 %v7030_v11, 16  ;;  %v6789_v55 = vld [vmem:[#allocation2 + $0x18] sm:$0x1]  ;;  %v6696_v22 = vld [vmem:[#allocation2 + $0x24] sm:$0x2]  ;;  %v7062_v48 = vor.u32 %v7061_v60, %v17978_v20  ;;  %v7103_v14 = vshll.u32 %v17976_v41, 16 }
 0x433   : > { %6788 = vst [vmem:[#allocation2 + $0xc] sm:$0x1] %v6787_v1  ;;  %v7085_v6 = vrot.slane %v7083_v49, 4  ;;  %v6790_v7 = vsel %vm15526_vm7, %v12639_v28, %v6789_v55  ;;  %v7107_v54 = vshrl.u32 %v17976_v41, 16  ;;  %v7113_v29 = vshll.u32 %v7031_v63, 16 }
 0x434   : > { %6791 = vst [vmem:[#allocation2 + $0x18] sm:$0x1] %v6790_v7  ;;  %v6792_v38 = vld [vmem:[#allocation2 + $0x24] sm:$0x1]  ;;  %v7032_v52 = vld [vmem:[#allocation2 + $0x2c] sm:$0x1] }
 0x435   : > { %v7086_v23 = vor.u32 %v7085_v6, %v17986_v36  ;;  %v17994_v47 = vrot.slane %v7103_v14, 5  ;;  %v12640_v61 = vrot.slane %v6696_v22, 9  ;;  %v7127_v12 = vshll.u32 %v17981_v40, 16  ;;  %v6697_v42 = vld [vmem:[#allocation2 + $0x30] sm:$0x2] }
 0x436   : > { %v7029_v58 = vld [vmem:[#allocation2 + $0x8] sm:$0x1]  ;;  %v17997_v19 = vrot.slane %v7089_v37, 5  ;;  %v7109_v26 = vrot.slane %v7107_v54, 4  ;;  %v7131_v4 = vshrl.u32 %v17981_v40, 16  ;;  %v7063_v25 = vrot.slane %v7062_v48, 4 }
 0x437   : > { %v18000_v39 = vld [vmem:[#allocation2] sm:$0xf]  ;;  %v7065_v59 = vshll.u32 %v7029_v58, 16  ;;  %v6793_v30 = vsel %vm15526_vm7, %v12640_v61, %v6792_v38  ;;  %v7137_v2 = vshll.u32 %v7032_v52, 16  ;;  %v7087_v10 = vrot.slane %v7086_v23, 4 }
 0x438   : > { %v7046_v53 = vshrl.u32 %v18000_v39, 16  ;;  %v7049_v9 = vshll.u32 %v18000_v39, 16  ;;  %v7110_v5 = vor.u32 %v7109_v26, %v17994_v47  ;;  %6794 = vst [vmem:[#allocation2 + $0x24] sm:$0x1] %v6793_v30  ;;  %v18007_v13 = vrot.slane %v7113_v29, 5 }
 0x439   : > { %v7067_v18 = vrot.slane %v7065_v59, 5  ;;  %v18009_v50 = vrot.slane %v7127_v12, 5  ;;  %v7133_v57 = vrot.slane %v7131_v4, 4  ;;  %v18011_v51 = vld [vmem:[#allocation2 + $0x34] sm:$0xf]  ;;  %v7092_v17 = vsel %vm15643_vm11, %v7087_v10, %v17997_v19 }
 0x43a   : > { %v7048_v31 = vrot.slane %v7046_v53, 4  ;;  %v7051_v45 = vrot.slane %v7049_v9, 5  ;;  %v18013_v43 = vld [vmem:[#allocation2 + $0xc] sm:$0xf]  ;;  %v12641_v35 = vrot.slane %v6697_v42, 9  ;;  %v7111_v27 = vrot.slane %v7110_v5, 4 }
 0x43b   : > { %v7070_v0 = vshrl.u32 %v18013_v43, 16  ;;  %v7073_v24 = vshll.u32 %v18013_v43, 16  ;;  %v18020_v16 = vld [vmem:[#allocation2 + $0x18] sm:$0xf]  ;;  %v18022_v8 = vrot.slane %v7137_v2, 5  ;;  %v7068_v32 = vsel %vm15643_vm11, %v7063_v25, %v7067_v18 }
 0x43c   : > { %v7052_v44 = vor.u32 %v7051_v45, %v7048_v31  ;;  %v7094_v21 = vshrl.u32 %v18020_v16, 16  ;;  %v7097_v60 = vshll.u32 %v18020_v16, 16  ;;  %v6795_v46 = vld [vmem:[#allocation2 + $0x30] sm:$0x1]  ;;  %v7033_v62 = vld [vmem:[#allocation2 + $0x38] sm:$0x1]  ;;  %v7134_v49 = vor.u32 %v7133_v57, %v18009_v50 }
 0x43d   : > { %v7072_v15 = vrot.slane %v7070_v0, 4  ;;  %v7075_v11 = vrot.slane %v7073_v24, 5  ;;  %v6796_v28 = vsel %vm15526_vm7, %v12641_v35, %v6795_v46  ;;  %v7151_v55 = vshll.u32 %v18011_v51, 16  ;;  %v6698_v23 = vld [vmem:[#allocation2 + $0x3c] sm:$0x2]  ;;  %v15267_v46 = vld [vmem:[%s19951_s3] sm:$0xff]  }
 0x43e   : > { %v7053_v63 = vrot.slane %v7052_v44, 4  ;;  %v7096_v1 = vrot.slane %v7094_v21, 4  ;;  %v7099_v37 = vrot.slane %v7097_v60, 5  ;;  %6797 = vst [vmem:[#allocation2 + $0x30] sm:$0x1] %v6796_v28  ;;  %v7116_v48 = vsel %vm15643_vm11, %v7111_v27, %v18007_v13  ;;  %v15115_v13 = vld [vmem:[%s19951_s3 + $0x8] sm:$0xff]  }
 0x43f   : > { %v7076_v22 = vor.u32 %v7075_v11, %v7072_v15  ;;  %v18035_v6 = vld [vmem:[#allocation2 + $0x24] sm:$0xf]  ;;  %v7155_v7 = vshrl.u32 %v18011_v51, 16  ;;  %v7161_v14 = vshll.u32 %v7033_v62, 16  ;;  %v18043_v61 = vld [vmem:[#allocation2 + $0x40] sm:$0xf] }
 0x440   : > { %v7058_v54 = vsel %vm15643_vm11, %v7053_v63, %v17978_v20  ;;  %v7100_v29 = vor.u32 %v7099_v37, %v7096_v1  ;;  %v7118_v38 = vshrl.u32 %v18035_v6, 16  ;;  %v7121_v52 = vshll.u32 %v18035_v6, 16  ;;  %20097 = vst [vmem:[#allocation17_spill] sm:$0xff] %v18043_v61  ;;  %v6798_v53 = vld [vmem:[#allocation2 + $0x3c] sm:$0x1]  ;;  %v15116_v21 = vld [vmem:[%s19951_s3 + $0x10] sm:$0xff]  }
 0x441   : > { %v12689_v12 = vcombine.low %v7058_v54, %v7068_v32  ;;  %v7077_v42 = vrot.slane %v7076_v22, 4  ;;  %v18045_v58 = vrot.slane %v7151_v55, 5  ;;  %v7157_v19 = vrot.slane %v7155_v7, 4  ;;  %v18052_v10 = vld [vmem:[#allocation2 + $0x4c] sm:$0xf] }
 0x442   : > { %v7101_v26 = vrot.slane %v7100_v29, 4  ;;  %v7120_v4 = vrot.slane %v7118_v38, 4  ;;  %v7123_v25 = vrot.slane %v7121_v52, 5  ;;  %v7135_v59 = vrot.slane %v7134_v49, 4  ;;  %20098 = vst [vmem:[#allocation18_spill] sm:$0xff] %v18052_v10 }
 0x443   : > { %14017 = vmatprep.mubr.bf16.mxu1 %v12689_v12  ;;  %v7082_v20 = vsel %vm15643_vm11, %v7077_v42, %v17986_v36  ;;  %v7158_v30 = vor.u32 %v7157_v19, %v18045_v58  ;;  %v12642_v2 = vrot.slane %v6698_v23, 9  ;;  %v7175_v9 = vshll.u32 %v18043_v61, 16  ;;  %v7034_v31 = vld [vmem:[#allocation2 + $0x44] sm:$0x1]  ;;  %v6699_v45 = vld [vmem:[#allocation2 + $0x48] sm:$0x2] }
 0x444   : > { %v12690_v5 = vcombine.low %v7082_v20, %v7092_v17  ;;  %v7106_v18 = vsel %vm15643_vm11, %v7101_v26, %v17994_v47  ;;  %v7124_v57 = vor.u32 %v7123_v25, %v7120_v4  ;;  %v7179_v36 = vshrl.u32 %v18043_v61, 16  ;;  %v18076_v28 = vld [vmem:[#allocation2 + $0x58] sm:$0xf]  ;;  %v6801_v22 = vld [vmem:[#allocation2 + $0x48] sm:$0x1] }
 0x445   : > { %v12691_v35 = vcombine.low %v7106_v18, %v7116_v48  ;;  %v18061_v0 = vld [vmem:[#allocation2 + $0x30] sm:$0xf]  ;;  %v7163_v24 = vrot.slane %v7161_v14, 5  ;;  %v6799_v17 = vsel %vm15526_vm7, %v12642_v2, %v6798_v53  ;;  %v18065_v27 = vrot.slane %v7175_v9, 5  ;;  %v6700_v48 = vld [vmem:[#allocation2 + $0x54] sm:$0x2] }
 0x446   : > { %14018 = vmatmul.mubr.bf16.vlgmr.msra.gmra.mrb[0].mxu1 %v12690_v5  ;;  %v7125_v47 = vrot.slane %v7124_v57, 4  ;;  %v7142_v44 = vshrl.u32 %v18061_v0, 16  ;;  %v7145_v32 = vshll.u32 %v18061_v0, 16  ;;  %6800 = vst [vmem:[#allocation2 + $0x3c] sm:$0x1] %v6799_v17  ;;  %v7181_v60 = vrot.slane %v7179_v36, 4 }
 0x447   : > { %14050 = vmatpush3.bf16.msra.mxu1 %v15267_v46  ;;  %14021 = vmatprep.mubr.bf16.mxu1 %v12691_v35  ;;  %v7159_v62 = vrot.slane %v7158_v30, 4  ;;  %v7185_v15 = vshll.u32 %v7034_v31, 16  ;;  %v12643_v11 = vrot.slane %v6699_v45, 9  ;;  %v7199_v49 = vshll.u32 %v18052_v10, 16  ;;  %v15117_v23 = vld [vmem:[%s19951_s3 + $0x18] sm:$0xff]  }
 0x448   : > { %14051 = vmatprep.subr.bf16.mxu1 %v15115_v13  ;;  %v7130_v63 = vsel %vm15643_vm11, %v7125_v47, %v18009_v50  ;;  %v7144_v1 = vrot.slane %v7142_v44, 4  ;;  %v7147_v37 = vrot.slane %v7145_v32, 5  ;;  %v7182_v55 = vor.u32 %v7181_v60, %v18065_v27  ;;  %v7035_v50 = vld [vmem:[#allocation2 + $0x50] sm:$0x1]  ;;  %v6804_v12 = vld [vmem:[#allocation2 + $0x54] sm:$0x1] }
 0x449   : > { %v7140_v7 = vsel %vm15643_vm11, %v7135_v59, %v18022_v8  ;;  %v6802_v14 = vsel %vm15526_vm7, %v12643_v11, %v6801_v22  ;;  %v7164_v38 = vsel %vm15643_vm11, %v7159_v62, %v7163_v24  ;;  %v7203_v52 = vshrl.u32 %v18052_v10, 16  ;;  %v18093_v42 = vld [vmem:[#allocation2 + $0x64] sm:$0xf]  ;;  %v18097_v26 = vld [vmem:[#allocation2 + $0x5c] sm:$0x1] }
 0x44a   : > { %v12692_v54 = vcombine.low %v7130_v63, %v7140_v7  ;;  %v7148_v29 = vor.u32 %v7147_v37, %v7144_v1  ;;  %6803 = vst [vmem:[#allocation2 + $0x48] sm:$0x1] %v6802_v14  ;;  %v18095_v8 = vrot.slane %v7199_v49, 5  ;;  %v12644_v19 = vrot.slane %v6700_v48, 9  ;;  %v6701_v53 = vld [vmem:[#allocation2 + $0x60] sm:$0x2] }
 0x44b   : > { %14052 = vmatpush3.bf16.msra.mxu1 %v15115_v13  ;;  %v7223_v4 = vshll.u32 %v18076_v28, 16  ;;  %v7227_v25 = vshrl.u32 %v18076_v28, 16  ;;  %v18101_v20 = vrot.slane %v7182_v55, 4  ;;  %v18103_v30 = vrot.slane %v7185_v15, 5  ;;  %v6807_v44 = vld [vmem:[#allocation2 + $0x60] sm:$0x1] }
 0x44c   : > { %v7149_v59 = vrot.slane %v7148_v29, 4  ;;  %14053 = vmatprep.subr.bf16.mxu1 %v15116_v21  ;;  %v7205_v2 = vrot.slane %v7203_v52, 4  ;;  %v7209_v5 = vshll.u32 %v7035_v50, 16  ;;  %v6805_v18 = vsel %vm15526_vm7, %v12644_v19, %v6804_v12  ;;  %v15118_v15 = vld [vmem:[%s19951_s3 + $0x20] sm:$0xff]   ;;  %v6702_v11 = vld [vmem:[#allocation2 + $0x6c] sm:$0x2] }
 0x44d   : > { %v18105_v9 = vld [vmem:[#allocation2 + $0x3c] sm:$0xf]  ;;  %v18109_v13 = vrot.slane %v7223_v4, 5  ;;  %v7229_v57 = vrot.slane %v7227_v25, 4  ;;  %6806 = vst [vmem:[#allocation2 + $0x54] sm:$0x1] %v6805_v18 }
 0x44e   : > { %20099 = vst [vmem:[#allocation11_spill] sm:$0xff] %v18105_v9  ;;  %14022 = vmatmul.mubr.bf16.gmra.mrb[4].mxu1 %v12692_v54  ;;  %v7154_v31 = vsel %vm15643_vm11, %v7149_v59, %v18045_v58  ;;  %v7166_v36 = vshrl.u32 %v18105_v9, 16  ;;  %v7169_v45 = vshll.u32 %v18105_v9, 16  ;;  %v7233_v35 = vshll.u32 %v18097_v26, 16  ;;  %v18132_v37 = vld [vmem:[#allocation2 + $0x70] sm:$0xf] }
 0x44f   : > { %v12693_v24 = vcombine.low %v7154_v31, %v7164_v38  ;;  %14054 = vmatpush3.bf16.msra.mxu1 %v15116_v21  ;;  %v7206_v17 = vor.u32 %v7205_v2, %v18095_v8  ;;  %v12645_v47 = vrot.slane %v6701_v53, 9  ;;  %v7247_v32 = vshll.u32 %v18093_v42, 16  ;;  %v18138_v14 = vld [vmem:[#allocation2 + $0x68] sm:$0x1]  ;;  %v6810_v59 = vld [vmem:[#allocation2 + $0x6c] sm:$0x1] }
 0x450   : > { %v7168_v60 = vrot.slane %v7166_v36, 4  ;;  %v7171_v46 = vrot.slane %v7169_v45, 5  ;;  %14055 = vmatprep.subr.bf16.mxu1 %v15117_v23  ;;  %v7230_v58 = vor.u32 %v7229_v57, %v18109_v13  ;;  %v7251_v62 = vshrl.u32 %v18093_v42, 16  ;;  %v15119_v52 = vld [vmem:[%s19951_s3 + $0x28] sm:$0xff]   ;;  %v6703_v36 = vld [vmem:[#allocation2 + $0x78] sm:$0x2] }
 0x451   : > { %14025 = vmatprep.mubr.bf16.mxu1 %v12693_v24  ;;  %v7188_v21 = vsel %vm15643_vm11, %v18101_v20, %v18103_v30  ;;  %v18128_v49 = vld [vmem:[#allocation2 + $0x48] sm:$0xf]  ;;  %v7211_v63 = vrot.slane %v7209_v5, 5  ;;  %v6808_v1 = vsel %vm15526_vm7, %v12645_v47, %v6807_v44  ;;  %v18136_v7 = vrot.slane %v7233_v35, 5 }
 0x452   : > { %20100 = vst [vmem:[#allocation13_spill] sm:$0xff] %v18128_v49  ;;  %v7172_v55 = vor.u32 %v7171_v46, %v7168_v60  ;;  %v7190_v22 = vshrl.u32 %v18128_v49, 16  ;;  %v7193_v48 = vshll.u32 %v18128_v49, 16  ;;  %6809 = vst [vmem:[#allocation2 + $0x60] sm:$0x1] %v6808_v1  ;;  %v7207_v54 = vrot.slane %v7206_v17, 4 }
 0x453   : > { %14056 = vmatpush3.bf16.msra.mxu1 %v15117_v23  ;;  %v18140_v29 = vrot.slane %v7247_v32, 5  ;;  %v7253_v38 = vrot.slane %v7251_v62, 4  ;;  %v12646_v50 = vrot.slane %v6702_v11, 9  ;;  %v18145_v25 = vrot.slane %v7230_v58, 4  ;;  %v18162_v17 = vld [vmem:[#allocation2 + $0x7c] sm:$0xf] }
 0x454   : > { %v7173_v12 = vrot.slane %v7172_v55, 4  ;;  %v7192_v19 = vrot.slane %v7190_v22, 4  ;;  %v7195_v4 = vrot.slane %v7193_v48, 5  ;;  %14057 = vmatprep.subr.bf16.mxu1 %v15118_v15  ;;  %v18147_v20 = vld [vmem:[#allocation2 + $0x54] sm:$0xf]  ;;  %v7257_v30 = vshll.u32 %v18138_v14, 16 }
 0x455   : > { %v6811_v23 = vsel %vm15526_vm7, %v12646_v50, %v6810_v59  ;;  %v7271_v2 = vshll.u32 %v18132_v37, 16  ;;  %v7275_v53 = vshrl.u32 %v18132_v37, 16  ;;  %v7214_v57 = vshrl.u32 %v18147_v20, 16  ;;  %v18168_v60 = vld [vmem:[#allocation2 + $0x74] sm:$0x1] }
 0x456   : > { %v7178_v5 = vsel %vm15643_vm11, %v7173_v12, %v18065_v27  ;;  %v7196_v18 = vor.u32 %v7195_v4, %v7192_v19  ;;  %v7217_v31 = vshll.u32 %v18147_v20, 16  ;;  %6812 = vst [vmem:[#allocation2 + $0x6c] sm:$0x1] %v6811_v23  ;;  %v7212_v35 = vsel %vm15643_vm11, %v7207_v54, %v7211_v63  ;;  %v18170_v46 = vld [vmem:[#allocation2 + $0x88] sm:$0xf]  ;;  %v15120_v58 = vld [vmem:[%s19951_s3 + $0x30] sm:$0xff]  }
 0x457   : > { %v12694_v45 = vcombine.low %v7178_v5, %v7188_v21  ;;  %v7254_v24 = vor.u32 %v7253_v38, %v18140_v29  ;;  %14058 = vmatpush3.bf16.msra.mxu1 %v15118_v15  ;;  %v7216_v44 = vrot.slane %v7214_v57, 4  ;;  %v7236_v27 = vsel %vm15643_vm11, %v18145_v25, %v18136_v7  ;;  %v6813_v7 = vld [vmem:[#allocation2 + $0x78] sm:$0x1]  ;;  %v6704_v54 = vld [vmem:[#allocation2 + $0x84] sm:$0x2] }
 0x458   : > { %v7197_v47 = vrot.slane %v7196_v18, 4  ;;  %v7219_v32 = vrot.slane %v7217_v31, 5  ;;  %14059 = vmatprep.subr.bf16.mxu1 %v15119_v52  ;;  %v7259_v15 = vrot.slane %v7257_v30, 5  ;;  %v18177_v11 = vrot.slane %v7271_v2, 5  ;;  %v15121_v4 = vld [vmem:[%s19951_s3 + $0x38] sm:$0xff]  }
 0x459   : > { %14026 = vmatmul.mubr.bf16.gmra.mrb[8].mxu1 %v12694_v45  ;;  %v18175_v62 = vld [vmem:[#allocation2 + $0x60] sm:$0xf]  ;;  %v7277_v21 = vrot.slane %v7275_v53, 4  ;;  %v12647_v63 = vrot.slane %v6703_v36, 9  ;;  %v7255_v50 = vrot.slane %v7254_v24, 4  ;;  %v7281_v12 = vshll.u32 %v18168_v60, 16 }
 0x45a   : > { %v7202_v1 = vsel %vm15643_vm11, %v7197_v47, %v18095_v8  ;;  %v7220_v55 = vor.u32 %v7219_v32, %v7216_v44  ;;  %v7238_v22 = vshrl.u32 %v18175_v62, 16  ;;  %v7241_v48 = vshll.u32 %v18175_v62, 16  ;;  %v18190_v30 = vld [vmem:[#allocation2 + $0x80] sm:$0x1]  ;;  %v6816_v2 = vld [vmem:[#allocation2 + $0x84] sm:$0x1] }
 0x45b   : > { %v12695_v38 = vcombine.low %v7202_v1, %v7212_v35  ;;  %v6814_v19 = vsel %vm15526_vm7, %v12647_v63, %v6813_v7  ;;  %14060 = vmatpush3.bf16.msra.mxu1 %v15119_v52  ;;  %v7295_v23 = vshll.u32 %v18162_v17, 16  ;;  %v6705_v53 = vld [vmem:[#allocation2 + $0x90] sm:$0x2]  ;;  %v7278_v52 = vor.u32 %v7277_v21, %v18177_v11  ;;  %v18207_v63 = vld [vmem:[#allocation2 + $0x94] sm:$0xf] }
 0x45c   : > { %v7221_v8 = vrot.slane %v7220_v55, 4  ;;  %v7240_v25 = vrot.slane %v7238_v22, 4  ;;  %v7243_v59 = vrot.slane %v7241_v48, 5  ;;  %6815 = vst [vmem:[#allocation2 + $0x78] sm:$0x1] %v6814_v19  ;;  %14061 = vmatprep.subr.bf16.mxu1 %v15120_v58  ;;  %v7299_v18 = vshrl.u32 %v18162_v17, 16 }
 0x45d   : > { %14029 = vmatprep.mubr.bf16.mxu1 %v12695_v38  ;;  %v18193_v5 = vld [vmem:[#allocation2 + $0x6c] sm:$0xf]  ;;  %v12648_v57 = vrot.slane %v6704_v54, 9  ;;  %v7319_v31 = vshll.u32 %v18170_v46, 16  ;;  %v7260_v44 = vsel %vm15643_vm11, %v7255_v50, %v7259_v15  ;;  %v7283_v32 = vrot.slane %v7281_v12, 5 }
 0x45e   : > { %v7226_v36 = vsel %vm15643_vm11, %v7221_v8, %v18109_v13  ;;  %v7244_v45 = vor.u32 %v7243_v59, %v7240_v25  ;;  %v7262_v35 = vshrl.u32 %v18193_v5, 16  ;;  %v7265_v24 = vshll.u32 %v18193_v5, 16  ;;  %v18212_v13 = vld [vmem:[%s19951_s3 + $0x80] sm:$0xff]   ;;  %v18217_v7 = vld [vmem:[#allocation2 + $0x8c] sm:$0x1] }
 0x45f   : > { %v12696_v47 = vcombine.low %v7226_v36, %v7236_v27  ;;  %v6817_v21 = vsel %vm15526_vm7, %v12648_v57, %v6816_v2  ;;  %14062 = vmatpush3.bf16.msra.mxu1 %v15120_v58  ;;  %v18214_v48 = vrot.slane %v7295_v23, 5  ;;  %v7301_v27 = vrot.slane %v7299_v18, 4  ;;  %v6819_v38 = vld [vmem:[#allocation2 + $0x90] sm:$0x1]  ;;  %v6706_v25 = vld [vmem:[#allocation2 + $0x9c] sm:$0x2] }
 0x460   : > { %v7245_v1 = vrot.slane %v7244_v45, 4  ;;  %v7264_v55 = vrot.slane %v7262_v35, 4  ;;  %v7267_v22 = vrot.slane %v7265_v24, 5  ;;  %6818 = vst [vmem:[#allocation2 + $0x84] sm:$0x1] %v6817_v21  ;;  %14063 = vmatprep.subr.bf16.mxu1 %v15121_v4  ;;  %v7305_v15 = vshll.u32 %v18190_v30, 16 }
 0x461   : > { %14030 = vmatmul.mubr.bf16.gmra.mrb[12].mxu1 %v12696_v47  ;;  %v7323_v58 = vshrl.u32 %v18170_v46, 16  ;;  %v12649_v54 = vrot.slane %v6705_v53, 9  ;;  %v7279_v19 = vrot.slane %v7278_v52, 4  ;;  %v18223_v8 = vrot.slane %v7319_v31, 5  ;;  %v18233_v52 = vld [vmem:[#allocation2 + $0xa0] sm:$0xf] }
 0x462   : > { %v7250_v50 = vsel %vm15643_vm11, %v7245_v1, %v18140_v29  ;;  %v7268_v12 = vor.u32 %v7267_v22, %v7264_v55  ;;  %v7343_v18 = vshll.u32 %v18207_v63, 16  ;;  %v7347_v57 = vshrl.u32 %v18207_v63, 16  ;;  %v18243_v1 = vld [vmem:[#allocation2 + $0x98] sm:$0x1]  ;;  %v6822_v55 = vld [vmem:[#allocation2 + $0x9c] sm:$0x1] }
 0x463   : > { %v12697_v59 = vcombine.low %v7250_v50, %v7260_v44  ;;  %v18225_v23 = vld [vmem:[#allocation2 + $0x78] sm:$0xf]  ;;  %v7325_v2 = vrot.slane %v7323_v58, 4  ;;  %14064 = vmatpush3.bf16.msra.mxu1 %v15121_v4  ;;  %v6820_v29 = vsel %vm15526_vm7, %v12649_v54, %v6819_v38  ;;  %v7284_v31 = vsel %vm15643_vm11, %v7279_v19, %v7283_v32 }
 0x464   : > { %v7269_v53 = vrot.slane %v7268_v12, 4  ;;  %v7286_v36 = vshrl.u32 %v18225_v23, 16  ;;  %v7289_v45 = vshll.u32 %v18225_v23, 16  ;;  %14097 = vmatprep.subr.bf16.mxu1 %v18212_v13  ;;  %v7302_v35 = vor.u32 %v7301_v27, %v18214_v48  ;;  %6821 = vst [vmem:[#allocation2 + $0x90] sm:$0x1] %v6820_v29 }
 0x465   : > { %14033 = vmatprep.mubr.bf16.mxu1 %v12697_v59  ;;  %v7307_v24 = vrot.slane %v7305_v15, 5  ;;  %v7329_v21 = vshll.u32 %v18217_v7, 16  ;;  %v7326_v32 = vor.u32 %v7325_v2, %v18223_v8  ;;  %v18248_v54 = vrot.slane %v7343_v18, 5  ;;  %v6707_v15 = vld [vmem:[#allocation2 + $0xa8] sm:$0x2] }
 0x466   : > { %v7274_v4 = vsel %vm15643_vm11, %v7269_v53, %v18177_v11  ;;  %v7288_v47 = vrot.slane %v7286_v36, 4  ;;  %v7291_v44 = vrot.slane %v7289_v45, 5  ;;  %v12650_v27 = vrot.slane %v6706_v25, 9  ;;  %v18255_v36 = vld [vmem:[#allocation2 + $0xac] sm:$0xf] }
 0x467   : > { %v12698_v22 = vcombine.low %v7274_v4, %v7284_v31  ;;  %v18245_v58 = vld [vmem:[#allocation2 + $0x84] sm:$0xf]  ;;  %v7349_v12 = vrot.slane %v7347_v57, 4  ;;  %v7303_v19 = vrot.slane %v7302_v35, 4  ;;  %v7367_v53 = vshll.u32 %v18233_v52, 16 }
 0x468   : > { %v7292_v38 = vor.u32 %v7291_v44, %v7288_v47  ;;  %v7310_v50 = vshrl.u32 %v18245_v58, 16  ;;  %v7313_v11 = vshll.u32 %v18245_v58, 16  ;;  %v6823_v59 = vsel %vm15526_vm7, %v12650_v27, %v6822_v55  ;;  %v18257_v25 = vld [vmem:[#allocation2 + $0xa4] sm:$0x1]  ;;  %v6825_v47 = vld [vmem:[#allocation2 + $0xa8] sm:$0x1] }
 0x469   : > { %14034 = vmatmul.mubr.bf16.gmra.mrb[16].mxu1 %v12698_v22  ;;  %6824 = vst [vmem:[#allocation2 + $0x9c] sm:$0x1] %v6823_v59  ;;  %v7371_v29 = vshrl.u32 %v18233_v52, 16  ;;  %v7308_v57 = vsel %vm15643_vm11, %v7303_v19, %v7307_v24  ;;  %v7331_v31 = vrot.slane %v7329_v21, 5  ;;  %v7353_v35 = vshll.u32 %v18243_v1, 16 }
 0x46a   : > { %v7293_v2 = vrot.slane %v7292_v38, 4  ;;  %v7312_v18 = vrot.slane %v7310_v50, 4  ;;  %v7315_v45 = vrot.slane %v7313_v11, 5  ;;  %v12651_v4 = vrot.slane %v6707_v15, 9  ;;  %v6708_v19 = vld [vmem:[#allocation2 + $0xb4] sm:$0x2] }
 0x46b   : > { %v7327_v22 = vrot.slane %v7326_v32, 4  ;;  %v18266_v27 = vld [vmem:[#allocation2 + $0x90] sm:$0xf]  ;;  %v7350_v38 = vor.u32 %v7349_v12, %v18248_v54  ;;  %v7391_v21 = vshll.u32 %v18255_v36, 16  ;;  %v7369_v59 = vrot.slane %v7367_v53, 5 }
 0x46c   : > { %v7298_v44 = vsel %vm15643_vm11, %v7293_v2, %v18214_v48  ;;  %v7316_v55 = vor.u32 %v7315_v45, %v7312_v18  ;;  %v7334_v11 = vshrl.u32 %v18266_v27, 16  ;;  %v7337_v24 = vshll.u32 %v18266_v27, 16  ;;  %v18276_v45 = vld [vmem:[#allocation2 + $0xb8] sm:$0xf] }
 0x46d   : > { %v12699_v50 = vcombine.low %v7298_v44, %v7308_v57  ;;  %v7373_v49 = vrot.slane %v7371_v29, 4  ;;  %v6826_v48 = vsel %vm15526_vm7, %v12651_v4, %v6825_v47  ;;  %v7377_v18 = vshll.u32 %v18257_v25, 16  ;;  %v18283_v44 = vld [vmem:[#allocation2 + $0xb0] sm:$0x1]  ;;  %v6828_v47 = vld [vmem:[#allocation2 + $0xb4] sm:$0x1] }
 0x46e   : > { %v7317_v15 = vrot.slane %v7316_v55, 4  ;;  %v7336_v32 = vrot.slane %v7334_v11, 4  ;;  %v7339_v2 = vrot.slane %v7337_v24, 5  ;;  %6827 = vst [vmem:[#allocation2 + $0xa8] sm:$0x1] %v6826_v48  ;;  %v7395_v12 = vshrl.u32 %v18255_v36, 16 }
 0x46f   : > { %14037 = vmatprep.mubr.bf16.mxu1 %v12699_v50  ;;  %v7332_v53 = vsel %vm15643_vm11, %v7327_v22, %v7331_v31  ;;  %v7355_v29 = vrot.slane %v7353_v35, 5  ;;  %v12652_v4 = vrot.slane %v6708_v19, 9  ;;  %v7393_v24 = vrot.slane %v7391_v21, 5 }
 0x470   : > { %v7322_v57 = vsel %vm15643_vm11, %v7317_v15, %v18223_v8  ;;  %v7340_v50 = vor.u32 %v7339_v2, %v7336_v32  ;;  %v18285_v11 = vld [vmem:[#allocation2 + $0x9c] sm:$0xf]  ;;  %v7397_v48 = vrot.slane %v7395_v12, 4  ;;  %v7374_v61 = vor.u32 %v7373_v49, %v7369_v59 }
 0x471   : > { %v12700_v55 = vcombine.low %v7322_v57, %v7332_v53  ;;  %v7358_v10 = vshrl.u32 %v18285_v11, 16  ;;  %v7361_v9 = vshll.u32 %v18285_v11, 16  ;;  %v6829_v8 = vsel %vm15526_vm7, %v12652_v4, %v6828_v47  ;;  %v18299_v53 = vld [vmem:[#allocation2 + $0xbc] sm:$0x1] }
 0x472   : > { %v7341_v31 = vrot.slane %v7340_v50, 4  ;;  %v7351_v35 = vrot.slane %v7350_v38, 4  ;;  %v7379_v22 = vrot.slane %v7377_v18, 5  ;;  %v7401_v19 = vshll.u32 %v18283_v44, 16  ;;  %6830 = vst [vmem:[#allocation2 + $0xb4] sm:$0x1] %v6829_v8 }
 0x473   : > { %14038 = vmatmul.mubr.bf16.gmra.mrb[20].mxu1 %v12700_v55  ;;  %v7360_v15 = vrot.slane %v7358_v10, 4  ;;  %v7363_v32 = vrot.slane %v7361_v9, 5  ;;  %v7415_v21 = vshll.u32 %v18276_v45, 16  ;;  %v7419_v2 = vshrl.u32 %v18276_v45, 16 }
 0x474   : > { %v7346_v49 = vsel %vm15643_vm11, %v7341_v31, %v18248_v54  ;;  %v7356_v12 = vsel %vm15643_vm11, %v7351_v35, %v7355_v29  ;;  %v7398_v57 = vor.u32 %v7397_v48, %v7393_v24  ;;  %v7375_v4 = vrot.slane %v7374_v61, 4 }
 0x475   : > { %v12701_v38 = vcombine.low %v7346_v49, %v7356_v12  ;;  %v7364_v18 = vor.u32 %v7363_v32, %v7360_v15  ;;  %v18301_v47 = vld [vmem:[#allocation2 + $0xa8] sm:$0xf]  ;;  %v7403_v55 = vrot.slane %v7401_v19, 5  ;;  %v7417_v8 = vrot.slane %v7415_v21, 5 }
 0x476   : > { %v7382_v10 = vshrl.u32 %v18301_v47, 16  ;;  %v7385_v9 = vshll.u32 %v18301_v47, 16  ;;  %v7380_v54 = vsel %vm15643_vm11, %v7375_v4, %v7379_v22  ;;  %v7421_v29 = vrot.slane %v7419_v2, 4 }
 0x477   : > { %14041 = vmatprep.mubr.bf16.mxu1 %v12701_v38  ;;  %v7365_v50 = vrot.slane %v7364_v18, 4  ;;  %v7399_v35 = vrot.slane %v7398_v57, 4  ;;  %v7425_v15 = vshll.u32 %v18299_v53, 16  ;;  %v12720_v19 = vcombine.low %v18147_v20, %v18076_v28  ;;  %v15268_v20 = vld [vmem:[#allocation2 + $0x4] sm:$0xf] }
 0x478   : > { %v7384_v48 = vrot.slane %v7382_v10, 4  ;;  %v7387_v31 = vrot.slane %v7385_v9, 5  ;;  %v12721_v49 = vcombine.low %v18175_v62, %v18093_v42  ;;  %v12722_v22 = vcombine.low %v18193_v5, %v18132_v37 }
 0x479   : > { %v7370_v61 = vsel %vm15643_vm11, %v7365_v50, %v7369_v59  ;;  %v18310_v32 = vld [vmem:[#allocation2 + $0xb4] sm:$0xf]  ;;  %v7422_v38 = vor.u32 %v7421_v29, %v7417_v8  ;;  %v12723_v59 = vcombine.low %v18225_v23, %v18162_v17  ;;  %v12713_v29 = vcombine.low %v18000_v39, %v17940_v33  ;;  %v15126_v33 = vld [vmem:[%s19951_s3 + $0x88] sm:$0xff]  }
 0x47a   : > { %v12702_v21 = vcombine.low %v7370_v61, %v7380_v54  ;;  %v7388_v2 = vor.u32 %v7387_v31, %v7384_v48  ;;  %v7406_v12 = vshrl.u32 %v18310_v32, 16  ;;  %v7409_v57 = vshll.u32 %v18310_v32, 16 }
 0x47b   : > { %v7404_v61 = vsel %vm15643_vm11, %v7399_v35, %v7403_v55  ;;  %v8032_v55 = vld [vmem:[#allocation2 + $0x60] sm:$0xe]  ;;  %v12716_v39 = vcombine.low %v18035_v6, %v17981_v40  ;;  %v8074_v62 = vrot.slane %v15268_v20, 5  ;;  %v15275_v20 = vld [vmem:[#allocation2 + $0x34] sm:$0xf] }
 0x47c   : > { %14042 = vmatmul.mubr.bf16.gmra.mrb[24].mxu1 %v12702_v21  ;;  %v7389_v10 = vrot.slane %v7388_v2, 4  ;;  %v7408_v9 = vrot.slane %v7406_v12, 4  ;;  %v7411_v50 = vrot.slane %v7409_v57, 5  ;;  %v7427_v21 = vrot.slane %v7425_v15, 5 }
 0x47d   : > { %v7423_v57 = vrot.slane %v7422_v38, 4  ;;  %v8123_v15 = vrot.slane %v18076_v28, 5  ;;  %v12714_v38 = vcombine.low %v18013_v43, %v17954_v3  ;;  %v8133_v3 = vrot.slane %v18138_v14, 5 }
 0x47e   : > { %v7394_v31 = vsel %vm15643_vm11, %v7389_v10, %v7393_v24  ;;  %v7412_v4 = vor.u32 %v7411_v50, %v7408_v9  ;;  %v8031_v24 = vld [vmem:[#allocation2 + $0x54] sm:$0xe]  ;;  %v8126_v10 = vrot.slane %v18097_v26, 5  ;;  %v12745_v9 = vrot.slane %v8032_v55, 9 }
 0x47f   : > { %v12703_v2 = vcombine.low %v7394_v31, %v7404_v61  ;;  %v7428_v48 = vsel %vm15643_vm11, %v7423_v57, %v7427_v21  ;;  %v12744_v35 = vrot.slane %v8031_v24, 9  ;;  %v8130_v50 = vrot.slane %v18093_v42, 5  ;;  %v15129_v21 = vld [vmem:[%s19951_s3 + $0x90] sm:$0xff]  }
 0x480   : > { %v7413_v12 = vrot.slane %v7412_v4, 4  ;;  %v8033_v4 = vld [vmem:[#allocation2 + $0x6c] sm:$0xe]  ;;  %v8140_v61 = vrot.slane %v18168_v60, 5  ;;  %v8147_v57 = vrot.slane %v18190_v30, 5  ;;  %v20106_v28 = vcombine.low %v18245_v58, %v18170_v46 }
 0x481   : > { %14045 = vmatprep.mubr.bf16.mxu1 %v12703_v2  ;;  %v12746_v43 = vrot.slane %v8033_v4, 9  ;;  %v18368_v6 = vsel %vm16147_vm14, %v12745_v9, %v8130_v50  ;;  %v8036_v24 = vld [vmem:[#allocation2 + $0x90] sm:$0xe]  ;;  %v8037_v4 = vld [vmem:[#allocation2 + $0x9c] sm:$0xe]  ;;  %v20107_v42 = vcombine.low %v18266_v27, %v18207_v63 }
 0x482   : > { %v7418_v54 = vsel %vm15643_vm11, %v7413_v12, %v7417_v8  ;;  %v12715_v8 = vcombine.low %v18020_v16, %v17976_v41  ;;  %v8137_v41 = vrot.slane %v18132_v37, 5  ;;  %v8034_v16 = vld [vmem:[#allocation2 + $0x78] sm:$0xe]  ;;  %v8144_v12 = vrot.slane %v18162_v17, 5 }
 0x483   : > { %v12704_v18 = vcombine.low %v7418_v54, %v7428_v48  ;;  %v12717_v54 = vcombine.low %v18061_v0, %v18011_v51  ;;  %v18360_v48 = vsel %vm16147_vm14, %v12744_v35, %v8123_v15  ;;  %v8132_v51 = vrot.slane %v8130_v50, 4  ;;  %v8035_v0 = vld [vmem:[#allocation2 + $0x84] sm:$0xe] }
 0x484   : > { %v8139_v31 = vrot.slane %v8137_v41, 4  ;;  %v12748_v35 = vrot.slane %v8035_v0, 9  ;;  %v8146_v30 = vrot.slane %v8144_v12, 4  ;;  %v12749_v50 = vrot.slane %v8036_v24, 9 }
 0x485   : > { %14046 = vmatmul.mubr.bf16.gmra.mrb[28].mxu1 %v12704_v18  ;;  %v8125_v18 = vrot.slane %v8123_v15, 4  ;;  %v18383_v2 = vsel %vm16147_vm14, %v8132_v51, %v8133_v3  ;;  %v8151_v15 = vrot.slane %v18170_v46, 5  ;;  %v8158_v3 = vrot.slane %v18207_v63, 5  ;;  %v8038_v51 = vld [vmem:[#allocation2 + $0xa8] sm:$0xe] }
 0x486   : > { %14065 = vmatprep.mubr.bf16.mxu1 %v12713_v29  ;;  %v18375_v29 = vsel %vm16147_vm14, %v12746_v43, %v8137_v41  ;;  %v12777_v55 = vcombine.low %v18368_v6, %v18383_v2  ;;  %v18391_v60 = vsel %vm16147_vm14, %v8139_v31, %v8140_v61  ;;  %v15132_v43 = vld [vmem:[%s19951_s3 + $0x98] sm:$0xff]   ;;  %v18411_v41 = vsel %vm16147_vm14, %v8146_v30, %v8147_v57  ;;  %v15270_v63 = vld [vmem:[#allocation2 + $0x10] sm:$0xf] }
 0x487   : > { %v18364_v40 = vsel %vm16147_vm14, %v8125_v18, %v8126_v10  ;;  %v8154_v10 = vrot.slane %v18217_v7, 5  ;;  %v18403_v18 = vsel %vm16147_vm14, %v12748_v35, %v8151_v15  ;;  %v8153_v9 = vrot.slane %v8151_v15, 4  ;;  %v6709_v15 = vld [vmem:[#allocation2 + $0xc0] sm:$0x2]  ;;  %v18624_v6 = vld [vmem:[#allocation2 + $0x70] sm:$0xf] }
 0x488   : > { %v12776_v14 = vcombine.low %v18360_v48, %v18364_v40  ;;  %v8161_v7 = vrot.slane %v18243_v1, 5  ;;  %v18423_v61 = vsel %vm16147_vm14, %v12749_v50, %v8158_v3  ;;  %v8168_v35 = vrot.slane %v18257_v25, 5  ;;  %v18611_v48 = vld [vmem:[#allocation2 + $0x68] sm:$0x1] }
 0x489   : > { %v18419_v31 = vsel %vm16147_vm14, %v8153_v9, %v8154_v10  ;;  %v12751_v30 = vrot.slane %v8038_v51, 9  ;;  %v8172_v10 = vrot.slane %v18255_v36, 5  ;;  %v8175_v9 = vrot.slane %v18283_v44, 5  ;;  %v20102_v44 = vld [vmem:[#allocation17_spill] sm:$0xff] }
 0x48a   : > { %v8179_v50 = vrot.slane %v18276_v45, 5  ;;  %v12653_v51 = vrot.slane %v6709_v15, 9  ;;  %v20108_v37 = vcombine.low %v18285_v11, %v18233_v52  ;;  %v20109_v17 = vcombine.low %v18301_v47, %v18255_v36  ;;  %v15273_v47 = vld [vmem:[#allocation2 + $0x20] sm:$0x1] }
 0x48b   : > { %v18455_v25 = vsel %vm16147_vm14, %v12751_v30, %v8172_v10  ;;  %v8076_v46 = vrot.slane %v8074_v62, 4  ;;  %v8081_v58 = vrot.slane %v15270_v63, 5  ;;  %v20110_v36 = vcombine.low %v18310_v32, %v18276_v45 }
 0x48d   : > { %14066 = vmatmul.mubr.bf16.vlgmr.msra.gmra.mrb[0].mxu1 %v12714_v38  ;;  %v12778_v38 = vcombine.low %v18375_v29, %v18391_v60 }
 0x48e   : > { %14098 = vmatpush3.bf16.msra.mxu1 %v18212_v13  ;;  %14069 = vmatprep.mubr.bf16.mxu1 %v12715_v8  ;;  %v12747_v13 = vrot.slane %v8034_v16, 9  ;;  %v8165_v16 = vrot.slane %v18233_v52, 5 }
 0x48f   : > { %14099 = vmatprep.subr.bf16.mxu1 %v15126_v33 }
 0x490   : > { %v18398_v8 = vsel %vm16147_vm14, %v12747_v13, %v8144_v12  ;;  %v8160_v13 = vrot.slane %v8158_v3, 4  ;;  %v8039_v12 = vld [vmem:[#allocation2 + $0xb4] sm:$0xe]  ;;  %v8167_v24 = vrot.slane %v8165_v16, 4 }
 0x491   : > { %v12779_v0 = vcombine.low %v18398_v8, %v18411_v41 }
 0x492   : > { %14100 = vmatpush3.bf16.msra.mxu1 %v15126_v33  ;;  %v12750_v33 = vrot.slane %v8037_v4, 9  ;;  %v15135_v4 = vld [vmem:[%s19951_s3 + $0xa0] sm:$0xff]  }
 0x493   : > { %14101 = vmatprep.subr.bf16.mxu1 %v15129_v21 }
 0x494   : > { %v18429_v57 = vsel %vm16147_vm14, %v12750_v33, %v8165_v16  ;;  %v8182_v33 = vrot.slane %v18299_v53, 5  ;;  %v8181_v16 = vrot.slane %v8179_v50, 4  ;;  %v15138_v53 = vld [vmem:[%s19951_s3 + $0xa8] sm:$0xff]  }
 0x495   : > { %14070 = vmatmul.mubr.bf16.gmra.mrb[4].mxu1 %v12716_v39  ;;  %v18437_v39 = vsel %vm16147_vm14, %v8160_v13, %v8161_v7  ;;  %v8174_v7 = vrot.slane %v8172_v10, 4  ;;  %v20103_v13 = vld [vmem:[#allocation11_spill] sm:$0xff]  ;;  %v20104_v10 = vld [vmem:[#allocation18_spill] sm:$0xff] }
 0x496   : > { %14073 = vmatprep.mubr.bf16.mxu1 %v12717_v54  ;;  %14102 = vmatpush3.bf16.msra.mxu1 %v15129_v21  ;;  %v18445_v54 = vsel %vm16147_vm14, %v8167_v24, %v8168_v35  ;;  %v12752_v21 = vrot.slane %v8039_v12, 9  ;;  %v12718_v1 = vcombine.low %v20103_v13, %v20102_v44  ;;  %v6831_v24 = vld [vmem:[#allocation2 + $0xc0] sm:$0x1]  ;;  %v18472_v15 = vsel %vm16147_vm14, %v8181_v16, %v8182_v33  ;;  %v15272_v33 = vld [vmem:[#allocation2 + $0x14] sm:$0x1] }
 0x497   : > { %14103 = vmatprep.subr.bf16.mxu1 %v15132_v43  ;;  %v18459_v12 = vsel %vm16147_vm14, %v8174_v7, %v8175_v9  ;;  %v6832_v30 = vsel %vm15526_vm7, %v12653_v51, %v6831_v24  ;;  %v20105_v9 = vld [vmem:[#allocation13_spill] sm:$0xff]  ;;  %v8084_v52 = vrot.slane %v15272_v33, 5  ;;  %v8026_v16 = vld [vmem:[#allocation2 + $0x18] sm:$0xe]  ;;  %v8091_v51 = vrot.slane %v15273_v47, 5 }
 0x498   : > { %v12719_v7 = vcombine.low %v20105_v9, %v20104_v10  ;;  %6833 = vst [vmem:[#allocation2 + $0xc0] sm:$0x1] %v6832_v30  ;;  %v8083_v24 = vrot.slane %v8081_v58, 4 }
 0x49a   : > { %14104 = vmatpush3.bf16.msra.mxu1 %v15132_v43  ;;  %v18468_v43 = vsel %vm16147_vm14, %v12752_v21, %v8179_v50  ;;  %v15141_v21 = vld [vmem:[%s19951_s3 + $0xb0] sm:$0xff]   ;;  %v8085_v10 = vsel %vm16147_vm14, %v8083_v24, %v8084_v52  ;;  %v15280_v24 = vld [vmem:[#allocation2 + $0x44] sm:$0x1] }
 0x49b   : > { %14105 = vmatprep.subr.bf16.mxu1 %v15135_v4 }
 0x49d   : > { %14074 = vmatmul.mubr.bf16.gmra.mrb[8].mxu1 %v12718_v1  ;;  %v15146_v1 = vld [vmem:[%s19951_s3 + $0xc0] sm:$0xff]  }
 0x49e   : > { %14077 = vmatprep.mubr.bf16.mxu1 %v12719_v7  ;;  %14106 = vmatpush3.bf16.msra.mxu1 %v15135_v4 }
 0x49f   : > { %14107 = vmatprep.subr.bf16.mxu1 %v15138_v53 }
 0x4a2   : > { %14108 = vmatpush3.bf16.msra.mxu1 %v15138_v53  ;;  %v12739_v53 = vrot.slane %v8026_v16, 9  ;;  %v8029_v16 = vld [vmem:[#allocation2 + $0x3c] sm:$0xe] }
 0x4a3   : > { %14109 = vmatprep.subr.bf16.mxu1 %v15141_v21 }
 0x4a5   : > { %14078 = vmatmul.mubr.bf16.gmra.mrb[12].mxu1 %v12720_v19  ;;  %v8024_v19 = vld [vmem:[#allocation2] sm:$0xe] }
 0x4a6   : > { %14081 = vmatprep.mubr.bf16.mxu1 %v12721_v49  ;;  %14110 = vmatpush3.bf16.msra.mxu1 %v15141_v21  ;;  %v15269_v49 = vld [vmem:[#allocation2 + $0x8] sm:$0x1]  ;;  %v12737_v5 = vrot.slane %v8024_v19, 9 }
 0x4a7   : > { %14111 = vmatprep.subr.bf16.mxu1 %v15144_v56  ;;  %v8077_v4 = vrot.slane %v15269_v49, 5  ;;  %v15274_v21 = vld [vmem:[#allocation2 + $0x28] sm:$0xf]  ;;  %v15276_v49 = vld [vmem:[#allocation2 + $0x2c] sm:$0x1] }
 0x4a8   : > { %v8075_v27 = vsel %vm16147_vm14, %v12737_v5, %v8074_v62  ;;  %v8102_v62 = vrot.slane %v15275_v20, 5 }
 0x4a9   : > { %v8078_v23 = vsel %vm16147_vm14, %v8076_v46, %v8077_v4  ;;  %v8098_v4 = vrot.slane %v15276_v49, 5  ;;  %v15151_v49 = vld [vmem:[%s19951_s3 + $0xe8] sm:$0xff]  }
 0x4aa   : > { %14112 = vmatpush3.bf16.msra.mxu1 %v15144_v56  ;;  %v12769_v11 = vcombine.low %v8075_v27, %v8078_v23  ;;  %v8095_v56 = vrot.slane %v15274_v21, 5  ;;  %v15148_v27 = vld [vmem:[%s19951_s3 + $0xd0] sm:$0xff]  }
 0x4ab   : > { %14145 = vmatprep.subr.bf16.mxu1 %v15146_v1 }
 0x4ac   : > { %v8097_v23 = vrot.slane %v8095_v56, 4 }
 0x4ad   : > { %14082 = vmatmul.mubr.bf16.gmra.mrb[16].mxu1 %v12722_v22  ;;  %v8025_v22 = vld [vmem:[#allocation2 + $0xc] sm:$0xe] }
 0x4ae   : > { %14085 = vmatprep.mubr.bf16.mxu1 %v12723_v59  ;;  %v15271_v59 = vld [vmem:[#allocation2 + $0x1c] sm:$0xf]  ;;  %v12738_v13 = vrot.slane %v8025_v22, 9  ;;  %v8099_v22 = vsel %vm16147_vm14, %v8097_v23, %v8098_v4  ;;  %v18566_v23 = vld [vmem:[#allocation2 + $0x2c] sm:$0x1] }
 0x4af   : > { %v8088_v50 = vrot.slane %v15271_v59, 5 }
 0x4b0   : > { %v8082_v7 = vsel %vm16147_vm14, %v12738_v13, %v8081_v58  ;;  %v8104_v58 = vrot.slane %v8102_v62, 4 }
 0x4b1   : > { %v8090_v30 = vrot.slane %v8088_v50, 4  ;;  %v12770_v45 = vcombine.low %v8082_v7, %v8085_v10  ;;  %v8089_v32 = vsel %vm16147_vm14, %v12739_v53, %v8088_v50  ;;  %v8112_v53 = vrot.slane %v15280_v24, 5  ;;  %v15281_v10 = vld [vmem:[#allocation2 + $0x50] sm:$0x1] }
 0x4b2   : > { %v12742_v7 = vrot.slane %v8029_v16, 9 }
 0x4b3   : > { %v8092_v9 = vsel %vm16147_vm14, %v8090_v30, %v8091_v51  ;;  %v15149_v51 = vld [vmem:[%s19951_s3 + $0xd8] sm:$0xff]   ;;  %v8030_v30 = vld [vmem:[#allocation2 + $0x48] sm:$0xe] }
 0x4b4   : > { %v12771_v19 = vcombine.low %v8089_v32, %v8092_v9  ;;  %v8119_v9 = vrot.slane %v15281_v10, 5  ;;  %v15150_v32 = vld [vmem:[%s19951_s3 + $0xe0] sm:$0xff]  }
 0x4b5   : > { %14086 = vmatmul.mubr.bf16.gmra.mrb[20].mxu1 %v20106_v28  ;;  %v15147_v28 = vld [vmem:[%s19951_s3 + $0xc8] sm:$0xff]  }
 0x4b6   : > { %14089 = vmatprep.mubr.bf16.mxu1 %v20107_v42  ;;  %v8027_v42 = vld [vmem:[#allocation2 + $0x24] sm:$0xe] }
 0x4b7   : > { %v12740_v46 = vrot.slane %v8027_v42, 9 }
 0x4b9   : > { %v8096_v50 = vsel %vm16147_vm14, %v12740_v46, %v8095_v56  ;;  %v12743_v56 = vrot.slane %v8030_v30, 9  ;;  %v15152_v46 = vld [vmem:[%s19951_s3 + $0xf0] sm:$0xff]  }
 0x4ba   : > { %v12772_v52 = vcombine.low %v8096_v50, %v8099_v22  ;;  %v9649_v22 = vld [vmem:[#allocation2 + $0x30] sm:$0xe] }
 0x4bd   : > { %14090 = vmatmul.mubr.bf16.gmra.mrb[24].mxu1 %v20108_v37  ;;  %v8028_v37 = vld [vmem:[#allocation2 + $0x30] sm:$0xe] }
 0x4be   : > { %14093 = vmatprep.mubr.bf16.mxu1 %v20109_v17  ;;  %v15277_v17 = vld [vmem:[#allocation2 + $0x38] sm:$0x1]  ;;  %v12741_v63 = vrot.slane %v8028_v37, 9  ;;  %v18559_v37 = vld [vmem:[#allocation2 + $0x28] sm:$0xf] }
 0x4bf   : > { %v8105_v5 = vrot.slane %v15277_v17, 5  ;;  %v18561_v17 = vld [vmem:[#allocation2 + $0x34] sm:$0xf] }
 0x4c1   : > { %v8106_v59 = vsel %vm16147_vm14, %v8104_v58, %v8105_v5  ;;  %v9648_v5 = vld [vmem:[#allocation2 + $0x24] sm:$0xe]  ;;  %v18570_v58 = vld [vmem:[#allocation2 + $0x40] sm:$0xf] }
 0x4c2   : > { %v12875_v50 = vrot.slane %v9648_v5, 9  ;;  %v9740_v10 = vrot.slane %v18570_v58, 5 }
 0x4c5   : > { %14094 = vmatmul.mubr.bf16.gmra.mrb[28].mxu1 %v20110_v36  ;;  %v15279_v36 = vld [vmem:[#allocation2 + $0x4c] sm:$0xf] }
 0x4c6   : > { %14113 = vmatprep.mubr.bf16.mxu1 %v12769_v11  ;;  %v8103_v11 = vsel %vm16147_vm14, %v12741_v63, %v8102_v62  ;;  %v8116_v47 = vrot.slane %v15279_v36, 5  ;;  %v18568_v63 = vld [vmem:[#allocation2 + $0x38] sm:$0x1] }
 0x4c7   : > { %v12773_v13 = vcombine.low %v8103_v11, %v8106_v59  ;;  %v18573_v59 = vld [vmem:[#allocation2 + $0x44] sm:$0x1]  ;;  %v18580_v11 = vld [vmem:[#allocation2 + $0x50] sm:$0x1]  ;;  %v18582_v36 = vld [vmem:[#allocation2 + $0x58] sm:$0xf] }
 0x4c8   : > { %v9736_v24 = vrot.slane %v18568_v63, 5 }
 0x4cd   : > { %14114 = vmatmul.mubr.bf16.vlgmr.msra.gmra.mrb[0].mxu1 %v12770_v45  ;;  %v8118_v45 = vrot.slane %v8116_v47, 4 }
 0x4ce   : > { %14146 = vmatpush3.bf16.msra.mxu1 %v15146_v1  ;;  %14117 = vmatprep.mubr.bf16.mxu1 %v12771_v19  ;;  %v15278_v1 = vld [vmem:[#allocation2 + $0x40] sm:$0xf]  ;;  %v8117_v19 = vsel %vm16147_vm14, %v12743_v56, %v8116_v47  ;;  %v9729_v47 = vrot.slane %v18566_v23, 5  ;;  %v18594_v56 = vld [vmem:[#allocation2 + $0x64] sm:$0xf] }
 0x4cf   : > { %14147 = vmatprep.subr.bf16.mxu1 %v15147_v28  ;;  %v8109_v33 = vrot.slane %v15278_v1, 5  ;;  %v8120_v42 = vsel %vm16147_vm14, %v8118_v45, %v8119_v9  ;;  %v9650_v1 = vld [vmem:[#allocation2 + $0x3c] sm:$0xe]  ;;  %v9743_v9 = vrot.slane %v18573_v59, 5 }
 0x4d0   : > { %v12775_v4 = vcombine.low %v8117_v19, %v8120_v42  ;;  %v12877_v30 = vrot.slane %v9650_v1, 9  ;;  %v9653_v19 = vld [vmem:[#allocation2 + $0x60] sm:$0xe] }
 0x4d1   : > { %v8111_v21 = vrot.slane %v8109_v33, 4  ;;  %v8110_v20 = vsel %vm16147_vm14, %v12742_v7, %v8109_v33  ;;  %v15153_v33 = vld [vmem:[%s19951_s3 + $0xf8] sm:$0xff]   ;;  %v9652_v7 = vld [vmem:[#allocation2 + $0x54] sm:$0xe] }
 0x4d2   : > { %14148 = vmatpush3.bf16.msra.mxu1 %v15147_v28  ;;  %v12879_v5 = vrot.slane %v9652_v7, 9 }
 0x4d3   : > { %14149 = vmatprep.subr.bf16.mxu1 %v15148_v27  ;;  %v8113_v28 = vsel %vm16147_vm14, %v8111_v21, %v8112_v53  ;;  %v9651_v53 = vld [vmem:[#allocation2 + $0x48] sm:$0xe]  ;;  %v18592_v21 = vld [vmem:[#allocation2 + $0x5c] sm:$0x1] }
 0x4d4   : > { %v12774_v62 = vcombine.low %v8110_v20, %v8113_v28  ;;  %v9742_v20 = vrot.slane %v9740_v10, 4  ;;  %v9757_v1 = vrot.slane %v18592_v21, 5 }
 0x4d5   : > { %14118 = vmatmul.mubr.bf16.gmra.mrb[4].mxu1 %v12772_v52  ;;  %v18578_v52 = vld [vmem:[#allocation2 + $0x4c] sm:$0xf] }
 0x4d6   : > { %14121 = vmatprep.mubr.bf16.mxu1 %v12773_v13  ;;  %14150 = vmatpush3.bf16.msra.mxu1 %v15148_v27  ;;  %v9726_v27 = vrot.slane %v18559_v37, 5  ;;  %v9733_v13 = vrot.slane %v18561_v17, 5 }
 0x4d7   : > { %14151 = vmatprep.subr.bf16.mxu1 %v15149_v51 }
 0x4d8   : > { %v9728_v16 = vrot.slane %v9726_v27, 4  ;;  %v18598_v45 = vsel %vm16147_vm14, %v12875_v50, %v9726_v27  ;;  %v9735_v42 = vrot.slane %v9733_v13, 4  ;;  %v9754_v50 = vrot.slane %v18582_v36, 5  ;;  %v9655_v27 = vld [vmem:[#allocation2 + $0x78] sm:$0xe] }
 0x4da   : > { %14152 = vmatpush3.bf16.msra.mxu1 %v15149_v51  ;;  %v12876_v51 = vrot.slane %v9649_v22, 9  ;;  %v18628_v2 = vsel %vm16147_vm14, %v9735_v42, %v9736_v24  ;;  %v18638_v22 = vsel %vm16147_vm14, %v9742_v20, %v9743_v9  ;;  %v18656_v9 = vsel %vm16147_vm14, %v12879_v5, %v9754_v50  ;;  %v18667_v5 = vld [vmem:[#allocation2 + $0x8c] sm:$0x1] }
 0x4db   : > { %14153 = vmatprep.subr.bf16.mxu1 %v15150_v32  ;;  %20111 = vst [vmem:[#allocation14_spill] sm:$0xff] %v18638_v22  ;;  %20113 = vst [vmem:[#allocation8_spill] sm:$0xff] %v18656_v9  ;;  %v9756_v7 = vrot.slane %v9754_v50, 4  ;;  %v9761_v42 = vrot.slane %v18594_v56, 5  ;;  %v9764_v20 = vrot.slane %v18611_v48, 5  ;;  %v9785_v41 = vrot.slane %v18667_v5, 5 }
 0x4dc   : > { %v18606_v28 = vsel %vm16147_vm14, %v12876_v51, %v9733_v13  ;;  %v18644_v51 = vld [vmem:[#allocation2 + $0x80] sm:$0x1]  ;;  %v9656_v13 = vld [vmem:[#allocation2 + $0x84] sm:$0xe]  ;;  %v18669_v50 = vld [vmem:[#allocation2 + $0x94] sm:$0xf] }
 0x4dd   : > { %14122 = vmatmul.mubr.bf16.gmra.mrb[8].mxu1 %v12774_v62  ;;  %v12878_v62 = vrot.slane %v9651_v53, 9  ;;  %v18675_v44 = vsel %vm16147_vm14, %v9756_v7, %v9757_v1  ;;  %v12882_v1 = vrot.slane %v9655_v27, 9  ;;  %v9657_v7 = vld [vmem:[#allocation2 + $0x90] sm:$0xe]  ;;  %v9659_v9 = vld [vmem:[#allocation2 + $0xa8] sm:$0xe] }
 0x4de   : > { %14125 = vmatprep.mubr.bf16.mxu1 %v12775_v4  ;;  %14154 = vmatpush3.bf16.msra.mxu1 %v15150_v32  ;;  %v18602_v32 = vsel %vm16147_vm14, %v9728_v16, %v9729_v47  ;;  %v9750_v4 = vrot.slane %v18580_v11, 5  ;;  %v9654_v16 = vld [vmem:[#allocation2 + $0x6c] sm:$0xe]  ;;  %v18642_v47 = vld [vmem:[#allocation2 + $0x7c] sm:$0xf]  ;;  %20115 = vst [vmem:[#allocation16_spill] sm:$0xff] %v18675_v44 }
 0x4df   : > { %14155 = vmatprep.subr.bf16.mxu1 %v15151_v49  ;;  %v9775_v60 = vrot.slane %v18642_v47, 5  ;;  %v12884_v27 = vrot.slane %v9657_v7, 9  ;;  %v8936_v7 = vld [vmem:[#allocation2 + $0xbc] sm:$0x1] }
 0x4e1   : > { %v9777_v44 = vrot.slane %v9775_v60, 4 }
 0x4e2   : > { %14156 = vmatpush3.bf16.msra.mxu1 %v15151_v49  ;;  %v18622_v49 = vld [vmem:[%s19951_s3 + $0x100] sm:$0xff]  }
 0x4e3   : > { %14157 = vmatprep.subr.bf16.mxu1 %v15152_v46 }
 0x4e5   : > { %14126 = vmatmul.mubr.bf16.gmra.mrb[12].mxu1 %v12776_v14  ;;  %v18617_v14 = vsel %vm16147_vm14, %v12877_v30, %v9740_v10  ;;  %v12880_v30 = vrot.slane %v9653_v19, 9  ;;  %v18652_v10 = vld [vmem:[#allocation2 + $0x88] sm:$0xf]  ;;  %v12881_v19 = vrot.slane %v9654_v16, 9  ;;  %v9763_v16 = vrot.slane %v9761_v42, 4 }
 0x4e6   : > { %14129 = vmatprep.mubr.bf16.mxu1 %v12777_v55  ;;  %14158 = vmatpush3.bf16.msra.mxu1 %v15152_v46  ;;  %v9747_v55 = vrot.slane %v18578_v52, 5  ;;  %v18632_v46 = vld [vmem:[#allocation2 + $0x74] sm:$0x1]  ;;  %v9782_v8 = vrot.slane %v18652_v10, 5 }
 0x4e7   : > { %14159 = vmatprep.subr.bf16.mxu1 %v15153_v33  ;;  %v18697_v29 = vsel %vm16147_vm14, %v9763_v16, %v9764_v20  ;;  %v8932_v20 = vld [vmem:[#allocation2 + $0xac] sm:$0xf]  ;;  %v8933_v16 = vld [vmem:[#allocation2 + $0xb0] sm:$0x1] }
 0x4e8   : > { %v18650_v24 = vsel %vm16147_vm14, %v12878_v62, %v9747_v55  ;;  %v9749_v53 = vrot.slane %v9747_v55, 4  ;;  %v9771_v55 = vrot.slane %v18632_v46, 5  ;;  %20118 = vst [vmem:[#allocation10_spill] sm:$0xff] %v18697_v29  ;;  %v9789_v29 = vrot.slane %v18669_v50, 5 }
 0x4e9   : > { %20112 = vst [vmem:[#allocation6_spill] sm:$0xff] %v18650_v24 }
 0x4ea   : > { %14160 = vmatpush3.bf16.msra.mxu1 %v15153_v33  ;;  %v18663_v62 = vsel %vm16147_vm14, %v9749_v53, %v9750_v4  ;;  %v9768_v33 = vrot.slane %v18624_v6, 5  ;;  %v18679_v4 = vsel %vm16147_vm14, %v12880_v30, %v9761_v42  ;;  %v8927_v53 = vld [vmem:[#allocation2 + $0x98] sm:$0x1]  ;;  %v18693_v30 = vld [vmem:[#allocation2 + $0xa0] sm:$0xf]  ;;  %v12883_v42 = vrot.slane %v9656_v13, 9 }
 0x4eb   : > { %14193 = vmatprep.subr.bf16.mxu1 %v18622_v49  ;;  %20114 = vst [vmem:[#allocation7_spill] sm:$0xff] %v18663_v62  ;;  %20116 = vst [vmem:[#allocation15_spill] sm:$0xff] %v18679_v4  ;;  %v18713_v13 = vsel %vm16147_vm14, %v12882_v1, %v9775_v60  ;;  %v9792_v4 = vrot.slane %v8927_v53, 5  ;;  %v8935_v60 = vld [vmem:[#allocation2 + $0xb8] sm:$0xf]  ;;  %v18733_v53 = vsel %vm16147_vm14, %v12884_v27, %v9789_v29 }
 0x4ec   : > { %v18688_v40 = vsel %vm16147_vm14, %v12881_v19, %v9768_v33  ;;  %v9770_v3 = vrot.slane %v9768_v33, 4  ;;  %v8930_v19 = vld [vmem:[#allocation2 + $0xa4] sm:$0x1]  ;;  %20120 = vst [vmem:[#allocation17_spill] sm:$0xff] %v18713_v13  ;;  %20123 = vst [vmem:[#allocation13_spill] sm:$0xff] %v18733_v53 }
 0x4ed   : > { %14130 = vmatmul.mubr.bf16.gmra.mrb[16].mxu1 %v12778_v38  ;;  %20117 = vst [vmem:[#allocation9_spill] sm:$0xff] %v18688_v40  ;;  %v9778_v38 = vrot.slane %v18644_v51, 5  ;;  %v9799_v1 = vrot.slane %v8930_v19, 5  ;;  %v9660_v40 = vld [vmem:[#allocation2 + $0xb4] sm:$0xe]  ;;  %v20127_v19 = vcombine.low %v18423_v61, %v18437_v39 }
 0x4ee   : > { %14133 = vmatprep.mubr.bf16.mxu1 %v12779_v0  ;;  %v18705_v33 = vsel %vm16147_vm14, %v9770_v3, %v9771_v55  ;;  %v9658_v0 = vld [vmem:[#allocation2 + $0x9c] sm:$0xe]  ;;  %v18717_v3 = vsel %vm16147_vm14, %v12883_v42, %v9782_v8  ;;  %v9784_v55 = vrot.slane %v9782_v8, 4  ;;  %v12886_v42 = vrot.slane %v9659_v9, 9  ;;  %v9661_v13 = vld [vmem:[#allocation2 + $0xc0] sm:$0xe] }
 0x4ef   : > { %20119 = vst [vmem:[#allocation12_spill] sm:$0xff] %v18705_v33  ;;  %v18722_v62 = vsel %vm16147_vm14, %v9777_v44, %v9778_v38  ;;  %v12885_v35 = vrot.slane %v9658_v0, 9  ;;  %v9796_v33 = vrot.slane %v18693_v30, 5  ;;  %v9791_v44 = vrot.slane %v9789_v29, 4  ;;  %v8938_v38 = vld [vmem:[#allocation2 + $0xc4] sm:$0xf] }
 0x4f0   : > { %20121 = vst [vmem:[#allocation11_spill] sm:$0xff] %v18722_v62  ;;  %v18729_v8 = vsel %vm16147_vm14, %v9784_v55, %v9785_v41  ;;  %v8939_v0 = vld [vmem:[#allocation2 + $0xc8] sm:$0x1]  ;;  %v20125_v41 = vcombine.low %v18403_v18, %v18419_v31  ;;  %v9803_v29 = vrot.slane %v8932_v20, 5  ;;  %v9806_v55 = vrot.slane %v8933_v16, 5 }
 0x4f1   : > { %20122 = vst [vmem:[#allocation18_spill] sm:$0xff] %v18729_v8  ;;  %v18739_v24 = vsel %vm16147_vm14, %v12885_v35, %v9796_v33  ;;  %v9798_v22 = vrot.slane %v9796_v33, 4  ;;  %v18746_v27 = vsel %vm16147_vm14, %v9791_v44, %v9792_v4  ;;  %v12887_v62 = vrot.slane %v9660_v40, 9  ;;  %v10561_v8 = vld [vmem:[#allocation2 + $0x94] sm:$0xf] }
 0x4f2   : > { %20124 = vst [vmem:[#allocation19_spill] sm:$0xff] %v18739_v24  ;;  %20126 = vst [vmem:[#allocation20_spill] sm:$0xff] %v18746_v27  ;;  %v9810_v18 = vrot.slane %v8935_v60, 5  ;;  %v9813_v31 = vrot.slane %v8936_v7, 5  ;;  %v9805_v33 = vrot.slane %v9803_v29, 4  ;;  %v12888_v40 = vrot.slane %v9661_v13, 9 }
 0x4f3   : > { %v18755_v9 = vsel %vm16147_vm14, %v9798_v22, %v9799_v1  ;;  %v9817_v16 = vrot.slane %v8938_v38, 5  ;;  %v9820_v44 = vrot.slane %v8939_v0, 5  ;;  %v18761_v61 = vsel %vm16147_vm14, %v12886_v42, %v9803_v29  ;;  %v18825_v22 = vld [vmem:[#allocation2 + $0x20] sm:$0x1] }
 0x4f4   : > { %20128 = vst [vmem:[#allocation21_spill] sm:$0xff] %v18755_v9  ;;  %v9812_v20 = vrot.slane %v9810_v18, 4  ;;  %20129 = vst [vmem:[#allocation22_spill] sm:$0xff] %v18761_v61  ;;  %v18765_v39 = vsel %vm16147_vm14, %v9805_v33, %v9806_v55  ;;  %v18771_v1 = vsel %vm16147_vm14, %v12887_v62, %v9810_v18  ;;  %v20135_v62 = vcombine.low %v18429_v57, %v18445_v54  ;;  %v15156_v55 = vld [vmem:[#allocation2 + $0x18] sm:$0xff]   ;;  %v15158_v18 = vld [vmem:[%s19951_s3 + $0x108] sm:$0xff]  }
 0x4f5   : > { %14134 = vmatmul.mubr.bf16.gmra.mrb[20].mxu1 %v20125_v41  ;;  %20130 = vst [vmem:[#allocation23_spill] sm:$0xff] %v18765_v39  ;;  %20131 = vst [vmem:[#allocation24_spill] sm:$0xff] %v18771_v1  ;;  %v9819_v60 = vrot.slane %v9817_v16, 4  ;;  %v18781_v42 = vsel %vm16147_vm14, %v12888_v40, %v9817_v16  ;;  %v15154_v41 = vld [vmem:[#allocation2 + $0xc] sm:$0xff]   ;;  %v20137_v29 = vcombine.low %v18468_v43, %v18472_v15  ;;  %v15157_v57 = vld [vmem:[#allocation2 + $0x24] sm:$0xff]   ;;  %v9008_v61 = vshll.u32 %v18566_v23, 16 }
 0x4f6   : > { %14137 = vmatprep.mubr.bf16.mxu1 %v20127_v19  ;;  %v18775_v13 = vsel %vm16147_vm14, %v9812_v20, %v9813_v31  ;;  %20133 = vst [vmem:[#allocation26_spill] sm:$0xff] %v18781_v42  ;;  %v20136_v19 = vcombine.low %v18455_v25, %v18459_v12  ;;  %v15161_v25 = vld [vmem:[%s19951_s3 + $0x110] sm:$0xff]   ;;  %v15164_v12 = vld [vmem:[%s19951_s3 + $0x118] sm:$0xff]   ;;  %v8892_v43 = vld [vmem:[#allocation2 + $0xc] sm:$0xf]  ;;  %v9026_v23 = vshrl.u32 %v18561_v17, 16 }
 0x4f7   : > { %20132 = vst [vmem:[#allocation25_spill] sm:$0xff] %v18775_v13  ;;  %v18785_v38 = vsel %vm16147_vm14, %v9819_v60, %v9820_v44  ;;  %v15159_v54 = vld [vmem:[#allocation2 + $0x30] sm:$0xff]   ;;  %v15160_v15 = vld [vmem:[#allocation2 + $0x3c] sm:$0xff]   ;;  %v8944_v33 = vshll.u32 %v8892_v43, 16  ;;  %v8895_v20 = vld [vmem:[#allocation2 + $0x18] sm:$0xf] }
 0x4f8   : > { %20134 = vst [vmem:[#allocation27_spill] sm:$0xff] %v18785_v38  ;;  %v18808_v31 = vld [vmem:[#allocation2 + $0x10] sm:$0xf]  ;;  %v15167_v40 = vld [vmem:[%s19951_s3 + $0x120] sm:$0xff]   ;;  %v18813_v16 = vld [vmem:[#allocation2 + $0x1c] sm:$0xf] }
 0x4f9   : > { %v8950_v44 = vshll.u32 %v18808_v31, 16  ;;  %v8954_v60 = vshrl.u32 %v18808_v31, 16  ;;  %v15173_v38 = vld [vmem:[%s19951_s3 + $0x130] sm:$0xff]   ;;  %v15165_v42 = vld [vmem:[#allocation2 + $0x60] sm:$0xff]   ;;  %v8904_v9 = vld [vmem:[#allocation2 + $0x3c] sm:$0xf] }
 0x4fb   : > { %v8952_v0 = vrot.slane %v8950_v44, 5 }
 0x4fd   : > { %14138 = vmatmul.mubr.bf16.gmra.mrb[24].mxu1 %v20135_v62  ;;  %v8965_v62 = vshrl.u32 %v8895_v20, 16 }
 0x4fe   : > { %14141 = vmatprep.mubr.bf16.mxu1 %v20136_v19  ;;  %v8968_v19 = vshll.u32 %v8895_v20, 16  ;;  %v8956_v20 = vrot.slane %v8954_v60, 4  ;;  %v8998_v60 = vshll.u32 %v18559_v37, 16 }
 0x500   : > { %v18839_v39 = vrot.slane %v8998_v60, 5 }
 0x505   : > { %14142 = vmatmul.mubr.bf16.gmra.mrb[28].mxu1 %v20137_v29  ;;  %v8946_v29 = vrot.slane %v8944_v33, 5 }
 0x506   : > { %14161 = vmatprep.mubr.bf16.mxu1 %v15154_v41 }
 0x50d   : > { %14162 = vmatmul.mubr.bf16.vlgmr.msra.gmra.mrb[0].mxu1 %v15156_v55  ;;  %v8974_v55 = vshll.u32 %v18813_v16, 16 }
 0x50e   : > { %14194 = vmatpush3.bf16.msra.mxu1 %v18622_v49  ;;  %14165 = vmatprep.mubr.bf16.mxu1 %v15157_v57  ;;  %v8941_v49 = vshrl.u32 %v8892_v43, 16  ;;  %v15162_v57 = vld [vmem:[#allocation2 + $0x48] sm:$0xff]   ;;  %v15163_v43 = vld [vmem:[#allocation2 + $0x54] sm:$0xff]  }
 0x50f   : > { %14195 = vmatprep.subr.bf16.mxu1 %v15158_v18  ;;  %v18827_v4 = vrot.slane %v8974_v55, 5 }
 0x510   : > { %v8943_v41 = vrot.slane %v8941_v49, 4  ;;  %v8970_v49 = vrot.slane %v8968_v19, 5 }
 0x512   : > { %14196 = vmatpush3.bf16.msra.mxu1 %v15158_v18  ;;  %v8978_v18 = vshrl.u32 %v18813_v16, 16  ;;  %v8947_v33 = vor.u32 %v8946_v29, %v8943_v41  ;;  %v8901_v41 = vld [vmem:[#allocation2 + $0x30] sm:$0xf] }
 0x513   : > { %14197 = vmatprep.subr.bf16.mxu1 %v15161_v25 }
 0x514   : > { %v8980_v35 = vrot.slane %v8978_v18, 4  ;;  %v8948_v29 = vrot.slane %v8947_v33, 4  ;;  %v8984_v18 = vshll.u32 %v18825_v22, 16 }
 0x515   : > { %14166 = vmatmul.mubr.bf16.gmra.mrb[4].mxu1 %v15159_v54  ;;  %v18822_v54 = vld [vmem:[#allocation2 + $0x14] sm:$0x1] }
 0x516   : > { %14169 = vmatprep.mubr.bf16.mxu1 %v15160_v15  ;;  %14198 = vmatpush3.bf16.msra.mxu1 %v15161_v25  ;;  %v15170_v25 = vld [vmem:[%s19951_s3 + $0x128] sm:$0xff]   ;;  %v8898_v15 = vld [vmem:[#allocation2 + $0x24] sm:$0xf]  ;;  %v8960_v7 = vshll.u32 %v18822_v54, 16  ;;  %v8981_v55 = vor.u32 %v8980_v35, %v18827_v4  ;;  %v8953_v35 = vsel %vm15643_vm11, %v8948_v29, %v8952_v0  ;;  %v8986_v33 = vrot.slane %v8984_v18, 5 }
 0x517   : > { %14199 = vmatprep.subr.bf16.mxu1 %v15164_v12  ;;  %v8992_v44 = vshll.u32 %v8898_v15, 16  ;;  %v9037_v18 = vshrl.u32 %v8904_v9, 16 }
 0x519   : > { %v8994_v1 = vrot.slane %v8992_v44, 5  ;;  %v18849_v44 = vld [vmem:[%s19951_s3 + $0x140] sm:$0xff]  }
 0x51a   : > { %14200 = vmatpush3.bf16.msra.mxu1 %v15164_v12  ;;  %v8967_v12 = vrot.slane %v8965_v62, 4  ;;  %v9002_v62 = vshrl.u32 %v18559_v37, 16 }
 0x51b   : > { %14201 = vmatprep.subr.bf16.mxu1 %v15167_v40 }
 0x51c   : > { %v8971_v19 = vor.u32 %v8970_v49, %v8967_v12  ;;  %v9004_v37 = vrot.slane %v9002_v62, 4  ;;  %v9013_v12 = vshrl.u32 %v8901_v41, 16  ;;  %v8907_v62 = vld [vmem:[#allocation2 + $0x48] sm:$0xf] }
 0x51d   : > { %14170 = vmatmul.mubr.bf16.gmra.mrb[8].mxu1 %v15162_v57  ;;  %v8989_v57 = vshrl.u32 %v8898_v15, 16  ;;  %v15176_v15 = vld [vmem:[%s19951_s3 + $0x138] sm:$0xff]  }
 0x51e   : > { %14173 = vmatprep.mubr.bf16.mxu1 %v15163_v43  ;;  %14202 = vmatpush3.bf16.msra.mxu1 %v15167_v40  ;;  %v8957_v40 = vor.u32 %v8956_v20, %v8952_v0  ;;  %v8962_v43 = vrot.slane %v8960_v7, 5  ;;  %v15166_v20 = vld [vmem:[#allocation2 + $0x6c] sm:$0xff]   ;;  %v8972_v49 = vrot.slane %v8971_v19, 4  ;;  %v9022_v19 = vshll.u32 %v18561_v17, 16 }
 0x51f   : > { %14203 = vmatprep.subr.bf16.mxu1 %v15170_v25  ;;  %v8991_v13 = vrot.slane %v8989_v57, 4 }
 0x520   : > { %v8958_v7 = vrot.slane %v8957_v40, 4  ;;  %v9015_v40 = vrot.slane %v9013_v12, 4  ;;  %v15168_v12 = vld [vmem:[#allocation2 + $0x78] sm:$0xff]   ;;  %v18862_v27 = vrot.slane %v9022_v19, 5  ;;  %v9094_v19 = vshll.u32 %v18582_v36, 16 }
 0x521   : > { %v8995_v60 = vor.u32 %v8994_v1, %v8991_v13  ;;  %v9010_v13 = vrot.slane %v9008_v61, 5  ;;  %v9046_v61 = vshll.u32 %v18570_v58, 16 }
 0x522   : > { %14204 = vmatpush3.bf16.msra.mxu1 %v15170_v25  ;;  %v9016_v25 = vshll.u32 %v8901_v41, 16  ;;  %v8963_v57 = vsel %vm15643_vm11, %v8958_v7, %v8962_v43  ;;  %v8910_v41 = vld [vmem:[#allocation2 + $0x54] sm:$0xf]  ;;  %v8977_v43 = vsel %vm15643_vm11, %v8972_v49, %v18827_v4  ;;  %v9028_v4 = vrot.slane %v9026_v23, 4 }
 0x523   : > { %14205 = vmatprep.subr.bf16.mxu1 %v15173_v38  ;;  %v18854_v29 = vcombine.low %v8953_v35, %v8963_v57  ;;  %v8996_v17 = vrot.slane %v8995_v60, 4  ;;  %v9085_v7 = vshrl.u32 %v8910_v41, 16  ;;  %v9088_v35 = vshll.u32 %v8910_v41, 16  ;;  %v15169_v57 = vld [vmem:[#allocation2 + $0x84] sm:$0xff]  }
 0x524   : > { %v9018_v0 = vrot.slane %v9016_v25, 5 }
 0x525   : > { %14174 = vmatmul.mubr.bf16.gmra.mrb[12].mxu1 %v15165_v42  ;;  %v8982_v42 = vrot.slane %v8981_v55, 4  ;;  %v9061_v55 = vshrl.u32 %v8907_v62, 16  ;;  %v9001_v41 = vsel %vm15643_vm11, %v8996_v17, %v18839_v39  ;;  %v9096_v17 = vrot.slane %v9094_v19, 5 }
 0x526   : > { %14177 = vmatprep.mubr.bf16.mxu1 %v15166_v20  ;;  %14206 = vmatpush3.bf16.msra.mxu1 %v15173_v38  ;;  %v9005_v38 = vor.u32 %v9004_v37, %v18839_v39  ;;  %v9040_v20 = vshll.u32 %v8904_v9, 16  ;;  %v9064_v37 = vshll.u32 %v8907_v62, 16  ;;  %v9019_v24 = vor.u32 %v9018_v0, %v9015_v40 }
 0x527   : > { %14207 = vmatprep.subr.bf16.mxu1 %v15176_v15  ;;  %v8987_v1 = vsel %vm15643_vm11, %v8982_v42, %v8986_v33  ;;  %v9032_v9 = vshll.u32 %v18568_v63, 16  ;;  %v9050_v33 = vshrl.u32 %v18570_v58, 16  ;;  %v9063_v42 = vrot.slane %v9061_v55, 4 }
 0x528   : > { %v9006_v25 = vrot.slane %v9005_v38, 4  ;;  %v9042_v49 = vrot.slane %v9040_v20, 5  ;;  %v9066_v60 = vrot.slane %v9064_v37, 5  ;;  %v9070_v38 = vshll.u32 %v18578_v52, 16 }
 0x529   : > { %v9074_v62 = vshrl.u32 %v18578_v52, 16  ;;  %v9087_v40 = vrot.slane %v9085_v7, 4  ;;  %v9090_v0 = vrot.slane %v9088_v35, 5  ;;  %v9098_v63 = vshrl.u32 %v18582_v36, 16  ;;  %v15171_v35 = vld [vmem:[#allocation2 + $0x90] sm:$0xff]  }
 0x52a   : > { %14208 = vmatpush3.bf16.msra.mxu1 %v15176_v15  ;;  %v9039_v15 = vrot.slane %v9037_v18, 4  ;;  %v18871_v23 = vcombine.low %v8977_v43, %v8987_v1  ;;  %v9011_v58 = vsel %vm15643_vm11, %v9006_v25, %v9010_v13  ;;  %v9034_v18 = vrot.slane %v9032_v9, 5  ;;  %v15172_v13 = vld [vmem:[#allocation2 + $0x9c] sm:$0xff]  }
 0x52b   : > { %14241 = vmatprep.subr.bf16.mxu1 %v18849_v44  ;;  %v9020_v20 = vrot.slane %v9019_v24, 4  ;;  %v9029_v55 = vor.u32 %v9028_v4, %v18862_v27  ;;  %v18879_v52 = vrot.slane %v9046_v61, 5  ;;  %v9052_v37 = vrot.slane %v9050_v33, 4 }
 0x52c   : > { %v9043_v7 = vor.u32 %v9042_v49, %v9039_v15  ;;  %v9056_v36 = vshll.u32 %v18573_v59, 16  ;;  %v9067_v43 = vor.u32 %v9066_v60, %v9063_v42  ;;  %v18882_v1 = vrot.slane %v9070_v38, 5 }
 0x52d   : > { %14178 = vmatmul.mubr.bf16.gmra.mrb[16].mxu1 %v15168_v12  ;;  %v8913_v12 = vld [vmem:[#allocation2 + $0x60] sm:$0xf]  ;;  %v9091_v39 = vor.u32 %v9090_v0, %v9087_v40  ;;  %v9100_v53 = vrot.slane %v9098_v63, 4  ;;  %v9118_v4 = vshll.u32 %v18594_v56, 16  ;;  %v9122_v9 = vshrl.u32 %v18594_v56, 16 }
 0x52e   : > { %14181 = vmatprep.mubr.bf16.mxu1 %v15169_v57  ;;  %v9076_v57 = vrot.slane %v9074_v62, 4  ;;  %v9109_v25 = vshrl.u32 %v8913_v12, 16  ;;  %v9112_v24 = vshll.u32 %v8913_v12, 16  ;;  %v18886_v61 = vcombine.low %v9001_v41, %v9011_v58  ;;  %v8916_v62 = vld [vmem:[#allocation2 + $0x6c] sm:$0xf] }
 0x52f   : > { %v9025_v59 = vsel %vm15643_vm11, %v9020_v20, %v18862_v27  ;;  %v9030_v15 = vrot.slane %v9029_v55, 4  ;;  %v9053_v49 = vor.u32 %v9052_v37, %v18879_v52  ;;  %v9044_v33 = vrot.slane %v9043_v7, 4 }
 0x530   : > { %v9058_v42 = vrot.slane %v9056_v36, 5  ;;  %v9080_v60 = vshll.u32 %v18580_v11, 16  ;;  %v9104_v38 = vshll.u32 %v18592_v21, 16  ;;  %v9068_v40 = vrot.slane %v9067_v43, 4 }
 0x531   : > { %v9077_v56 = vor.u32 %v9076_v57, %v18882_v1  ;;  %v9092_v0 = vrot.slane %v9091_v39, 4  ;;  %v9101_v19 = vor.u32 %v9100_v53, %v9096_v17  ;;  %v9111_v63 = vrot.slane %v9109_v25, 4  ;;  %v15174_v53 = vld [vmem:[#allocation2 + $0xa8] sm:$0xff]   ;;  %v8919_v39 = vld [vmem:[#allocation2 + $0x78] sm:$0xf] }
 0x532   : > { %v9114_v41 = vrot.slane %v9112_v24, 5  ;;  %v18895_v58 = vrot.slane %v9118_v4, 5  ;;  %v9124_v27 = vrot.slane %v9122_v9, 4  ;;  %v9035_v20 = vsel %vm15643_vm11, %v9030_v15, %v9034_v18  ;;  %v18913_v9 = vld [vmem:[#allocation2 + $0x34] sm:$0xf] }
 0x533   : > { %v9054_v55 = vrot.slane %v9053_v49, 4  ;;  %v9133_v37 = vshrl.u32 %v8916_v62, 16  ;;  %v9136_v12 = vshll.u32 %v8916_v62, 16  ;;  %v18899_v11 = vcombine.low %v9025_v59, %v9035_v20  ;;  %20138 = vst [vmem:[#allocation28_spill] sm:$0xff] %v18913_v9  ;;  %v11286_v49 = vld [vmem:[#allocation2 + $0x30] sm:$0xe] }
 0x534   : > { %v9049_v21 = vsel %vm15643_vm11, %v9044_v33, %v18879_v52  ;;  %v9082_v7 = vrot.slane %v9080_v60, 5  ;;  %v9106_v36 = vrot.slane %v9104_v38, 5  ;;  %v9078_v18 = vrot.slane %v9077_v56, 4  ;;  %v18927_v38 = vld [vmem:[#allocation2 + $0x38] sm:$0x1] }
 0x535   : > { %14182 = vmatmul.mubr.bf16.gmra.mrb[20].mxu1 %v15171_v35  ;;  %v9059_v43 = vsel %vm15643_vm11, %v9054_v55, %v9058_v42  ;;  %v9073_v35 = vsel %vm15643_vm11, %v9068_v40, %v18882_v1  ;;  %v9128_v57 = vshll.u32 %v18611_v48, 16  ;;  %v9097_v25 = vsel %vm15643_vm11, %v9092_v0, %v9096_v17  ;;  %20139 = vst [vmem:[#allocation29_spill] sm:$0xff] %v18927_v38  ;;  %v18935_v0 = vld [vmem:[#allocation2 + $0x40] sm:$0xf] }
 0x536   : > { %14185 = vmatprep.mubr.bf16.mxu1 %v15172_v13  ;;  %v15175_v13 = vld [vmem:[#allocation2 + $0xb4] sm:$0xff]   ;;  %v9102_v24 = vrot.slane %v9101_v19, 4  ;;  %v9115_v52 = vor.u32 %v9114_v41, %v9111_v63  ;;  %v9125_v4 = vor.u32 %v9124_v27, %v18895_v58  ;;  %v18915_v59 = vrot.slane %v9133_v37, 4  ;;  %20140 = vst [vmem:[#allocation30_spill] sm:$0xff] %v18935_v0  ;;  %v18937_v19 = vld [vmem:[#allocation2 + $0x44] sm:$0x1] }
 0x537   : > { %v18917_v15 = vrot.slane %v9136_v12, 5  ;;  %v9142_v1 = vshll.u32 %v18624_v6, 16  ;;  %v9146_v48 = vshrl.u32 %v18624_v6, 16  ;;  %v18921_v33 = vcombine.low %v9049_v21, %v9059_v43  ;;  %20141 = vst [vmem:[#allocation31_spill] sm:$0xff] %v18937_v19  ;;  %v18943_v27 = vld [vmem:[#allocation2 + $0x4c] sm:$0xf] }
 0x538   : > { %v9083_v17 = vsel %vm15643_vm11, %v9078_v18, %v9082_v7  ;;  %v9107_v42 = vsel %vm15643_vm11, %v9102_v24, %v9106_v36  ;;  %v9157_v60 = vshrl.u32 %v8919_v39, 16  ;;  %v18933_v56 = vrot.slane %v9128_v57, 5  ;;  %20142 = vst [vmem:[#allocation32_spill] sm:$0xff] %v18943_v27  ;;  %v11287_v37 = vld [vmem:[#allocation2 + $0x3c] sm:$0xe]  ;;  %v15177_v12 = vld [vmem:[#allocation2 + $0xc0] sm:$0xff]  }
 0x539   : > { %v18929_v62 = vcombine.low %v9073_v35, %v9083_v17  ;;  %v18931_v40 = vcombine.low %v9097_v25, %v9107_v42  ;;  %v9160_v6 = vshll.u32 %v8919_v39, 16  ;;  %v18939_v63 = vrot.slane %v9115_v52, 4  ;;  %v18954_v43 = vld [vmem:[#allocation2 + $0x58] sm:$0xf]  ;;  %v11288_v18 = vld [vmem:[#allocation2 + $0x48] sm:$0xe] }
 0x53a   : > { %v18941_v41 = vrot.slane %v9125_v4, 4  ;;  %v13011_v20 = vrot.slane %v11286_v49, 9  ;;  %v11364_v55 = vrot.slane %v18913_v9, 5  ;;  %v18948_v7 = vrot.slane %v9142_v1, 5  ;;  %20144 = vst [vmem:[#allocation34_spill] sm:$0xff] %v18954_v43 }
 0x53b   : > { %v18950_v36 = vrot.slane %v9146_v48, 4  ;;  %v11367_v35 = vrot.slane %v18927_v38, 5  ;;  %v18958_v39 = vrot.slane %v9157_v60, 4  ;;  %v10547_v25 = vld [vmem:[#allocation2 + $0x5c] sm:$0x1]  ;;  %v18961_v52 = vrot.slane %v9160_v6, 5 }
 0x53c   : > { %v11366_v24 = vrot.slane %v11364_v55, 4  ;;  %v13012_v1 = vrot.slane %v11287_v37, 9  ;;  %v11371_v48 = vrot.slane %v18935_v0, 5  ;;  %v11289_v49 = vld [vmem:[#allocation2 + $0x54] sm:$0xe]  ;;  %v18969_v42 = vsel %vm16147_vm14, %v13011_v20, %v11364_v55 }
 0x53d   : > { %14186 = vmatmul.mubr.bf16.gmra.mrb[24].mxu1 %v15174_v53  ;;  %v18952_v53 = vld [vmem:[#allocation2 + $0x50] sm:$0x1]  ;;  %v18965_v17 = vld [vmem:[#allocation2 + $0x64] sm:$0xf]  ;;  %20146 = vst [vmem:[#allocation36_spill] sm:$0xff] %v18969_v42  ;;  %v13013_v6 = vrot.slane %v11288_v18, 9 }
 0x53e   : > { %14189 = vmatprep.mubr.bf16.mxu1 %v15175_v13  ;;  %20143 = vst [vmem:[#allocation33_spill] sm:$0xff] %v18952_v53  ;;  %20145 = vst [vmem:[#allocation35_spill] sm:$0xff] %v18965_v17  ;;  %v18973_v60 = vsel %vm16147_vm14, %v11366_v24, %v11367_v35  ;;  %v11374_v13 = vrot.slane %v18937_v19, 5  ;;  %v11290_v57 = vld [vmem:[#allocation2 + $0x60] sm:$0xe]  ;;  %v18980_v38 = vsel %vm16147_vm14, %v13012_v1, %v11371_v48  ;;  %v11373_v20 = vrot.slane %v11371_v48, 4 }
 0x53f   : > { %20147 = vst [vmem:[#allocation37_spill] sm:$0xff] %v18973_v60  ;;  %v10550_v4 = vld [vmem:[#allocation2 + $0x68] sm:$0x1]  ;;  %v10552_v37 = vld [vmem:[#allocation2 + $0x70] sm:$0xf]  ;;  %20148 = vst [vmem:[#allocation38_spill] sm:$0xff] %v18980_v38 }
 0x540   : > { %v11378_v55 = vrot.slane %v18943_v27, 5  ;;  %v11381_v35 = vrot.slane %v18952_v53, 5  ;;  %v13014_v24 = vrot.slane %v11289_v49, 9  ;;  %v11385_v18 = vrot.slane %v18954_v43, 5  ;;  %v11291_v19 = vld [vmem:[#allocation2 + $0x6c] sm:$0xe] }
 0x541   : > { %v10553_v0 = vld [vmem:[#allocation2 + $0x74] sm:$0x1]  ;;  %v10555_v9 = vld [vmem:[#allocation2 + $0x7c] sm:$0xf]  ;;  %v18988_v21 = vsel %vm16147_vm14, %v11373_v20, %v11374_v13  ;;  %v13015_v60 = vrot.slane %v11290_v57, 9  ;;  %v11392_v43 = vrot.slane %v18965_v17, 5 }
 0x542   : > { %20149 = vst [vmem:[#allocation39_spill] sm:$0xff] %v18988_v21  ;;  %v18992_v1 = vsel %vm16147_vm14, %v13013_v6, %v11378_v55  ;;  %v11380_v48 = vrot.slane %v11378_v55, 4  ;;  %v10558_v42 = vld [vmem:[#allocation2 + $0x88] sm:$0xf]  ;;  %v11387_v53 = vrot.slane %v11385_v18, 4  ;;  %v11395_v6 = vrot.slane %v10550_v4, 5 }
 0x543   : > { %20150 = vst [vmem:[#allocation40_spill] sm:$0xff] %v18992_v1  ;;  %v10559_v13 = vld [vmem:[#allocation2 + $0x8c] sm:$0x1]  ;;  %v13016_v55 = vrot.slane %v11291_v19, 9  ;;  %v11399_v57 = vrot.slane %v10552_v37, 5  ;;  %v11394_v21 = vrot.slane %v11392_v43, 4 }
 0x544   : > { %v19003_v20 = vsel %vm16147_vm14, %v11380_v48, %v11381_v35  ;;  %v11292_v27 = vld [vmem:[#allocation2 + $0x78] sm:$0xe]  ;;  %v11293_v38 = vld [vmem:[#allocation2 + $0x84] sm:$0xe]  ;;  %v15179_v19 = vld [vmem:[%s19951_s3 + $0x148] sm:$0xff]   ;;  %v11406_v49 = vrot.slane %v10555_v9, 5 }
 0x545   : > { %14190 = vmatmul.mubr.bf16.gmra.mrb[28].mxu1 %v15177_v12  ;;  %v11388_v12 = vrot.slane %v10547_v25, 5  ;;  %v18998_v25 = vsel %vm16147_vm14, %v13014_v24, %v11385_v18  ;;  %20151 = vst [vmem:[#allocation41_spill] sm:$0xff] %v19003_v20  ;;  %v19013_v18 = vsel %vm16147_vm14, %v13015_v60, %v11392_v43  ;;  %v10562_v4 = vld [vmem:[#allocation2 + $0x98] sm:$0x1]  ;;  %v10564_v37 = vld [vmem:[#allocation2 + $0xa0] sm:$0xf]  ;;  %v19022_v48 = vsel %vm16147_vm14, %v13016_v55, %v11399_v57 }
 0x546   : > { %14209 = vmatprep.mubr.bf16.mxu1 %v18854_v29  ;;  %v10556_v29 = vld [vmem:[#allocation2 + $0x80] sm:$0x1]  ;;  %20153 = vst [vmem:[#allocation43_spill] sm:$0xff] %v19022_v48  ;;  %v19026_v60 = vsel %vm16147_vm14, %v11394_v21, %v11395_v6  ;;  %v13017_v43 = vrot.slane %v11292_v27, 9  ;;  %v11294_v1 = vld [vmem:[#allocation2 + $0x90] sm:$0xe] }
 0x547   : > { %v19009_v24 = vsel %vm16147_vm14, %v11387_v53, %v11388_v12  ;;  %v11401_v53 = vrot.slane %v11399_v57, 4  ;;  %v11402_v12 = vrot.slane %v10553_v0, 5  ;;  %20154 = vst [vmem:[#allocation44_spill] sm:$0xff] %v19026_v60  ;;  %v11409_v20 = vrot.slane %v10556_v29, 5  ;;  %v10565_v17 = vld [vmem:[#allocation2 + $0xa4] sm:$0x1] }
 0x548   : > { %20152 = vst [vmem:[#allocation42_spill] sm:$0xff] %v19009_v24  ;;  %v13018_v57 = vrot.slane %v11293_v38, 9  ;;  %v11413_v0 = vrot.slane %v10558_v42, 5  ;;  %v11295_v24 = vld [vmem:[#allocation2 + $0x9c] sm:$0xe]  ;;  %v19041_v21 = vsel %vm16147_vm14, %v13017_v43, %v11406_v49  ;;  %v11408_v29 = vrot.slane %v11406_v49, 4 }
 0x549   : > { %v19033_v55 = vsel %vm16147_vm14, %v11401_v53, %v11402_v12  ;;  %v10567_v9 = vld [vmem:[#allocation2 + $0xac] sm:$0xf]  ;;  %v10568_v27 = vld [vmem:[#allocation2 + $0xb0] sm:$0x1]  ;;  %v11416_v6 = vrot.slane %v10559_v13, 5  ;;  %v13019_v53 = vrot.slane %v11294_v1, 9 }
 0x54a   : > { %20155 = vst [vmem:[#allocation45_spill] sm:$0xff] %v19033_v55  ;;  %v15180_v38 = vld [vmem:[%s19951_s3 + $0x150] sm:$0xff]   ;;  %v10570_v42 = vld [vmem:[#allocation2 + $0xb8] sm:$0xf]  ;;  %v11420_v12 = vrot.slane %v10561_v8, 5  ;;  %v19054_v43 = vsel %vm16147_vm14, %v11408_v29, %v11409_v20  ;;  %v11423_v49 = vrot.slane %v10562_v4, 5 }
 0x54b   : > { %20157 = vst [vmem:[#allocation47_spill] sm:$0xff] %v19054_v43  ;;  %v13020_v13 = vrot.slane %v11295_v24, 9  ;;  %v11427_v35 = vrot.slane %v10564_v37, 5  ;;  %v11296_v55 = vld [vmem:[#allocation2 + $0xa8] sm:$0xe]  ;;  %v11430_v60 = vrot.slane %v10565_v17, 5 }
 0x54c   : > { %v10571_v48 = vld [vmem:[#allocation2 + $0xbc] sm:$0x1]  ;;  %v19064_v8 = vsel %vm16147_vm14, %v13019_v53, %v11420_v12  ;;  %v11422_v1 = vrot.slane %v11420_v12, 4  ;;  %v10573_v20 = vld [vmem:[#allocation2 + $0xc4] sm:$0xf]  ;;  %v11434_v53 = vrot.slane %v10567_v9, 5 }
 0x54d   : > { %14210 = vmatmul.mubr.bf16.vlgmr.msra.gmra.mrb[0].mxu1 %v18871_v23  ;;  %v19050_v23 = vld [vmem:[#allocation2 + $0x84] sm:$0xf]  ;;  %v10574_v4 = vld [vmem:[#allocation2 + $0xc8] sm:$0x1]  ;;  %v19070_v37 = vsel %vm16147_vm14, %v13020_v13, %v11427_v35  ;;  %v11429_v29 = vrot.slane %v11427_v35, 4  ;;  %v11437_v12 = vrot.slane %v10568_v27, 5 }
 0x54e   : > { %14242 = vmatpush3.bf16.msra.mxu1 %v18849_v44  ;;  %14213 = vmatprep.mubr.bf16.mxu1 %v18886_v61  ;;  %v19048_v44 = vsel %vm16147_vm14, %v13018_v57, %v11413_v0  ;;  %v11415_v61 = vrot.slane %v11413_v0, 4  ;;  %v11297_v0 = vld [vmem:[#allocation2 + $0xb4] sm:$0xe]  ;;  %v11298_v43 = vld [vmem:[#allocation2 + $0xc0] sm:$0xe]  ;;  %v11436_v9 = vrot.slane %v11434_v53, 4 }
 0x54f   : > { %14243 = vmatprep.subr.bf16.mxu1 %v15179_v19  ;;  %20156 = vst [vmem:[#allocation46_spill] sm:$0xff] %v19048_v44  ;;  %v10576_v24 = vld [vmem:[#allocation2 + $0xd0] sm:$0xf]  ;;  %v19083_v17 = vsel %vm16147_vm14, %v11429_v29, %v11430_v60  ;;  %v13022_v35 = vrot.slane %v11297_v0, 9  ;;  %v11299_v44 = vld [vmem:[#allocation2 + $0xcc] sm:$0xe] }
 0x550   : > { %v19060_v57 = vsel %vm16147_vm14, %v11415_v61, %v11416_v6  ;;  %v15181_v6 = vld [vmem:[%s19951_s3 + $0x158] sm:$0xff]   ;;  %v19077_v61 = vsel %vm16147_vm14, %v11422_v1, %v11423_v49  ;;  %v9181_v49 = vshrl.u32 %v19050_v23, 16  ;;  %v11444_v27 = vrot.slane %v10571_v48, 5  ;;  %v10577_v1 = vld [vmem:[#allocation2 + $0xd4] sm:$0x1]  ;;  %v20218_v26 = vld [vmem:[#allocation44_spill] sm:$0xff] }
 0x551   : > { %20158 = vst [vmem:[#allocation48_spill] sm:$0xff] %v19060_v57  ;;  %v11441_v57 = vrot.slane %v10570_v42, 5  ;;  %v13023_v42 = vrot.slane %v11298_v43, 9  ;;  %v11448_v29 = vrot.slane %v10573_v20, 5  ;;  %v11451_v48 = vrot.slane %v10574_v4, 5 }
 0x552   : > { %14244 = vmatpush3.bf16.msra.mxu1 %v15179_v19  ;;  %v13021_v19 = vrot.slane %v11296_v55, 9  ;;  %v19099_v55 = vsel %vm16147_vm14, %v11436_v9, %v11437_v12  ;;  %v9190_v9 = vshll.u32 %v18652_v10, 16 }
 0x553   : > { %14245 = vmatprep.subr.bf16.mxu1 %v15180_v38  ;;  %v11443_v0 = vrot.slane %v11441_v57, 4  ;;  %v11450_v20 = vrot.slane %v11448_v29, 4 }
 0x554   : > { %v19092_v60 = vsel %vm16147_vm14, %v13021_v19, %v11434_v53  ;;  %v19105_v19 = vsel %vm16147_vm14, %v13022_v35, %v11441_v57  ;;  %v9184_v53 = vshll.u32 %v19050_v23, 16  ;;  %v19119_v57 = vsel %vm16147_vm14, %v13023_v42, %v11448_v29 }
 0x555   : > { %14214 = vmatmul.mubr.bf16.gmra.mrb[4].mxu1 %v18899_v11  ;;  %v15182_v11 = vld [vmem:[%s19951_s3 + $0x160] sm:$0xff]   ;;  %v13053_v13 = vcombine.low %v19092_v60, %v19099_v55  ;;  %v19109_v43 = vsel %vm16147_vm14, %v11443_v0, %v11444_v27  ;;  %v19123_v35 = vsel %vm16147_vm14, %v11450_v20, %v11451_v48  ;;  %v9194_v23 = vshrl.u32 %v18652_v10, 16  ;;  %v8925_v27 = vld [vmem:[#allocation2 + $0x90] sm:$0xf] }
 0x556   : > { %14217 = vmatprep.mubr.bf16.mxu1 %v18921_v33  ;;  %14246 = vmatpush3.bf16.msra.mxu1 %v15180_v38  ;;  %v13024_v33 = vrot.slane %v11299_v44, 9  ;;  %v11455_v38 = vrot.slane %v10576_v24, 5  ;;  %v11458_v44 = vrot.slane %v10577_v1, 5  ;;  %v9149_v24 = vor.u32 %v18950_v36, %v18948_v7 }
 0x557   : > { %14247 = vmatprep.subr.bf16.mxu1 %v15181_v6  ;;  %v20159_v42 = vor.u32 %v18917_v15, %v18915_v59  ;;  %v20160_v29 = vshll.u32 %v18632_v46, 16  ;;  %v20161_v20 = vshll.u32 %v18642_v47, 16  ;;  %v9183_v59 = vrot.slane %v9181_v49, 4 }
 0x558   : > { %v11457_v4 = vrot.slane %v11455_v38, 4  ;;  %v19133_v1 = vsel %vm16147_vm14, %v13024_v33, %v11455_v38  ;;  %v9163_v33 = vor.u32 %v18961_v52, %v18958_v39  ;;  %v20162_v38 = vshrl.u32 %v18642_v47, 16 }
 0x559   : > { %v9140_v10 = vrot.slane %v20159_v42, 4  ;;  %v9154_v48 = vrot.slane %v20160_v29, 5  ;;  %v19146_v12 = vrot.slane %v20161_v20, 5  ;;  %v9186_v15 = vrot.slane %v9184_v53, 5 }
 0x55a   : > { %14248 = vmatpush3.bf16.msra.mxu1 %v15181_v6  ;;  %v15183_v6 = vld [vmem:[%s19951_s3 + $0x168] sm:$0xff]   ;;  %v19137_v0 = vsel %vm16147_vm14, %v11457_v4, %v11458_v44  ;;  %v9172_v4 = vrot.slane %v20162_v38, 4  ;;  %v8928_v44 = vld [vmem:[#allocation2 + $0x9c] sm:$0xf]  ;;  %v9121_v46 = vsel %vm15643_vm11, %v18939_v63, %v18895_v58  ;;  %v9150_v42 = vrot.slane %v9149_v24, 4 }
 0x55b   : > { %14249 = vmatprep.subr.bf16.mxu1 %v15182_v11  ;;  %v13056_v36 = vcombine.low %v19133_v1, %v19137_v0  ;;  %v9205_v29 = vshrl.u32 %v8925_v27, 16  ;;  %v9131_v47 = vsel %vm15643_vm11, %v18941_v41, %v18933_v56  ;;  %v9176_v39 = vshll.u32 %v18644_v51, 16 }
 0x55c   : > { %v19165_v52 = vrot.slane %v9190_v9, 5  ;;  %v9196_v49 = vrot.slane %v9194_v23, 4  ;;  %v9145_v58 = vsel %vm15643_vm11, %v9140_v10, %v18948_v7  ;;  %v9155_v63 = vsel %vm15643_vm11, %v9150_v42, %v9154_v48 }
 0x55d   : > { %14218 = vmatmul.mubr.bf16.gmra.mrb[8].mxu1 %v18929_v62  ;;  %v9208_v62 = vshll.u32 %v8925_v27, 16  ;;  %v9232_v53 = vshll.u32 %v8928_v44, 16  ;;  %v9164_v56 = vrot.slane %v9163_v33, 4  ;;  %v9173_v51 = vor.u32 %v9172_v4, %v19146_v12  ;;  %v15185_v33 = vld [vmem:[%s19951_s3 + $0x178] sm:$0xff]  }
 0x55e   : > { %14221 = vmatprep.mubr.bf16.mxu1 %v18931_v40  ;;  %14250 = vmatpush3.bf16.msra.mxu1 %v15182_v11  ;;  %v15184_v40 = vld [vmem:[%s19951_s3 + $0x170] sm:$0xff]   ;;  %v9229_v11 = vshrl.u32 %v8928_v44, 16  ;;  %v9187_v41 = vor.u32 %v9186_v15, %v9183_v59  ;;  %v9200_v24 = vshll.u32 %v18667_v5, 16  ;;  %v9207_v9 = vrot.slane %v9205_v29, 4  ;;  %v8931_v44 = vld [vmem:[#allocation2 + $0xa8] sm:$0xf] }
 0x55f   : > { %14251 = vmatprep.subr.bf16.mxu1 %v15183_v6  ;;  %v9210_v23 = vrot.slane %v9208_v62, 5  ;;  %v9214_v27 = vshll.u32 %v18669_v50, 16  ;;  %v9218_v20 = vshrl.u32 %v18669_v50, 16  ;;  %v12856_v38 = vcombine.low %v9121_v46, %v9131_v47 }
 0x560   : > { %v12857_v7 = vcombine.low %v9145_v58, %v9155_v63  ;;  %v9178_v10 = vrot.slane %v9176_v39, 5  ;;  %v9197_v48 = vor.u32 %v9196_v49, %v19165_v52  ;;  %v9231_v4 = vrot.slane %v9229_v11, 4  ;;  %v8934_v39 = vld [vmem:[#allocation2 + $0xb4] sm:$0xf]  ;;  %v15282_v11 = vld [vmem:[#allocation2 + $0x98] sm:$0x1] }
 0x561   : > { %v9234_v59 = vrot.slane %v9232_v53, 5  ;;  %v9238_v5 = vshll.u32 %v18693_v30, 16  ;;  %v9242_v15 = vshrl.u32 %v18693_v30, 16  ;;  %v9169_v50 = vsel %vm15643_vm11, %v9164_v56, %v19146_v12  ;;  %v19193_v12 = vld [vmem:[%s19951_s3 + $0x180] sm:$0xff]  }
 0x562   : > { %14252 = vmatpush3.bf16.msra.mxu1 %v15183_v6  ;;  %v9174_v6 = vrot.slane %v9173_v51, 4  ;;  %v9188_v46 = vrot.slane %v9187_v41, 4  ;;  %v9202_v42 = vrot.slane %v9200_v24, 5  ;;  %v9211_v29 = vor.u32 %v9210_v23, %v9207_v9 }
 0x563   : > { %14253 = vmatprep.subr.bf16.mxu1 %v15184_v40  ;;  %v9216_v62 = vrot.slane %v9214_v27, 5  ;;  %v9220_v47 = vrot.slane %v9218_v20, 4  ;;  %v9198_v58 = vrot.slane %v9197_v48, 4  ;;  %v9253_v30 = vshrl.u32 %v8931_v44, 16 }
 0x564   : > { %v9179_v49 = vsel %vm15643_vm11, %v9174_v6, %v9178_v10  ;;  %v9256_v63 = vshll.u32 %v8931_v44, 16  ;;  %v9224_v53 = vshll.u32 %v15282_v11, 16  ;;  %v9235_v56 = vor.u32 %v9234_v59, %v9231_v4  ;;  %v15284_v4 = vld [vmem:[#allocation2 + $0xac] sm:$0xf] }
 0x565   : > { %14222 = vmatmul.mubr.bf16.gmra.mrb[12].mxu1 %v12856_v38  ;;  %v9240_v51 = vrot.slane %v9238_v5, 5  ;;  %v9244_v41 = vrot.slane %v9242_v15, 4  ;;  %v12858_v24 = vcombine.low %v9169_v50, %v9179_v49  ;;  %v9277_v9 = vshrl.u32 %v8934_v39, 16  ;;  %v8937_v49 = vld [vmem:[#allocation2 + $0xc0] sm:$0xf] }
 0x566   : > { %14225 = vmatprep.mubr.bf16.mxu1 %v12857_v7  ;;  %14254 = vmatpush3.bf16.msra.mxu1 %v15184_v40  ;;  %v9193_v40 = vsel %vm15643_vm11, %v9188_v46, %v19165_v52  ;;  %v9280_v23 = vshll.u32 %v8934_v39, 16  ;;  %v9203_v27 = vsel %vm15643_vm11, %v9198_v58, %v9202_v42  ;;  %v9212_v20 = vrot.slane %v9211_v29, 4  ;;  %v15283_v7 = vld [vmem:[#allocation2 + $0xa4] sm:$0x1]  ;;  %v15285_v42 = vld [vmem:[#allocation2 + $0xb8] sm:$0xf] }
 0x567   : > { %14255 = vmatprep.subr.bf16.mxu1 %v15185_v33  ;;  %v9221_v38 = vor.u32 %v9220_v47, %v9216_v62  ;;  %v9248_v10 = vshll.u32 %v15283_v7, 16  ;;  %v9255_v48 = vrot.slane %v9253_v30, 4  ;;  %v9258_v44 = vrot.slane %v9256_v63, 5 }
 0x568   : > { %v9262_v59 = vshll.u32 %v15284_v4, 16  ;;  %v9266_v5 = vshrl.u32 %v15284_v4, 16  ;;  %v12859_v15 = vcombine.low %v9193_v40, %v9203_v27  ;;  %v9226_v50 = vrot.slane %v9224_v53, 5 }
 0x569   : > { %v9236_v52 = vrot.slane %v9235_v56, 4  ;;  %v9245_v6 = vor.u32 %v9244_v41, %v9240_v51  ;;  %v9279_v46 = vrot.slane %v9277_v9, 4  ;;  %v9282_v39 = vrot.slane %v9280_v23, 5 }
 0x56a   : > { %14256 = vmatpush3.bf16.msra.mxu1 %v15185_v33  ;;  %v9286_v29 = vshll.u32 %v15285_v42, 16  ;;  %v9290_v47 = vshrl.u32 %v15285_v42, 16  ;;  %v9217_v33 = vsel %vm15643_vm11, %v9212_v20, %v9216_v62  ;;  %v9250_v58 = vrot.slane %v9248_v10, 5  ;;  %v15286_v20 = vld [vmem:[#allocation2 + $0xb0] sm:$0x1] }
 0x56b   : > { %14289 = vmatprep.subr.bf16.mxu1 %v19193_v12  ;;  %v9222_v30 = vrot.slane %v9221_v38, 4  ;;  %v9259_v63 = vor.u32 %v9258_v44, %v9255_v48  ;;  %v9264_v11 = vrot.slane %v9262_v59, 5  ;;  %v9268_v7 = vrot.slane %v9266_v5, 4  ;;  %v15287_v59 = vld [vmem:[#allocation2 + $0xbc] sm:$0x1] }
 0x56c   : > { %v9241_v53 = vsel %vm15643_vm11, %v9236_v52, %v9240_v51  ;;  %v9246_v56 = vrot.slane %v9245_v6, 4  ;;  %v9301_v41 = vshrl.u32 %v8937_v49, 16  ;;  %v9283_v9 = vor.u32 %v9282_v39, %v9279_v46  ;;  %v15288_v52 = vld [vmem:[#allocation2 + $0xc4] sm:$0xf] }
 0x56d   : > { %14226 = vmatmul.mubr.bf16.gmra.mrb[16].mxu1 %v12858_v24  ;;  %v9304_v24 = vshll.u32 %v8937_v49, 16  ;;  %v9227_v40 = vsel %vm15643_vm11, %v9222_v30, %v9226_v50  ;;  %v9288_v23 = vrot.slane %v9286_v29, 5  ;;  %v9292_v27 = vrot.slane %v9290_v47, 4 }
 0x56e   : > { %14229 = vmatprep.mubr.bf16.mxu1 %v12859_v15  ;;  %v12860_v4 = vcombine.low %v9217_v33, %v9227_v40  ;;  %v9251_v62 = vsel %vm15643_vm11, %v9246_v56, %v9250_v58  ;;  %v9272_v38 = vshll.u32 %v15286_v20, 16  ;;  %v9260_v48 = vrot.slane %v9259_v63, 4  ;;  %v15289_v56 = vld [vmem:[#allocation2 + $0xc8] sm:$0x1] }
 0x56f   : > { %v12861_v10 = vcombine.low %v9241_v53, %v9251_v62  ;;  %v9269_v44 = vor.u32 %v9268_v7, %v9264_v11  ;;  %v9296_v51 = vshll.u32 %v15287_v59, 16  ;;  %v9303_v5 = vrot.slane %v9301_v41, 4  ;;  %v9646_v62 = vld [vmem:[#allocation2 + $0xc] sm:$0xe] }
 0x570   : > { %v9306_v15 = vrot.slane %v9304_v24, 5  ;;  %v9310_v6 = vshll.u32 %v15288_v52, 16  ;;  %v9314_v42 = vshrl.u32 %v15288_v52, 16  ;;  %v9284_v50 = vrot.slane %v9283_v9, 4 }
 0x571   : > { %v9293_v46 = vor.u32 %v9292_v27, %v9288_v23  ;;  %v9274_v39 = vrot.slane %v9272_v38, 5  ;;  %v9265_v29 = vsel %vm15643_vm11, %v9260_v48, %v9264_v11  ;;  %v9298_v47 = vrot.slane %v9296_v51, 5 }
 0x572   : > { %v9270_v49 = vrot.slane %v9269_v44, 4  ;;  %v9307_v33 = vor.u32 %v9306_v15, %v9303_v5  ;;  %v9312_v58 = vrot.slane %v9310_v6, 5  ;;  %v9316_v30 = vrot.slane %v9314_v42, 4  ;;  %v9647_v15 = vld [vmem:[#allocation2 + $0x18] sm:$0xe] }
 0x573   : > { %v9289_v63 = vsel %vm15643_vm11, %v9284_v50, %v9288_v23  ;;  %v9294_v7 = vrot.slane %v9293_v46, 4  ;;  %v9320_v41 = vshll.u32 %v15289_v56, 16  ;;  %v9712_v11 = vrot.slane %v18808_v31, 5  ;;  %v15193_v56 = vld [vmem:[%s19951_s3 + $0x1b8] sm:$0xff]  }
 0x574   : > { %v9275_v53 = vsel %vm15643_vm11, %v9270_v49, %v9274_v39  ;;  %v9308_v27 = vrot.slane %v9307_v33, 4  ;;  %v9715_v20 = vrot.slane %v18822_v54, 5  ;;  %v12873_v38 = vrot.slane %v9646_v62, 9  ;;  %v15189_v49 = vld [vmem:[%s19951_s3 + $0x198] sm:$0xff]   ;;  %v20179_v62 = vld [vmem:[#allocation17_spill] sm:$0xff] }
 0x575   : > { %14230 = vmatmul.mubr.bf16.gmra.mrb[20].mxu1 %v12860_v4  ;;  %v12862_v24 = vcombine.low %v9265_v29, %v9275_v53  ;;  %v9299_v40 = vsel %vm15643_vm11, %v9294_v7, %v9298_v47  ;;  %v9317_v4 = vor.u32 %v9316_v30, %v9312_v58  ;;  %v9322_v23 = vrot.slane %v9320_v41, 5  ;;  %v15188_v47 = vld [vmem:[%s19951_s3 + $0x190] sm:$0xff]   ;;  %v20167_v30 = vld [vmem:[#allocation6_spill] sm:$0xff]  ;;  %v20171_v7 = vld [vmem:[#allocation16_spill] sm:$0xff] }
 0x576   : > { %14233 = vmatprep.mubr.bf16.mxu1 %v12861_v10  ;;  %v12863_v9 = vcombine.low %v9289_v63, %v9299_v40  ;;  %v9714_v10 = vrot.slane %v9712_v11, 4  ;;  %v9313_v48 = vsel %vm15643_vm11, %v9308_v27, %v9312_v58  ;;  %v9719_v51 = vrot.slane %v18813_v16, 5  ;;  %v15187_v16 = vld [vmem:[%s19951_s3 + $0x188] sm:$0xff]   ;;  %v20168_v63 = vld [vmem:[#allocation7_spill] sm:$0xff]  ;;  %v15192_v53 = vld [vmem:[%s19951_s3 + $0x1b0] sm:$0xff]  }
 0x577   : > { %v9318_v44 = vrot.slane %v9317_v4, 4  ;;  %v9713_v54 = vsel %vm16147_vm14, %v12873_v38, %v9712_v11  ;;  %v9722_v6 = vrot.slane %v18825_v22, 5  ;;  %v12874_v42 = vrot.slane %v9647_v15, 9  ;;  %v20173_v41 = vld [vmem:[#allocation15_spill] sm:$0xff]  ;;  %v20176_v11 = vld [vmem:[#allocation9_spill] sm:$0xff]  ;;  %v20182_v38 = vld [vmem:[#allocation18_spill] sm:$0xff] }
 0x578   : > { %v9716_v59 = vsel %vm16147_vm14, %v9714_v10, %v9715_v20  ;;  %v9721_v50 = vrot.slane %v9719_v51, 4  ;;  %v20163_v22 = vcombine.low %v18598_v45, %v18602_v32  ;;  %v20164_v33 = vcombine.low %v18606_v28, %v18628_v2  ;;  %v15190_v45 = vld [vmem:[%s19951_s3 + $0x1a0] sm:$0xff]   ;;  %v15191_v32 = vld [vmem:[%s19951_s3 + $0x1a8] sm:$0xff]  }
 0x579   : > { %v9323_v31 = vsel %vm15643_vm11, %v9318_v44, %v9322_v23  ;;  %v12905_v52 = vcombine.low %v9713_v54, %v9716_v59  ;;  %v9720_v39 = vsel %vm16147_vm14, %v12874_v42, %v9719_v51  ;;  %v20169_v28 = vcombine.low %v20167_v30, %v20168_v63  ;;  %v20170_v2 = vld [vmem:[#allocation8_spill] sm:$0xff]  ;;  %v15195_v4 = vld [vmem:[%s19951_s3 + $0x1c0] sm:$0xff]   ;;  %v20188_v51 = vld [vmem:[#allocation21_spill] sm:$0xff] }
 0x57a   : > { %v12864_v5 = vcombine.low %v9313_v48, %v9323_v31  ;;  %v9723_v46 = vsel %vm16147_vm14, %v9721_v50, %v9722_v6  ;;  %v20180_v20 = vld [vmem:[#allocation11_spill] sm:$0xff]  ;;  %v20183_v10 = vcombine.low %v18717_v3, %v20182_v38  ;;  %v20184_v48 = vld [vmem:[#allocation13_spill] sm:$0xff]  ;;  %v20185_v44 = vld [vmem:[#allocation20_spill] sm:$0xff] }
 0x57b   : > { %v12906_v29 = vcombine.low %v9720_v39, %v9723_v46  ;;  %v20181_v23 = vcombine.low %v20179_v62, %v20180_v20  ;;  %v20186_v59 = vcombine.low %v20184_v48, %v20185_v44  ;;  %v20187_v31 = vld [vmem:[#allocation19_spill] sm:$0xff]  ;;  %v20190_v54 = vld [vmem:[#allocation22_spill] sm:$0xff]  ;;  %v20193_v6 = vld [vmem:[#allocation24_spill] sm:$0xff] }
 0x57c   : > { %v20191_v15 = vld [vmem:[#allocation23_spill] sm:$0xff]  ;;  %v20194_v42 = vld [vmem:[#allocation25_spill] sm:$0xff]  ;;  %v15194_v46 = vld [vmem:[#allocation2 + $0x18] sm:$0xff]  }
 0x57d   : > { %14234 = vmatmul.mubr.bf16.gmra.mrb[24].mxu1 %v12862_v24  ;;  %v20174_v24 = vld [vmem:[#allocation10_spill] sm:$0xff]  ;;  %v20195_v50 = vcombine.low %v20193_v6, %v20194_v42  ;;  %v20197_v3 = vld [vmem:[#allocation27_spill] sm:$0xff]  ;;  %v15210_v30 = vld [vmem:[%s19951_s3 + $0x1e8] sm:$0xff]  }
 0x57e   : > { %14237 = vmatprep.mubr.bf16.mxu1 %v12863_v9  ;;  %v20175_v40 = vcombine.low %v20173_v41, %v20174_v24  ;;  %v20177_v9 = vld [vmem:[#allocation12_spill] sm:$0xff]  ;;  %v20196_v39 = vld [vmem:[#allocation26_spill] sm:$0xff]  ;;  %v15203_v63 = vld [vmem:[#allocation2 + $0x60] sm:$0xff]  }
 0x57f   : > { %v20178_v27 = vcombine.low %v20176_v11, %v20177_v9  ;;  %v15208_v41 = vld [vmem:[#allocation2 + $0x84] sm:$0xff]   ;;  %v15209_v24 = vld [vmem:[#allocation2 + $0x90] sm:$0xff]   ;;  %v19327_v9 = vld [vmem:[#allocation2 + $0x1c] sm:$0xf] }
 0x580   : > { %v10588_v20 = vshll.u32 %v19327_v9, 16  ;;  %v19331_v38 = vld [vmem:[#allocation2 + $0x28] sm:$0xf]  ;;  %v15211_v44 = vld [vmem:[#allocation2 + $0x9c] sm:$0xff]  }
 0x585   : > { %14238 = vmatmul.mubr.bf16.gmra.mrb[28].mxu1 %v12864_v5  ;;  %v20189_v5 = vcombine.low %v20187_v31, %v20188_v51  ;;  %v10536_v51 = vld [vmem:[#allocation2 + $0x30] sm:$0xf] }
 0x586   : > { %14257 = vmatprep.mubr.bf16.mxu1 %v12905_v52  ;;  %v20192_v52 = vcombine.low %v20190_v54, %v20191_v15  ;;  %v10612_v54 = vshll.u32 %v19331_v38, 16  ;;  %v10616_v15 = vshrl.u32 %v19331_v38, 16 }
 0x58d   : > { %14258 = vmatmul.mubr.bf16.vlgmr.msra.gmra.mrb[0].mxu1 %v12906_v29  ;;  %v20198_v29 = vcombine.low %v20196_v39, %v20197_v3  ;;  %v10630_v39 = vshll.u32 %v10536_v51, 16 }
 0x58e   : > { %14290 = vmatpush3.bf16.msra.mxu1 %v19193_v12  ;;  %14261 = vmatprep.mubr.bf16.mxu1 %v20163_v22  ;;  %v20165_v12 = vld [vmem:[#allocation14_spill] sm:$0xff]  ;;  %v15198_v22 = vld [vmem:[%s19951_s3 + $0x1c8] sm:$0xff]  }
 0x58f   : > { %14291 = vmatprep.subr.bf16.mxu1 %v15187_v16  ;;  %v20166_v58 = vcombine.low %v18617_v14, %v20165_v12  ;;  %v20172_v14 = vcombine.low %v20170_v2, %v20171_v7  ;;  %v15204_v12 = vld [vmem:[%s19951_s3 + $0x1d8] sm:$0xff]   ;;  %v15205_v2 = vld [vmem:[#allocation2 + $0x6c] sm:$0xff]  }
 0x590   : > { %v15216_v7 = vld [vmem:[%s19951_s3 + $0x1f8] sm:$0xff]  }
 0x592   : > { %14292 = vmatpush3.bf16.msra.mxu1 %v15187_v16  ;;  %v15196_v16 = vld [vmem:[#allocation2 + $0x24] sm:$0xff]  }
 0x593   : > { %14293 = vmatprep.subr.bf16.mxu1 %v15188_v47 }
 0x595   : > { %14262 = vmatmul.mubr.bf16.gmra.mrb[4].mxu1 %v20164_v33  ;;  %v15199_v33 = vld [vmem:[#allocation2 + $0x3c] sm:$0xff]  }
 0x596   : > { %14265 = vmatprep.mubr.bf16.mxu1 %v20166_v58  ;;  %14294 = vmatpush3.bf16.msra.mxu1 %v15188_v47  ;;  %v15197_v47 = vld [vmem:[#allocation2 + $0x30] sm:$0xff]   ;;  %v15200_v58 = vld [vmem:[#allocation2 + $0x48] sm:$0xff]  }
 0x597   : > { %14295 = vmatprep.subr.bf16.mxu1 %v15189_v49 }
 0x59a   : > { %14296 = vmatpush3.bf16.msra.mxu1 %v15189_v49  ;;  %v15201_v49 = vld [vmem:[%s19951_s3 + $0x1d0] sm:$0xff]  }
 0x59b   : > { %14297 = vmatprep.subr.bf16.mxu1 %v15190_v45 }
 0x59d   : > { %14266 = vmatmul.mubr.bf16.gmra.mrb[8].mxu1 %v20169_v28  ;;  %v15213_v28 = vld [vmem:[%s19951_s3 + $0x1f0] sm:$0xff]  }
 0x59e   : > { %14269 = vmatprep.mubr.bf16.mxu1 %v20172_v14  ;;  %14298 = vmatpush3.bf16.msra.mxu1 %v15190_v45  ;;  %v15207_v45 = vld [vmem:[%s19951_s3 + $0x1e0] sm:$0xff]   ;;  %v15206_v14 = vld [vmem:[#allocation2 + $0x78] sm:$0xff]  }
 0x59f   : > { %14299 = vmatprep.subr.bf16.mxu1 %v15191_v32 }
 0x5a2   : > { %14300 = vmatpush3.bf16.msra.mxu1 %v15191_v32  ;;  %v15202_v32 = vld [vmem:[#allocation2 + $0x54] sm:$0xff]  }
 0x5a3   : > { %14301 = vmatprep.subr.bf16.mxu1 %v15192_v53 }
 0x5a5   : > { %14270 = vmatmul.mubr.bf16.gmra.mrb[12].mxu1 %v20175_v40 }
 0x5a6   : > { %14273 = vmatprep.mubr.bf16.mxu1 %v20178_v27  ;;  %14302 = vmatpush3.bf16.msra.mxu1 %v15192_v53  ;;  %v19324_v53 = vld [vmem:[%s19951_s3 + $0x200] sm:$0xff]  }
 0x5a7   : > { %14303 = vmatprep.subr.bf16.mxu1 %v15193_v56  ;;  %v10533_v27 = vld [vmem:[#allocation2 + $0x24] sm:$0xf] }
 0x5a8   : > { %v10606_v48 = vshll.u32 %v10533_v27, 16 }
 0x5aa   : > { %14304 = vmatpush3.bf16.msra.mxu1 %v15193_v56  ;;  %v10530_v56 = vld [vmem:[#allocation2 + $0x18] sm:$0xf] }
 0x5ab   : > { %14337 = vmatprep.subr.bf16.mxu1 %v15195_v4  ;;  %v10579_v40 = vshrl.u32 %v10530_v56, 16  ;;  %v10582_v11 = vshll.u32 %v10530_v56, 16  ;;  %v15215_v56 = vld [vmem:[#allocation2 + $0xc0] sm:$0xff]  }
 0x5ad   : > { %14274 = vmatmul.mubr.bf16.gmra.mrb[16].mxu1 %v20181_v23  ;;  %v10584_v62 = vrot.slane %v10582_v11, 5  ;;  %v10592_v23 = vshrl.u32 %v19327_v9, 16 }
 0x5ae   : > { %14277 = vmatprep.mubr.bf16.mxu1 %v20183_v10  ;;  %v10603_v10 = vshrl.u32 %v10533_v27, 16 }
 0x5af   : > { %v10594_v6 = vrot.slane %v10592_v23, 4 }
 0x5b0   : > { %v10605_v42 = vrot.slane %v10603_v10, 4 }
 0x5b5   : > { %14278 = vmatmul.mubr.bf16.gmra.mrb[20].mxu1 %v20186_v59  ;;  %v15212_v59 = vld [vmem:[#allocation2 + $0xa8] sm:$0xff]  }
 0x5b6   : > { %14281 = vmatprep.mubr.bf16.mxu1 %v20189_v5  ;;  %v19333_v5 = vld [vmem:[#allocation2 + $0x20] sm:$0x1] }
 0x5bd   : > { %14282 = vmatmul.mubr.bf16.gmra.mrb[24].mxu1 %v20192_v52  ;;  %v10590_v52 = vrot.slane %v10588_v20, 5 }
 0x5be   : > { %14285 = vmatprep.mubr.bf16.mxu1 %v20195_v50  ;;  %v10608_v50 = vrot.slane %v10606_v48, 5  ;;  %v20200_v48 = vld [vmem:[#allocation30_spill] sm:$0xff] }
 0x5c5   : > { %14286 = vmatmul.mubr.bf16.gmra.mrb[28].mxu1 %v20198_v29  ;;  %v10598_v29 = vshll.u32 %v19333_v5, 16 }
 0x5c6   : > { %14305 = vmatprep.mubr.bf16.mxu1 %v15194_v46  ;;  %v10627_v46 = vshrl.u32 %v10536_v51, 16  ;;  %v20201_v51 = vld [vmem:[#allocation29_spill] sm:$0xff] }
 0x5cd   : > { %14306 = vmatmul.mubr.bf16.vlgmr.msra.gmra.mrb[0].mxu1 %v15196_v16  ;;  %v19338_v16 = vld [vmem:[#allocation2 + $0x2c] sm:$0x1] }
 0x5ce   : > { %14338 = vmatpush3.bf16.msra.mxu1 %v15195_v4  ;;  %14309 = vmatprep.mubr.bf16.mxu1 %v15197_v47  ;;  %v10581_v4 = vrot.slane %v10579_v40, 4  ;;  %v19340_v47 = vrot.slane %v10612_v54, 5  ;;  %v10646_v54 = vshll.u32 %v20201_v51, 16 }
 0x5cf   : > { %14339 = vmatprep.subr.bf16.mxu1 %v15198_v22 }
 0x5d0   : > { %v10585_v31 = vor.u32 %v10584_v62, %v10581_v4 }
 0x5d2   : > { %14340 = vmatpush3.bf16.msra.mxu1 %v15198_v22  ;;  %v10586_v3 = vrot.slane %v10585_v31, 4  ;;  %v10539_v22 = vld [vmem:[#allocation2 + $0x3c] sm:$0xf] }
 0x5d3   : > { %14341 = vmatprep.subr.bf16.mxu1 %v15201_v49 }
 0x5d4   : > { %v10591_v27 = vsel %vm15643_vm11, %v10586_v3, %v10590_v52 }
 0x5d5   : > { %14310 = vmatmul.mubr.bf16.gmra.mrb[4].mxu1 %v15199_v33  ;;  %v20199_v33 = vld [vmem:[#allocation28_spill] sm:$0xff] }
 0x5d6   : > { %14313 = vmatprep.mubr.bf16.mxu1 %v15200_v58  ;;  %14342 = vmatpush3.bf16.msra.mxu1 %v15201_v49  ;;  %v10618_v49 = vrot.slane %v10616_v15, 4  ;;  %v10640_v58 = vshrl.u32 %v20199_v33, 16 }
 0x5d7   : > { %14343 = vmatprep.subr.bf16.mxu1 %v15204_v12 }
 0x5d8   : > { %v10619_v4 = vor.u32 %v10618_v49, %v19340_v47  ;;  %v10642_v20 = vrot.slane %v10640_v58, 4 }
 0x5da   : > { %14344 = vmatpush3.bf16.msra.mxu1 %v15204_v12  ;;  %v10636_v12 = vshll.u32 %v20199_v33, 16  ;;  %v10545_v33 = vld [vmem:[#allocation2 + $0x54] sm:$0xf] }
 0x5db   : > { %14345 = vmatprep.subr.bf16.mxu1 %v15207_v45 }
 0x5dc   : > { %v10638_v62 = vrot.slane %v10636_v12, 5 }
 0x5dd   : > { %14314 = vmatmul.mubr.bf16.gmra.mrb[8].mxu1 %v15202_v32  ;;  %v10595_v32 = vor.u32 %v10594_v6, %v10590_v52 }
 0x5de   : > { %14317 = vmatprep.mubr.bf16.mxu1 %v15203_v63  ;;  %14346 = vmatpush3.bf16.msra.mxu1 %v15207_v45  ;;  %v10542_v45 = vld [vmem:[#allocation2 + $0x48] sm:$0xf]  ;;  %v15214_v63 = vld [vmem:[#allocation2 + $0xb4] sm:$0xff]   ;;  %v10643_v49 = vor.u32 %v10642_v20, %v10638_v62 }
 0x5df   : > { %14347 = vmatprep.subr.bf16.mxu1 %v15210_v30  ;;  %v10675_v40 = vshrl.u32 %v10542_v45, 16  ;;  %v10678_v11 = vshll.u32 %v10542_v45, 16  ;;  %v10596_v23 = vrot.slane %v10595_v32, 4  ;;  %v20204_v20 = vld [vmem:[#allocation34_spill] sm:$0xff] }
 0x5e2   : > { %14348 = vmatpush3.bf16.msra.mxu1 %v15210_v30  ;;  %v10609_v30 = vor.u32 %v10608_v50, %v10605_v42  ;;  %v10677_v42 = vrot.slane %v10675_v40, 4  ;;  %v10680_v50 = vrot.slane %v10678_v11, 5 }
 0x5e3   : > { %14349 = vmatprep.subr.bf16.mxu1 %v15213_v28 }
 0x5e4   : > { %v10610_v10 = vrot.slane %v10609_v30, 4  ;;  %v15217_v30 = vld [vmem:[#allocation2 + $0xcc] sm:$0xff]   ;;  %v10681_v40 = vor.u32 %v10680_v50, %v10677_v42 }
 0x5e5   : > { %14318 = vmatmul.mubr.bf16.gmra.mrb[12].mxu1 %v15205_v2  ;;  %v10632_v2 = vrot.slane %v10630_v39, 5  ;;  %v20205_v50 = vld [vmem:[#allocation33_spill] sm:$0xff] }
 0x5e6   : > { %14321 = vmatprep.mubr.bf16.mxu1 %v15206_v14  ;;  %14350 = vmatpush3.bf16.msra.mxu1 %v15213_v28  ;;  %v10629_v28 = vrot.slane %v10627_v46, 4  ;;  %v10654_v14 = vshll.u32 %v10539_v22, 16  ;;  %v20202_v46 = vld [vmem:[#allocation32_spill] sm:$0xff]  ;;  %v10615_v58 = vsel %vm15643_vm11, %v10610_v10, %v19340_v47  ;;  %v10712_v47 = vshrl.u32 %v20204_v20, 16 }
 0x5e7   : > { %14351 = vmatprep.subr.bf16.mxu1 %v15216_v7  ;;  %v10684_v52 = vshll.u32 %v20202_v46, 16  ;;  %v10688_v39 = vshrl.u32 %v20202_v46, 16  ;;  %v10694_v46 = vshll.u32 %v20205_v50, 16 }
 0x5e8   : > { %v10633_v31 = vor.u32 %v10632_v2, %v10629_v28  ;;  %v10656_v6 = vrot.slane %v10654_v14, 5  ;;  %v10648_v28 = vrot.slane %v10646_v54, 5 }
 0x5e9   : > { %v10690_v11 = vrot.slane %v10688_v39, 4 }
 0x5ea   : > { %14352 = vmatpush3.bf16.msra.mxu1 %v15216_v7  ;;  %v10651_v7 = vshrl.u32 %v10539_v22, 16 }
 0x5eb   : > { %14385 = vmatprep.subr.bf16.mxu1 %v19324_v53 }
 0x5ec   : > { %v10653_v15 = vrot.slane %v10651_v7, 4  ;;  %v20203_v7 = vld [vmem:[#allocation31_spill] sm:$0xff] }
 0x5ed   : > { %14322 = vmatmul.mubr.bf16.gmra.mrb[16].mxu1 %v15208_v41  ;;  %v10600_v41 = vrot.slane %v10598_v29, 5  ;;  %v10620_v29 = vrot.slane %v10619_v4, 4  ;;  %v10670_v14 = vshll.u32 %v20203_v7, 16  ;;  %v10644_v4 = vrot.slane %v10643_v49, 4  ;;  %v10551_v7 = vld [vmem:[#allocation2 + $0x6c] sm:$0xf] }
 0x5ee   : > { %14325 = vmatprep.mubr.bf16.mxu1 %v15209_v24  ;;  %v10622_v24 = vshll.u32 %v19338_v16, 16  ;;  %v10657_v2 = vor.u32 %v10656_v6, %v10653_v15  ;;  %v10682_v6 = vrot.slane %v10681_v40, 4  ;;  %v10696_v40 = vrot.slane %v10694_v46, 5 }
 0x5ef   : > { %v10601_v3 = vsel %vm15643_vm11, %v10596_v23, %v10600_v41  ;;  %v10686_v41 = vrot.slane %v10684_v52, 5  ;;  %v10708_v23 = vshll.u32 %v20204_v20, 16  ;;  %v10649_v51 = vsel %vm15643_vm11, %v10644_v4, %v10648_v28  ;;  %v15219_v28 = vld [vmem:[%s19951_s3 + $0x208] sm:$0xff]  }
 0x5f0   : > { %v10624_v22 = vrot.slane %v10622_v24, 5  ;;  %v12985_v12 = vcombine.low %v10591_v27, %v10601_v3  ;;  %v10699_v24 = vshrl.u32 %v10545_v33, 16  ;;  %v10702_v27 = vshll.u32 %v10545_v33, 16 }
 0x5f1   : > { %v10658_v54 = vrot.slane %v10657_v2, 4  ;;  %v10672_v15 = vrot.slane %v10670_v14, 5  ;;  %v10691_v42 = vor.u32 %v10690_v11, %v10686_v41  ;;  %v19368_v3 = vrot.slane %v10708_v23, 5  ;;  %v15290_v11 = vld [vmem:[#allocation2 + $0x5c] sm:$0x1] }
 0x5f2   : > { %v10625_v10 = vsel %vm15643_vm11, %v10620_v29, %v10624_v22  ;;  %v10701_v52 = vrot.slane %v10699_v24, 4  ;;  %v10704_v39 = vrot.slane %v10702_v27, 5  ;;  %v10714_v29 = vrot.slane %v10712_v47, 4  ;;  %v20206_v22 = vld [vmem:[#allocation35_spill] sm:$0xff]  ;;  %v10554_v23 = vld [vmem:[#allocation2 + $0x78] sm:$0xf] }
 0x5f3   : > { %v10732_v49 = vshll.u32 %v20206_v22, 16  ;;  %v10718_v24 = vshll.u32 %v15290_v11, 16 }
 0x5f4   : > { %v10705_v4 = vor.u32 %v10704_v39, %v10701_v52  ;;  %v10715_v27 = vor.u32 %v10714_v29, %v19368_v3  ;;  %v15292_v52 = vld [vmem:[#allocation2 + $0x68] sm:$0x1]  ;;  %v10557_v29 = vld [vmem:[#allocation2 + $0x84] sm:$0xf] }
 0x5f5   : > { %14326 = vmatmul.mubr.bf16.gmra.mrb[20].mxu1 %v15211_v44  ;;  %v10660_v44 = vshll.u32 %v20200_v48, 16  ;;  %v19382_v20 = vrot.slane %v10732_v49, 5  ;;  %v10742_v39 = vshll.u32 %v15292_v52, 16 }
 0x5f6   : > { %14329 = vmatprep.mubr.bf16.mxu1 %v15212_v59  ;;  %v10664_v59 = vshrl.u32 %v20200_v48, 16  ;;  %v10706_v50 = vrot.slane %v10705_v4, 4  ;;  %v10716_v46 = vrot.slane %v10715_v27, 4 }
 0x5f7   : > { %v10662_v45 = vrot.slane %v10660_v44, 5 }
 0x5f8   : > { %v10666_v32 = vrot.slane %v10664_v59, 4  ;;  %v10711_v11 = vsel %vm15643_vm11, %v10706_v50, %v19368_v3 }
 0x5f9   : > { %v10663_v2 = vsel %vm15643_vm11, %v10658_v54, %v10662_v45 }
 0x5fa   : > { %v10667_v48 = vor.u32 %v10666_v32, %v10662_v45 }
 0x5fc   : > { %v10668_v33 = vrot.slane %v10667_v48, 4  ;;  %v10750_v48 = vshll.u32 %v10551_v7, 16 }
 0x5fd   : > { %14330 = vmatmul.mubr.bf16.gmra.mrb[24].mxu1 %v15214_v63  ;;  %v10634_v63 = vrot.slane %v10633_v31, 4 }
 0x5fe   : > { %14333 = vmatprep.mubr.bf16.mxu1 %v15215_v56  ;;  %v10548_v56 = vld [vmem:[#allocation2 + $0x60] sm:$0xf]  ;;  %v10673_v14 = vsel %vm15643_vm11, %v10668_v33, %v10672_v15  ;;  %v10720_v15 = vrot.slane %v10718_v24, 5  ;;  %v10744_v24 = vrot.slane %v10742_v39, 5 }
 0x5ff   : > { %v10723_v44 = vshrl.u32 %v10548_v56, 16  ;;  %v10726_v59 = vshll.u32 %v10548_v56, 16  ;;  %v10639_v31 = vsel %vm15643_vm11, %v10634_v63, %v10638_v62  ;;  %v10736_v62 = vshrl.u32 %v20206_v22, 16 }
 0x600   : > { %v12987_v63 = vcombine.low %v10639_v31, %v10649_v51  ;;  %v10687_v56 = vsel %vm15643_vm11, %v10682_v6, %v10686_v41  ;;  %v12988_v41 = vcombine.low %v10663_v2, %v10673_v14  ;;  %v10771_v6 = vshrl.u32 %v10554_v23, 16 }
 0x601   : > { %v10728_v32 = vrot.slane %v10726_v59, 5  ;;  %v10738_v47 = vrot.slane %v10736_v62, 4  ;;  %v15291_v59 = vld [vmem:[#allocation2 + $0x70] sm:$0xf] }
 0x602   : > { %v10756_v31 = vshll.u32 %v15291_v59, 16  ;;  %v10760_v51 = vshrl.u32 %v15291_v59, 16  ;;  %v10773_v14 = vrot.slane %v10771_v6, 4  ;;  %v15222_v59 = vld [vmem:[%s19951_s3 + $0x220] sm:$0xff]   ;;  %v15296_v6 = vld [vmem:[#allocation2 + $0x88] sm:$0xf] }
 0x603   : > { %v10739_v49 = vor.u32 %v10738_v47, %v19382_v20  ;;  %v10560_v47 = vld [vmem:[#allocation2 + $0x90] sm:$0xf] }
 0x604   : > { %v19394_v62 = vrot.slane %v10756_v31, 5  ;;  %v15295_v31 = vld [vmem:[#allocation2 + $0x80] sm:$0x1]  ;;  %v10819_v50 = vshrl.u32 %v10560_v47, 16 }
 0x605   : > { %14334 = vmatmul.mubr.bf16.gmra.mrb[28].mxu1 %v15217_v30  ;;  %v12986_v30 = vcombine.low %v10615_v58, %v10625_v10  ;;  %v10692_v58 = vrot.slane %v10691_v42, 4  ;;  %v10747_v10 = vshrl.u32 %v10551_v7, 16  ;;  %v10740_v4 = vrot.slane %v10739_v49, 4 }
 0x606   : > { %14353 = vmatprep.mubr.bf16.mxu1 %v12985_v12  ;;  %v10725_v12 = vrot.slane %v10723_v44, 4  ;;  %v15220_v44 = vld [vmem:[%s19951_s3 + $0x210] sm:$0xff]  }
 0x607   : > { %v10697_v54 = vsel %vm15643_vm11, %v10692_v58, %v10696_v40  ;;  %v10749_v33 = vrot.slane %v10747_v10, 4  ;;  %v10795_v40 = vshrl.u32 %v10557_v29, 16  ;;  %v10721_v58 = vsel %vm15643_vm11, %v10716_v46, %v10720_v15 }
 0x608   : > { %v10729_v45 = vor.u32 %v10728_v32, %v10725_v12  ;;  %v12989_v42 = vcombine.low %v10687_v56, %v10697_v54  ;;  %v10752_v12 = vrot.slane %v10750_v48, 5  ;;  %v15221_v32 = vld [vmem:[%s19951_s3 + $0x218] sm:$0xff]   ;;  %v12990_v46 = vcombine.low %v10711_v11, %v10721_v58  ;;  %v10566_v58 = vld [vmem:[#allocation2 + $0xa8] sm:$0xf] }
 0x609   : > { %v10797_v54 = vrot.slane %v10795_v40, 4  ;;  %v10745_v52 = vsel %vm15643_vm11, %v10740_v4, %v10744_v24  ;;  %v10821_v11 = vrot.slane %v10819_v50, 4 }
 0x60a   : > { %v10730_v22 = vrot.slane %v10729_v45, 4  ;;  %v10753_v27 = vor.u32 %v10752_v12, %v10749_v33  ;;  %v15297_v33 = vld [vmem:[#allocation2 + $0x94] sm:$0xf] }
 0x60b   : > { %v10828_v12 = vshll.u32 %v15297_v33, 16 }
 0x60c   : > { %v10735_v10 = vsel %vm15643_vm11, %v10730_v22, %v19382_v20  ;;  %v10822_v20 = vshll.u32 %v10560_v47, 16  ;;  %v10754_v39 = vrot.slane %v10753_v27, 4 }
 0x60d   : > { %14354 = vmatmul.mubr.bf16.vlgmr.msra.gmra.mrb[0].mxu1 %v12986_v30  ;;  %v10762_v30 = vrot.slane %v10760_v51, 4  ;;  %v10790_v51 = vshll.u32 %v15295_v31, 16  ;;  %v12991_v22 = vcombine.low %v10735_v10, %v10745_v52  ;;  %v15298_v10 = vld [vmem:[#allocation2 + $0x8c] sm:$0x1]  ;;  %v15224_v31 = vld [vmem:[%s19951_s3 + $0x230] sm:$0xff]  }
 0x60e   : > { %14386 = vmatpush3.bf16.msra.mxu1 %v19324_v53  ;;  %14357 = vmatprep.mubr.bf16.mxu1 %v12987_v63  ;;  %v10774_v53 = vshll.u32 %v10554_v23, 16  ;;  %v15293_v63 = vld [vmem:[#allocation2 + $0x7c] sm:$0xf]  ;;  %v15294_v23 = vld [vmem:[#allocation2 + $0x74] sm:$0x1]  ;;  %v10824_v24 = vrot.slane %v10822_v20, 5  ;;  %v10759_v4 = vsel %vm15643_vm11, %v10754_v39, %v19394_v62 }
 0x60f   : > { %14387 = vmatprep.subr.bf16.mxu1 %v15219_v28  ;;  %v10780_v2 = vshll.u32 %v15293_v63, 16  ;;  %v10784_v7 = vshrl.u32 %v15293_v63, 16  ;;  %v10766_v45 = vshll.u32 %v15294_v23, 16  ;;  %v10763_v48 = vor.u32 %v10762_v30, %v19394_v62  ;;  %v15223_v63 = vld [vmem:[%s19951_s3 + $0x228] sm:$0xff]   ;;  %v15300_v52 = vld [vmem:[#allocation2 + $0xa0] sm:$0xf] }
 0x610   : > { %v10776_v56 = vrot.slane %v10774_v53, 5  ;;  %v10804_v53 = vshll.u32 %v15296_v6, 16  ;;  %v10832_v30 = vshrl.u32 %v15297_v33, 16  ;;  %v10852_v39 = vshll.u32 %v15300_v52, 16 }
 0x611   : > { %v10786_v3 = vrot.slane %v10784_v7, 4  ;;  %v10764_v7 = vrot.slane %v10763_v48, 4  ;;  %v10814_v48 = vshll.u32 %v15298_v10, 16 }
 0x612   : > { %14388 = vmatpush3.bf16.msra.mxu1 %v15219_v28  ;;  %v10798_v28 = vshll.u32 %v10557_v29, 16  ;;  %v10768_v29 = vrot.slane %v10766_v45, 5 }
 0x613   : > { %14389 = vmatprep.subr.bf16.mxu1 %v15220_v44 }
 0x614   : > { %v10800_v15 = vrot.slane %v10798_v28, 5  ;;  %v19416_v28 = vrot.slane %v10804_v53, 5  ;;  %v10769_v27 = vsel %vm15643_vm11, %v10764_v7, %v10768_v29  ;;  %v10825_v53 = vor.u32 %v10824_v24, %v10821_v11  ;;  %v15301_v7 = vld [vmem:[#allocation2 + $0xac] sm:$0xf] }
 0x615   : > { %14358 = vmatmul.mubr.bf16.gmra.mrb[4].mxu1 %v12988_v41  ;;  %v19405_v41 = vrot.slane %v10780_v2, 5  ;;  %v10563_v2 = vld [vmem:[#allocation2 + $0x9c] sm:$0xf]  ;;  %v10856_v29 = vshrl.u32 %v15300_v52, 16 }
 0x616   : > { %14361 = vmatprep.mubr.bf16.mxu1 %v12989_v42  ;;  %14390 = vmatpush3.bf16.msra.mxu1 %v15220_v44  ;;  %v10777_v44 = vor.u32 %v10776_v56, %v10773_v14  ;;  %v10808_v42 = vshrl.u32 %v15296_v6, 16  ;;  %v10792_v56 = vrot.slane %v10790_v51, 5  ;;  %v10801_v40 = vor.u32 %v10800_v15, %v10797_v54 }
 0x617   : > { %14391 = vmatprep.subr.bf16.mxu1 %v15221_v32  ;;  %v10787_v49 = vor.u32 %v10786_v3, %v19405_v41  ;;  %v10843_v23 = vshrl.u32 %v10563_v2, 16  ;;  %v10846_v45 = vshll.u32 %v10563_v2, 16  ;;  %v19423_v3 = vrot.slane %v10828_v12, 5  ;;  %v15225_v12 = vld [vmem:[%s19951_s3 + $0x238] sm:$0xff]  }
 0x618   : > { %v10778_v14 = vrot.slane %v10777_v44, 4  ;;  %v10834_v44 = vrot.slane %v10832_v30, 4  ;;  %v10802_v51 = vrot.slane %v10801_v40, 4  ;;  %v10867_v54 = vshrl.u32 %v10566_v58, 16  ;;  %v10569_v40 = vld [vmem:[#allocation2 + $0xb4] sm:$0xf] }
 0x619   : > { %v10788_v47 = vrot.slane %v10787_v49, 4  ;;  %v10845_v20 = vrot.slane %v10843_v23, 4  ;;  %v10826_v11 = vrot.slane %v10825_v53, 4  ;;  %v10572_v23 = vld [vmem:[#allocation2 + $0xc0] sm:$0xf] }
 0x61a   : > { %14392 = vmatpush3.bf16.msra.mxu1 %v15221_v32  ;;  %v10810_v32 = vrot.slane %v10808_v42, 4  ;;  %v10783_v62 = vsel %vm15643_vm11, %v10778_v14, %v19405_v41  ;;  %v15299_v42 = vld [vmem:[#allocation2 + $0x98] sm:$0x1]  ;;  %v10816_v41 = vrot.slane %v10814_v48, 5  ;;  %v10835_v33 = vor.u32 %v10834_v44, %v19423_v3 }
 0x61b   : > { %14393 = vmatprep.subr.bf16.mxu1 %v15222_v59  ;;  %v10793_v15 = vsel %vm15643_vm11, %v10788_v47, %v10792_v56  ;;  %v10838_v50 = vshll.u32 %v15299_v42, 16  ;;  %v10869_v30 = vrot.slane %v10867_v54, 4  ;;  %v10876_v14 = vshll.u32 %v15301_v7, 16  ;;  %v15302_v47 = vld [vmem:[#allocation2 + $0xa4] sm:$0x1] }
 0x61c   : > { %v10811_v6 = vor.u32 %v10810_v32, %v19416_v28  ;;  %v12993_v49 = vcombine.low %v10783_v62, %v10793_v15  ;;  %v10880_v56 = vshrl.u32 %v15301_v7, 16  ;;  %v10862_v10 = vshll.u32 %v15302_v47, 16 }
 0x61d   : > { %14362 = vmatmul.mubr.bf16.gmra.mrb[8].mxu1 %v12990_v46  ;;  %v10848_v46 = vrot.slane %v10846_v45, 5  ;;  %v10840_v24 = vrot.slane %v10838_v50, 5  ;;  %v10891_v48 = vshrl.u32 %v10569_v40, 16  ;;  %v10894_v44 = vshll.u32 %v10569_v40, 16 }
 0x61e   : > { %14365 = vmatprep.mubr.bf16.mxu1 %v12991_v22  ;;  %14394 = vmatpush3.bf16.msra.mxu1 %v15222_v59  ;;  %v10870_v59 = vshll.u32 %v10566_v58, 16  ;;  %v12992_v22 = vcombine.low %v10759_v4, %v10769_v27  ;;  %v10812_v32 = vrot.slane %v10811_v6, 4  ;;  %v10854_v4 = vrot.slane %v10852_v39, 5 }
 0x61f   : > { %14395 = vmatprep.subr.bf16.mxu1 %v15223_v63  ;;  %v10849_v58 = vor.u32 %v10848_v46, %v10845_v20  ;;  %v10858_v27 = vrot.slane %v10856_v29, 4  ;;  %v10836_v62 = vrot.slane %v10835_v33, 4  ;;  %v10831_v15 = vsel %vm15643_vm11, %v10826_v11, %v19423_v3  ;;  %v15303_v20 = vld [vmem:[#allocation2 + $0xb0] sm:$0x1]  ;;  %v15304_v29 = vld [vmem:[#allocation2 + $0xb8] sm:$0xf] }
 0x620   : > { %v10872_v2 = vrot.slane %v10870_v59, 5  ;;  %v10817_v45 = vsel %vm15643_vm11, %v10812_v32, %v10816_v41  ;;  %v10915_v6 = vshrl.u32 %v10572_v23, 16  ;;  %v10886_v46 = vshll.u32 %v15303_v20, 16 }
 0x621   : > { %v10841_v53 = vsel %vm15643_vm11, %v10836_v62, %v10840_v24  ;;  %v10850_v42 = vrot.slane %v10849_v58, 4  ;;  %v10859_v50 = vor.u32 %v10858_v27, %v10854_v4  ;;  %v10893_v52 = vrot.slane %v10891_v48, 4 }
 0x622   : > { %14396 = vmatpush3.bf16.msra.mxu1 %v15223_v63  ;;  %v10807_v63 = vsel %vm15643_vm11, %v10802_v51, %v19416_v28  ;;  %v10873_v54 = vor.u32 %v10872_v2, %v10869_v30  ;;  %v10878_v28 = vrot.slane %v10876_v14, 5  ;;  %v10882_v51 = vrot.slane %v10880_v56, 4  ;;  %v15305_v14 = vld [vmem:[#allocation2 + $0xc4] sm:$0xf] }
 0x623   : > { %14397 = vmatprep.subr.bf16.mxu1 %v15224_v31  ;;  %v12994_v59 = vcombine.low %v10807_v63, %v10817_v45  ;;  %v10896_v39 = vrot.slane %v10894_v44, 5  ;;  %v12995_v41 = vcombine.low %v10831_v15, %v10841_v53  ;;  %v10864_v33 = vrot.slane %v10862_v10, 5  ;;  %v10575_v63 = vld [vmem:[#allocation2 + $0xcc] sm:$0xf] }
 0x624   : > { %v10874_v30 = vrot.slane %v10873_v54, 4  ;;  %v10883_v2 = vor.u32 %v10882_v51, %v10878_v28  ;;  %v10917_v3 = vrot.slane %v10915_v6, 4  ;;  %v10924_v56 = vshll.u32 %v15305_v14, 16 }
 0x625   : > { %14366 = vmatmul.mubr.bf16.gmra.mrb[12].mxu1 %v12992_v22  ;;  %v10900_v22 = vshll.u32 %v15304_v29, 16  ;;  %v10928_v40 = vshrl.u32 %v15305_v14, 16  ;;  %v10860_v32 = vrot.slane %v10859_v50, 4  ;;  %v10888_v11 = vrot.slane %v10886_v46, 5  ;;  %v15308_v46 = vld [vmem:[#allocation2 + $0xd0] sm:$0xf] }
 0x626   : > { %14369 = vmatprep.mubr.bf16.mxu1 %v12993_v49  ;;  %14398 = vmatpush3.bf16.msra.mxu1 %v15224_v31  ;;  %v10918_v31 = vshll.u32 %v10572_v23, 16  ;;  %v10904_v49 = vshrl.u32 %v15304_v29, 16  ;;  %v10897_v24 = vor.u32 %v10896_v39, %v10893_v52  ;;  %v10879_v23 = vsel %vm15643_vm11, %v10874_v30, %v10878_v28 }
 0x627   : > { %14399 = vmatprep.subr.bf16.mxu1 %v15225_v12  ;;  %v10902_v58 = vrot.slane %v10900_v22, 5  ;;  %v10884_v45 = vrot.slane %v10883_v2, 4  ;;  %v10939_v47 = vshrl.u32 %v10575_v63, 16  ;;  %v10942_v10 = vshll.u32 %v10575_v63, 16  ;;  %v15309_v63 = vld [vmem:[#allocation2 + $0xd4] sm:$0x1] }
 0x628   : > { %v10920_v7 = vrot.slane %v10918_v31, 5  ;;  %v10906_v27 = vrot.slane %v10904_v49, 4  ;;  %v10865_v48 = vsel %vm15643_vm11, %v10860_v32, %v10864_v33  ;;  %v10926_v62 = vrot.slane %v10924_v56, 5 }
 0x629   : > { %v10930_v54 = vrot.slane %v10928_v40, 4  ;;  %v10898_v31 = vrot.slane %v10897_v24, 4  ;;  %v10941_v50 = vrot.slane %v10939_v47, 4  ;;  %v10944_v20 = vrot.slane %v10942_v10, 5 }
 0x62a   : > { %14400 = vmatpush3.bf16.msra.mxu1 %v15225_v12  ;;  %v10855_v12 = vsel %vm15643_vm11, %v10850_v42, %v10854_v4  ;;  %v10921_v44 = vor.u32 %v10920_v7, %v10917_v3  ;;  %v15306_v4 = vld [vmem:[#allocation2 + $0xbc] sm:$0x1]  ;;  %v10907_v53 = vor.u32 %v10906_v27, %v10902_v58  ;;  %v15307_v42 = vld [vmem:[#allocation2 + $0xc8] sm:$0x1]  ;;  %v10948_v52 = vshll.u32 %v15308_v46, 16 }
 0x62b   : > { %v12996_v51 = vcombine.low %v10855_v12, %v10865_v48  ;;  %v10910_v15 = vshll.u32 %v15306_v4, 16  ;;  %v10934_v28 = vshll.u32 %v15307_v42, 16  ;;  %v10952_v39 = vshrl.u32 %v15308_v46, 16 }
 0x62c   : > { %v10922_v29 = vrot.slane %v10921_v44, 4  ;;  %v10931_v22 = vor.u32 %v10930_v54, %v10926_v62  ;;  %v10908_v30 = vrot.slane %v10907_v53, 4  ;;  %v10945_v2 = vor.u32 %v10944_v20, %v10941_v50  ;;  %v20208_v20 = vld [vmem:[#allocation37_spill] sm:$0xff] }
 0x62d   : > { %14370 = vmatmul.mubr.bf16.gmra.mrb[16].mxu1 %v12994_v59  ;;  %v10889_v59 = vsel %vm15643_vm11, %v10884_v45, %v10888_v11  ;;  %v10912_v49 = vrot.slane %v10910_v15, 5  ;;  %v10936_v33 = vrot.slane %v10934_v28, 5  ;;  %v10950_v3 = vrot.slane %v10948_v52, 5  ;;  %v11284_v45 = vld [vmem:[#allocation2 + $0x18] sm:$0xe] }
 0x62e   : > { %14373 = vmatprep.mubr.bf16.mxu1 %v12995_v41  ;;  %v12997_v6 = vcombine.low %v10879_v23, %v10889_v59  ;;  %v10903_v41 = vsel %vm15643_vm11, %v10898_v31, %v10902_v58  ;;  %v10954_v7 = vrot.slane %v10952_v39, 4  ;;  %v10927_v14 = vsel %vm15643_vm11, %v10922_v29, %v10926_v62  ;;  %v11285_v15 = vld [vmem:[#allocation2 + $0x24] sm:$0xe]  ;;  %v20210_v52 = vld [vmem:[#allocation38_spill] sm:$0xff] }
 0x62f   : > { %v10932_v56 = vrot.slane %v10931_v22, 4  ;;  %v10913_v40 = vsel %vm15643_vm11, %v10908_v30, %v10912_v49  ;;  %v10958_v32 = vshll.u32 %v15309_v63, 16  ;;  %v11350_v24 = vrot.slane %v19327_v9, 5  ;;  %v20211_v39 = vld [vmem:[#allocation39_spill] sm:$0xff]  ;;  %v20214_v22 = vld [vmem:[#allocation41_spill] sm:$0xff]  ;;  %v20226_v63 = vld [vmem:[#allocation48_spill] sm:$0xff] }
 0x630   : > { %v12998_v11 = vcombine.low %v10903_v41, %v10913_v40  ;;  %v10946_v27 = vrot.slane %v10945_v2, 4  ;;  %v10955_v23 = vor.u32 %v10954_v7, %v10950_v3  ;;  %v11353_v47 = vrot.slane %v19333_v5, 5  ;;  %v20216_v41 = vld [vmem:[#allocation42_spill] sm:$0xff]  ;;  %v20220_v2 = vld [vmem:[#allocation43_spill] sm:$0xff] }
 0x631   : > { %v10937_v12 = vsel %vm15643_vm11, %v10932_v56, %v10936_v33  ;;  %v10960_v10 = vrot.slane %v10958_v32, 5  ;;  %v13009_v48 = vrot.slane %v11284_v45, 9  ;;  %v11352_v44 = vrot.slane %v11350_v24, 4  ;;  %v20225_v40 = vld [vmem:[#allocation46_spill] sm:$0xff] }
 0x632   : > { %v12999_v58 = vcombine.low %v10927_v14, %v10937_v12  ;;  %v10951_v62 = vsel %vm15643_vm11, %v10946_v27, %v10950_v3  ;;  %v10956_v54 = vrot.slane %v10955_v23, 4  ;;  %v11357_v59 = vrot.slane %v19331_v38, 5  ;;  %v20207_v38 = vld [vmem:[#allocation36_spill] sm:$0xff]  ;;  %v20221_v3 = vld [vmem:[#allocation45_spill] sm:$0xff]  ;;  %v20223_v14 = vld [vmem:[#allocation47_spill] sm:$0xff] }
 0x633   : > { %v11351_v5 = vsel %vm16147_vm14, %v13009_v48, %v11350_v24  ;;  %v11360_v31 = vrot.slane %v19338_v16, 5  ;;  %v13010_v53 = vrot.slane %v11285_v15, 9  ;;  %v20209_v46 = vcombine.low %v20207_v38, %v20208_v20  ;;  %v20213_v16 = vld [vmem:[#allocation40_spill] sm:$0xff] }
 0x634   : > { %v10961_v9 = vsel %vm15643_vm11, %v10956_v54, %v10960_v10  ;;  %v11359_v42 = vrot.slane %v11357_v59, 4  ;;  %v20212_v29 = vcombine.low %v20210_v52, %v20211_v39  ;;  %v20215_v49 = vcombine.low %v20213_v16, %v20214_v22 }
 0x635   : > { %14374 = vmatmul.mubr.bf16.gmra.mrb[20].mxu1 %v12996_v51  ;;  %v11354_v51 = vsel %vm16147_vm14, %v11352_v44, %v11353_v47  ;;  %v13000_v4 = vcombine.low %v10951_v62, %v10961_v9  ;;  %v11358_v34 = vsel %vm16147_vm14, %v13010_v53, %v11357_v59  ;;  %v20217_v33 = vcombine.low %v18998_v25, %v20216_v41 }
 0x636   : > { %14377 = vmatprep.mubr.bf16.mxu1 %v12997_v6  ;;  %v13041_v6 = vcombine.low %v11351_v5, %v11354_v51  ;;  %v11361_v28 = vsel %vm16147_vm14, %v11359_v42, %v11360_v31  ;;  %v20219_v30 = vcombine.low %v19013_v18, %v20218_v26  ;;  %v20222_v7 = vcombine.low %v20220_v2, %v20221_v3 }
 0x637   : > { %v13042_v50 = vcombine.low %v11358_v34, %v11361_v28  ;;  %v20224_v56 = vcombine.low %v19041_v21, %v20223_v14  ;;  %v20227_v32 = vcombine.low %v20225_v40, %v20226_v63  ;;  %v20228_v25 = vcombine.low %v19064_v8, %v19077_v61  ;;  %v19525_v8 = vld [vmem:[%s19952_s4] ss:$0 sm:$0xff] }
 0x638   : > { %v20229_v18 = vcombine.low %v19070_v37, %v19083_v17  ;;  %v20230_v21 = vcombine.low %v19105_v19, %v19109_v43 }
 0x63d   : > { %14378 = vmatmul.mubr.bf16.gmra.mrb[24].mxu1 %v12998_v11  ;;  %v20231_v11 = vcombine.low %v19119_v57, %v19123_v35 }
 0x63e   : > { %14381 = vmatprep.mubr.bf16.mxu1 %v12999_v58 }
 0x645   : > { %14382 = vmatmul.mubr.bf16.gmra.mrb[28].mxu1 %v13000_v4 }
 0x646   : > { %14401 = vmatprep.mubr.bf16.mxu1 %v13041_v6 }
 0x64d   : > { %14402 = vmatmul.mubr.bf16.vlgmr.msra.gmra.mrb[0].mxu1 %v13042_v50 }
 0x64e   : > { %14405 = vmatprep.mubr.bf16.mxu1 %v20209_v46 }
 0x655   : > { %14406 = vmatmul.mubr.bf16.gmra.mrb[4].mxu1 %v20212_v29 }
 0x656   : > { %14409 = vmatprep.mubr.bf16.mxu1 %v20215_v49 }
 0x65d   : > { %14410 = vmatmul.mubr.bf16.gmra.mrb[8].mxu1 %v20217_v33 }
 0x65e   : > { %14413 = vmatprep.mubr.bf16.mxu1 %v20219_v30 }
 0x665   : > { %14414 = vmatmul.mubr.bf16.gmra.mrb[12].mxu1 %v20222_v7 }
 0x666   : > { %14417 = vmatprep.mubr.bf16.mxu1 %v20224_v56 }
 0x66d   : > { %14418 = vmatmul.mubr.bf16.gmra.mrb[16].mxu1 %v20227_v32 }
 0x66e   : > { %14421 = vmatprep.mubr.bf16.mxu1 %v20228_v25 }
 0x675   : > { %14422 = vmatmul.mubr.bf16.gmra.mrb[20].mxu1 %v20229_v18 }
 0x676   : > { %14425 = vmatprep.mubr.bf16.mxu1 %v13053_v13 }
 0x67d   : > { %14426 = vmatmul.mubr.bf16.gmra.mrb[24].mxu1 %v20230_v21 }
 0x67e   : > { %14429 = vmatprep.mubr.bf16.mxu1 %v20231_v11 }
 0x685   : > { %14430 = vmatmul.mubr.bf16.gmra.mrb[28].mxu1 %v13056_v36 }
 0x720   : > { %v14403_v37 = vpop.f32.mrb[0].mxu1 }
 0x721   : > { %v11623_v61 = vpop.f32.mrb[1].mxu1  ;;  %v19531_v60 = vadd.f32 %v14403_v37, %v19525_v8 }
 0x722   : > { %v19528_v13 = vadd.f32 %v19525_v8, %v11623_v61  ;;  %v14404_v17 = vpop.f32.mrb[2].mxu1 }
 0x723   : > { %v11626_v55 = vpop.f32.mrb[3].mxu1  ;;  %v19539_v57 = vadd.f32 %v14404_v17, %v19525_v8  ;;  %v11861_v1 = vmul.f32 %v19531_v60, %v19531_v60 }
 0x724   : > { %v19534_v19 = vadd.f32 %v19525_v8, %v11626_v55  ;;  %v11859_v43 = vmul.f32 %v19528_v13, %v19528_v13 }
 0x725   : > { %v11862_v27 = vmul.f32 %v19539_v57, %v19539_v57 }
 0x726   : > { %v11821_v35 = vadd.f32 %v19534_v19, %v19528_v13  ;;  %v11860_v36 = vmul.f32 %v19534_v19, %v19534_v19 }
 0x728   : > { %v11822_v0 = vadd.f32 %v11821_v35, %v19531_v60  ;;  %v11891_v12 = vadd.f32 %v11860_v36, %v11859_v43  ;;  %v14407_v24 = vpop.f32.mrb[4].mxu1 }
 0x729   : > { %v11639_v58 = vpop.f32.mrb[5].mxu1  ;;  %v19555_v48 = vadd.f32 %v14407_v24, %v19525_v8 }
 0x72a   : > { %v11892_v23 = vadd.f32 %v11891_v12, %v11861_v1  ;;  %v19551_v45 = vadd.f32 %v19525_v8, %v11639_v58  ;;  %v11823_v47 = vadd.f32 %v11822_v0, %v19539_v57  ;;  %v14408_v10 = vpop.f32.mrb[6].mxu1 }
 0x72b   : > { %v11642_v44 = vpop.f32.mrb[7].mxu1  ;;  %v19564_v4 = vadd.f32 %v14408_v10, %v19525_v8  ;;  %v11865_v6 = vmul.f32 %v19555_v48, %v19555_v48 }
 0x72c   : > { %v11824_v62 = vadd.f32 %v11823_v47, %v19551_v45  ;;  %v11863_v54 = vmul.f32 %v19551_v45, %v19551_v45  ;;  %v11893_v51 = vadd.f32 %v11892_v23, %v11862_v27  ;;  %v19561_v9 = vadd.f32 %v19525_v8, %v11642_v44 }
 0x72d   : > { %v11866_v34 = vmul.f32 %v19564_v4, %v19564_v4 }
 0x72e   : > { %v11894_v59 = vadd.f32 %v11893_v51, %v11863_v54  ;;  %v11825_v5 = vadd.f32 %v11824_v62, %v19561_v9  ;;  %v11864_v15 = vmul.f32 %v19561_v9, %v19561_v9 }
 0x730   : > { %v11826_v31 = vadd.f32 %v11825_v5, %v19555_v48  ;;  %v11895_v53 = vadd.f32 %v11894_v59, %v11864_v15  ;;  %v14411_v42 = vpop.f32.mrb[8].mxu1 }
 0x731   : > { %v11655_v28 = vpop.f32.mrb[9].mxu1  ;;  %v19579_v52 = vadd.f32 %v14411_v42, %v19525_v8 }
 0x732   : > { %v11896_v50 = vadd.f32 %v11895_v53, %v11865_v6  ;;  %v19575_v38 = vadd.f32 %v19525_v8, %v11655_v28  ;;  %v11827_v20 = vadd.f32 %v11826_v31, %v19564_v4  ;;  %v14412_v46 = vpop.f32.mrb[10].mxu1 }
 0x733   : > { %v11658_v39 = vpop.f32.mrb[11].mxu1  ;;  %v19588_v33 = vadd.f32 %v14412_v46, %v19525_v8  ;;  %v11869_v2 = vmul.f32 %v19579_v52, %v19579_v52 }
 0x734   : > { %v11828_v29 = vadd.f32 %v11827_v20, %v19575_v38  ;;  %v11867_v16 = vmul.f32 %v19575_v38, %v19575_v38  ;;  %v11897_v22 = vadd.f32 %v11896_v50, %v11866_v34  ;;  %v19585_v49 = vadd.f32 %v19525_v8, %v11658_v39 }
 0x735   : > { %v11870_v40 = vmul.f32 %v19588_v33, %v19588_v33 }
 0x736   : > { %v11898_v41 = vadd.f32 %v11897_v22, %v11867_v16  ;;  %v11829_v26 = vadd.f32 %v11828_v29, %v19585_v49  ;;  %v11868_v30 = vmul.f32 %v19585_v49, %v19585_v49 }
 0x738   : > { %v11830_v3 = vadd.f32 %v11829_v26, %v19579_v52  ;;  %v11899_v7 = vadd.f32 %v11898_v41, %v11868_v30  ;;  %v14415_v14 = vpop.f32.mrb[12].mxu1 }
 0x739   : > { %v11671_v56 = vpop.f32.mrb[13].mxu1  ;;  %v19603_v21 = vadd.f32 %v14415_v14, %v19525_v8 }
 0x73a   : > { %v11900_v63 = vadd.f32 %v11899_v7, %v11869_v2  ;;  %v19599_v32 = vadd.f32 %v19525_v8, %v11671_v56  ;;  %v11831_v25 = vadd.f32 %v11830_v3, %v19588_v33  ;;  %v14416_v18 = vpop.f32.mrb[14].mxu1 }
 0x73b   : > { %v11674_v11 = vpop.f32.mrb[15].mxu1  ;;  %v19612_v35 = vadd.f32 %v14416_v18, %v19525_v8  ;;  %v11873_v0 = vmul.f32 %v19603_v21, %v19603_v21 }
 0x73c   : > { %v11832_v37 = vadd.f32 %v11831_v25, %v19599_v32  ;;  %v11871_v61 = vmul.f32 %v19599_v32, %v19599_v32  ;;  %v11901_v17 = vadd.f32 %v11900_v63, %v11870_v40  ;;  %v19609_v55 = vadd.f32 %v19525_v8, %v11674_v11 }
 0x73d   : > { %v11874_v23 = vmul.f32 %v19612_v35, %v19612_v35 }
 0x73e   : > { %v11902_v43 = vadd.f32 %v11901_v17, %v11871_v61  ;;  %v11833_v36 = vadd.f32 %v11832_v37, %v19609_v55  ;;  %v11872_v1 = vmul.f32 %v19609_v55, %v19609_v55 }
 0x740   : > { %v11834_v12 = vadd.f32 %v11833_v36, %v19603_v21  ;;  %v11903_v24 = vadd.f32 %v11902_v43, %v11872_v1  ;;  %v14419_v58 = vpop.f32.mrb[16].mxu1 }
 0x741   : > { %v11687_v27 = vpop.f32.mrb[17].mxu1  ;;  %v19627_v54 = vadd.f32 %v14419_v58, %v19525_v8 }
 0x742   : > { %v11904_v47 = vadd.f32 %v11903_v24, %v11873_v0  ;;  %v19623_v10 = vadd.f32 %v19525_v8, %v11687_v27  ;;  %v11835_v44 = vadd.f32 %v11834_v12, %v19612_v35  ;;  %v14420_v62 = vpop.f32.mrb[18].mxu1 }
 0x743   : > { %v11690_v51 = vpop.f32.mrb[19].mxu1  ;;  %v19636_v53 = vadd.f32 %v14420_v62, %v19525_v8  ;;  %v11877_v34 = vmul.f32 %v19627_v54, %v19627_v54 }
 0x744   : > { %v11836_v59 = vadd.f32 %v11835_v44, %v19623_v10  ;;  %v11875_v5 = vmul.f32 %v19623_v10, %v19623_v10  ;;  %v11905_v15 = vadd.f32 %v11904_v47, %v11874_v23  ;;  %v19633_v6 = vadd.f32 %v19525_v8, %v11690_v51 }
 0x745   : > { %v11878_v29 = vmul.f32 %v19636_v53, %v19636_v53 }
 0x746   : > { %v11906_v31 = vadd.f32 %v11905_v15, %v11875_v5  ;;  %v11837_v42 = vadd.f32 %v11836_v59, %v19633_v6  ;;  %v11876_v28 = vmul.f32 %v19633_v6, %v19633_v6 }
 0x748   : > { %v11838_v50 = vadd.f32 %v11837_v42, %v19627_v54  ;;  %v11907_v20 = vadd.f32 %v11906_v31, %v11876_v28  ;;  %v14423_v46 = vpop.f32.mrb[20].mxu1 }
 0x749   : > { %v11703_v39 = vpop.f32.mrb[21].mxu1  ;;  %v19651_v30 = vadd.f32 %v14423_v46, %v19525_v8 }
 0x74a   : > { %v11908_v16 = vadd.f32 %v11907_v20, %v11877_v34  ;;  %v19647_v22 = vadd.f32 %v19525_v8, %v11703_v39  ;;  %v11839_v41 = vadd.f32 %v11838_v50, %v19636_v53  ;;  %v14424_v26 = vpop.f32.mrb[22].mxu1 }
 0x74b   : > { %v11706_v2 = vpop.f32.mrb[23].mxu1  ;;  %v19660_v63 = vadd.f32 %v14424_v26, %v19525_v8  ;;  %v11881_v11 = vmul.f32 %v19651_v30, %v19651_v30 }
 0x74c   : > { %v11840_v3 = vadd.f32 %v11839_v41, %v19647_v22  ;;  %v11879_v7 = vmul.f32 %v19647_v22, %v19647_v22  ;;  %v11909_v14 = vadd.f32 %v11908_v16, %v11878_v29  ;;  %v19657_v56 = vadd.f32 %v19525_v8, %v11706_v2 }
 0x74d   : > { %v11882_v36 = vmul.f32 %v19660_v63, %v19660_v63 }
 0x74e   : > { %v11910_v40 = vadd.f32 %v11909_v14, %v11879_v7  ;;  %v11841_v25 = vadd.f32 %v11840_v3, %v19657_v56  ;;  %v11880_v18 = vmul.f32 %v19657_v56, %v19657_v56 }
 0x750   : > { %v11842_v37 = vadd.f32 %v11841_v25, %v19651_v30  ;;  %v11911_v61 = vadd.f32 %v11910_v40, %v11880_v18  ;;  %v14427_v17 = vpop.f32.mrb[24].mxu1 }
 0x751   : > { %v11719_v43 = vpop.f32.mrb[25].mxu1  ;;  %v19675_v58 = vadd.f32 %v14427_v17, %v19525_v8 }
 0x752   : > { %v11912_v1 = vadd.f32 %v11911_v61, %v11881_v11  ;;  %v19671_v0 = vadd.f32 %v19525_v8, %v11719_v43  ;;  %v11843_v12 = vadd.f32 %v11842_v37, %v19660_v63  ;;  %v14428_v24 = vpop.f32.mrb[26].mxu1 }
 0x753   : > { %v11722_v27 = vpop.f32.mrb[27].mxu1  ;;  %v19684_v59 = vadd.f32 %v14428_v24, %v19525_v8  ;;  %v11885_v31 = vmul.f32 %v19675_v58, %v19675_v58 }
 0x754   : > { %v11844_v23 = vadd.f32 %v11843_v12, %v19671_v0  ;;  %v11883_v47 = vmul.f32 %v19671_v0, %v19671_v0  ;;  %v11913_v44 = vadd.f32 %v11912_v1, %v11882_v36  ;;  %v19681_v62 = vadd.f32 %v19525_v8, %v11722_v27 }
 0x755   : > { %v11886_v20 = vmul.f32 %v19684_v59, %v19684_v59 }
 0x756   : > { %v11914_v51 = vadd.f32 %v11913_v44, %v11883_v47  ;;  %v11845_v5 = vadd.f32 %v11844_v23, %v19681_v62  ;;  %v11884_v15 = vmul.f32 %v19681_v62, %v19681_v62 }
 0x758   : > { %v11846_v42 = vadd.f32 %v11845_v5, %v19675_v58  ;;  %v11915_v28 = vadd.f32 %v11914_v51, %v11884_v15  ;;  %v14431_v34 = vpop.f32.mrb[28].mxu1 }
 0x759   : > { %v11735_v50 = vpop.f32.mrb[29].mxu1  ;;  %v19699_v41 = vadd.f32 %v14431_v34, %v19525_v8 }
 0x75a   : > { %v11916_v46 = vadd.f32 %v11915_v28, %v11885_v31  ;;  %v19695_v39 = vadd.f32 %v19525_v8, %v11735_v50  ;;  %v11847_v29 = vadd.f32 %v11846_v42, %v19684_v59  ;;  %v14432_v16 = vpop.f32.mrb[30].mxu1 }
 0x75b   : > { %v11738_v26 = vpop.f32.mrb[31].mxu1  ;;  %v19708_v25 = vadd.f32 %v14432_v16, %v19525_v8  ;;  %v11889_v37 = vmul.f32 %v19699_v41, %v19699_v41 }
 0x75c   : > { %v11848_v2 = vadd.f32 %v11847_v29, %v19695_v39  ;;  %v11887_v3 = vmul.f32 %v19695_v39, %v19695_v39  ;;  %v11917_v7 = vadd.f32 %v11916_v46, %v11886_v20  ;;  %v19705_v14 = vadd.f32 %v19525_v8, %v11738_v26 }
 0x75d   : > { %v11890_v43 = vmul.f32 %v19708_v25, %v19708_v25 }
 0x75e   : > { %v11918_v40 = vadd.f32 %v11917_v7, %v11887_v3  ;;  %v11849_v18 = vadd.f32 %v11848_v2, %v19705_v14  ;;  %v11888_v11 = vmul.f32 %v19705_v14, %v19705_v14 }
 0x760   : > { %v11850_v61 = vadd.f32 %v11849_v18, %v19699_v41  ;;  %v11919_v17 = vadd.f32 %v11918_v40, %v11888_v11 }
 0x762   : > { %v11851_v36 = vadd.f32 %v11850_v61, %v19708_v25  ;;  %v11920_v1 = vadd.f32 %v11919_v17, %v11889_v37 }
 0x764   : > { %v11852_v12 = vrot.slane %v11851_v36, 4  ;;  %v11921_v8 = vadd.f32 %v11920_v1, %v11890_v43  ;;  %v15310_v1 = vld [vmem:[%s15501_s15 + $0xe8] sm:$0xff] }
 0x766   : > { %v11853_v24 = vadd.f32 %v11852_v12, %v11851_v36  ;;  %v11922_v27 = vrot.slane %v11921_v8, 4 }
 0x768   : > { %v11854_v23 = vrot.slane %v11853_v24, 2  ;;  %v11923_v47 = vadd.f32 %v11922_v27, %v11921_v8 }
 0x76a   : > { %v11855_v44 = vadd.f32 %v11854_v23, %v11853_v24  ;;  %v11924_v51 = vrot.slane %v11923_v47, 2 }
 0x76c   : > { %v11856_v5 = vrot.slane %v11855_v44, 1  ;;  %v11925_v15 = vadd.f32 %v11924_v51, %v11923_v47 }
 0x76e   : > { %v11857_v31 = vadd.f32 %v11856_v5, %v11855_v44  ;;  %v11926_v42 = vrot.slane %v11925_v15, 1 }
 0x770   : > { %v19719_v28 = vmul.f32 0.00390625, %v11857_v31  ;;  %v11927_v34 = vadd.f32 %v11926_v42, %v11925_v15 }
 0x772   : > { %v11928_v50 = vmul.f32 0.00390625, %v11927_v34  ;;  %v11929_v20 = vmul.f32 %v19719_v28, %v19719_v28  ;;  %v11960_v46 = vsub.f32 %v19705_v14, %v19719_v28  ;;  %v11940_v16 = vsub.f32 %v19585_v49, %v19719_v28 }
 0x773   : > { %v11942_v26 = vsub.f32 %v19588_v33, %v19719_v28  ;;  %v11943_v3 = vsub.f32 %v19599_v32, %v19719_v28  ;;  %v11944_v7 = vsub.f32 %v19609_v55, %v19719_v28  ;;  %v11945_v40 = vsub.f32 %v19603_v21, %v19719_v28 }
 0x774   : > { %v11930_v29 = vsub.f32 %v11928_v50, %v11929_v20  ;;  %v11946_v14 = vsub.f32 %v19612_v35, %v19719_v28  ;;  %v11947_v18 = vsub.f32 %v19623_v10, %v19719_v28  ;;  %v11948_v49 = vsub.f32 %v19633_v6, %v19719_v28 }
 0x775   : > { %v11949_v33 = vsub.f32 %v19627_v54, %v19719_v28  ;;  %v11950_v32 = vsub.f32 %v19636_v53, %v19719_v28  ;;  %v11951_v21 = vsub.f32 %v19647_v22, %v19719_v28  ;;  %v11952_v55 = vsub.f32 %v19657_v56, %v19719_v28 }
 0x776   : > { %v11963_v2 = vadd.f32 1e-05, %v11930_v29  ;;  %v11953_v35 = vsub.f32 %v19651_v30, %v19719_v28  ;;  %v11954_v10 = vsub.f32 %v19660_v63, %v19719_v28  ;;  %v11955_v54 = vsub.f32 %v19671_v0, %v19719_v28 }
 0x777   : > { %v11956_v6 = vsub.f32 %v19681_v62, %v19719_v28  ;;  %v11957_v53 = vsub.f32 %v19675_v58, %v19719_v28  ;;  %v11958_v22 = vsub.f32 %v19684_v59, %v19719_v28  ;;  %v11959_v56 = vsub.f32 %v19695_v39, %v19719_v28 }
 0x778   : > { %15228 = vrsqrt.f32 %v11963_v2  ;;  %v11961_v30 = vsub.f32 %v19699_v41, %v19719_v28  ;;  %v11962_v63 = vsub.f32 %v19708_v25, %v19719_v28  ;;  %v11931_v0 = vsub.f32 %v19528_v13, %v19719_v28 }
 0x779   : > { %v11932_v62 = vsub.f32 %v19534_v19, %v19719_v28  ;;  %v11933_v58 = vsub.f32 %v19531_v60, %v19719_v28  ;;  %v11934_v59 = vsub.f32 %v19539_v57, %v19719_v28  ;;  %v11935_v39 = vsub.f32 %v19551_v45, %v19719_v28 }
 0x77a   : > { %v11936_v41 = vsub.f32 %v19561_v9, %v19719_v28  ;;  %v11937_v13 = vsub.f32 %v19555_v48, %v19719_v28  ;;  %v11938_v19 = vsub.f32 %v19564_v4, %v19719_v28  ;;  %v11939_v60 = vsub.f32 %v19575_v38, %v19719_v28 }
 0x77b   : > { %v11941_v57 = vsub.f32 %v19579_v52, %v19719_v28 }
 0x782   : > { %v15229_v25 = vpop.eup %15228 }
 0x783   : > { %v11994_v11 = vmul.f32 %v15229_v25, %v11960_v46  ;;  %v11965_v37 = vmul.f32 %v15229_v25, %v11931_v0  ;;  %v11966_v61 = vmul.f32 %v15229_v25, %v11932_v62  ;;  %v11967_v45 = vmul.f32 %v15229_v25, %v11933_v58  ;;  %v15321_v62 = vld [vmem:[%s15501_s15 + $0x50] sm:$0xff] }
 0x784   : > { %v11968_v17 = vmul.f32 %v15229_v25, %v11934_v59  ;;  %v11969_v43 = vmul.f32 %v15229_v25, %v11935_v39  ;;  %v11970_v9 = vmul.f32 %v15229_v25, %v11936_v41  ;;  %v11971_v36 = vmul.f32 %v15229_v25, %v11937_v13  ;;  %v15322_v59 = vld [vmem:[%s15501_s15 + $0x58] sm:$0xff]  ;;  %v15323_v41 = vld [vmem:[%s15501_s15 + $0x60] sm:$0xff]  ;;  %v15324_v13 = vld [vmem:[%s15501_s15 + $0x68] sm:$0xff] }
 0x785   : > { %v12026_v12 = vadd.f32 %v15310_v1, %v11994_v11  ;;  %v11972_v48 = vmul.f32 %v15229_v25, %v11938_v19  ;;  %v11973_v8 = vmul.f32 %v15229_v25, %v11939_v60  ;;  %v11974_v24 = vmul.f32 %v15229_v25, %v11940_v16  ;;  %v15325_v60 = vld [vmem:[%s15501_s15 + $0x70] sm:$0xff]  ;;  %v15326_v11 = vld [vmem:[%s15501_s15 + $0x78] sm:$0xff] }
 0x786   : > { %v11975_v4 = vmul.f32 %v15229_v25, %v11941_v57  ;;  %v11976_v27 = vmul.f32 %v15229_v25, %v11942_v26  ;;  %v11977_v23 = vmul.f32 %v15229_v25, %v11943_v3  ;;  %v11978_v38 = vmul.f32 %v15229_v25, %v11944_v7  ;;  %v15311_v3 = vld [vmem:[%s15501_s15] sm:$0xff]  ;;  %v15330_v1 = vld [vmem:[%s15501_s15 + $0x98] sm:$0xff] }
 0x787   : > { %12058 = vst [vmem:[%s19791_s7 + $0xe8] sm:$0xff] %v12026_v12  ;;  %v11979_v52 = vmul.f32 %v15229_v25, %v11945_v40  ;;  %v11980_v47 = vmul.f32 %v15229_v25, %v11946_v14  ;;  %v11981_v44 = vmul.f32 %v15229_v25, %v11947_v18  ;;  %v11982_v51 = vmul.f32 %v15229_v25, %v11948_v49  ;;  %v15312_v40 = vld [vmem:[%s15501_s15 + $0x8] sm:$0xff]  ;;  %v15313_v18 = vld [vmem:[%s15501_s15 + $0x10] sm:$0xff] }
 0x788   : > { %v11983_v5 = vmul.f32 %v15229_v25, %v11949_v33  ;;  %v19794_v15 = vmul.f32 %v15229_v25, %v11950_v32  ;;  %v19796_v31 = vmul.f32 %v15229_v25, %v11951_v21  ;;  %v19798_v42 = vmul.f32 %v15229_v25, %v11952_v55  ;;  %v15314_v33 = vld [vmem:[%s15501_s15 + $0x18] sm:$0xff]  ;;  %v15315_v21 = vld [vmem:[%s15501_s15 + $0x20] sm:$0xff] }
 0x789   : > { %v19800_v28 = vmul.f32 %v15229_v25, %v11953_v35  ;;  %v19802_v34 = vmul.f32 %v15229_v25, %v11954_v10  ;;  %v19804_v50 = vmul.f32 %v15229_v25, %v11955_v54  ;;  %v19806_v20 = vmul.f32 %v15229_v25, %v11956_v6  ;;  %v15316_v35 = vld [vmem:[%s15501_s15 + $0x28] sm:$0xff]  ;;  %v15317_v54 = vld [vmem:[%s15501_s15 + $0x30] sm:$0xff] }
 0x78a   : > { %v19808_v46 = vmul.f32 %v15229_v25, %v11957_v53  ;;  %v19810_v29 = vmul.f32 %v15229_v25, %v11958_v22  ;;  %v19812_v16 = vmul.f32 %v15229_v25, %v11959_v56  ;;  %v19814_v26 = vmul.f32 %v15229_v25, %v11961_v30  ;;  %v15318_v53 = vld [vmem:[%s15501_s15 + $0x38] sm:$0xff]  ;;  %v15319_v56 = vld [vmem:[%s15501_s15 + $0x40] sm:$0xff] }
 0x78b   : > { %v19816_v2 = vmul.f32 %v15229_v25, %v11962_v63  ;;  %v11997_v7 = vadd.f32 %v15311_v3, %v11965_v37  ;;  %v11998_v14 = vadd.f32 %v15312_v40, %v11966_v61  ;;  %v11999_v49 = vadd.f32 %v15313_v18, %v11967_v45  ;;  %v15320_v63 = vld [vmem:[%s15501_s15 + $0x48] sm:$0xff]  ;;  %v15327_v61 = vld [vmem:[%s15501_s15 + $0x80] sm:$0xff]  ;;  %v15341_v3 = vld [vmem:[%s15501_s15 + $0xf8] sm:$0xff] }
 0x78c   : > { %v12000_v32 = vadd.f32 %v15314_v33, %v11968_v17  ;;  %v12001_v55 = vadd.f32 %v15315_v21, %v11969_v43  ;;  %v12002_v10 = vadd.f32 %v15316_v35, %v11970_v9  ;;  %v12003_v6 = vadd.f32 %v15317_v54, %v11971_v36  ;;  %v15328_v17 = vld [vmem:[%s15501_s15 + $0x88] sm:$0xff]  ;;  %v15329_v9 = vld [vmem:[%s15501_s15 + $0x90] sm:$0xff] }
 0x78d   : > { %v12004_v22 = vadd.f32 %v15318_v53, %v11972_v48  ;;  %v12005_v30 = vadd.f32 %v15319_v56, %v11973_v8  ;;  %v12006_v0 = vadd.f32 %v15320_v63, %v11974_v24  ;;  %v12007_v58 = vadd.f32 %v15321_v62, %v11975_v4  ;;  %12029 = vst [vmem:[%s19791_s7] sm:$0xff] %v11997_v7  ;;  %v15331_v48 = vld [vmem:[%s15501_s15 + $0xa0] sm:$0xff]  ;;  %v15332_v24 = vld [vmem:[%s15501_s15 + $0xa8] sm:$0xff] }
 0x78e   : > { %12030 = vst [vmem:[%s19791_s7 + $0x8] sm:$0xff] %v11998_v14  ;;  %12031 = vst [vmem:[%s19791_s7 + $0x10] sm:$0xff] %v11999_v49  ;;  %v12008_v39 = vadd.f32 %v15322_v59, %v11976_v27  ;;  %v12009_v25 = vadd.f32 %v15323_v41, %v11977_v23  ;;  %v12010_v19 = vadd.f32 %v15324_v13, %v11978_v38  ;;  %v15333_v27 = vld [vmem:[%s15501_s15 + $0xb0] sm:$0xff]  ;;  %v15334_v38 = vld [vmem:[%s15501_s15 + $0xb8] sm:$0xff] }
 0x78f   : > { %v12011_v57 = vadd.f32 %v15325_v60, %v11979_v52  ;;  %12032 = vst [vmem:[%s19791_s7 + $0x18] sm:$0xff] %v12000_v32  ;;  %12033 = vst [vmem:[%s19791_s7 + $0x20] sm:$0xff] %v12001_v55  ;;  %v12012_v37 = vadd.f32 %v15326_v11, %v11980_v47  ;;  %v12013_v45 = vadd.f32 %v15327_v61, %v11981_v44  ;;  %v15335_v47 = vld [vmem:[%s15501_s15 + $0xc0] sm:$0xff] }
 0x790   : > { %12034 = vst [vmem:[%s19791_s7 + $0x28] sm:$0xff] %v12002_v10  ;;  %12035 = vst [vmem:[%s19791_s7 + $0x30] sm:$0xff] %v12003_v6  ;;  %v12014_v43 = vadd.f32 %v15328_v17, %v11982_v51  ;;  %v12015_v36 = vadd.f32 %v15329_v9, %v11983_v5  ;;  %v12016_v12 = vadd.f32 %v15330_v1, %v19794_v15  ;;  %v15336_v51 = vld [vmem:[%s15501_s15 + $0xc8] sm:$0xff]  ;;  %v15337_v15 = vld [vmem:[%s15501_s15 + $0xd0] sm:$0xff] }
 0x791   : > { %12036 = vst [vmem:[%s19791_s7 + $0x38] sm:$0xff] %v12004_v22  ;;  %12037 = vst [vmem:[%s19791_s7 + $0x40] sm:$0xff] %v12005_v30  ;;  %v12017_v8 = vadd.f32 %v15331_v48, %v19796_v31  ;;  %v12018_v4 = vadd.f32 %v15332_v24, %v19798_v42  ;;  %v12019_v23 = vadd.f32 %v15333_v27, %v19800_v28  ;;  %v15338_v42 = vld [vmem:[%s15501_s15 + $0xd8] sm:$0xff] }
 0x792   : > { %12038 = vst [vmem:[%s19791_s7 + $0x48] sm:$0xff] %v12006_v0  ;;  %12039 = vst [vmem:[%s19791_s7 + $0x50] sm:$0xff] %v12007_v58  ;;  %v12020_v52 = vadd.f32 %v15334_v38, %v19802_v34  ;;  %v12021_v44 = vadd.f32 %v15335_v47, %v19804_v50  ;;  %v12022_v5 = vadd.f32 %v15336_v51, %v19806_v20  ;;  %v15339_v34 = vld [vmem:[%s15501_s15 + $0xe0] sm:$0xff]  ;;  %v15340_v20 = vld [vmem:[%s15501_s15 + $0xf0] sm:$0xff]  ;;  %s15342_s15 = scalar_lea.vmem %s19883_s9, 4096 }
 0x793   : > { %12040 = vst [vmem:[%s19791_s7 + $0x58] sm:$0xff] %v12008_v39  ;;  %12041 = vst [vmem:[%s19791_s7 + $0x60] sm:$0xff] %v12009_v25  ;;  %v12023_v31 = vadd.f32 %v15337_v15, %v19808_v46  ;;  %v12024_v28 = vadd.f32 %v15338_v42, %v19810_v29  ;;  %v12025_v50 = vadd.f32 %v15339_v34, %v19812_v16  ;;  %p15343_p11 = scmp.ne.s32.totalorder %s19883_s9, %s15342_s15  ;;  %p15350_p1 = scmp.lt.s32.totalorder %s15348_s16, %s15342_s15 }
 0x794   : > { %12042 = vst [vmem:[%s19791_s7 + $0x68] sm:$0xff] %v12010_v19  ;;  %12043 = vst [vmem:[%s19791_s7 + $0x70] sm:$0xff] %v12011_v57  ;;  %v12027_v46 = vadd.f32 %v15340_v20, %v19814_v26  ;;  %v12028_v7 = vadd.f32 %v15341_v3, %v19816_v2 }
 0x795   : > { %12044 = vst [vmem:[%s19791_s7 + $0x78] sm:$0xff] %v12012_v37  ;;  %12045 = vst [vmem:[%s19791_s7 + $0x80] sm:$0xff] %v12013_v45  ;;  %p15344_p12 = pnand %p15343_p11, %p15477_p5  ;;  %p15351_p2 = por %p15350_p1, %p15349_p0 }
 0x796   : > { %12046 = vst [vmem:[%s19791_s7 + $0x88] sm:$0xff] %v12014_v43  ;;  %12047 = vst [vmem:[%s19791_s7 + $0x90] sm:$0xff] %v12015_v36 }
 0x797   : > { %12048 = vst [vmem:[%s19791_s7 + $0x98] sm:$0xff] %v12016_v12  ;;  %12049 = vst [vmem:[%s19791_s7 + $0xa0] sm:$0xff] %v12017_v8  ;;  %p15345_p13 = pneg %p15344_p12 }
 0x798   : > { %12050 = vst [vmem:[%s19791_s7 + $0xa8] sm:$0xff] %v12018_v4  ;;  %12051 = vst [vmem:[%s19791_s7 + $0xb0] sm:$0xff] %v12019_v23 }
 0x799   : > { %12052 = vst [vmem:[%s19791_s7 + $0xb8] sm:$0xff] %v12020_v52  ;;  %12053 = vst [vmem:[%s19791_s7 + $0xc0] sm:$0xff] %v12021_v44  ;;  %p15352_p3 = pnand %p15351_p2, %p15345_p13 }
 0x79a   : > { %12054 = vst [vmem:[%s19791_s7 + $0xc8] sm:$0xff] %v12022_v5  ;;  %12055 = vst [vmem:[%s19791_s7 + $0xd0] sm:$0xff] %v12023_v31 }
 0x79b   : > { %12056 = vst [vmem:[%s19791_s7 + $0xd8] sm:$0xff] %v12024_v28  ;;  %12057 = vst [vmem:[%s19791_s7 + $0xe0] sm:$0xff] %v12025_v50 }
 0x79c   : > { %12059 = vst [vmem:[%s19791_s7 + $0xf0] sm:$0xff] %v12027_v46  ;;  %12060 = vst [vmem:[%s19791_s7 + $0xf8] sm:$0xff] %v12028_v7 }
 0x79d   : > { %15355 = shalt.err (!%p15352_p3)
}
 0x79e   : > { %s15356_s17 = scalar_lea.hbm %s19879_s12, 4096  ;;  %s15360_s26 = scalar_lea.hbm %s19953_s5, 8192 }
 0x79f   : > { %p15357_p4 = scmp.ne.s32.totalorder %s19879_s12, %s15356_s17  ;;  %p15361_p9 = scmp.lt.u32.totalorder %s19879_s12, %s19953_s5 }
 0x7a0   : > { %p15362_p10 = scmp.lt.u32.totalorder %s15360_s26, %s15356_s17  ;;  %p15364_p12 = scmp.lt.u32.totalorder %s15356_s17, %s19879_s12 }
 0x7a1   : > { %p15358_p7 = pnand %p15357_p4, %p15477_p5 }
 0x7a2   : > { %p15363_p11 = por %p15362_p10, %p15361_p9 }
 0x7a3   : > { %p15359_p8 = pneg %p15358_p7 }
 0x7a4   : > { %p15365_p13 = por %p15364_p12, %p15363_p11 }
 0x7a6   : > { %p15366_p0 = pnand %p15365_p13, %p15359_p8 }
 0x7a8   : > { %15369 = shalt.err (!%p15366_p0)
}
 0x7a9   : > { %s15407_s7 = smov 128   ;;  %s15408_s8 = smov 8  }
 0x7aa   : > { %14945 = dma.vmem_to_hbm [thread:$0]  (%p15477_p5), %s19883_s9, 4096, %s19879_s12, %s19907_s22, %s15407_s7, %s15407_s7, %s15408_s8  }
 0x7ab PF: > { %p14951_p1 = scmp.ge.s32.totalorder %s15404_s21, 2  ;;  %s12090_s10 = sand.u32 1, %s15392_s18  }
 0x7ac   : > { %s12091_s11 = scalar_lea.sflag [#allocation4], %s12090_s10 }
 0x7ad   : > { %p14948_p2 = pnand %p14951_p1, %p15481_p6 }
 0x7af   : > { %15387 = dma.done.wait (!%p14948_p2), %s12091_s11, 4096  }
 0x7b0   : > { %15389 = vsyncadd (!%p14948_p2), %s12091_s11, 4294963200  ;;  %p15_p3 = scmp.ge.s32.totalorder %s15464_s24, 4   ;;  %s20232_s18 = smov %s15396_s19 }
 0x7b1   : > { %s20233_s19 = smov %s15400_s20  ;;  %s20234_s20 = smov %s15475_s27 }
 0x7b2   : > { %s20235_s21 = smov %s15464_s24  ;;  %17 = sbr.rel (!%p15_p3) target bundleno = 3 (0x3), region = 94 }
 0x7b9   :  { %12096 = vsyncpa [#allocation4], 1 }
 0x7ba   :  { %12098 = vsyncpa [#allocation4 + $0x1], 1 }

</bundles_post_ra>
